<compile_context>
chip_gen: v6e
topology: v6e:2x2x1
jax: 0.10.0
libtpu: 0.0.40
codegen_flags: <defaults>
</compile_context>

<pallas_src>
import functools

import jax
import jax.numpy as jnp
from jax.experimental import pallas as pl
from jax.experimental.pallas import tpu as pltpu

_HIGHEST = jax.lax.Precision.HIGHEST


# ----------------------------- Pallas kernel ------------------------------- #
def _dino_decoder_kernel(inp_ref, wf_ref, ac_ref, bias_ref, b_ref, wo_ref,
                         bo_ref, o_ref, *, n_layers, hidden_c):
    """Feature-major MFN decoder.

    inp_ref  : (coord_dim + code_dim, TN)       [pos^T ; code^T]
    wf_ref   : ((L+1)*H, coord_dim + code_dim)  filter freqs, zero on code rows
    ac_ref   : ((L+1)*H, coord_dim + code_dim)  code mats, zero on coord rows
    bias_ref : ((L+1)*H, 1)
    b_ref    : (L, H, H)    transposed chain weights (B_i^T)
    wo_ref   : (state_dim, H)
    bo_ref   : (state_dim, 1)
    o_ref    : (state_dim, TN)
    """
    inp = inp_ref[...]                                         # (K_in, TN)

    # All-layer filter phases: one small-K MXU pass, then one lane-dense sin.
    filt_all = jnp.sin(
        jnp.dot(wf_ref[...], inp, precision=_HIGHEST,
                preferred_element_type=jnp.float32))           # ((L+1)H, TN)

    # All-layer code modulation: one MXU matmul + lane-broadcast bias.
    cmod_all = (jnp.dot(ac_ref[...], inp, precision=_HIGHEST,
                        preferred_element_type=jnp.float32)
                + bias_ref[...])                               # ((L+1)H, TN)

    # Layer 0.  Row slices below start at multiples of 32 -> sublane-aligned.
    out = filt_all[:hidden_c, :] * cmod_all[:hidden_c, :]      # (H, TN)

    # Layers 1..L: filt_i * (B_{i-1}^T @ out + cmod_i), all lane-dense along N.
    for i in range(1, n_layers + 1):
        lo = i * hidden_c
        mod = (jnp.dot(b_ref[i - 1], out, precision=_HIGHEST,
                       preferred_element_type=jnp.float32)
               + cmod_all[lo:lo + hidden_c, :])
        out = filt_all[lo:lo + hidden_c, :] * mod

    # Output linear; lane-dense (state_dim, TN) store.
    o_ref[...] = (jnp.dot(wo_ref[...], out, precision=_HIGHEST,
                          preferred_element_type=jnp.float32)
                  + bo_ref[...]).astype(o_ref.dtype)


# ------------------------------ tile policy --------------------------------- #
def _device_kind():
    try:
        return jax.devices()[0].device_kind.lower()
    except Exception:
        return ""


def _round_up(x, m):
    return ((x + m - 1) // m) * m


def _pick_tile_n(n, *, two_tc, max_tile):
    # 2-TC chips (v7x): only split into >=2 "parallel" steps once each TC has
    # at least ~1024 rows of work; otherwise the extra step is pure overhead.
    if two_tc and n >= 2048:
        return min(max_tile, _round_up(pl.cdiv(n, 2), 128))
    # single-TC chips (v5e/v6e) or small N: one big step (step-overhead bound).
    return max(128, min(max_tile, _round_up(n, 128)))


# ------------------------- one-time weight layout --------------------------- #
def prepare_params(params):
    """Hoisted, one-time weight layout prep (feature-major + zero-padding)."""
    wf, a, b, bias, wo, bo = (params["wf"], params["a"], params["b"],
                              params["bias"], params["wo"], params["bo"])
    n_l1, coord_dim, hidden_c = wf.shape
    code_dim = a.shape[1]
    n_layers = n_l1 - 1
    state_dim = wo.shape[-1]
    lh = n_l1 * hidden_c
    f32 = jnp.float32

    # Feature-major concatenations: rows = (L+1)*H output features.
    wf_t = jnp.transpose(wf, (0, 2, 1)).reshape(lh, coord_dim).astype(f32)
    a_t = jnp.transpose(a, (0, 2, 1)).reshape(lh, code_dim).astype(f32)
    # Zero-pad each over the other input's rows so both matmuls consume the
    # single stacked (coord+code, TN) input block with no in-kernel slicing.
    wf_pad = jnp.concatenate([wf_t, jnp.zeros((lh, code_dim), f32)], axis=1)
    a_pad = jnp.concatenate([jnp.zeros((lh, coord_dim), f32), a_t], axis=1)

    return {
        "wf_pad": wf_pad,                                   # (lh, K_in)
        "a_pad": a_pad,                                     # (lh, K_in)
        "bias_t": bias.reshape(lh, 1).astype(f32),          # (lh, 1)
        "b_t": jnp.transpose(b, (0, 2, 1)).astype(f32),     # (L, H, H)
        "wo_t": wo.T.astype(f32),                           # (state, H)
        "bo_t": bo.reshape(state_dim, 1).astype(f32),       # (state, 1)
        "dims": (coord_dim, code_dim, hidden_c, n_layers, state_dim),
    }


# --------------------------------- wrapper ----------------------------------- #
def dino_physics_engine(pos, recent_pos, prepared, *, tile_n=None):
    """DINo decoder hot path in a single Pallas kernel.  `prepared` comes from
    prepare_params() (call once per parameter set, not per forward)."""
    coord_dim, code_dim, hidden_c, n_layers, state_dim = prepared["dims"]
    N = pos.shape[0]
    k_in = coord_dim + code_dim
    lh = (n_layers + 1) * hidden_c

    kind = _device_kind()
    two_tc = "7" in kind                        # v7x: 2 TensorCores / chip
    max_tile = 4096 if "v5" in kind else 8192   # v5e: tighter VMEM budget
    if tile_n is None:
        tile_n = _pick_tile_n(N, two_tc=two_tc, max_tile=max_tile)

    # Per-call glue (layout plumbing only): feature-major input, pad row axis.
    inp_t = jnp.concatenate(
        [pos.astype(jnp.float32).T, recent_pos.astype(jnp.float32).T], axis=0)
    n_pad = (-N) % tile_n
    if n_pad:
        inp_t = jnp.pad(inp_t, ((0, 0), (0, n_pad)))
    n_total = N + n_pad
    grid = (n_total // tile_n,)

    full = lambda *shape: pl.BlockSpec(shape, lambda i: (0,) * len(shape))

    out_t = pl.pallas_call(
        functools.partial(_dino_decoder_kernel, n_layers=n_layers,
                          hidden_c=hidden_c),
        out_shape=jax.ShapeDtypeStruct((state_dim, n_total), jnp.float32),
        grid_spec=pltpu.PrefetchScalarGridSpec(
            num_scalar_prefetch=0,
            grid=grid,
            in_specs=[
                pl.BlockSpec((k_in, tile_n), lambda i: (0, i)),  # [pos;code]^T
                full(lh, k_in),                                  # wf_pad
                full(lh, k_in),                                  # a_pad
                full(lh, 1),                                     # bias_t
                full(n_layers, hidden_c, hidden_c),              # b_t
                full(state_dim, hidden_c),                       # wo_t
                full(state_dim, 1),                              # bo_t
            ],
            out_specs=pl.BlockSpec((state_dim, tile_n), lambda i: (0, i)),
        ),
        compiler_params=pltpu.CompilerParams(
            dimension_semantics=("parallel",),
            vmem_limit_bytes=32 * 1024 * 1024),
    )(inp_t, prepared["wf_pad"], prepared["a_pad"], prepared["bias_t"],
      prepared["b_t"], prepared["wo_t"], prepared["bo_t"])

    return out_t[:, :N].T                       # back to (N, state_dim)


# --------------------------- reference (pure JAX) --------------------------- #
def dino_physics_engine_ref(pos, recent_pos, params):
    wf, a, b, bias, wo, bo = (params["wf"], params["a"], params["b"],
                              params["bias"], params["wo"], params["bo"])
    n_layers = b.shape[0]
    dot = functools.partial(jnp.dot, precision=_HIGHEST)
    out = jnp.sin(dot(pos, wf[0])) * (dot(recent_pos, a[0]) + bias[0][None, :])
    for i in range(1, n_layers + 1):
        out = jnp.sin(dot(pos, wf[i])) * (dot(out, b[i - 1])
                                          + dot(recent_pos, a[i])
                                          + bias[i][None, :])
    return dot(out, wo) + bo


# ------------------------------ param init --------------------------------- #
def init_params(key, *, coord_dim, code_dim, hidden_c, n_layers, state_dim,
                input_scale=64.0):
    ks = jax.random.split(key, 6)
    freq_scale = input_scale / jnp.sqrt(n_layers + 1.0)
    wf = jax.random.normal(ks[0], (n_layers + 1, coord_dim, hidden_c),
                           jnp.float32) * freq_scale
    a = jax.random.normal(ks[1], (n_layers + 1, code_dim, hidden_c),
                          jnp.float32) / jnp.sqrt(code_dim * 1.0)
    b = jax.random.normal(ks[2], (n_layers, hidden_c, hidden_c),
                          jnp.float32) / jnp.sqrt(hidden_c * 1.0)
    bias = jax.random.normal(ks[3], (n_layers + 1, hidden_c), jnp.float32) * 0.01
    wo = jax.random.normal(ks[4], (hidden_c, state_dim),
                           jnp.float32) / jnp.sqrt(hidden_c * 1.0)
    bo = jax.random.normal(ks[5], (1, state_dim), jnp.float32) * 0.01
    return {"wf": wf, "a": a, "b": b, "bias": bias, "wo": wo, "bo": bo}


# ---------------------------------- main ------------------------------------ #
if __name__ == "__main__":
    # PhysicsEngine(device, state_dim=2, code_dim=10, hidden_c_enc=32,
    #               n_layers=3, coord_dim=2); window_size=5 -> code_dim = 5*2.
    state_dim, code_dim, hidden_c, n_layers, coord_dim = 2, 10, 32, 3, 2
    N = 256  # number of nodes / query coordinates

    key = jax.random.PRNGKey(0)
    k_pos, k_rec, k_par = jax.random.split(key, 3)
    pos = jax.random.uniform(k_pos, (N, coord_dim), jnp.float32)        # data.pos
    recent_pos = jax.random.uniform(k_rec, (N, code_dim), jnp.float32)  # data.recent_pos

    params = init_params(k_par, coord_dim=coord_dim, code_dim=code_dim,
                         hidden_c=hidden_c, n_layers=n_layers,
                         state_dim=state_dim)
    prepared = prepare_params(params)   # one-time weight layout prep (hoisted)

    out = dino_physics_engine(pos, recent_pos, prepared)
    out = jax.block_until_ready(out)

    ref = dino_physics_engine_ref(pos, recent_pos, params)
    assert out.shape == (N, state_dim)
    assert jnp.allclose(out, ref, atol=2e-4, rtol=2e-4), "mismatch vs JAX reference"

    print("KERNEL_OK")
</pallas_src>

<mosaic_0001>
module attributes {stable_mosaic.version = 11 : i64} {
  func.func @_dino_decoder_kernel(%arg0: i32, %arg1: memref<12x256xf32, #tpu.memory_space<vmem>>, %arg2: memref<128x12xf32, #tpu.memory_space<vmem>>, %arg3: memref<128x12xf32, #tpu.memory_space<vmem>>, %arg4: memref<128x1xf32, #tpu.memory_space<vmem>>, %arg5: memref<3x32x32xf32, #tpu.memory_space<vmem>>, %arg6: memref<2x32xf32, #tpu.memory_space<vmem>>, %arg7: memref<2x1xf32, #tpu.memory_space<vmem>>, %arg8: memref<2x256xf32, #tpu.memory_space<vmem>>) attributes {dimension_semantics = [#tpu.dimension_semantics<parallel>], iteration_bounds = array<i64: 1>, scalar_prefetch = 0 : i64, scratch_operands = 0 : i64, tpu.core_type = #tpu.core_type<tc>, window_params = [{transform_indices = @transform_0, window_bounds = array<i64: 12, 256>}, {pipeline_mode = #tpu.pipeline_mode<synchronous>, transform_indices = @transform_1, window_bounds = array<i64: 128, 12>}, {pipeline_mode = #tpu.pipeline_mode<synchronous>, transform_indices = @transform_2, window_bounds = array<i64: 128, 12>}, {pipeline_mode = #tpu.pipeline_mode<synchronous>, transform_indices = @transform_3, window_bounds = array<i64: 128, 1>}, {pipeline_mode = #tpu.pipeline_mode<synchronous>, transform_indices = @transform_4, window_bounds = array<i64: 3, 32, 32>}, {pipeline_mode = #tpu.pipeline_mode<synchronous>, transform_indices = @transform_5, window_bounds = array<i64: 2, 32>}, {pipeline_mode = #tpu.pipeline_mode<synchronous>, transform_indices = @transform_6, window_bounds = array<i64: 2, 1>}, {transform_indices = @transform_7, window_bounds = array<i64: 2, 256>}]} {
    %c0 = arith.constant 0 : index
    %c0_0 = arith.constant 0 : index
    %0 = vector.load %arg1[%c0, %c0_0] : memref<12x256xf32, #tpu.memory_space<vmem>>, vector<12x256xf32>
    %c0_1 = arith.constant 0 : index
    %c0_2 = arith.constant 0 : index
    %1 = vector.load %arg2[%c0_1, %c0_2] : memref<128x12xf32, #tpu.memory_space<vmem>>, vector<128x12xf32>
    %cst = arith.constant dense<0.000000e+00> : vector<128x256xf32>
    %2 = tpu.matmul %1, %0, %cst {dimension_numbers = #tpu.dot_dimension_numbers<[1], [0], [0], [1], [0, 0, 1, 1], [], []>, precision = #tpu.contract_precision<fp32>} : vector<128x12xf32>, vector<12x256xf32>, vector<128x256xf32> -> vector<128x256xf32>
    %3 = math.sin %2 : vector<128x256xf32>
    %c0_3 = arith.constant 0 : index
    %c0_4 = arith.constant 0 : index
    %4 = vector.load %arg3[%c0_3, %c0_4] : memref<128x12xf32, #tpu.memory_space<vmem>>, vector<128x12xf32>
    %cst_5 = arith.constant dense<0.000000e+00> : vector<128x256xf32>
    %5 = tpu.matmul %4, %0, %cst_5 {dimension_numbers = #tpu.dot_dimension_numbers<[1], [0], [0], [1], [0, 0, 1, 1], [], []>, precision = #tpu.contract_precision<fp32>} : vector<128x12xf32>, vector<12x256xf32>, vector<128x256xf32> -> vector<128x256xf32>
    %c0_6 = arith.constant 0 : index
    %c0_7 = arith.constant 0 : index
    %6 = vector.load %arg4[%c0_6, %c0_7] : memref<128x1xf32, #tpu.memory_space<vmem>>, vector<128x1xf32>
    %7 = vector.broadcast %6 : vector<128x1xf32> to vector<128x256xf32>
    %8 = arith.addf %5, %7 : vector<128x256xf32>
    %9 = vector.extract_strided_slice %3 {offsets = [0, 0], sizes = [32, 256], strides = [1, 1]} : vector<128x256xf32> to vector<32x256xf32>
    %10 = vector.extract_strided_slice %8 {offsets = [0, 0], sizes = [32, 256], strides = [1, 1]} : vector<128x256xf32> to vector<32x256xf32>
    %11 = arith.mulf %9, %10 : vector<32x256xf32>
    %c0_8 = arith.constant 0 : index
    %c0_9 = arith.constant 0 : index
    %c0_10 = arith.constant 0 : index
    %12 = vector.load %arg5[%c0_8, %c0_9, %c0_10] : memref<3x32x32xf32, #tpu.memory_space<vmem>>, vector<1x32x32xf32>
    %13 = vector.shape_cast %12 : vector<1x32x32xf32> to vector<32x32xf32>
    %cst_11 = arith.constant dense<0.000000e+00> : vector<32x256xf32>
    %14 = tpu.matmul %13, %11, %cst_11 {dimension_numbers = #tpu.dot_dimension_numbers<[1], [0], [0], [1], [0, 0, 1, 1], [], []>, precision = #tpu.contract_precision<fp32>} : vector<32x32xf32>, vector<32x256xf32>, vector<32x256xf32> -> vector<32x256xf32>
    %15 = vector.extract_strided_slice %8 {offsets = [32, 0], sizes = [32, 256], strides = [1, 1]} : vector<128x256xf32> to vector<32x256xf32>
    %16 = arith.addf %14, %15 : vector<32x256xf32>
    %17 = vector.extract_strided_slice %3 {offsets = [32, 0], sizes = [32, 256], strides = [1, 1]} : vector<128x256xf32> to vector<32x256xf32>
    %18 = arith.mulf %17, %16 : vector<32x256xf32>
    %c1 = arith.constant 1 : index
    %c0_12 = arith.constant 0 : index
    %c0_13 = arith.constant 0 : index
    %19 = vector.load %arg5[%c1, %c0_12, %c0_13] : memref<3x32x32xf32, #tpu.memory_space<vmem>>, vector<1x32x32xf32>
    %20 = vector.shape_cast %19 : vector<1x32x32xf32> to vector<32x32xf32>
    %cst_14 = arith.constant dense<0.000000e+00> : vector<32x256xf32>
    %21 = tpu.matmul %20, %18, %cst_14 {dimension_numbers = #tpu.dot_dimension_numbers<[1], [0], [0], [1], [0, 0, 1, 1], [], []>, precision = #tpu.contract_precision<fp32>} : vector<32x32xf32>, vector<32x256xf32>, vector<32x256xf32> -> vector<32x256xf32>
    %22 = vector.extract_strided_slice %8 {offsets = [64, 0], sizes = [32, 256], strides = [1, 1]} : vector<128x256xf32> to vector<32x256xf32>
    %23 = arith.addf %21, %22 : vector<32x256xf32>
    %24 = vector.extract_strided_slice %3 {offsets = [64, 0], sizes = [32, 256], strides = [1, 1]} : vector<128x256xf32> to vector<32x256xf32>
    %25 = arith.mulf %24, %23 : vector<32x256xf32>
    %c2 = arith.constant 2 : index
    %c0_15 = arith.constant 0 : index
    %c0_16 = arith.constant 0 : index
    %26 = vector.load %arg5[%c2, %c0_15, %c0_16] : memref<3x32x32xf32, #tpu.memory_space<vmem>>, vector<1x32x32xf32>
    %27 = vector.shape_cast %26 : vector<1x32x32xf32> to vector<32x32xf32>
    %cst_17 = arith.constant dense<0.000000e+00> : vector<32x256xf32>
    %28 = tpu.matmul %27, %25, %cst_17 {dimension_numbers = #tpu.dot_dimension_numbers<[1], [0], [0], [1], [0, 0, 1, 1], [], []>, precision = #tpu.contract_precision<fp32>} : vector<32x32xf32>, vector<32x256xf32>, vector<32x256xf32> -> vector<32x256xf32>
    %29 = vector.extract_strided_slice %8 {offsets = [96, 0], sizes = [32, 256], strides = [1, 1]} : vector<128x256xf32> to vector<32x256xf32>
    %30 = arith.addf %28, %29 : vector<32x256xf32>
    %31 = vector.extract_strided_slice %3 {offsets = [96, 0], sizes = [32, 256], strides = [1, 1]} : vector<128x256xf32> to vector<32x256xf32>
    %32 = arith.mulf %31, %30 : vector<32x256xf32>
    %c0_18 = arith.constant 0 : index
    %c0_19 = arith.constant 0 : index
    %33 = vector.load %arg6[%c0_18, %c0_19] : memref<2x32xf32, #tpu.memory_space<vmem>>, vector<2x32xf32>
    %cst_20 = arith.constant dense<0.000000e+00> : vector<2x256xf32>
    %34 = tpu.matmul %33, %32, %cst_20 {dimension_numbers = #tpu.dot_dimension_numbers<[1], [0], [0], [1], [0, 0, 1, 1], [], []>, precision = #tpu.contract_precision<fp32>} : vector<2x32xf32>, vector<32x256xf32>, vector<2x256xf32> -> vector<2x256xf32>
    %c0_21 = arith.constant 0 : index
    %c0_22 = arith.constant 0 : index
    %35 = vector.load %arg7[%c0_21, %c0_22] : memref<2x1xf32, #tpu.memory_space<vmem>>, vector<2x1xf32>
    %36 = vector.broadcast %35 : vector<2x1xf32> to vector<2x256xf32>
    %37 = arith.addf %34, %36 : vector<2x256xf32>
    %c0_23 = arith.constant 0 : index
    %c0_24 = arith.constant 0 : index
    %38 = vector.load %arg8[%c0_23, %c0_24] : memref<2x256xf32, #tpu.memory_space<vmem>>, vector<2x256xf32>
    tpu.vector_store %arg8[%c0_23, %c0_24], %37 {strides = array<i32>} : memref<2x256xf32, #tpu.memory_space<vmem>>, vector<2x256xf32>,
    return
  }
  func.func @transform_0(%arg0: i32) -> (i32, i32) {
    %c0_i32 = arith.constant 0 : i32
    %c0_i32_0 = arith.constant 0 : i32
    return %c0_i32, %arg0 : i32, i32
  }
  func.func @transform_1(%arg0: i32) -> (i32, i32) {
    %c0_i32 = arith.constant 0 : i32
    %c0_i32_0 = arith.constant 0 : i32
    %c0_i32_1 = arith.constant 0 : i32
    return %c0_i32, %c0_i32_0 : i32, i32
  }
  func.func @transform_2(%arg0: i32) -> (i32, i32) {
    %c0_i32 = arith.constant 0 : i32
    %c0_i32_0 = arith.constant 0 : i32
    %c0_i32_1 = arith.constant 0 : i32
    return %c0_i32, %c0_i32_0 : i32, i32
  }
  func.func @transform_3(%arg0: i32) -> (i32, i32) {
    %c0_i32 = arith.constant 0 : i32
    %c0_i32_0 = arith.constant 0 : i32
    %c0_i32_1 = arith.constant 0 : i32
    return %c0_i32, %c0_i32_0 : i32, i32
  }
  func.func @transform_4(%arg0: i32) -> (i32, i32, i32) {
    %c0_i32 = arith.constant 0 : i32
    %c0_i32_0 = arith.constant 0 : i32
    %c0_i32_1 = arith.constant 0 : i32
    %c0_i32_2 = arith.constant 0 : i32
    return %c0_i32, %c0_i32_0, %c0_i32_1 : i32, i32, i32
  }
  func.func @transform_5(%arg0: i32) -> (i32, i32) {
    %c0_i32 = arith.constant 0 : i32
    %c0_i32_0 = arith.constant 0 : i32
    %c0_i32_1 = arith.constant 0 : i32
    return %c0_i32, %c0_i32_0 : i32, i32
  }
  func.func @transform_6(%arg0: i32) -> (i32, i32) {
    %c0_i32 = arith.constant 0 : i32
    %c0_i32_0 = arith.constant 0 : i32
    %c0_i32_1 = arith.constant 0 : i32
    return %c0_i32, %c0_i32_0 : i32, i32
  }
  func.func @transform_7(%arg0: i32) -> (i32, i32) {
    %c0_i32 = arith.constant 0 : i32
    %c0_i32_0 = arith.constant 0 : i32
    return %c0_i32, %arg0 : i32, i32
  }
}

</mosaic_0001>

<bundles_post_ra>
// kernel: tpu_custom_call.1
= control target key start
LH: loop header
LB: loop body
LE: loop exit
PB: predicated region body
PF: predicated region fallthrough
CT: control target
= control target key end

     0   :  { %vm96_vm0 = vcmask 1043456   ;;  %v16689_v11 = vmov 0.0   ;;  %vm47_vm1 = vcmask 97280   ;;  %s16628_s0 = inlined_call_operand.vmem [shape: f32[12,256], index: 0, kind: input, shape index: {}]   ;;  %s16629_s1 = inlined_call_operand.vmem [shape: f32[128,12], index: 1, kind: input, shape index: {}]   ;;  %s16630_s2 = inlined_call_operand.vmem [shape: f32[128,12], index: 2, kind: input, shape index: {}]   ;;  %s16631_s3 = inlined_call_operand.vmem [shape: f32[128,1], index: 3, kind: input, shape index: {}]   ;;  %s16632_s4 = inlined_call_operand.vmem [shape: f32[3,32,32], index: 4, kind: input, shape index: {}]   ;;  %s16633_s5 = inlined_call_operand.vmem [shape: f32[2,32], index: 5, kind: input, shape index: {}]   ;;  %s16634_s6 = inlined_call_operand.vmem [shape: f32[2,1], index: 6, kind: input, shape index: {}]   ;;  %s16635_s7 = inlined_call_operand.hbm [shape: f32[2,256], index: 7, kind: output, shape index: {}]  }
   0x1   :  { %v30_v0 = vld [vmem:[%s16628_s0 + $0x18] sm:$0xf]  ;;  %v29_v1 = vld [vmem:[%s16628_s0 + $0x10] sm:$0xf]  ;;  %v28_v2 = vld [vmem:[%s16628_s0 + $0x8] sm:$0xff]  ;;  %171 = vmatprep.mubr.f32.mxu0 %v16689_v11  ;;  %432 = vmatprep.mubr.f32.mxu1 %v16689_v11 }
   0x2   :  { %v101_v3 = vsel %vm96_vm0, %v30_v0, 0  ;;  %v98_v4 = vsel %vm96_vm0, %v29_v1, 0  ;;  %v9259_v5 = vand.u32 4294901760, %v28_v2  ;;  %v27_v6 = vld [vmem:[%s16628_s0] sm:$0xff]  ;;  %v32_v12 = vld [vmem:[%s16629_s1 + $0x8] sm:$0xff]  ;;  %v33_v13 = vld [vmem:[%s16629_s1 + $0x10] sm:$0xff] }
   0x3   :  { %v31_v7 = vld [vmem:[%s16629_s1] sm:$0xff]  ;;  %v9267_v8 = vand.u32 4294901760, %v101_v3  ;;  %v9269_v9 = vand.u32 4294901760, %v98_v4  ;;  %v9271_v10 = vand.u32 4294901760, %v27_v6  ;;  %v52_v16 = vsel %vm47_vm1, %v32_v12, 0  ;;  %v34_v18 = vld [vmem:[%s16629_s1 + $0x18] sm:$0xff] }
   0x4   :  { %v49_v14 = vsel %vm47_vm1, %v31_v7, 0  ;;  %v9283_v15 = vsub.f32 %v28_v2, %v9259_v5  ;;  %v55_v17 = vsel %vm47_vm1, %v33_v13, 0  ;;  %v9306_v24 = vand.u32 4294901760, %v52_v16 }
   0x5   :  { %132 = vmatprep.subr.mxu0 %v9267_v8  ;;  %v9291_v19 = vand.u32 4294901760, %v49_v14  ;;  %v9294_v20 = vsub.f32 %v101_v3, %v9267_v8  ;;  %v9297_v21 = vsub.f32 %v98_v4, %v9269_v9  ;;  %v9300_v22 = vsub.f32 %v27_v6, %v9271_v10 }
   0x6   :  { %134 = vmatpush1.msra.mxu0 %v9269_v9  ;;  %v9304_v23 = vand.u32 4294901760, %v9283_v15  ;;  %v9308_v25 = vand.u32 4294901760, %v55_v17  ;;  %v58_v26 = vsel %vm47_vm1, %v34_v18, 0  ;;  %v9328_v32 = vsub.f32 %v52_v16, %v9306_v24 }
   0x7   :  { %136 = vmatprep.subr.mxu0 %v9259_v5  ;;  %v9313_v27 = vsub.f32 %v49_v14, %v9291_v19  ;;  %v9316_v28 = vand.u32 4294901760, %v9294_v20  ;;  %v9319_v29 = vand.u32 4294901760, %v9297_v21  ;;  %v9322_v30 = vand.u32 4294901760, %v9300_v22 }
   0x8   :  { %138 = vmatpush1.msra.mxu0 %v9271_v10  ;;  %v391_v31 = vsub.f32 %v9283_v15, %v9304_v23  ;;  %v9331_v33 = vsub.f32 %v55_v17, %v9308_v25  ;;  %v9333_v34 = vand.u32 4294901760, %v58_v26 }
   0x9   :  { %12 = vsyncpa [#allocation3], 0  ;;  %v174_v35 = vand.u32 4294901760, %v9313_v27  ;;  %v379_v36 = vsub.f32 %v9294_v20, %v9316_v28  ;;  %v385_v37 = vsub.f32 %v9297_v21, %v9319_v29  ;;  %v397_v38 = vsub.f32 %v9300_v22, %v9322_v30  ;;  %v35_v39 = vld [vmem:[%s16629_s1 + $0x20] sm:$0xff]  ;;  %575 = vmatprep.subr.mxu0 %v9294_v20  ;;  %v36_v43 = vld [vmem:[%s16629_s1 + $0x28] sm:$0xff] }
   0xa   :  { %v9346_v40 = vand.u32 4294901760, %v391_v31  ;;  %v185_v41 = vand.u32 4294901760, %v9328_v32  ;;  %v9350_v42 = vsub.f32 %v58_v26, %v9333_v34  ;;  %v196_v47 = vand.u32 4294901760, %v9331_v33  ;;  %v37_v54 = vld [vmem:[%s16629_s1 + $0x30] sm:$0xff]  ;;  %v38_v61 = vld [vmem:[%s16629_s1 + $0x38] sm:$0xff]  ;;  %v39_v3 = vld [vmem:[%s16629_s1 + $0x40] sm:$0xff] }
   0xb   :  { %v175_v44 = vsub.f32 %v9313_v27, %v174_v35  ;;  %v9358_v45 = vand.u32 4294901760, %v379_v36  ;;  %v9360_v46 = vand.u32 4294901760, %v385_v37  ;;  %v9363_v48 = vand.u32 4294901760, %v397_v38  ;;  %v40_v17 = vld [vmem:[%s16629_s1 + $0x48] sm:$0xff]  ;;  %v41_v38 = vld [vmem:[%s16629_s1 + $0x50] sm:$0xff] }
   0xc   :  { %v186_v49 = vsub.f32 %v9328_v32, %v185_v41  ;;  %v61_v50 = vsel %vm47_vm1, %v35_v39, 0  ;;  %v64_v53 = vsel %vm47_vm1, %v36_v43, 0  ;;  %v207_v55 = vand.u32 4294901760, %v9350_v42 }
   0xd   :  { %v176_v51 = vand.u32 4294901760, %v175_v44  ;;  %381 = vmatprep.subr.mxu1 %v9358_v45  ;;  %v9370_v52 = vand.u32 4294901760, %v61_v50  ;;  %v197_v57 = vsub.f32 %v9331_v33, %v196_v47  ;;  %v9385_v59 = vand.u32 4294901760, %v64_v53 }
   0xe   :  { %387 = vmatpush1.msra.mxu1 %v9360_v46  ;;  %v187_v56 = vand.u32 4294901760, %v186_v49  ;;  %v67_v60 = vsel %vm47_vm1, %v37_v54, 0  ;;  %v208_v62 = vsub.f32 %v9350_v42, %v207_v55  ;;  %v70_v4 = vsel %vm47_vm1, %v38_v61, 0  ;;  %v42_v54 = vld [vmem:[%s16629_s1 + $0x58] sm:$0xff] }
   0xf   :  { %177 = vmatmul.mubr.f32.vlgmr.msra.gmra.mxu0 %v176_v51  ;;  %393 = vmatprep.subr.mxu1 %v9346_v40  ;;  %v9383_v58 = vsub.f32 %v61_v50, %v9370_v52  ;;  %v198_v63 = vand.u32 4294901760, %v197_v57  ;;  %v9402_v1 = vsub.f32 %v64_v53, %v9385_v59  ;;  %v9404_v2 = vand.u32 4294901760, %v67_v60 }
  0x10   :  { %182 = vmatprep.mubr.f32.mxu0 %v16689_v11  ;;  %399 = vmatpush1.msra.mxu1 %v9363_v48  ;;  %v209_v6 = vand.u32 4294901760, %v208_v62  ;;  %v73_v7 = vsel %vm47_vm1, %v39_v3, 0  ;;  %v9425_v16 = vand.u32 4294901760, %v70_v4  ;;  %v76_v39 = vsel %vm47_vm1, %v40_v17, 0  ;;  %v43_v3 = vld [vmem:[%s16629_s1 + $0x60] sm:$0xff] }
  0x11   :  { %434 = vmatmul.mubr.f32.vlgmr.msra.gmra.mxu1 %v9291_v19  ;;  %578 = vmatpush1.msra.mxu0 %v9297_v21  ;;  %v218_v0 = vand.u32 4294901760, %v9383_v58  ;;  %v229_v13 = vand.u32 4294901760, %v9402_v1  ;;  %v9423_v14 = vsub.f32 %v67_v60, %v9404_v2  ;;  %v9436_v18 = vand.u32 4294901760, %v73_v7 }
  0x12   :  { %439 = vmatprep.mubr.f32.mxu1 %v16689_v11  ;;  %775 = vmatprep.subr.mxu1 %v9267_v8  ;;  %v9443_v37 = vsub.f32 %v70_v4, %v9425_v16  ;;  %v79_v44 = vsel %vm47_vm1, %v41_v38, 0  ;;  %v9460_v53 = vand.u32 4294901760, %v76_v39  ;;  %v82_v57 = vsel %vm47_vm1, %v42_v54, 0 }
  0x13   :  { %188 = vmatmul.mubr.f32.gmra.mxu0 %v187_v56  ;;  %777 = vmatpush1.msra.mxu1 %v9269_v9  ;;  %v219_v12 = vsub.f32 %v9383_v58, %v218_v0  ;;  %v230_v31 = vsub.f32 %v9402_v1, %v229_v13  ;;  %v240_v36 = vand.u32 4294901760, %v9423_v14  ;;  %v9453_v43 = vsub.f32 %v73_v7, %v9436_v18 }
  0x14   :  { %193 = vmatprep.mubr.f32.mxu0 %v16689_v11  ;;  %581 = vmatprep.subr.mxu0 %v9283_v15  ;;  %v16640_v51 = vand.u32 4294901760, %v9443_v37  ;;  %v9468_v56 = vand.u32 4294901760, %v79_v44 }
  0x15   :  { %441 = vmatmul.mubr.f32.gmra.mxu1 %v9306_v24  ;;  %584 = vmatpush1.msra.mxu0 %v9300_v22  ;;  %v220_v26 = vand.u32 4294901760, %v219_v12  ;;  %v231_v49 = vand.u32 4294901760, %v230_v31  ;;  %v241_v50 = vsub.f32 %v9423_v14, %v240_v36  ;;  %v16638_v62 = vand.u32 4294901760, %v9453_v43  ;;  %v44_v31 = vld [vmem:[%s16629_s1 + $0x68] sm:$0xff] }
  0x16   :  { %446 = vmatprep.mubr.f32.mxu1 %v16689_v11  ;;  %779 = vmatprep.subr.mxu1 %v9259_v5  ;;  %v252_v61 = vsub.f32 %v9443_v37, %v16640_v51  ;;  %v9485_v4 = vsub.f32 %v79_v44, %v9468_v56  ;;  %v88_v54 = vsel %vm47_vm1, %v44_v31, 0 }
  0x17   :  { %199 = vmatmul.mubr.f32.gmra.mxu0 %v198_v63  ;;  %781 = vmatpush1.msra.mxu1 %v9271_v10  ;;  %v242_v60 = vand.u32 4294901760, %v241_v50  ;;  %v9476_v63 = vsub.f32 %v76_v39, %v9460_v53  ;;  %v263_v12 = vsub.f32 %v9453_v43, %v16638_v62 }
  0x18   :  { %204 = vmatprep.mubr.f32.mxu0 %v16689_v11  ;;  %990 = vmatprep.subr.mxu0 %v9316_v28  ;;  %v253_v7 = vand.u32 4294901760, %v252_v61  ;;  %v16637_v38 = vand.u32 4294901760, %v9485_v4 }
  0x19   :  { %448 = vmatmul.mubr.f32.gmra.mxu1 %v9308_v25  ;;  %1177 = vmatprep.subr.mxu1 %v9267_v8  ;;  %v16636_v17 = vand.u32 4294901760, %v9476_v63  ;;  %v264_v44 = vand.u32 4294901760, %v263_v12  ;;  %v9523_v12 = vand.u32 4294901760, %v88_v54 }
  0x1a   :  { %453 = vmatprep.mubr.f32.mxu1 %v16689_v11 }
  0x1b   :  { %210 = vmatmul.mubr.f32.gmra.mxu0 %v209_v6  ;;  %v9487_v6 = vand.u32 4294901760, %v82_v57 }
  0x1c   :  { %215 = vmatprep.mubr.f32.mxu0 %v16689_v11 }
  0x1d   :  { %455 = vmatmul.mubr.f32.gmra.mxu1 %v9333_v34  ;;  %v9502_v39 = vsub.f32 %v82_v57, %v9487_v6  ;;  %v285_v57 = vsub.f32 %v9485_v4, %v16637_v38 }
  0x1e   :  { %460 = vmatprep.mubr.f32.mxu1 %v16689_v11 }
  0x1f   :  { %221 = vmatmul.mubr.f32.gmra.mxu0 %v220_v26  ;;  %v85_v26 = vsel %vm47_vm1, %v43_v3, 0  ;;  %v16639_v61 = vand.u32 4294901760, %v9502_v39 }
  0x20   :  { %226 = vmatprep.mubr.f32.mxu0 %v16689_v11  ;;  %v9507_v50 = vand.u32 4294901760, %v85_v26 }
  0x21   :  { %462 = vmatmul.mubr.f32.gmra.mxu1 %v9370_v52 }
  0x22   :  { %467 = vmatprep.mubr.f32.mxu1 %v16689_v11 }
  0x23   :  { %232 = vmatmul.mubr.f32.gmra.mxu0 %v231_v49  ;;  %v274_v49 = vsub.f32 %v9476_v63, %v16636_v17  ;;  %v46_v17 = vld [vmem:[%s16629_s1 + $0x78] sm:$0xff] }
  0x24   :  { %237 = vmatprep.mubr.f32.mxu0 %v16689_v11  ;;  %v94_v62 = vsel %vm47_vm1, %v46_v17, 0 }
  0x25   :  { %469 = vmatmul.mubr.f32.gmra.mxu1 %v9385_v59  ;;  %v275_v3 = vand.u32 4294901760, %v274_v49  ;;  %v9552_v51 = vand.u32 4294901760, %v94_v62 }
  0x26   :  { %474 = vmatprep.mubr.f32.mxu1 %v16689_v11 }
  0x27   :  { %243 = vmatmul.mubr.f32.gmra.mxu0 %v242_v60  ;;  %v45_v60 = vld [vmem:[%s16629_s1 + $0x70] sm:$0xff] }
  0x28   :  { %248 = vmatprep.mubr.f32.mxu0 %v16689_v11  ;;  %v91_v31 = vsel %vm47_vm1, %v45_v60, 0  ;;  %v9539_v60 = vsub.f32 %v88_v54, %v9523_v12 }
  0x29   :  { %476 = vmatmul.mubr.f32.gmra.mxu1 %v9404_v2  ;;  %v9532_v38 = vand.u32 4294901760, %v91_v31 }
  0x2a   :  { %481 = vmatprep.mubr.f32.mxu1 %v16689_v11  ;;  %v16642_v54 = vand.u32 4294901760, %v9539_v60 }
  0x2b   :  { %254 = vmatmul.mubr.f32.gmra.mxu0 %v253_v7  ;;  %v9521_v7 = vsub.f32 %v85_v26, %v9507_v50  ;;  %v296_v26 = vsub.f32 %v9502_v39, %v16639_v61 }
  0x2c   :  { %259 = vmatprep.mubr.f32.mxu0 %v16689_v11 }
  0x2d   :  { %483 = vmatmul.mubr.f32.gmra.mxu1 %v9425_v16  ;;  %v16641_v49 = vand.u32 4294901760, %v9521_v7 }
  0x2e   :  { %488 = vmatprep.mubr.f32.mxu1 %v16689_v11 }
  0x2f   :  { %265 = vmatmul.mubr.f32.gmra.mxu0 %v264_v44  ;;  %v286_v44 = vand.u32 4294901760, %v285_v57  ;;  %v297_v57 = vand.u32 4294901760, %v296_v26  ;;  %v307_v61 = vsub.f32 %v9521_v7, %v16641_v49  ;;  %v9562_v26 = vsub.f32 %v94_v62, %v9552_v51 }
  0x30   :  { %270 = vmatprep.mubr.f32.mxu0 %v16689_v11 }
  0x31   :  { %490 = vmatmul.mubr.f32.gmra.mxu1 %v9436_v18  ;;  %v308_v17 = vand.u32 4294901760, %v307_v61 }
  0x32   :  { %495 = vmatprep.mubr.f32.mxu1 %v16689_v11 }
  0x33   :  { %276 = vmatmul.mubr.f32.gmra.mxu0 %v275_v3  ;;  %v9546_v3 = vsub.f32 %v91_v31, %v9532_v38  ;;  %v318_v31 = vsub.f32 %v9539_v60, %v16642_v54 }
  0x34   :  { %281 = vmatprep.mubr.f32.mxu0 %v16689_v11 }
  0x35   :  { %497 = vmatmul.mubr.f32.gmra.mxu1 %v9460_v53  ;;  %v319_v49 = vand.u32 4294901760, %v318_v31  ;;  %v4662_v31 = vld [vmem:[%s16630_s2 + $0x28] sm:$0xff] }
  0x36   :  { %502 = vmatprep.mubr.f32.mxu1 %v16689_v11 }
  0x37   :  { %287 = vmatmul.mubr.f32.gmra.mxu0 %v286_v44  ;;  %v328_v44 = vand.u32 4294901760, %v9546_v3 }
  0x38   :  { %292 = vmatprep.mubr.f32.mxu0 %v16689_v11 }
  0x39   :  { %504 = vmatmul.mubr.f32.gmra.mxu1 %v9468_v56  ;;  %v329_v61 = vsub.f32 %v9546_v3, %v328_v44 }
  0x3a   :  { %509 = vmatprep.mubr.f32.mxu1 %v16689_v11 }
  0x3b   :  { %298 = vmatmul.mubr.f32.gmra.mxu0 %v297_v57  ;;  %v339_v57 = vand.u32 4294901760, %v9562_v26  ;;  %v330_v62 = vand.u32 4294901760, %v329_v61 }
  0x3c   :  { %303 = vmatprep.mubr.f32.mxu0 %v16689_v11 }
  0x3d   :  { %511 = vmatmul.mubr.f32.gmra.mxu1 %v9487_v6  ;;  %v340_v54 = vsub.f32 %v9562_v26, %v339_v57 }
  0x3e   :  { %516 = vmatprep.mubr.f32.mxu1 %v16689_v11 }
  0x3f   :  { %309 = vmatmul.mubr.f32.gmra.mxu0 %v308_v17  ;;  %v341_v17 = vand.u32 4294901760, %v340_v54 }
  0x40   :  { %314 = vmatprep.mubr.f32.mxu0 %v16689_v11 }
  0x41   :  { %518 = vmatmul.mubr.f32.gmra.mxu1 %v9507_v50 }
  0x42   :  { %523 = vmatprep.mubr.f32.mxu1 %v16689_v11 }
  0x43   :  { %320 = vmatmul.mubr.f32.gmra.mxu0 %v319_v49 }
  0x44   :  { %325 = vmatprep.mubr.f32.mxu0 %v16689_v11 }
  0x45   :  { %525 = vmatmul.mubr.f32.gmra.mxu1 %v9523_v12 }
  0x46   :  { %530 = vmatprep.mubr.f32.mxu1 %v16689_v11 }
  0x47   :  { %331 = vmatmul.mubr.f32.gmra.mxu0 %v330_v62 }
  0x48   :  { %336 = vmatprep.mubr.f32.mxu0 %v16689_v11 }
  0x49   :  { %532 = vmatmul.mubr.f32.gmra.mxu1 %v9532_v38 }
  0x4a   :  { %537 = vmatprep.mubr.f32.mxu1 %v16689_v11 }
  0x4b   :  { %342 = vmatmul.mubr.f32.gmra.mxu0 %v341_v17  ;;  %v4785_v17 = vsel %vm47_vm1, %v4662_v31, 0 }
  0x4c   :  { %617 = vmatprep.mubr.f32.mxu0 %v16689_v11 }
  0x4d   :  { %539 = vmatmul.mubr.f32.gmra.mxu1 %v9552_v51 }
  0x4e   :  { %814 = vmatprep.mubr.f32.mxu1 %v16689_v11 }
  0x4f   :  { %620 = vmatmul.mubr.f32.vlgmr.msra.gmra.mxu0 %v9313_v27  ;;  %v16895_v27 = vand.u32 4294901760, %v9443_v37 }
  0x50   :  { %625 = vmatprep.mubr.f32.mxu0 %v16689_v11  ;;  %994 = vmatpush1.msra.mxu0 %v9319_v29 }
  0x51   :  { %818 = vmatmul.mubr.f32.vlgmr.msra.gmra.mxu1 %v174_v35  ;;  %998 = vmatprep.subr.mxu0 %v9304_v23  ;;  %v16898_v35 = vand.u32 4294901760, %v9485_v4 }
  0x52   :  { %823 = vmatprep.mubr.f32.mxu1 %v16689_v11  ;;  %1179 = vmatpush1.msra.mxu1 %v9269_v9 }
  0x53   :  { %628 = vmatmul.mubr.f32.gmra.mxu0 %v9328_v32  ;;  %1181 = vmatprep.subr.mxu1 %v9259_v5  ;;  %v16896_v32 = vand.u32 4294901760, %v9453_v43 }
  0x54   :  { %633 = vmatprep.mubr.f32.mxu0 %v16689_v11  ;;  %1002 = vmatpush1.msra.mxu0 %v9322_v30 }
  0x55   :  { %827 = vmatmul.mubr.f32.gmra.mxu1 %v185_v41  ;;  %4846 = vmatprep.subr.mxu0 %v9267_v8  ;;  %v16899_v41 = vand.u32 4294901760, %v9502_v39 }
  0x56   :  { %832 = vmatprep.mubr.f32.mxu1 %v16689_v11  ;;  %1183 = vmatpush1.msra.mxu1 %v9271_v10 }
  0x57   :  { %636 = vmatmul.mubr.f32.gmra.mxu0 %v9331_v33  ;;  %5095 = vmatprep.subr.mxu1 %v9358_v45  ;;  %v16897_v33 = vand.u32 4294901760, %v9476_v63  ;;  %v16901_v45 = vand.u32 4294901760, %v9539_v60 }
  0x58   :  { %641 = vmatprep.mubr.f32.mxu0 %v16689_v11 }
  0x59   :  { %836 = vmatmul.mubr.f32.gmra.mxu1 %v196_v47  ;;  %v4677_v47 = vld [vmem:[%s16631_s3 + $0x20] sm:$0xff] }
  0x5a   :  { %841 = vmatprep.mubr.f32.mxu1 %v16689_v11 }
  0x5b   :  { %644 = vmatmul.mubr.f32.gmra.mxu0 %v9350_v42  ;;  %v16900_v42 = vand.u32 4294901760, %v9521_v7 }
  0x5c   :  { %649 = vmatprep.mubr.f32.mxu0 %v16689_v11 }
  0x5d   :  { %845 = vmatmul.mubr.f32.gmra.mxu1 %v207_v55  ;;  %v4657_v55 = vld [vmem:[%s16630_s2] sm:$0xff] }
  0x5e   :  { %850 = vmatprep.mubr.f32.mxu1 %v16689_v11 }
  0x5f   :  { %652 = vmatmul.mubr.f32.gmra.mxu0 %v9383_v58  ;;  %v4684_v58 = vld [vmem:[%s16631_s3 + $0x58] sm:$0xff] }
  0x60   :  { %657 = vmatprep.mubr.f32.mxu0 %v16689_v11 }
  0x61   :  { %854 = vmatmul.mubr.f32.gmra.mxu1 %v218_v0  ;;  %v4770_v0 = vsel %vm47_vm1, %v4657_v55, 0 }
  0x62   :  { %859 = vmatprep.mubr.f32.mxu1 %v16689_v11 }
  0x63   :  { %660 = vmatmul.mubr.f32.gmra.mxu0 %v9402_v1  ;;  %v4658_v1 = vld [vmem:[%s16630_s2 + $0x8] sm:$0xff] }
  0x64   :  { %665 = vmatprep.mubr.f32.mxu0 %v16689_v11 }
  0x65   :  { %863 = vmatmul.mubr.f32.gmra.mxu1 %v229_v13  ;;  %v9770_v13 = vand.u32 4294901760, %v4770_v0 }
  0x66   :  { %868 = vmatprep.mubr.f32.mxu1 %v16689_v11 }
  0x67   :  { %668 = vmatmul.mubr.f32.gmra.mxu0 %v9423_v14  ;;  %16902 = vst [vmem:[#allocation5_spill] sm:$0xff] %v9770_v13  ;;  %v4773_v14 = vsel %vm47_vm1, %v4658_v1, 0 }
  0x68   :  { %673 = vmatprep.mubr.f32.mxu0 %v16689_v11 }
  0x69   :  { %872 = vmatmul.mubr.f32.gmra.mxu1 %v240_v36  ;;  %v9783_v36 = vsub.f32 %v4770_v0, %v9770_v13  ;;  %v4665_v0 = vld [vmem:[%s16630_s2 + $0x40] sm:$0xff] }
  0x6a   :  { %877 = vmatprep.mubr.f32.mxu1 %v16689_v11 }
  0x6b   :  { %676 = vmatmul.mubr.f32.gmra.mxu0 %v9443_v37 }
  0x6c   :  { %681 = vmatprep.mubr.f32.mxu0 %v16689_v11 }
  0x6d   :  { %881 = vmatmul.mubr.f32.gmra.mxu1 %v16895_v27  ;;  %v4663_v27 = vld [vmem:[%s16630_s2 + $0x30] sm:$0xff] }
  0x6e   :  { %886 = vmatprep.mubr.f32.mxu1 %v16689_v11 }
  0x6f   :  { %684 = vmatmul.mubr.f32.gmra.mxu0 %v9453_v43  ;;  %v4660_v43 = vld [vmem:[%s16630_s2 + $0x18] sm:$0xff] }
  0x70   :  { %689 = vmatprep.mubr.f32.mxu0 %v16689_v11 }
  0x71   :  { %890 = vmatmul.mubr.f32.gmra.mxu1 %v16896_v32 }
  0x72   :  { %895 = vmatprep.mubr.f32.mxu1 %v16689_v11 }
  0x73   :  { %692 = vmatmul.mubr.f32.gmra.mxu0 %v9476_v63 }
  0x74   :  { %697 = vmatprep.mubr.f32.mxu0 %v16689_v11 }
  0x75   :  { %899 = vmatmul.mubr.f32.gmra.mxu1 %v16897_v33 }
  0x76   :  { %904 = vmatprep.mubr.f32.mxu1 %v16689_v11 }
  0x77   :  { %700 = vmatmul.mubr.f32.gmra.mxu0 %v9485_v4  ;;  %v16652_v4 = vand.u32 4294901760, %v9783_v36 }
  0x78   :  { %705 = vmatprep.mubr.f32.mxu0 %v16689_v11 }
  0x79   :  { %908 = vmatmul.mubr.f32.gmra.mxu1 %v16898_v35 }
  0x7a   :  { %913 = vmatprep.mubr.f32.mxu1 %v16689_v11 }
  0x7b   :  { %708 = vmatmul.mubr.f32.gmra.mxu0 %v9502_v39  ;;  %v4661_v39 = vld [vmem:[%s16630_s2 + $0x20] sm:$0xff] }
  0x7c   :  { %713 = vmatprep.mubr.f32.mxu0 %v16689_v11  ;;  %v4782_v54 = vsel %vm47_vm1, %v4661_v39, 0 }
  0x7d   :  { %917 = vmatmul.mubr.f32.gmra.mxu1 %v16899_v41  ;;  %v9843_v62 = vand.u32 4294901760, %v4782_v54 }
  0x7e   :  { %922 = vmatprep.mubr.f32.mxu1 %v16689_v11 }
  0x7f   :  { %716 = vmatmul.mubr.f32.gmra.mxu0 %v9521_v7  ;;  %v4685_v7 = vld [vmem:[%s16631_s3 + $0x60] sm:$0xff]  ;;  %16906 = vst [vmem:[#allocation9_spill] sm:$0xff] %v9843_v62 }
  0x80   :  { %721 = vmatprep.mubr.f32.mxu0 %v16689_v11 }
  0x81   :  { %926 = vmatmul.mubr.f32.gmra.mxu1 %v16900_v42  ;;  %v9857_v42 = vsub.f32 %v4782_v54, %v9843_v62 }
  0x82   :  { %931 = vmatprep.mubr.f32.mxu1 %v16689_v11 }
  0x83   :  { %724 = vmatmul.mubr.f32.gmra.mxu0 %v9539_v60 }
  0x84   :  { %729 = vmatprep.mubr.f32.mxu0 %v16689_v11 }
  0x85   :  { %935 = vmatmul.mubr.f32.gmra.mxu1 %v16901_v45  ;;  %v9859_v45 = vand.u32 4294901760, %v4785_v17 }
  0x86   :  { %940 = vmatprep.mubr.f32.mxu1 %v16689_v11 }
  0x87   :  { %732 = vmatmul.mubr.f32.gmra.mxu0 %v9546_v3  ;;  %16907 = vst [vmem:[#allocation10_spill] sm:$0xff] %v9859_v45 }
  0x88   :  { %737 = vmatprep.mubr.f32.mxu0 %v16689_v11 }
  0x89   :  { %944 = vmatmul.mubr.f32.gmra.mxu1 %v328_v44  ;;  %v4686_v44 = vld [vmem:[%s16631_s3 + $0x68] sm:$0xff] }
  0x8a   :  { %949 = vmatprep.mubr.f32.mxu1 %v16689_v11 }
  0x8b   :  { %740 = vmatmul.mubr.f32.gmra.mxu0 %v9562_v26 }
  0x8c   :  { %1035 = vmatprep.mubr.f32.mxu0 %v16689_v11 }
  0x8d   :  { %953 = vmatmul.mubr.f32.gmra.mxu1 %v339_v57 }
  0x8e   :  { %1216 = vmatprep.mubr.f32.mxu1 %v16689_v11 }
  0x8f   :  { %1037 = vmatmul.mubr.f32.vlgmr.msra.gmra.mxu0 %v9291_v19 }
  0x90   :  { %1042 = vmatprep.mubr.f32.mxu0 %v16689_v11  ;;  %4848 = vmatpush1.msra.mxu0 %v9269_v9 }
  0x91   :  { %1218 = vmatmul.mubr.f32.vlgmr.msra.gmra.mxu1 %v9291_v19  ;;  %4850 = vmatprep.subr.mxu0 %v9259_v5  ;;  %v4674_v19 = vld [vmem:[%s16631_s3 + $0x8] sm:$0xff] }
  0x92   :  { %1223 = vmatprep.mubr.f32.mxu1 %v16689_v11  ;;  %5101 = vmatpush1.msra.mxu1 %v9360_v46  ;;  %v4679_v46 = vld [vmem:[%s16631_s3 + $0x30] sm:$0xff] }
  0x93   :  { %1044 = vmatmul.mubr.f32.gmra.mxu0 %v9306_v24  ;;  %5107 = vmatprep.subr.mxu1 %v9346_v40  ;;  %v9202_v40 = vmov 0  }
  0x94   :  { %1049 = vmatprep.mubr.f32.mxu0 %v16689_v11  ;;  %4852 = vmatpush1.msra.mxu0 %v9271_v10 }
  0x95   :  { %1225 = vmatmul.mubr.f32.gmra.mxu1 %v9306_v24  ;;  %5289 = vmatprep.subr.mxu0 %v9294_v20  ;;  %v4676_v20 = vld [vmem:[%s16631_s3 + $0x18] sm:$0xff]  ;;  %v4673_v24 = vld [vmem:[%s16631_s3] sm:$0xff] }
  0x96   :  { %1230 = vmatprep.mubr.f32.mxu1 %v16689_v11  ;;  %5113 = vmatpush1.msra.mxu1 %v9363_v48  ;;  %v4678_v48 = vld [vmem:[%s16631_s3 + $0x28] sm:$0xff] }
  0x97   :  { %1051 = vmatmul.mubr.f32.gmra.mxu0 %v9308_v25  ;;  %5489 = vmatprep.subr.mxu1 %v9267_v8 }
  0x98   :  { %1056 = vmatprep.mubr.f32.mxu0 %v16689_v11  ;;  %9050 = vset.pattern.permute.xlu1 %v9202_v40 }
  0x99   :  { %1232 = vmatmul.mubr.f32.gmra.mxu1 %v9308_v25  ;;  %4696 = vperm.xlu1 %9050, %v4674_v19   ;;  %v4675_v25 = vld [vmem:[%s16631_s3 + $0x10] sm:$0xff]  ;;  %v4788_v19 = vsel %vm47_vm1, %v4663_v27, 0 }
  0x9a   :  { %1237 = vmatprep.mubr.f32.mxu1 %v16689_v11  ;;  %9049 = vset.pattern.permute.xlu0 %v9202_v40 }
  0x9b   :  { %1058 = vmatmul.mubr.f32.gmra.mxu0 %v9333_v34  ;;  %4706 = vperm.xlu0 %9049, %v4676_v20  }
  0x9c   :  { %1063 = vmatprep.mubr.f32.mxu0 %v16689_v11 }
  0x9d   :  { %1239 = vmatmul.mubr.f32.gmra.mxu1 %v9333_v34  ;;  %4691 = vperm.xlu1 %9050, %v4673_v24   ;;  %v4680_v34 = vld [vmem:[%s16631_s3 + $0x38] sm:$0xff] }
  0x9e   :  { %1244 = vmatprep.mubr.f32.mxu1 %v16689_v11 }
  0x9f   :  { %1065 = vmatmul.mubr.f32.gmra.mxu0 %v9370_v52  ;;  %4701 = vperm.xlu0 %9049, %v4675_v25  }
  0xa0   :  { %1070 = vmatprep.mubr.f32.mxu0 %v16689_v11 }
  0xa1   :  { %1246 = vmatmul.mubr.f32.gmra.mxu1 %v9370_v52  ;;  %4721 = vperm.xlu1 %9050, %v4679_v46   ;;  %v4683_v52 = vld [vmem:[%s16631_s3 + $0x50] sm:$0xff]  ;;  %v9872_v46 = vand.u32 4294901760, %v4788_v19 }
  0xa2   :  { %1251 = vmatprep.mubr.f32.mxu1 %v16689_v11 }
  0xa3   :  { %1072 = vmatmul.mubr.f32.gmra.mxu0 %v9385_v59  ;;  %4726 = vperm.xlu0 %9049, %v4680_v34   ;;  %16908 = vst [vmem:[#allocation11_spill] sm:$0xff] %v9872_v46 }
  0xa4   :  { %1077 = vmatprep.mubr.f32.mxu0 %v16689_v11 }
  0xa5   :  { %1253 = vmatmul.mubr.f32.gmra.mxu1 %v9385_v59  ;;  %4711 = vperm.xlu1 %9050, %v4677_v47   ;;  %v4681_v59 = vld [vmem:[%s16631_s3 + $0x40] sm:$0xff] }
  0xa6   :  { %1258 = vmatprep.mubr.f32.mxu1 %v16689_v11 }
  0xa7   :  { %1079 = vmatmul.mubr.f32.gmra.mxu0 %v9404_v2  ;;  %4716 = vperm.xlu0 %9049, %v4678_v48   ;;  %v16647_v48 = vand.u32 4294901760, %v9857_v42 }
  0xa8   :  { %1084 = vmatprep.mubr.f32.mxu0 %v16689_v11 }
  0xa9   :  { %1260 = vmatmul.mubr.f32.gmra.mxu1 %v9404_v2  ;;  %4741 = vperm.xlu1 %9050, %v4683_v52   ;;  %v4682_v2 = vld [vmem:[%s16631_s3 + $0x48] sm:$0xff] }
  0xaa   :  { %1265 = vmatprep.mubr.f32.mxu1 %v16689_v11 }
  0xab   :  { %1086 = vmatmul.mubr.f32.gmra.mxu0 %v9425_v16  ;;  %4746 = vperm.xlu0 %9049, %v4684_v58  }
  0xac   :  { %1091 = vmatprep.mubr.f32.mxu0 %v16689_v11 }
  0xad   :  { %1267 = vmatmul.mubr.f32.gmra.mxu1 %v9425_v16  ;;  %4731 = vperm.xlu1 %9050, %v4681_v59   ;;  %v4659_v16 = vld [vmem:[%s16630_s2 + $0x10] sm:$0xff] }
  0xae   :  { %1272 = vmatprep.mubr.f32.mxu1 %v16689_v11  ;;  %v4776_v37 = vsel %vm47_vm1, %v4659_v16, 0 }
  0xaf   :  { %1093 = vmatmul.mubr.f32.gmra.mxu0 %v9436_v18  ;;  %4736 = vperm.xlu0 %9049, %v4682_v2   ;;  %v9798_v63 = vand.u32 4294901760, %v4776_v37  ;;  %v9897_v2 = vsub.f32 %v4788_v19, %v9872_v46  ;;  %v4667_v19 = vld [vmem:[%s16630_s2 + $0x50] sm:$0xff] }
  0xb0   :  { %1098 = vmatprep.mubr.f32.mxu0 %v16689_v11 }
  0xb1   :  { %1274 = vmatmul.mubr.f32.gmra.mxu1 %v9436_v18  ;;  %v9779_v18 = vand.u32 4294901760, %v4773_v14  ;;  %16904 = vst [vmem:[#allocation7_spill] sm:$0xff] %v9798_v63  ;;  %v9817_v60 = vsub.f32 %v4776_v37, %v9798_v63 }
  0xb2   :  { %1279 = vmatprep.mubr.f32.mxu1 %v16689_v11 }
  0xb3   :  { %1100 = vmatmul.mubr.f32.gmra.mxu0 %v9460_v53  ;;  %16903 = vst [vmem:[#allocation6_spill] sm:$0xff] %v9779_v18  ;;  %v16650_v61 = vand.u32 4294901760, %v9817_v60 }
  0xb4   :  { %1105 = vmatprep.mubr.f32.mxu0 %v16689_v11 }
  0xb5   :  { %1281 = vmatmul.mubr.f32.gmra.mxu1 %v9460_v53  ;;  %v4687_v53 = vld [vmem:[%s16631_s3 + $0x70] sm:$0xff]  ;;  %v4911_v33 = vsub.f32 %v9817_v60, %v16650_v61 }
  0xb6   :  { %1286 = vmatprep.mubr.f32.mxu1 %v16689_v11  ;;  %4761 = vperm.xlu1 %9050, %v4687_v53  }
  0xb7   :  { %1107 = vmatmul.mubr.f32.gmra.mxu0 %v9468_v56  ;;  %v4912_v25 = vand.u32 4294901760, %v4911_v33 }
  0xb8   :  { %1112 = vmatprep.mubr.f32.mxu0 %v16689_v11 }
  0xb9   :  { %1288 = vmatmul.mubr.f32.gmra.mxu1 %v9468_v56  ;;  %v9796_v56 = vsub.f32 %v4773_v14, %v9779_v18 }
  0xba   :  { %1293 = vmatprep.mubr.f32.mxu1 %v16689_v11  ;;  %4751 = vperm.xlu1 %9050, %v4685_v7   ;;  %v4666_v7 = vld [vmem:[%s16630_s2 + $0x48] sm:$0xff] }
  0xbb   :  { %1114 = vmatmul.mubr.f32.gmra.mxu0 %v9487_v6  ;;  %v16651_v49 = vand.u32 4294901760, %v9796_v56 }
  0xbc   :  { %1119 = vmatprep.mubr.f32.mxu0 %v16689_v11 }
  0xbd   :  { %1295 = vmatmul.mubr.f32.gmra.mxu1 %v9487_v6  ;;  %v4779_v6 = vsel %vm47_vm1, %v4660_v43, 0  ;;  %v4900_v26 = vsub.f32 %v9796_v56, %v16651_v49  ;;  %v4933_v43 = vsub.f32 %v9857_v42, %v16647_v48 }
  0xbe   :  { %1300 = vmatprep.mubr.f32.mxu1 %v16689_v11  ;;  %v9823_v3 = vand.u32 4294901760, %v4779_v6 }
  0xbf   :  { %1121 = vmatmul.mubr.f32.gmra.mxu0 %v9507_v50  ;;  %v4901_v32 = vand.u32 4294901760, %v4900_v26  ;;  %v4934_v26 = vand.u32 4294901760, %v4933_v43 }
  0xc0   :  { %1126 = vmatprep.mubr.f32.mxu0 %v16689_v11  ;;  %16905 = vst [vmem:[#allocation8_spill] sm:$0xff] %v9823_v3  ;;  %v9841_v57 = vsub.f32 %v4779_v6, %v9823_v3  ;;  %v4794_v6 = vsel %vm47_vm1, %v4665_v0, 0  ;;  %v4668_v0 = vld [vmem:[%s16630_s2 + $0x58] sm:$0xff] }
  0xc1   :  { %1302 = vmatmul.mubr.f32.gmra.mxu1 %v9507_v50  ;;  %v4688_v50 = vld [vmem:[%s16631_s3 + $0x78] sm:$0xff] }
  0xc2   :  { %1307 = vmatprep.mubr.f32.mxu1 %v16689_v11  ;;  %4766 = vperm.xlu0 %9049, %v4688_v50   ;;  %v16649_v41 = vand.u32 4294901760, %v9841_v57 }
  0xc3   :  { %1128 = vmatmul.mubr.f32.gmra.mxu0 %v9523_v12 }
  0xc4   :  { %1133 = vmatprep.mubr.f32.mxu0 %v16689_v11 }
  0xc5   :  { %1309 = vmatmul.mubr.f32.gmra.mxu1 %v9523_v12  ;;  %v4889_v12 = vsub.f32 %v9783_v36, %v16652_v4 }
  0xc6   :  { %1314 = vmatprep.mubr.f32.mxu1 %v16689_v11  ;;  %4756 = vperm.xlu0 %9049, %v4686_v44  }
  0xc7   :  { %1135 = vmatmul.mubr.f32.gmra.mxu0 %v9532_v38 }
  0xc8   :  { %1140 = vmatprep.mubr.f32.mxu0 %v16689_v11 }
  0xc9   :  { %1316 = vmatmul.mubr.f32.gmra.mxu1 %v9532_v38  ;;  %v4890_v38 = vand.u32 4294901760, %v4889_v12 }
  0xca   :  { %1321 = vmatprep.mubr.f32.mxu1 %v16689_v11 }
  0xcb   :  { %1142 = vmatmul.mubr.f32.gmra.mxu0 %v9552_v51 }
  0xcc   :  { %4885 = vmatprep.mubr.f32.mxu0 %v16689_v11 }
  0xcd   :  { %1323 = vmatmul.mubr.f32.gmra.mxu1 %v9552_v51  ;;  %v4664_v51 = vld [vmem:[%s16630_s2 + $0x38] sm:$0xff] }
  0xce   :  { %5146 = vmatprep.mubr.f32.mxu1 %v16689_v11  ;;  %v4791_v52 = vsel %vm47_vm1, %v4664_v51, 0 }
  0xcf   :  { %v178_v35 = vpop.f32.mrf.mxu0  ;;  %4891 = vmatmul.mubr.f32.vlgmr.msra.gmra.mxu0 %v4890_v38  ;;  %v9899_v14 = vand.u32 4294901760, %v4791_v52 }
  0xd0   :  { %4896 = vmatprep.mubr.f32.mxu0 %v16689_v11  ;;  %5292 = vmatpush1.msra.mxu0 %v9297_v21  ;;  %v4922_v21 = vsub.f32 %v9841_v57, %v16649_v41 }
  0xd1   :  { %v180_v40 = vpop.f32.mrf.mxu0  ;;  %v435_v20 = vpop.f32.mrf.mxu1  ;;  %5148 = vmatmul.mubr.f32.vlgmr.msra.gmra.mxu1 %v9770_v13  ;;  %5295 = vmatprep.subr.mxu0 %v9283_v15  ;;  %v9880_v15 = vsub.f32 %v4785_v17, %v9859_v45  ;;  %16909 = vst [vmem:[#allocation12_spill] sm:$0xff] %v9899_v14  ;;  %v9920_v54 = vsub.f32 %v4791_v52, %v9899_v14  ;;  %v9925_v17 = vand.u32 4294901760, %v4794_v6 }
  0xd2   :  { %v9869_v24 = vadd.f32 %v435_v20, %v178_v35  ;;  %5153 = vmatprep.mubr.f32.mxu1 %v16689_v11  ;;  %5491 = vmatpush1.msra.mxu1 %v9269_v9  ;;  %v4923_v37 = vand.u32 4294901760, %v4922_v21 }
  0xd3   :  { %v189_v34 = vpop.f32.mrf.mxu0  ;;  %4902 = vmatmul.mubr.f32.gmra.mxu0 %v4901_v32  ;;  %v437_v47 = vpop.f32.mrf.mxu1  ;;  %5493 = vmatprep.subr.mxu1 %v9259_v5  ;;  %16910 = vst [vmem:[#allocation13_spill] sm:$0xff] %v9925_v17  ;;  %v4797_v32 = vsel %vm47_vm1, %v4666_v7, 0  ;;  %v16643_v20 = vand.u32 4294901760, %v9920_v54  ;;  %v9943_v21 = vsub.f32 %v4794_v6, %v9925_v17 }
  0xd4   :  { %v9884_v55 = vadd.f32 %v437_v47, %v180_v40  ;;  %4907 = vmatprep.mubr.f32.mxu0 %v16689_v11  ;;  %5298 = vmatpush1.msra.mxu0 %v9300_v22  ;;  %v9945_v52 = vand.u32 4294901760, %v4797_v32 }
  0xd5   :  { %v191_v58 = vpop.f32.mrf.mxu0  ;;  %v442_v59 = vpop.f32.mrf.mxu1  ;;  %5155 = vmatmul.mubr.f32.gmra.mxu1 %v9779_v18  ;;  %5704 = vmatprep.subr.mxu0 %v9316_v28  ;;  %v16646_v28 = vand.u32 4294901760, %v9880_v15  ;;  %v4966_v6 = vsub.f32 %v9920_v54, %v16643_v20  ;;  %v16644_v7 = vand.u32 4294901760, %v9943_v21 }
  0xd6   :  { %v9893_v1 = vadd.f32 %v442_v59, %v189_v34  ;;  %5160 = vmatprep.mubr.f32.mxu1 %v16689_v11  ;;  %5495 = vmatpush1.msra.mxu1 %v9271_v10  ;;  %16911 = vst [vmem:[#allocation14_spill] sm:$0xff] %v9945_v52  ;;  %v4800_v59 = vsel %vm47_vm1, %v4667_v19, 0  ;;  %v4669_v19 = vld [vmem:[%s16630_s2 + $0x60] sm:$0xff] }
  0xd7   :  { %v200_v22 = vpop.f32.mrf.mxu0  ;;  %4913 = vmatmul.mubr.f32.gmra.mxu0 %v4912_v25  ;;  %v444_v16 = vpop.f32.mrf.mxu1  ;;  %5891 = vmatprep.subr.mxu1 %v9267_v8  ;;  %v16645_v8 = vand.u32 4294901760, %v9897_v2  ;;  %v4944_v38 = vsub.f32 %v9880_v15, %v16646_v28 }
  0xd8   :  { %v9907_v53 = vadd.f32 %v444_v16, %v191_v58  ;;  %4918 = vmatprep.mubr.f32.mxu0 %v16689_v11 }
  0xd9   :  { %v202_v39 = vpop.f32.mrf.mxu0  ;;  %v449_v50 = vpop.f32.mrf.mxu1  ;;  %5162 = vmatmul.mubr.f32.gmra.mxu1 %v9798_v63  ;;  %v4955_v40 = vsub.f32 %v9897_v2, %v16645_v8  ;;  %v4945_v47 = vand.u32 4294901760, %v4944_v38 }
  0xda   :  { %v9915_v12 = vadd.f32 %v449_v50, %v200_v22  ;;  %5167 = vmatprep.mubr.f32.mxu1 %v16689_v11 }
  0xdb   :  { %v211_v31 = vpop.f32.mrf.mxu0  ;;  %4924 = vmatmul.mubr.f32.gmra.mxu0 %v4923_v37  ;;  %v451_v44 = vpop.f32.mrf.mxu1  ;;  %v4956_v43 = vand.u32 4294901760, %v4955_v40 }
  0xdc   :  { %v9927_v27 = vadd.f32 %v451_v44, %v202_v39  ;;  %4929 = vmatprep.mubr.f32.mxu0 %v16689_v11  ;;  %v9965_v44 = vand.u32 4294901760, %v4800_v59 }
  0xdd   :  { %v213_v33 = vpop.f32.mrf.mxu0  ;;  %v456_v35 = vpop.f32.mrf.mxu1  ;;  %5169 = vmatmul.mubr.f32.gmra.mxu1 %v9823_v3 }
  0xde   :  { %v9935_v51 = vadd.f32 %v456_v35, %v211_v31  ;;  %5174 = vmatprep.mubr.f32.mxu1 %v16689_v11  ;;  %v9963_v31 = vsub.f32 %v4797_v32, %v9945_v52  ;;  %16912 = vst [vmem:[#allocation15_spill] sm:$0xff] %v9965_v44 }
  0xdf   :  { %v222_v25 = vpop.f32.mrf.mxu0  ;;  %4935 = vmatmul.mubr.f32.gmra.mxu0 %v4934_v26  ;;  %v458_v34 = vpop.f32.mrf.mxu1  ;;  %v4803_v26 = vsel %vm47_vm1, %v4668_v0, 0  ;;  %v4977_v0 = vsub.f32 %v9943_v21, %v16644_v7 }
  0xe0   :  { %v9947_v58 = vadd.f32 %v458_v34, %v213_v33  ;;  %4940 = vmatprep.mubr.f32.mxu0 %v16689_v11  ;;  %v9978_v32 = vand.u32 4294901760, %v4803_v26 }
  0xe1   :  { %v224_v22 = vpop.f32.mrf.mxu0  ;;  %v463_v16 = vpop.f32.mrf.mxu1  ;;  %5176 = vmatmul.mubr.f32.gmra.mxu1 %v9843_v62  ;;  %v4978_v7 = vand.u32 4294901760, %v4977_v0 }
  0xe2   :  { %v9955_v37 = vadd.f32 %v463_v16, %v222_v25  ;;  %5181 = vmatprep.mubr.f32.mxu1 %v16689_v11  ;;  %16913 = vst [vmem:[#allocation16_spill] sm:$0xff] %v9978_v32  ;;  %v9985_v16 = vsub.f32 %v4800_v59, %v9965_v44  ;;  %v9999_v59 = vsub.f32 %v4803_v26, %v9978_v32 }
  0xe3   :  { %v233_v39 = vpop.f32.mrf.mxu0  ;;  %4946 = vmatmul.mubr.f32.gmra.mxu0 %v4945_v47  ;;  %v465_v50 = vpop.f32.mrf.mxu1  ;;  %v4967_v47 = vand.u32 4294901760, %v4966_v6 }
  0xe4   :  { %v9968_v38 = vadd.f32 %v465_v50, %v224_v22  ;;  %4951 = vmatprep.mubr.f32.mxu0 %v16689_v11  ;;  %v16648_v22 = vand.u32 4294901760, %v9963_v31  ;;  %v16653_v8 = vand.u32 4294901760, %v9985_v16 }
  0xe5   :  { %v235_v33 = vpop.f32.mrf.mxu0  ;;  %v470_v35 = vpop.f32.mrf.mxu1  ;;  %5183 = vmatmul.mubr.f32.gmra.mxu1 %v9859_v45 }
  0xe6   :  { %v9975_v40 = vadd.f32 %v470_v35, %v233_v39  ;;  %5188 = vmatprep.mubr.f32.mxu1 %v16689_v11  ;;  %v4806_v39 = vsel %vm47_vm1, %v4669_v19, 0  ;;  %v4988_v19 = vsub.f32 %v9963_v31, %v16648_v22 }
  0xe7   :  { %v244_v25 = vpop.f32.mrf.mxu0  ;;  %4957 = vmatmul.mubr.f32.gmra.mxu0 %v4956_v43  ;;  %v472_v34 = vpop.f32.mrf.mxu1  ;;  %v4670_v43 = vld [vmem:[%s16630_s2 + $0x68] sm:$0xff]  ;;  %v10005_v28 = vand.u32 4294901760, %v4806_v39 }
  0xe8   :  { %v9987_v50 = vadd.f32 %v472_v34, %v235_v33  ;;  %4962 = vmatprep.mubr.f32.mxu0 %v16689_v11  ;;  %v4989_v41 = vand.u32 4294901760, %v4988_v19 }
  0xe9   :  { %v246_v35 = vpop.f32.mrf.mxu0  ;;  %v477_v20 = vpop.f32.mrf.mxu1  ;;  %5190 = vmatmul.mubr.f32.gmra.mxu1 %v9872_v46  ;;  %16914 = vst [vmem:[#allocation17_spill] sm:$0xff] %v10005_v28  ;;  %v10023_v61 = vsub.f32 %v4806_v39, %v10005_v28  ;;  %v16916_v39 = vand.u32 4294901760, %v9999_v59 }
  0xea   :  { %v9995_v6 = vadd.f32 %v477_v20, %v244_v25  ;;  %5195 = vmatprep.mubr.f32.mxu1 %v16689_v11  ;;  %v4809_v20 = vsel %vm47_vm1, %v4670_v43, 0  ;;  %v4999_v43 = vsub.f32 %v9985_v16, %v16653_v8 }
  0xeb   :  { %v255_v33 = vpop.f32.mrf.mxu0  ;;  %4968 = vmatmul.mubr.f32.gmra.mxu0 %v4967_v47  ;;  %v479_v34 = vpop.f32.mrf.mxu1  ;;  %v4671_v47 = vld [vmem:[%s16630_s2 + $0x70] sm:$0xff]  ;;  %v10025_v49 = vand.u32 4294901760, %v4809_v20 }
  0xec   :  { %v10007_v48 = vadd.f32 %v479_v34, %v246_v35  ;;  %4973 = vmatprep.mubr.f32.mxu0 %v16689_v11 }
  0xed   :  { %v257_v26 = vpop.f32.mrf.mxu0  ;;  %v484_v25 = vpop.f32.mrf.mxu1  ;;  %5197 = vmatmul.mubr.f32.gmra.mxu1 %v9899_v14  ;;  %16915 = vst [vmem:[#allocation18_spill] sm:$0xff] %v10025_v49  ;;  %v16668_v14 = vand.u32 4294901760, %v10023_v61 }
  0xee   :  { %v10015_v0 = vadd.f32 %v484_v25, %v255_v33  ;;  %5202 = vmatprep.mubr.f32.mxu1 %v16689_v11  ;;  %v4812_v33 = vsel %vm47_vm1, %v4671_v47, 0  ;;  %v5000_v47 = vand.u32 4294901760, %v4999_v43 }
  0xef   :  { %v266_v35 = vpop.f32.mrf.mxu0  ;;  %4979 = vmatmul.mubr.f32.gmra.mxu0 %v4978_v7  ;;  %v486_v34 = vpop.f32.mrf.mxu1  ;;  %v4672_v7 = vld [vmem:[%s16630_s2 + $0x78] sm:$0xff]  ;;  %v10045_v46 = vand.u32 4294901760, %v4812_v33 }
  0xf0   :  { %v10027_v4 = vadd.f32 %v486_v34, %v257_v26  ;;  %4984 = vmatprep.mubr.f32.mxu0 %v16689_v11  ;;  %v5010_v26 = vsub.f32 %v9999_v59, %v16916_v39 }
  0xf1   :  { %v268_v25 = vpop.f32.mrf.mxu0  ;;  %v491_v22 = vpop.f32.mrf.mxu1  ;;  %5204 = vmatmul.mubr.f32.gmra.mxu1 %v9925_v17  ;;  %v10043_v17 = vsub.f32 %v4809_v20, %v10025_v49 }
  0xf2   :  { %v10035_v19 = vadd.f32 %v491_v22, %v266_v35  ;;  %5209 = vmatprep.mubr.f32.mxu1 %v16689_v11  ;;  %v4815_v22 = vsel %vm47_vm1, %v4672_v7, 0  ;;  %v5011_v43 = vand.u32 4294901760, %v5010_v26  ;;  %v10060_v7 = vsub.f32 %v4812_v33, %v10045_v46 }
  0xf3   :  { %v277_v34 = vpop.f32.mrf.mxu0  ;;  %4990 = vmatmul.mubr.f32.gmra.mxu0 %v4989_v41  ;;  %v493_v8 = vpop.f32.mrf.mxu1  ;;  %v10062_v3 = vand.u32 4294901760, %v4815_v22  ;;  %v16919_v33 = vand.u32 4294901760, %v10043_v17 }
  0xf4   :  { %v10047_v45 = vadd.f32 %v493_v8, %v268_v25  ;;  %4995 = vmatprep.mubr.f32.mxu0 %v16689_v11  ;;  %v5021_v8 = vsub.f32 %v10023_v61, %v16668_v14  ;;  %16917 = vst [vmem:[#allocation19_spill] sm:$0xff] %v10060_v7 }
  0xf5   :  { %v279_v35 = vpop.f32.mrf.mxu0  ;;  %v498_v62 = vpop.f32.mrf.mxu1  ;;  %5211 = vmatmul.mubr.f32.gmra.mxu1 %v9945_v52  ;;  %16918 = vst [vmem:[#allocation20_spill] sm:$0xff] %v10062_v3  ;;  %v5032_v63 = vsub.f32 %v10043_v17, %v16919_v33 }
  0xf6   :  { %v10052_v41 = vadd.f32 %v498_v62, %v277_v34  ;;  %5216 = vmatprep.mubr.f32.mxu1 %v16689_v11  ;;  %v5022_v25 = vand.u32 4294901760, %v5021_v8 }
  0xf7   :  { %v288_v39 = vpop.f32.mrf.mxu0  ;;  %5001 = vmatmul.mubr.f32.gmra.mxu0 %v5000_v47  ;;  %v500_v20 = vpop.f32.mrf.mxu1 }
  0xf8   :  { %v10064_v52 = vadd.f32 %v500_v20, %v279_v35  ;;  %5006 = vmatprep.mubr.f32.mxu0 %v16689_v11  ;;  %v16679_v35 = vand.u32 4294901760, %v10060_v7  ;;  %v10076_v20 = vsub.f32 %v4815_v22, %v10062_v3 }
  0xf9   :  { %v290_v62 = vpop.f32.mrf.mxu0  ;;  %v505_v26 = vpop.f32.mrf.mxu1  ;;  %5218 = vmatmul.mubr.f32.gmra.mxu1 %v9965_v44  ;;  %v5033_v44 = vand.u32 4294901760, %v5032_v63 }
  0xfa   :  { %v10068_v34 = vadd.f32 %v505_v26, %v288_v39  ;;  %5223 = vmatprep.mubr.f32.mxu1 %v16689_v11  ;;  %v5043_v22 = vsub.f32 %v10060_v7, %v16679_v35 }
  0xfb   :  { %v299_v47 = vpop.f32.mrf.mxu0  ;;  %5012 = vmatmul.mubr.f32.gmra.mxu0 %v5011_v43  ;;  %v507_v14 = vpop.f32.mrf.mxu1 }
  0xfc   :  { %v10078_v18 = vadd.f32 %v507_v14, %v290_v62  ;;  %5017 = vmatprep.mubr.f32.mxu0 %v16689_v11  ;;  %v16684_v14 = vand.u32 4294901760, %v10076_v20 }
  0xfd   :  { %v301_v39 = vpop.f32.mrf.mxu0  ;;  %v512_v26 = vpop.f32.mrf.mxu1  ;;  %5225 = vmatmul.mubr.f32.gmra.mxu1 %v9978_v32 }
  0xfe   :  { %v10082_v43 = vadd.f32 %v512_v26, %v299_v47  ;;  %5230 = vmatprep.mubr.f32.mxu1 %v16689_v11  ;;  %v5044_v26 = vand.u32 4294901760, %v5043_v22  ;;  %v5054_v35 = vsub.f32 %v10076_v20, %v16684_v14 }
  0xff   :  { %v310_v8 = vpop.f32.mrf.mxu0  ;;  %5023 = vmatmul.mubr.f32.gmra.mxu0 %v5022_v25  ;;  %v514_v33 = vpop.f32.mrf.mxu1 }
 0x100   :  { %v10089_v62 = vadd.f32 %v514_v33, %v301_v39  ;;  %5028 = vmatprep.mubr.f32.mxu0 %v16689_v11  ;;  %v5055_v22 = vand.u32 4294901760, %v5054_v35 }
 0x101   :  { %v312_v13 = vpop.f32.mrf.mxu0  ;;  %v519_v32 = vpop.f32.mrf.mxu1  ;;  %5232 = vmatmul.mubr.f32.gmra.mxu1 %v10005_v28 }
 0x102   :  { %v10093_v47 = vadd.f32 %v519_v32, %v310_v8  ;;  %5237 = vmatprep.mubr.f32.mxu1 %v16689_v11 }
 0x103   :  { %v321_v25 = vpop.f32.mrf.mxu0  ;;  %5034 = vmatmul.mubr.f32.gmra.mxu0 %v5033_v44  ;;  %v521_v63 = vpop.f32.mrf.mxu1 }
 0x104   :  { %v10099_v39 = vadd.f32 %v521_v63, %v312_v13  ;;  %5039 = vmatprep.mubr.f32.mxu0 %v16689_v11 }
 0x105   :  { %v323_v33 = vpop.f32.mrf.mxu0  ;;  %v526_v7 = vpop.f32.mrf.mxu1  ;;  %5239 = vmatmul.mubr.f32.gmra.mxu1 %v10025_v49 }
 0x106   :  { %v10103_v32 = vadd.f32 %v526_v7, %v321_v25  ;;  %5244 = vmatprep.mubr.f32.mxu1 %v16689_v11 }
 0x107   :  { %v332_v8 = vpop.f32.mrf.mxu0  ;;  %5045 = vmatmul.mubr.f32.gmra.mxu0 %v5044_v26  ;;  %v528_v44 = vpop.f32.mrf.mxu1 }
 0x108   :  { %v10106_v28 = vadd.f32 %v528_v44, %v323_v33  ;;  %5050 = vmatprep.mubr.f32.mxu0 %v16689_v11 }
 0x109   :  { %v334_v13 = vpop.f32.mrf.mxu0  ;;  %v533_v63 = vpop.f32.mrf.mxu1  ;;  %5246 = vmatmul.mubr.f32.gmra.mxu1 %v10045_v46 }
 0x10a   :  { %v10110_v14 = vadd.f32 %v533_v63, %v332_v8  ;;  %5251 = vmatprep.mubr.f32.mxu1 %v16689_v11 }
 0x10b   :  { %v343_v7 = vpop.f32.mrf.mxu0  ;;  %5056 = vmatmul.mubr.f32.gmra.mxu0 %v5055_v22  ;;  %v535_v25 = vpop.f32.mrf.mxu1 }
 0x10c   :  { %v10113_v49 = vadd.f32 %v535_v25, %v334_v13  ;;  %5331 = vmatprep.mubr.f32.mxu0 %v16689_v11 }
 0x10d   :  { %v345_v35 = vpop.f32.mrf.mxu0  ;;  %v540_v26 = vpop.f32.mrf.mxu1  ;;  %5253 = vmatmul.mubr.f32.gmra.mxu1 %v10062_v3  ;;  %v16920_v3 = vand.u32 4294901760, %v9783_v36 }
 0x10e   :  { %v10117_v33 = vadd.f32 %v540_v26, %v343_v7  ;;  %5528 = vmatprep.mubr.f32.mxu1 %v16689_v11 }
 0x10f   :  { %v621_v44 = vpop.f32.mrf.mxu0  ;;  %5334 = vmatmul.mubr.f32.vlgmr.msra.gmra.mxu0 %v9783_v36  ;;  %v542_v8 = vpop.f32.mrf.mxu1 }
 0x110   :  { %v622_v63 = vadd.f32 %v621_v44, %v9869_v24  ;;  %v10122_v22 = vadd.f32 %v542_v8, %v345_v35  ;;  %5339 = vmatprep.mubr.f32.mxu0 %v16689_v11  ;;  %5708 = vmatpush1.msra.mxu0 %v9319_v29 }
 0x111   :  { %v623_v13 = vpop.f32.mrf.mxu0  ;;  %v819_v25 = vpop.f32.mrf.mxu1  ;;  %5532 = vmatmul.mubr.f32.vlgmr.msra.gmra.mxu1 %v16920_v3  ;;  %5712 = vmatprep.subr.mxu0 %v9304_v23 }
 0x112   :  { %v624_v7 = vadd.f32 %v623_v13, %v9884_v55  ;;  %v10130_v26 = vadd.f32 %v819_v25, %v622_v63  ;;  %5537 = vmatprep.mubr.f32.mxu1 %v16689_v11  ;;  %5893 = vmatpush1.msra.mxu1 %v9269_v9  ;;  %v16921_v55 = vand.u32 4294901760, %v9796_v56 }
 0x113   :  { %v629_v24 = vpop.f32.mrf.mxu0  ;;  %5342 = vmatmul.mubr.f32.gmra.mxu0 %v9796_v56  ;;  %v821_v35 = vpop.f32.mrf.mxu1  ;;  %5895 = vmatprep.subr.mxu1 %v9259_v5 }
 0x114   :  { %v630_v29 = vadd.f32 %v629_v24, %v9893_v1  ;;  %v10137_v36 = vadd.f32 %v821_v35, %v624_v7  ;;  %5347 = vmatprep.mubr.f32.mxu0 %v16689_v11  ;;  %5716 = vmatpush1.msra.mxu0 %v9322_v30 }
 0x115   :  { %v631_v23 = vpop.f32.mrf.mxu0  ;;  %v828_v3 = vpop.f32.mrf.mxu1  ;;  %5541 = vmatmul.mubr.f32.gmra.mxu1 %v16921_v55 }
 0x116   :  { %v632_v9 = vadd.f32 %v631_v23, %v9907_v53  ;;  %v10144_v44 = vadd.f32 %v828_v3, %v630_v29  ;;  %5546 = vmatprep.mubr.f32.mxu1 %v16689_v11  ;;  %5897 = vmatpush1.msra.mxu1 %v9271_v10  ;;  %v16922_v53 = vand.u32 4294901760, %v9817_v60 }
 0x117   :  { %v637_v5 = vpop.f32.mrf.mxu0  ;;  %5350 = vmatmul.mubr.f32.gmra.mxu0 %v9817_v60  ;;  %v830_v1 = vpop.f32.mrf.mxu1  ;;  %v16923_v60 = vand.u32 4294901760, %v9841_v57 }
 0x118   :  { %v638_v8 = vadd.f32 %v637_v5, %v9915_v12  ;;  %v10150_v30 = vadd.f32 %v830_v1, %v632_v9  ;;  %5355 = vmatprep.mubr.f32.mxu0 %v16689_v11 }
 0x119   :  { %v639_v56 = vpop.f32.mrf.mxu0  ;;  %v837_v63 = vpop.f32.mrf.mxu1  ;;  %5550 = vmatmul.mubr.f32.gmra.mxu1 %v16922_v53 }
 0x11a   :  { %v640_v13 = vadd.f32 %v639_v56, %v9927_v27  ;;  %v10156_v25 = vadd.f32 %v837_v63, %v638_v8  ;;  %5555 = vmatprep.mubr.f32.mxu1 %v16689_v11 }
 0x11b   :  { %v645_v10 = vpop.f32.mrf.mxu0  ;;  %5358 = vmatmul.mubr.f32.gmra.mxu0 %v9841_v57  ;;  %v839_v7 = vpop.f32.mrf.mxu1  ;;  %v16924_v57 = vand.u32 4294901760, %v9857_v42 }
 0x11c   :  { %v646_v12 = vadd.f32 %v645_v10, %v9935_v51  ;;  %v10161_v24 = vadd.f32 %v839_v7, %v640_v13  ;;  %5363 = vmatprep.mubr.f32.mxu0 %v16689_v11 }
 0x11d   :  { %v647_v35 = vpop.f32.mrf.mxu0  ;;  %v846_v29 = vpop.f32.mrf.mxu1  ;;  %5559 = vmatmul.mubr.f32.gmra.mxu1 %v16923_v60 }
 0x11e   :  { %v648_v27 = vadd.f32 %v647_v35, %v9947_v58  ;;  %v10167_v23 = vadd.f32 %v846_v29, %v646_v12  ;;  %5564 = vmatprep.mubr.f32.mxu1 %v16689_v11 }
 0x11f   :  { %v653_v3 = vpop.f32.mrf.mxu0  ;;  %5366 = vmatmul.mubr.f32.gmra.mxu0 %v9857_v42  ;;  %v848_v55 = vpop.f32.mrf.mxu1  ;;  %v16925_v42 = vand.u32 4294901760, %v9880_v15 }
 0x120   :  { %v654_v51 = vadd.f32 %v653_v3, %v9955_v37  ;;  %v10172_v9 = vadd.f32 %v848_v55, %v648_v27  ;;  %5371 = vmatprep.mubr.f32.mxu0 %v16689_v11 }
 0x121   :  { %v655_v5 = vpop.f32.mrf.mxu0  ;;  %v855_v1 = vpop.f32.mrf.mxu1  ;;  %5568 = vmatmul.mubr.f32.gmra.mxu1 %v16924_v57 }
 0x122   :  { %v656_v58 = vadd.f32 %v655_v5, %v9968_v38  ;;  %v10178_v8 = vadd.f32 %v855_v1, %v654_v51  ;;  %5573 = vmatprep.mubr.f32.mxu1 %v16689_v11 }
 0x123   :  { %v661_v56 = vpop.f32.mrf.mxu0  ;;  %5374 = vmatmul.mubr.f32.gmra.mxu0 %v9880_v15  ;;  %v857_v63 = vpop.f32.mrf.mxu1  ;;  %v16928_v15 = vand.u32 4294901760, %v9897_v2 }
 0x124   :  { %v662_v37 = vadd.f32 %v661_v56, %v9975_v40  ;;  %v10183_v53 = vadd.f32 %v857_v63, %v656_v58  ;;  %5379 = vmatprep.mubr.f32.mxu0 %v16689_v11 }
 0x125   :  { %v663_v13 = vpop.f32.mrf.mxu0  ;;  %v864_v10 = vpop.f32.mrf.mxu1  ;;  %5577 = vmatmul.mubr.f32.gmra.mxu1 %v16925_v42 }
 0x126   :  { %v664_v38 = vadd.f32 %v663_v13, %v9987_v50  ;;  %v10189_v7 = vadd.f32 %v864_v10, %v662_v37  ;;  %5582 = vmatprep.mubr.f32.mxu1 %v16689_v11 }
 0x127   :  { %v669_v12 = vpop.f32.mrf.mxu0  ;;  %5382 = vmatmul.mubr.f32.gmra.mxu0 %v9897_v2  ;;  %v866_v35 = vpop.f32.mrf.mxu1  ;;  %v16931_v2 = vand.u32 4294901760, %v9920_v54 }
 0x128   :  { %16926 = vst [vmem:[#allocation21_spill] sm:$0xff] %v10189_v7  ;;  %v670_v40 = vadd.f32 %v669_v12, %v9995_v6  ;;  %v10194_v29 = vadd.f32 %v866_v35, %v664_v38  ;;  %5387 = vmatprep.mubr.f32.mxu0 %v16689_v11 }
 0x129   :  { %v671_v60 = vpop.f32.mrf.mxu0  ;;  %v873_v27 = vpop.f32.mrf.mxu1  ;;  %5586 = vmatmul.mubr.f32.gmra.mxu1 %v16928_v15 }
 0x12a   :  { %16927 = vst [vmem:[#allocation22_spill] sm:$0xff] %v10194_v29  ;;  %v672_v50 = vadd.f32 %v671_v60, %v10007_v48  ;;  %v10200_v3 = vadd.f32 %v873_v27, %v670_v40  ;;  %5591 = vmatprep.mubr.f32.mxu1 %v16689_v11 }
 0x12b   :  { %v677_v55 = vpop.f32.mrf.mxu0  ;;  %5390 = vmatmul.mubr.f32.gmra.mxu0 %v9920_v54  ;;  %v875_v51 = vpop.f32.mrf.mxu1  ;;  %v16934_v54 = vand.u32 4294901760, %v9943_v21 }
 0x12c   :  { %16929 = vst [vmem:[#allocation23_spill] sm:$0xff] %v10200_v3  ;;  %v678_v6 = vadd.f32 %v677_v55, %v10015_v0  ;;  %v10205_v5 = vadd.f32 %v875_v51, %v672_v50  ;;  %5395 = vmatprep.mubr.f32.mxu0 %v16689_v11 }
 0x12d   :  { %v679_v1 = vpop.f32.mrf.mxu0  ;;  %v882_v57 = vpop.f32.mrf.mxu1  ;;  %5595 = vmatmul.mubr.f32.gmra.mxu1 %v16931_v2 }
 0x12e   :  { %16930 = vst [vmem:[#allocation24_spill] sm:$0xff] %v10205_v5  ;;  %v680_v48 = vadd.f32 %v679_v1, %v10027_v4  ;;  %v10211_v58 = vadd.f32 %v882_v57, %v678_v6  ;;  %5600 = vmatprep.mubr.f32.mxu1 %v16689_v11 }
 0x12f   :  { %v685_v56 = vpop.f32.mrf.mxu0  ;;  %5398 = vmatmul.mubr.f32.gmra.mxu0 %v9943_v21  ;;  %v884_v63 = vpop.f32.mrf.mxu1  ;;  %v16937_v21 = vand.u32 4294901760, %v9963_v31 }
 0x130   :  { %16932 = vst [vmem:[#allocation25_spill] sm:$0xff] %v10211_v58  ;;  %v686_v0 = vadd.f32 %v685_v56, %v10035_v19  ;;  %v10216_v37 = vadd.f32 %v884_v63, %v680_v48  ;;  %5403 = vmatprep.mubr.f32.mxu0 %v16689_v11 }
 0x131   :  { %v687_v13 = vpop.f32.mrf.mxu0  ;;  %v891_v10 = vpop.f32.mrf.mxu1  ;;  %5604 = vmatmul.mubr.f32.gmra.mxu1 %v16934_v54 }
 0x132   :  { %16933 = vst [vmem:[#allocation26_spill] sm:$0xff] %v10216_v37  ;;  %v688_v4 = vadd.f32 %v687_v13, %v10047_v45  ;;  %v10222_v42 = vadd.f32 %v891_v10, %v686_v0  ;;  %5609 = vmatprep.mubr.f32.mxu1 %v16689_v11 }
 0x133   :  { %v693_v38 = vpop.f32.mrf.mxu0  ;;  %5406 = vmatmul.mubr.f32.gmra.mxu0 %v9963_v31  ;;  %v893_v12 = vpop.f32.mrf.mxu1  ;;  %v16940_v31 = vand.u32 4294901760, %v9985_v16 }
 0x134   :  { %16935 = vst [vmem:[#allocation27_spill] sm:$0xff] %v10222_v42  ;;  %v694_v19 = vadd.f32 %v693_v38, %v10052_v41  ;;  %v10227_v35 = vadd.f32 %v893_v12, %v688_v4  ;;  %5411 = vmatprep.mubr.f32.mxu0 %v16689_v11 }
 0x135   :  { %v695_v40 = vpop.f32.mrf.mxu0  ;;  %v900_v60 = vpop.f32.mrf.mxu1  ;;  %5613 = vmatmul.mubr.f32.gmra.mxu1 %v16937_v21 }
 0x136   :  { %16936 = vst [vmem:[#allocation28_spill] sm:$0xff] %v10227_v35  ;;  %v696_v45 = vadd.f32 %v695_v40, %v10064_v52  ;;  %v10233_v27 = vadd.f32 %v900_v60, %v694_v19  ;;  %5618 = vmatprep.mubr.f32.mxu1 %v16689_v11 }
 0x137   :  { %v701_v15 = vpop.f32.mrf.mxu0  ;;  %5414 = vmatmul.mubr.f32.gmra.mxu0 %v9985_v16  ;;  %v902_v50 = vpop.f32.mrf.mxu1  ;;  %v16943_v16 = vand.u32 4294901760, %v9999_v59 }
 0x138   :  { %16938 = vst [vmem:[#allocation29_spill] sm:$0xff] %v10233_v27  ;;  %v702_v41 = vadd.f32 %v701_v15, %v10068_v34  ;;  %v10238_v55 = vadd.f32 %v902_v50, %v696_v45  ;;  %5419 = vmatprep.mubr.f32.mxu0 %v16689_v11 }
 0x139   :  { %v703_v51 = vpop.f32.mrf.mxu0  ;;  %v909_v6 = vpop.f32.mrf.mxu1  ;;  %5622 = vmatmul.mubr.f32.gmra.mxu1 %v16940_v31 }
 0x13a   :  { %16939 = vst [vmem:[#allocation30_spill] sm:$0xff] %v10238_v55  ;;  %v704_v52 = vadd.f32 %v703_v51, %v10078_v18  ;;  %v10244_v1 = vadd.f32 %v909_v6, %v702_v41  ;;  %5627 = vmatprep.mubr.f32.mxu1 %v16689_v11  ;;  %v16951_v41 = vld [vmem:[#allocation19_spill] sm:$0xff] }
 0x13b   :  { %v709_v57 = vpop.f32.mrf.mxu0  ;;  %5422 = vmatmul.mubr.f32.gmra.mxu0 %v9999_v59  ;;  %v911_v2 = vpop.f32.mrf.mxu1  ;;  %v16946_v59 = vand.u32 4294901760, %v10023_v61 }
 0x13c   :  { %16941 = vst [vmem:[#allocation31_spill] sm:$0xff] %v10244_v1  ;;  %v710_v34 = vadd.f32 %v709_v57, %v10082_v43  ;;  %v10249_v48 = vadd.f32 %v911_v2, %v704_v52  ;;  %5427 = vmatprep.mubr.f32.mxu0 %v16689_v11 }
 0x13d   :  { %v711_v56 = vpop.f32.mrf.mxu0  ;;  %v918_v63 = vpop.f32.mrf.mxu1  ;;  %5631 = vmatmul.mubr.f32.gmra.mxu1 %v16943_v16 }
 0x13e   :  { %16942 = vst [vmem:[#allocation32_spill] sm:$0xff] %v10249_v48  ;;  %v712_v18 = vadd.f32 %v711_v56, %v10089_v62  ;;  %v10255_v0 = vadd.f32 %v918_v63, %v710_v34  ;;  %5636 = vmatprep.mubr.f32.mxu1 %v16689_v11 }
 0x13f   :  { %v717_v13 = vpop.f32.mrf.mxu0  ;;  %5430 = vmatmul.mubr.f32.gmra.mxu0 %v10023_v61  ;;  %v920_v10 = vpop.f32.mrf.mxu1  ;;  %v16949_v61 = vand.u32 4294901760, %v10043_v17 }
 0x140   :  { %16944 = vst [vmem:[#allocation33_spill] sm:$0xff] %v10255_v0  ;;  %v718_v43 = vadd.f32 %v717_v13, %v10093_v47  ;;  %v10260_v54 = vadd.f32 %v920_v10, %v712_v18  ;;  %5435 = vmatprep.mubr.f32.mxu0 %v16689_v11  ;;  %v16956_v18 = vand.u32 4294901760, %v10076_v20 }
 0x141   :  { %v719_v4 = vpop.f32.mrf.mxu0  ;;  %v927_v38 = vpop.f32.mrf.mxu1  ;;  %5640 = vmatmul.mubr.f32.gmra.mxu1 %v16946_v59 }
 0x142   :  { %16945 = vst [vmem:[#allocation34_spill] sm:$0xff] %v10260_v54  ;;  %v720_v62 = vadd.f32 %v719_v4, %v10099_v39  ;;  %v10266_v12 = vadd.f32 %v927_v38, %v718_v43  ;;  %5645 = vmatprep.mubr.f32.mxu1 %v16689_v11  ;;  %v16958_v43 = vld [vmem:[#allocation5_spill] sm:$0xff] }
 0x143   :  { %v725_v19 = vpop.f32.mrf.mxu0  ;;  %5438 = vmatmul.mubr.f32.gmra.mxu0 %v10043_v17  ;;  %v929_v40 = vpop.f32.mrf.mxu1  ;;  %v16953_v17 = vand.u32 4294901760, %v16951_v41 }
 0x144   :  { %16947 = vst [vmem:[#allocation35_spill] sm:$0xff] %v10266_v12  ;;  %v726_v47 = vadd.f32 %v725_v19, %v10103_v32  ;;  %v10271_v60 = vadd.f32 %v929_v40, %v720_v62  ;;  %5443 = vmatprep.mubr.f32.mxu0 %v16689_v11  ;;  %v16961_v40 = vld [vmem:[#allocation6_spill] sm:$0xff] }
 0x145   :  { %v727_v21 = vpop.f32.mrf.mxu0  ;;  %v936_v45 = vpop.f32.mrf.mxu1  ;;  %5649 = vmatmul.mubr.f32.gmra.mxu1 %v16949_v61 }
 0x146   :  { %16948 = vst [vmem:[#allocation36_spill] sm:$0xff] %v10271_v60  ;;  %v728_v39 = vadd.f32 %v727_v21, %v10106_v28  ;;  %v10277_v15 = vadd.f32 %v936_v45, %v726_v47  ;;  %5654 = vmatprep.mubr.f32.mxu1 %v16689_v11 }
 0x147   :  { %v733_v50 = vpop.f32.mrf.mxu0  ;;  %5446 = vmatmul.mubr.f32.gmra.mxu0 %v16951_v41  ;;  %v938_v51 = vpop.f32.mrf.mxu1  ;;  %v16964_v41 = vld [vmem:[#allocation7_spill] sm:$0xff] }
 0x148   :  { %16950 = vst [vmem:[#allocation37_spill] sm:$0xff] %v10277_v15  ;;  %v734_v32 = vadd.f32 %v733_v50, %v10110_v14  ;;  %v10282_v6 = vadd.f32 %v938_v51, %v728_v39  ;;  %5451 = vmatprep.mubr.f32.mxu0 %v16689_v11 }
 0x149   :  { %v735_v31 = vpop.f32.mrf.mxu0  ;;  %v945_v52 = vpop.f32.mrf.mxu1  ;;  %5658 = vmatmul.mubr.f32.gmra.mxu1 %v16953_v17 }
 0x14a   :  { %16952 = vst [vmem:[#allocation19_spill] sm:$0xff] %v10282_v6  ;;  %v736_v28 = vadd.f32 %v735_v31, %v10113_v49  ;;  %v10288_v57 = vadd.f32 %v945_v52, %v734_v32  ;;  %5663 = vmatprep.mubr.f32.mxu1 %v16689_v11 }
 0x14b   :  { %v741_v2 = vpop.f32.mrf.mxu0  ;;  %5454 = vmatmul.mubr.f32.gmra.mxu0 %v10076_v20  ;;  %v947_v34 = vpop.f32.mrf.mxu1 }
 0x14c   :  { %16954 = vst [vmem:[#allocation38_spill] sm:$0xff] %v10288_v57  ;;  %v742_v14 = vadd.f32 %v741_v2, %v10117_v33  ;;  %v10293_v56 = vadd.f32 %v947_v34, %v736_v28  ;;  %5749 = vmatprep.mubr.f32.mxu0 %v16689_v11  ;;  %v16967_v28 = vld [vmem:[#allocation9_spill] sm:$0xff]  ;;  %v16969_v2 = vld [vmem:[#allocation11_spill] sm:$0xff] }
 0x14d   :  { %v743_v63 = vpop.f32.mrf.mxu0  ;;  %v954_v16 = vpop.f32.mrf.mxu1  ;;  %5667 = vmatmul.mubr.f32.gmra.mxu1 %v16956_v18  ;;  %v16972_v18 = vld [vmem:[#allocation14_spill] sm:$0xff] }
 0x14e   :  { %16955 = vst [vmem:[#allocation39_spill] sm:$0xff] %v10293_v56  ;;  %v744_v49 = vadd.f32 %v743_v63, %v10122_v22  ;;  %v10299_v13 = vadd.f32 %v954_v16, %v742_v14  ;;  %5930 = vmatprep.mubr.f32.mxu1 %v16689_v11  ;;  %v16971_v14 = vld [vmem:[#allocation13_spill] sm:$0xff] }
 0x14f   :  { %v1038_v10 = vpop.f32.mrf.mxu0  ;;  %5751 = vmatmul.mubr.f32.vlgmr.msra.gmra.mxu0 %v16958_v43  ;;  %v956_v4 = vpop.f32.mrf.mxu1 }
 0x150   :  { %16957 = vst [vmem:[#allocation40_spill] sm:$0xff] %v10299_v13  ;;  %v1039_v33 = vadd.f32 %v1038_v10, %v10130_v26  ;;  %v10304_v38 = vadd.f32 %v956_v4, %v744_v49  ;;  %5756 = vmatprep.mubr.f32.mxu0 %v16689_v11 }
 0x151   :  { %v1040_v59 = vpop.f32.mrf.mxu0  ;;  %v1219_v62 = vpop.f32.mrf.mxu1  ;;  %5932 = vmatmul.mubr.f32.vlgmr.msra.gmra.mxu1 %v16958_v43 }
 0x152   :  { %16959 = vst [vmem:[#allocation5_spill] sm:$0xff] %v10304_v38  ;;  %v1041_v20 = vadd.f32 %v1040_v59, %v10137_v36  ;;  %v10309_v22 = vadd.f32 %v1219_v62, %v1039_v33  ;;  %5937 = vmatprep.mubr.f32.mxu1 %v16689_v11  ;;  %v16974_v33 = vld [vmem:[#allocation15_spill] sm:$0xff] }
 0x153   :  { %v1045_v19 = vpop.f32.mrf.mxu0  ;;  %5758 = vmatmul.mubr.f32.gmra.mxu0 %v16961_v40  ;;  %v1221_v47 = vpop.f32.mrf.mxu1 }
 0x154   :  { %16960 = vst [vmem:[#allocation41_spill] sm:$0xff] %v10309_v22  ;;  %v1046_v26 = vadd.f32 %v1045_v19, %v10144_v44  ;;  %5763 = vmatprep.mubr.f32.mxu0 %v16689_v11  ;;  %v10315_v45 = vadd.f32 %v1221_v47, %v1041_v20  ;;  %v16975_v20 = vld [vmem:[#allocation16_spill] sm:$0xff]  ;;  %v17030_v55 = vand.u32 2147483647, %v10309_v22 }
 0x155   :  { %v1047_v21 = vpop.f32.mrf.mxu0  ;;  %v1226_v61 = vpop.f32.mrf.mxu1  ;;  %5939 = vmatmul.mubr.f32.gmra.mxu1 %v16961_v40  ;;  %v16978_v40 = vld [vmem:[#allocation17_spill] sm:$0xff] }
 0x156   :  { %16962 = vst [vmem:[#allocation6_spill] sm:$0xff] %v10315_v45  ;;  %v1048_v36 = vadd.f32 %v1047_v21, %v10150_v30  ;;  %5944 = vmatprep.mubr.f32.mxu1 %v16689_v11  ;;  %v10320_v50 = vadd.f32 %v1226_v61, %v1046_v26  ;;  %v16966_v30 = vld [vmem:[#allocation8_spill] sm:$0xff]  ;;  %v16981_v21 = vld [vmem:[#allocation18_spill] sm:$0xff] }
 0x157   :  { %v1052_v39 = vpop.f32.mrf.mxu0  ;;  %5765 = vmatmul.mubr.f32.gmra.mxu0 %v16964_v41  ;;  %v1228_v51 = vpop.f32.mrf.mxu1 }
 0x158   :  { %16963 = vst [vmem:[#allocation42_spill] sm:$0xff] %v10320_v50  ;;  %v1053_v44 = vadd.f32 %v1052_v39, %v10156_v25  ;;  %v10324_v32 = vadd.f32 %v1228_v51, %v1048_v36  ;;  %5770 = vmatprep.mubr.f32.mxu0 %v16689_v11  ;;  %v17042_v42 = vand.u32 2147483647, %v10320_v50 }
 0x159   :  { %v1054_v31 = vpop.f32.mrf.mxu0  ;;  %5946 = vmatmul.mubr.f32.gmra.mxu1 %v16964_v41  ;;  %v1233_v34 = vpop.f32.mrf.mxu1 }
 0x15a   :  { %16965 = vst [vmem:[#allocation7_spill] sm:$0xff] %v10324_v32  ;;  %v10329_v52 = vadd.f32 %v1054_v31, %v10161_v24  ;;  %5951 = vmatprep.mubr.f32.mxu1 %v16689_v11  ;;  %v16968_v24 = vld [vmem:[#allocation10_spill] sm:$0xff]  ;;  %v10362_v10 = vadd.f32 %v1233_v34, %v1053_v44 }
 0x15b   :  { %5772 = vmatmul.mubr.f32.gmra.mxu0 %v16966_v30  ;;  %v1059_v17 = vpop.f32.mrf.mxu0  ;;  %v10355_v63 = vpop.f32.mrf.mxu1 }
 0x15c   :  { %5777 = vmatprep.mubr.f32.mxu0 %v16689_v11  ;;  %v1060_v25 = vadd.f32 %v1059_v17, %v10167_v23  ;;  %v16970_v23 = vld [vmem:[#allocation12_spill] sm:$0xff]  ;;  %16973 = vst [vmem:[#allocation8_spill] sm:$0xff] %v10362_v10 }
 0x15d   :  { %5953 = vmatmul.mubr.f32.gmra.mxu1 %v16966_v30  ;;  %v1061_v16 = vpop.f32.mrf.mxu0  ;;  %v1240_v49 = vpop.f32.mrf.mxu1 }
 0x15e   :  { %5958 = vmatprep.mubr.f32.mxu1 %v16689_v11  ;;  %v1062_v43 = vadd.f32 %v1061_v16, %v10172_v9  ;;  %v10403_v44 = vadd.f32 %v1240_v49, %v1060_v25 }
 0x15f   :  { %5779 = vmatmul.mubr.f32.gmra.mxu0 %v16967_v28  ;;  %v1066_v4 = vpop.f32.mrf.mxu0  ;;  %v1242_v59 = vpop.f32.mrf.mxu1 }
 0x160   :  { %5784 = vmatprep.mubr.f32.mxu0 %v16689_v11  ;;  %v10401_v51 = vadd.f32 %v1066_v4, %v10178_v8  ;;  %16987 = vst [vmem:[#allocation18_spill] sm:$0xff] %v10403_v44  ;;  %v10408_v30 = vadd.f32 %v1242_v59, %v1062_v43 }
 0x161   :  { %5960 = vmatmul.mubr.f32.gmra.mxu1 %v16967_v28  ;;  %v1068_v62 = vpop.f32.mrf.mxu0  ;;  %v10372_v19 = vpop.f32.mrf.mxu1 }
 0x162   :  { %5965 = vmatprep.mubr.f32.mxu1 %v16689_v11  ;;  %16976 = vst [vmem:[#allocation9_spill] sm:$0xff] %v10372_v19  ;;  %16986 = vst [vmem:[#allocation17_spill] sm:$0xff] %v10401_v51  ;;  %v10406_v31 = vadd.f32 %v1068_v62, %v10183_v53 }
 0x163   :  { %5786 = vmatmul.mubr.f32.gmra.mxu0 %v16968_v24  ;;  %v10376_v9 = vpop.f32.mrf.mxu0  ;;  %v10380_v47 = vpop.f32.mrf.mxu1 }
 0x164   :  { %5791 = vmatprep.mubr.f32.mxu0 %v16689_v11  ;;  %16977 = vst [vmem:[#allocation10_spill] sm:$0xff] %v10376_v9  ;;  %16979 = vst [vmem:[#allocation11_spill] sm:$0xff] %v10380_v47 }
 0x165   :  { %5967 = vmatmul.mubr.f32.gmra.mxu1 %v16968_v24  ;;  %v10384_v26 = vpop.f32.mrf.mxu0  ;;  %v10390_v36 = vpop.f32.mrf.mxu1  ;;  %16988 = vst [vmem:[#allocation43_spill] sm:$0xff] %v10406_v31 }
 0x166   :  { %5972 = vmatprep.mubr.f32.mxu1 %v16689_v11  ;;  %16980 = vst [vmem:[#allocation12_spill] sm:$0xff] %v10384_v26  ;;  %16983 = vst [vmem:[#allocation14_spill] sm:$0xff] %v10390_v36 }
 0x167   :  { %5793 = vmatmul.mubr.f32.gmra.mxu0 %v16969_v2  ;;  %v10388_v61 = vpop.f32.mrf.mxu0  ;;  %v10394_v41 = vpop.f32.mrf.mxu1 }
 0x168   :  { %5798 = vmatprep.mubr.f32.mxu0 %v16689_v11  ;;  %16982 = vst [vmem:[#allocation13_spill] sm:$0xff] %v10388_v61  ;;  %16985 = vst [vmem:[#allocation16_spill] sm:$0xff] %v10394_v41 }
 0x169   :  { %5974 = vmatmul.mubr.f32.gmra.mxu1 %v16969_v2  ;;  %v10392_v39 = vpop.f32.mrf.mxu0  ;;  %v10412_v28 = vpop.f32.mrf.mxu1 }
 0x16a   :  { %5979 = vmatprep.mubr.f32.mxu1 %v16689_v11  ;;  %16984 = vst [vmem:[#allocation15_spill] sm:$0xff] %v10392_v39  ;;  %16990 = vst [vmem:[#allocation45_spill] sm:$0xff] %v10412_v28 }
 0x16b   :  { %5800 = vmatmul.mubr.f32.gmra.mxu0 %v16970_v23  ;;  %v10410_v17 = vpop.f32.mrf.mxu0  ;;  %v10416_v2 = vpop.f32.mrf.mxu1 }
 0x16c   :  { %5805 = vmatprep.mubr.f32.mxu0 %v16689_v11  ;;  %16989 = vst [vmem:[#allocation44_spill] sm:$0xff] %v10410_v17  ;;  %16992 = vst [vmem:[#allocation47_spill] sm:$0xff] %v10416_v2  ;;  %v17046_v2 = vmov 2131351028  }
 0x16d   :  { %5981 = vmatmul.mubr.f32.gmra.mxu1 %v16970_v23  ;;  %v10414_v24 = vpop.f32.mrf.mxu0  ;;  %v16993_v23 = vld [vmem:[#allocation20_spill] sm:$0xff]  ;;  %v10422_v8 = vpop.f32.mrf.mxu1 }
 0x16e   :  { %5986 = vmatprep.mubr.f32.mxu1 %v16689_v11  ;;  %16991 = vst [vmem:[#allocation46_spill] sm:$0xff] %v10414_v24  ;;  %16994 = vst [vmem:[#allocation20_spill] sm:$0xff] %v10422_v8 }
 0x16f   :  { %5807 = vmatmul.mubr.f32.gmra.mxu0 %v16971_v14  ;;  %v10424_v53 = vpop.f32.mrf.mxu1  ;;  %v10428_v25 = vpop.f32.mrf.mxu0 }
 0x170   :  { %5812 = vmatprep.mubr.f32.mxu0 %v16689_v11  ;;  %16995 = vst [vmem:[#allocation48_spill] sm:$0xff] %v10424_v53  ;;  %16996 = vst [vmem:[#allocation49_spill] sm:$0xff] %v10428_v25  ;;  %v10574_v53 = vand.u32 8388607, %v17042_v42  ;;  %v1644_v42 = vand.u32 2139095040, %v10324_v32 }
 0x171   :  { %5988 = vmatmul.mubr.f32.gmra.mxu1 %v16971_v14  ;;  %v10430_v34 = vpop.f32.mrf.mxu0  ;;  %v10432_v14 = vpop.f32.mrf.mxu1 }
 0x172   :  { %5993 = vmatprep.mubr.f32.mxu1 %v16689_v11  ;;  %16997 = vst [vmem:[#allocation50_spill] sm:$0xff] %v10430_v34  ;;  %16998 = vst [vmem:[#allocation51_spill] sm:$0xff] %v10432_v14  ;;  %v1645_v28 = vshrl.u32 %v1644_v42, 23 }
 0x173   :  { %5814 = vmatmul.mubr.f32.gmra.mxu0 %v16972_v18  ;;  %v10434_v16 = vpop.f32.mrf.mxu0 }
 0x174   :  { %5819 = vmatprep.mubr.f32.mxu0 %v16689_v11  ;;  %16999 = vst [vmem:[#allocation52_spill] sm:$0xff] %v10434_v16 }
 0x175   :  { %5995 = vmatmul.mubr.f32.gmra.mxu1 %v16972_v18  ;;  %v10438_v18 = vpop.f32.mrf.mxu0 }
 0x176   :  { %6000 = vmatprep.mubr.f32.mxu1 %v16689_v11  ;;  %17001 = vst [vmem:[#allocation54_spill] sm:$0xff] %v10438_v18 }
 0x177   :  { %5821 = vmatmul.mubr.f32.gmra.mxu0 %v16974_v33  ;;  %v10442_v43 = vpop.f32.mrf.mxu0 }
 0x178   :  { %5826 = vmatprep.mubr.f32.mxu0 %v16689_v11  ;;  %17003 = vst [vmem:[#allocation56_spill] sm:$0xff] %v10442_v43 }
 0x179   :  { %6002 = vmatmul.mubr.f32.gmra.mxu1 %v16974_v33  ;;  %v10446_v33 = vpop.f32.mrf.mxu0 }
 0x17a   :  { %6007 = vmatprep.mubr.f32.mxu1 %v16689_v11  ;;  %17005 = vst [vmem:[#allocation58_spill] sm:$0xff] %v10446_v33 }
 0x17b   :  { %5828 = vmatmul.mubr.f32.gmra.mxu0 %v16975_v20  ;;  %v10450_v62 = vpop.f32.mrf.mxu0 }
 0x17c   :  { %5833 = vmatprep.mubr.f32.mxu0 %v16689_v11  ;;  %17007 = vst [vmem:[#allocation60_spill] sm:$0xff] %v10450_v62 }
 0x17d   :  { %6009 = vmatmul.mubr.f32.gmra.mxu1 %v16975_v20 }
 0x17e   :  { %6014 = vmatprep.mubr.f32.mxu1 %v16689_v11 }
 0x17f   :  { %5835 = vmatmul.mubr.f32.gmra.mxu0 %v16978_v40 }
 0x180   :  { %5840 = vmatprep.mubr.f32.mxu0 %v16689_v11 }
 0x181   :  { %6016 = vmatmul.mubr.f32.gmra.mxu1 %v16978_v40  ;;  %v10454_v40 = vpop.f32.mrf.mxu0 }
 0x182   :  { %6021 = vmatprep.mubr.f32.mxu1 %v16689_v11  ;;  %17009 = vst [vmem:[#allocation62_spill] sm:$0xff] %v10454_v40 }
 0x183   :  { %5842 = vmatmul.mubr.f32.gmra.mxu0 %v16981_v21 }
 0x184   :  { %5847 = vmatprep.mubr.f32.mxu0 %v16689_v11 }
 0x185   :  { %6023 = vmatmul.mubr.f32.gmra.mxu1 %v16981_v21 }
 0x186   :  { %6028 = vmatprep.mubr.f32.mxu1 %v16689_v11 }
 0x187   :  { %5849 = vmatmul.mubr.f32.gmra.mxu0 %v10045_v46 }
 0x188   :  { %5854 = vmatprep.mubr.f32.mxu0 %v16689_v11 }
 0x189   :  { %6030 = vmatmul.mubr.f32.gmra.mxu1 %v10045_v46  ;;  %v10436_v46 = vpop.f32.mrf.mxu1 }
 0x18a   :  { %6035 = vmatprep.mubr.f32.mxu1 %v16689_v11  ;;  %17000 = vst [vmem:[#allocation53_spill] sm:$0xff] %v10436_v46  ;;  %v17031_v46 = vmov 920167782  }
 0x18b   :  { %5856 = vmatmul.mubr.f32.gmra.mxu0 %v16993_v23  ;;  %v10440_v49 = vpop.f32.mrf.mxu1 }
 0x18c   :  { %6140 = vmatprep.mubr.f32.mxu0 %v16689_v11  ;;  %17002 = vst [vmem:[#allocation55_spill] sm:$0xff] %v10440_v49  ;;  %v1336_v49 = vand.u32 8388607, %v17030_v55 }
 0x18d   :  { %6037 = vmatmul.mubr.f32.gmra.mxu1 %v16993_v23  ;;  %v10444_v4 = vpop.f32.mrf.mxu1  ;;  %v10458_v23 = vpop.f32.mrf.mxu0 }
 0x18e   :  { %6289 = vmatprep.mubr.f32.mxu1 %v16689_v11  ;;  %17004 = vst [vmem:[#allocation57_spill] sm:$0xff] %v10444_v4  ;;  %17011 = vst [vmem:[#allocation64_spill] sm:$0xff] %v10458_v23  ;;  %v1332_v11 = vand.u32 2139095040, %v10309_v22 }
 0x18f   :  { %v10448_v59 = vpop.f32.mrf.mxu1  ;;  %v10463_v13 = vpop.f32.mrf.mxu0 }
 0x190   :  { %17006 = vst [vmem:[#allocation59_spill] sm:$0xff] %v10448_v59  ;;  %17013 = vst [vmem:[#allocation66_spill] sm:$0xff] %v10463_v13  ;;  %v1333_v56 = vshrl.u32 %v1332_v11, 23  ;;  %v1436_v13 = vand.u32 2139095040, %v10315_v45  ;;  %v16695_v59 = vmov 1326507024  }
 0x191   :  { %v10452_v20 = vpop.f32.mrf.mxu1  ;;  %v10467_v6 = vpop.f32.mrf.mxu0 }
 0x192   :  { %17008 = vst [vmem:[#allocation61_spill] sm:$0xff] %v10452_v20  ;;  %17015 = vst [vmem:[#allocation68_spill] sm:$0xff] %v10467_v6  ;;  %v8775_v15 = vadd.s32 4294967169, %v1333_v56 }
 0x193   :  { %v10456_v21 = vpop.f32.mrf.mxu1  ;;  %v10471_v12 = vpop.f32.mrf.mxu0 }
 0x194   :  { %17010 = vst [vmem:[#allocation63_spill] sm:$0xff] %v10456_v21  ;;  %17017 = vst [vmem:[#allocation70_spill] sm:$0xff] %v10471_v12  ;;  %v1339_v40 = vadd.s32 1, %v8775_v15  ;;  %v1540_v12 = vand.u32 2139095040, %v10320_v50  ;;  %v1437_v15 = vshrl.u32 %v1436_v13, 23 }
 0x195   :  { %v10461_v38 = vpop.f32.mrf.mxu1  ;;  %v10475_v23 = vpop.f32.mrf.mxu0  ;;  %v16693_v13 = vmov 2102212464  }
 0x196   :  { %17012 = vst [vmem:[#allocation65_spill] sm:$0xff] %v10461_v38  ;;  %17019 = vst [vmem:[#allocation72_spill] sm:$0xff] %v10475_v23  ;;  %vm1340_vm2 = vcmp.gt.s32.totalorder %v1339_v40, 0  ;;  %v8779_v20 = vadd.s32 4294967169, %v1437_v15 }
 0x197   :  { %v10465_v57 = vpop.f32.mrf.mxu1  ;;  %v10479_v38 = vpop.f32.mrf.mxu0  ;;  %v1341_v11 = vsel %vm1340_vm2, %v1339_v40, 0  ;;  %v16691_v40 = vmov 920167782  }
 0x198   :  { %17014 = vst [vmem:[#allocation67_spill] sm:$0xff] %v10465_v57  ;;  %17021 = vst [vmem:[#allocation74_spill] sm:$0xff] %v10479_v38  ;;  %v1343_v56 = vand.u32 31, %v1341_v11  ;;  %v1443_v33 = vadd.s32 1, %v8779_v20 }
 0x199   :  { %v10469_v60 = vpop.f32.mrf.mxu1  ;;  %v10484_v6 = vpop.f32.mrf.mxu0 }
 0x19a   :  { %17016 = vst [vmem:[#allocation69_spill] sm:$0xff] %v10469_v60  ;;  %17023 = vst [vmem:[#allocation76_spill] sm:$0xff] %v10484_v6  ;;  %vm1444_vm3 = vcmp.gt.s32.totalorder %v1443_v33, 0 }
 0x19b   :  { %v10473_v54 = vpop.f32.mrf.mxu1  ;;  %v10491_v23 = vpop.f32.mrf.mxu0 }
 0x19c   :  { %17018 = vst [vmem:[#allocation71_spill] sm:$0xff] %v10473_v54  ;;  %v10489_v54 = vsub.s32 32, %v1343_v56  ;;  %17025 = vst [vmem:[#allocation78_spill] sm:$0xff] %v10491_v23  ;;  %v10503_v23 = vshrl.u32 %v1341_v11, 5  ;;  %v16697_v11 = vmov 683565275  }
 0x19d   :  { %v10477_v21 = vpop.f32.mrf.mxu1  ;;  %v10497_v62 = vpop.f32.mrf.mxu0 }
 0x19e   :  { %17020 = vst [vmem:[#allocation73_spill] sm:$0xff] %v10477_v21  ;;  %v1541_v21 = vshrl.u32 %v1540_v12, 23  ;;  %17027 = vst [vmem:[#allocation80_spill] sm:$0xff] %v10497_v62  ;;  %v16701_v12 = vmov 2475754826   ;;  %v1359_v20 = vshrl.u32 %v16695_v59, %v10489_v54  ;;  %vm1364_vm4 = vcmp.lt.s32.totalorder %v10503_v23, 4 }
 0x19f   :  { %v10482_v57 = vpop.f32.mrf.mxu1  ;;  %v1347_v15 = vshrl.u32 %v16701_v12, %v10489_v54  ;;  %v10513_v43 = vpop.f32.mrf.mxu0  ;;  %v1349_v1 = vshll.u32 %v16701_v12, %v1343_v56  ;;  %v1445_v12 = vsel %vm1444_vm3, %v1443_v33, 0  ;;  %vm1361_vm6 = vcmp.lt.s32.totalorder %v10503_v23, 1 }
 0x1a0   :  { %17022 = vst [vmem:[#allocation75_spill] sm:$0xff] %v10482_v57  ;;  %v1356_v57 = vshrl.u32 %v16691_v40, %v10489_v54  ;;  %v8783_v6 = vadd.s32 4294967169, %v1541_v21  ;;  %v1353_v21 = vshrl.u32 %v16693_v13, %v10489_v54  ;;  %17029 = vst [vmem:[#allocation82_spill] sm:$0xff] %v10513_v43  ;;  %vm1363_vm7 = vcmp.lt.s32.totalorder %v10503_v23, 3 }
 0x1a1   :  { %v10487_v60 = vpop.f32.mrf.mxu1  ;;  %vm1362_vm8 = vcmp.lt.s32.totalorder %v10503_v23, 2  ;;  %v10595_v17 = vshrl.u32 %v1445_v12, 5  ;;  %v17048_v23 = vmov 2102212464  }
 0x1a2   :  { %17024 = vst [vmem:[#allocation77_spill] sm:$0xff] %v10487_v60  ;;  %v1355_v60 = vshll.u32 %v16693_v13, %v1343_v56  ;;  %v1547_v18 = vadd.s32 1, %v8783_v6  ;;  %v1358_v13 = vshll.u32 %v17031_v46, %v1343_v56 }
 0x1a3   :  { %v10493_v38 = vpop.f32.mrf.mxu1  ;;  %vm1468_vm9 = vcmp.lt.s32.totalorder %v10595_v17, 4  ;;  %vm1465_vm12 = vcmp.lt.s32.totalorder %v10595_v17, 1  ;;  %vm1466_vm13 = vcmp.lt.s32.totalorder %v10595_v17, 2  ;;  %vm1467_vm14 = vcmp.lt.s32.totalorder %v10595_v17, 3 }
 0x1a4   :  { %17026 = vst [vmem:[#allocation79_spill] sm:$0xff] %v10493_v38  ;;  %v16699_v38 = vmov 2131351028   ;;  %v1357_v0 = vor.u32 %v1356_v57, %v1355_v60  ;;  %v10521_v60 = vpop.f32.mrf.mxu0  ;;  %vm1548_vm5 = vcmp.gt.s32.totalorder %v1547_v18, 0 }
 0x1a5   :  { %v10501_v48 = vpop.f32.mrf.mxu1  ;;  %v1350_v40 = vshrl.u32 %v16699_v38, %v10489_v54  ;;  %v1352_v4 = vshll.u32 %v16699_v38, %v1343_v56  ;;  %17032 = vst [vmem:[#allocation83_spill] sm:$0xff] %v10521_v60 }
 0x1a6   :  { %17028 = vst [vmem:[#allocation81_spill] sm:$0xff] %v10501_v48  ;;  %v1346_v48 = vshll.u32 %v16697_v11, %v1343_v56  ;;  %v1360_v11 = vor.u32 %v1359_v20, %v1358_v13  ;;  %v1370_v38 = vsel %vm1364_vm4, %v1357_v0, 920167782  ;;  %v10528_v6 = vpop.f32.mrf.mxu0  ;;  %v1337_v56 = vor.u32 8388608, %v1336_v49  ;;  %v8197_v20 = vld [vmem:[%s16634_s6] sm:$0x3] }
 0x1a7   :  { %v10523_v57 = vpop.f32.mrf.mxu1  ;;  %v1351_v16 = vor.u32 %v1350_v40, %v1349_v1  ;;  %v1354_v27 = vor.u32 %v1353_v21, %v1352_v4  ;;  %17034 = vst [vmem:[#allocation85_spill] sm:$0xff] %v10528_v6  ;;  %v1549_v21 = vsel %vm1548_vm5, %v1547_v18, 0  ;;  %8200 = vperm.xlu0 %9049, %v8197_v20   ;;  %v17040_v20 = vmov 683565275  }
 0x1a8   :  { %17033 = vst [vmem:[#allocation84_spill] sm:$0xff] %v10523_v57  ;;  %v1348_v59 = vor.u32 %v1347_v15, %v1346_v48  ;;  %v10534_v48 = vpop.f32.mrf.mxu0  ;;  %v1374_v49 = vsel %vm1364_vm4, %v1360_v11, 1326507024  ;;  %v1447_v15 = vand.u32 31, %v1445_v12  ;;  %v10552_v40 = vshll.u32 %v1337_v56, 8 }
 0x1a9   :  { %v10530_v55 = vpop.f32.mrf.mxu1  ;;  %17036 = vst [vmem:[#allocation87_spill] sm:$0xff] %v10534_v48  ;;  %v1371_v4 = vsel %vm1363_vm7, %v1354_v27, %v1370_v38  ;;  %v1366_v34 = vsel %vm1364_vm4, %v1354_v27, 2102212464  ;;  %v1373_v18 = vsel %vm1361_vm6, %v1351_v16, %v1354_v27  ;;  %v1375_v11 = vsel %vm1363_vm7, %v1357_v0, %v1374_v49 }
 0x1aa   :  { %17035 = vst [vmem:[#allocation86_spill] sm:$0xff] %v10530_v55  ;;  %v1369_v1 = vsel %vm1361_vm6, %v1348_v59, %v1351_v16  ;;  %v10554_v33 = vpop.f32.mrf.mxu0  ;;  %v1551_v35 = vand.u32 31, %v1549_v21  ;;  %v1345_v25 = vshrl.u32 %v17040_v20, %v10489_v54  ;;  %v17041_v56 = vand.u32 2147483647, %v10315_v45 }
 0x1ab   :  { %v10542_v13 = vpop.f32.mrf.mxu1  ;;  %v1372_v38 = vsel %vm1362_vm8, %v1369_v1, %v1371_v4  ;;  %17038 = vst [vmem:[#allocation89_spill] sm:$0xff] %v10554_v33  ;;  %v10570_v4 = vsub.s32 32, %v1447_v15  ;;  %v1367_v54 = vsel %vm1363_vm7, %v1351_v16, %v1366_v34  ;;  %v1376_v49 = vsel %vm1362_vm8, %v1373_v18, %v1375_v11 }
 0x1ac   :  { %17037 = vst [vmem:[#allocation88_spill] sm:$0xff] %v10542_v13  ;;  %v10568_v1 = vand.u32 8388607, %v17041_v56  ;;  %v10577_v27 = vmul.u32.u64.low %v10552_v40, %v1372_v38  ;;  %v10578_v24 = vmul.u32.u64.high %v10552_v40, %v1372_v38, %v10577_v27  ;;  %v1365_v0 = vsel %vm1361_vm6, %v1345_v25, %v1348_v59  ;;  %v10587_v56 = vpop.f32.mrf.mxu0 }
 0x1ad   :  { %v10562_v14 = vpop.f32.mrf.mxu1  ;;  %17043 = vst [vmem:[#allocation91_spill] sm:$0xff] %v10587_v56  ;;  %v10589_v37 = vsub.s32 32, %v1551_v35  ;;  %v17045_v25 = vmov 2475754826   ;;  %v10602_v16 = vsel %vm1362_vm8, %v1365_v0, %v1367_v54  ;;  %v1460_v58 = vshrl.u32 %v17031_v46, %v10570_v4 }
 0x1ae   :  { %17039 = vst [vmem:[#allocation90_spill] sm:$0xff] %v10562_v14  ;;  %v1451_v59 = vshrl.u32 %v17045_v25, %v10570_v4  ;;  %v10605_v18 = vmul.u32.u64.low %v10552_v40, %v1376_v49  ;;  %v10606_v11 = vmul.u32.u64.high %v10552_v40, %v1376_v49, %v10605_v18  ;;  %v1450_v38 = vshll.u32 %v17040_v20, %v1447_v15  ;;  %v10615_v5 = vpop.f32.mrf.mxu0 }
 0x1af   :  { %v10592_v8 = vpop.f32.mrf.mxu1  ;;  %v1453_v12 = vshll.u32 %v17045_v25, %v1447_v15  ;;  %v1454_v39 = vshrl.u32 %v17046_v2, %v10570_v4  ;;  %v1456_v34 = vshll.u32 %v17046_v2, %v1447_v15  ;;  %17047 = vst [vmem:[#allocation93_spill] sm:$0xff] %v10615_v5  ;;  %v1459_v0 = vshll.u32 %v17048_v23, %v1447_v15 }
 0x1b0   :  { %17044 = vst [vmem:[#allocation92_spill] sm:$0xff] %v10592_v8  ;;  %v17049_v54 = vmov 1326507024   ;;  %v1564_v18 = vshrl.u32 %v17031_v46, %v10589_v37  ;;  %v10624_v61 = vor.u32 %v1451_v59, %v1450_v38  ;;  %v1457_v3 = vshrl.u32 %v17048_v23, %v10570_v4 }
 0x1b1   :  { %v1463_v49 = vshrl.u32 %v17049_v54, %v10570_v4  ;;  %v10622_v41 = vpop.f32.mrf.mxu1  ;;  %v1462_v26 = vshll.u32 %v17031_v46, %v1447_v15  ;;  %v1567_v29 = vshrl.u32 %v17049_v54, %v10589_v37  ;;  %v1387_v8 = vadd.s32 1, %v10578_v24 }
 0x1b2   :  { %17050 = vst [vmem:[#allocation94_spill] sm:$0xff] %v10622_v41  ;;  %v1461_v5 = vor.u32 %v1460_v58, %v1459_v0  ;;  %v10632_v14 = vshrl.u32 %v1549_v21, 5  ;;  %v1563_v33 = vshll.u32 %v17048_v23, %v1551_v35  ;;  %v1555_v42 = vshrl.u32 %v17045_v25, %v10589_v37  ;;  %v10642_v41 = vpop.f32.mrf.mxu0 }
 0x1b3   :  { %v1558_v38 = vshrl.u32 %v17046_v2, %v10589_v37  ;;  %v1561_v59 = vshrl.u32 %v17048_v23, %v10589_v37  ;;  %v1566_v15 = vshll.u32 %v17031_v46, %v1551_v35  ;;  %17051 = vst [vmem:[#allocation95_spill] sm:$0xff] %v10642_v41  ;;  %v10644_v13 = vpop.f32.mrf.mxu1  ;;  %v1464_v58 = vor.u32 %v1463_v49, %v1462_v26 }
 0x1b4   :  { %17052 = vst [vmem:[#allocation96_spill] sm:$0xff] %v10644_v13  ;;  %v1565_v21 = vor.u32 %v1564_v18, %v1563_v33  ;;  %v8787_v0 = vadd.s32 4294967169, %v1645_v28  ;;  %v1554_v55 = vshll.u32 %v17040_v20, %v1551_v35  ;;  %v1557_v57 = vshll.u32 %v17045_v25, %v1551_v35  ;;  %v10656_v49 = vpop.f32.mrf.mxu0 }
 0x1b5   :  { %v1560_v56 = vshll.u32 %v17046_v2, %v1551_v35  ;;  %v1568_v48 = vor.u32 %v1567_v29, %v1566_v15  ;;  %vm1386_vm10 = vc.u32 %v10606_v11, %v10577_v27  ;;  %v10652_v6 = vor.u32 %v1454_v39, %v1453_v12  ;;  %17053 = vst [vmem:[#allocation97_spill] sm:$0xff] %v10656_v49  ;;  %v10658_v33 = vpop.f32.mrf.mxu1 }
 0x1b6   :  { %v1458_v41 = vor.u32 %v1457_v3, %v1456_v34  ;;  %v1474_v26 = vsel %vm1468_vm9, %v1461_v5, 920167782  ;;  %17054 = vst [vmem:[#allocation98_spill] sm:$0xff] %v10658_v33  ;;  %v10660_v28 = vor.u32 %v1555_v42, %v1554_v55  ;;  %v10662_v18 = vor.u32 %v1558_v38, %v1557_v57  ;;  %v10670_v39 = vpop.f32.mrf.mxu0 }
 0x1b7   :  { %v1562_v13 = vor.u32 %v1561_v59, %v1560_v56  ;;  %vm1572_vm11 = vcmp.lt.s32.totalorder %v10632_v14, 4  ;;  %v1478_v29 = vsel %vm1468_vm9, %v1464_v58, 1326507024  ;;  %v1651_v35 = vadd.s32 1, %v8787_v0  ;;  %17055 = vst [vmem:[#allocation99_spill] sm:$0xff] %v10670_v39  ;;  %v10672_v34 = vpop.f32.mrf.mxu1 }
 0x1b8   :  { %v1578_v3 = vsel %vm1572_vm11, %v1565_v21, 920167782  ;;  %17056 = vst [vmem:[#allocation100_spill] sm:$0xff] %v10672_v34  ;;  %v1388_v57 = vsel %vm1386_vm10, %v1387_v8, %v10578_v24  ;;  %v1582_v55 = vsel %vm1572_vm11, %v1568_v48, 1326507024  ;;  %v1473_v56 = vsel %vm1465_vm12, %v10624_v61, %v10652_v6  ;;  %v10690_v24 = vpop.f32.mrf.mxu0 }
 0x1b9   :  { %v1475_v12 = vsel %vm1467_vm14, %v1458_v41, %v1474_v26  ;;  %vm1569_vm15 = vcmp.lt.s32.totalorder %v10632_v14, 1  ;;  %vm1571_vm0 = vcmp.lt.s32.totalorder %v10632_v14, 3  ;;  %17057 = vst [vmem:[#allocation101_spill] sm:$0xff] %v10690_v24  ;;  %v10692_v8 = vpop.f32.mrf.mxu1  ;;  %v1477_v48 = vsel %vm1465_vm12, %v10652_v6, %v1458_v41 }
 0x1ba   :  { %17058 = vst [vmem:[#allocation102_spill] sm:$0xff] %v10692_v8  ;;  %v1479_v42 = vsel %vm1467_vm14, %v1461_v5, %v1478_v29  ;;  %v1577_v38 = vsel %vm1569_vm15, %v10660_v28, %v10662_v18  ;;  %v1579_v59 = vsel %vm1571_vm0, %v1562_v13, %v1578_v3  ;;  %v1581_v15 = vsel %vm1569_vm15, %v10662_v18, %v1562_v13  ;;  %v10711_v26 = vpop.f32.mrf.mxu0 }
 0x1bb   :  { %v1583_v58 = vsel %vm1571_vm0, %v1565_v21, %v1582_v55  ;;  %vm1652_vm1 = vcmp.gt.s32.totalorder %v1651_v35, 0  ;;  %v1748_v0 = vand.u32 2139095040, %v10362_v10  ;;  %17059 = vst [vmem:[#allocation103_spill] sm:$0xff] %v10711_v26  ;;  %v10713_v5 = vpop.f32.mrf.mxu1  ;;  %v1384_v29 = vmul.u32 %v10552_v40, %v10602_v16 }
 0x1bc   :  { %17060 = vst [vmem:[#allocation104_spill] sm:$0xff] %v10713_v5  ;;  %v1476_v3 = vsel %vm1466_vm13, %v1473_v56, %v1475_v12  ;;  %vm1570_vm2 = vcmp.lt.s32.totalorder %v10632_v14, 2  ;;  %v1480_v8 = vsel %vm1466_vm13, %v1477_v48, %v1479_v42  ;;  %v17061_v21 = vor.u32 8388608, %v10568_v1  ;;  %v10728_v24 = vpop.f32.mrf.mxu0 }
 0x1bd   :  { %v1580_v34 = vsel %vm1570_vm2, %v1577_v38, %v1579_v59  ;;  %17062 = vst [vmem:[#allocation105_spill] sm:$0xff] %v10728_v24  ;;  %v10730_v5 = vpop.f32.mrf.mxu1  ;;  %v10732_v40 = vadd.s32 %v1388_v57, %v1384_v29  ;;  %v1584_v16 = vsel %vm1570_vm2, %v1581_v15, %v1583_v58  ;;  %v17064_v56 = vor.u32 8388608, %v10574_v53 }
 0x1be   :  { %v10724_v55 = vshll.u32 %v17061_v21, 8  ;;  %17063 = vst [vmem:[#allocation106_spill] sm:$0xff] %v10730_v5  ;;  %v1653_v48 = vsel %vm1652_vm1, %v1651_v35, 0  ;;  %v1470_v1 = vsel %vm1468_vm9, %v1458_v41, 2102212464  ;;  %v1749_v59 = vshrl.u32 %v1748_v0, 23  ;;  %v10747_v21 = vpop.f32.mrf.mxu0 }
 0x1bf   :  { %v10738_v12 = vshll.u32 %v17064_v56, 8  ;;  %17066 = vst [vmem:[#allocation108_spill] sm:$0xff] %v10747_v21  ;;  %v10749_v57 = vpop.f32.mrf.mxu1  ;;  %v1449_v41 = vshrl.u32 %v17040_v20, %v10570_v4  ;;  %v10766_v0 = vand.u32 31, %v1653_v48  ;;  %v1956_v49 = vand.u32 2139095040, %v10403_v44 }
 0x1c0   :  { %v10743_v42 = vmul.u32.u64.low %v10724_v55, %v1476_v3  ;;  %v10744_v38 = vmul.u32.u64.high %v10724_v55, %v1476_v3, %v10743_v42  ;;  %17067 = vst [vmem:[#allocation109_spill] sm:$0xff] %v10749_v57  ;;  %v10752_v15 = vmul.u32.u64.low %v10724_v55, %v1480_v8  ;;  %v10753_v58 = vmul.u32.u64.high %v10724_v55, %v1480_v8, %v10752_v15  ;;  %v10768_v56 = vpop.f32.mrf.mxu0 }
 0x1c1   :  { %v10756_v53 = vmul.u32.u64.low %v10738_v12, %v1580_v34  ;;  %v10757_v35 = vmul.u32.u64.high %v10738_v12, %v1580_v34, %v10756_v53  ;;  %v10763_v29 = vmul.u32.u64.low %v10738_v12, %v1584_v16  ;;  %v10764_v3 = vmul.u32.u64.high %v10738_v12, %v1584_v16, %v10763_v29  ;;  %17071 = vst [vmem:[#allocation113_spill] sm:$0xff] %v10768_v56  ;;  %v10770_v57 = vpop.f32.mrf.mxu1 }
 0x1c2   :  { %17065 = vst [vmem:[#allocation107_spill] sm:$0xff] %v10743_v42  ;;  %17068 = vst [vmem:[#allocation110_spill] sm:$0xff] %v10753_v58  ;;  %v1390_v8 = vadd.s32 536870912, %v10732_v40  ;;  %v10775_v34 = vadd.f32 %v10355_v63, %v10329_v52  ;;  %v1469_v4 = vsel %vm1465_vm12, %v1449_v41, %v10624_v61  ;;  %v1471_v16 = vsel %vm1467_vm14, %v10652_v6, %v1470_v1  ;;  %v10783_v29 = vpop.f32.mrf.mxu0 }
 0x1c3   :  { %17069 = vst [vmem:[#allocation111_spill] sm:$0xff] %v10756_v53  ;;  %17070 = vst [vmem:[#allocation112_spill] sm:$0xff] %v10764_v3  ;;  %v8791_v15 = vadd.s32 4294967169, %v1749_v59  ;;  %v10785_v56 = vpop.f32.mrf.mxu1  ;;  %v1553_v52 = vshrl.u32 %v17040_v20, %v10589_v37  ;;  %v10793_v5 = vsub.s32 32, %v10766_v0  ;;  %v1472_v1 = vsel %vm1466_vm13, %v1469_v4, %v1471_v16 }
 0x1c4   :  { %17072 = vst [vmem:[#allocation114_spill] sm:$0xff] %v10770_v57  ;;  %17073 = vst [vmem:[#allocation115_spill] sm:$0xff] %v10775_v34  ;;  %v1574_v57 = vsel %vm1572_vm11, %v1562_v13, 2102212464  ;;  %v10795_v61 = vpop.f32.mrf.mxu0  ;;  %v10799_v6 = vshrl.u32 %v1390_v8, 30  ;;  %v1852_v59 = vand.u32 2139095040, %v10775_v34  ;;  %vm1490_vm3 = vc.u32 %v10753_v58, %v10743_v42 }
 0x1c5   :  { %17074 = vst [vmem:[#allocation116_spill] sm:$0xff] %v10783_v29  ;;  %17075 = vst [vmem:[#allocation117_spill] sm:$0xff] %v10785_v56  ;;  %v10797_v41 = vpop.f32.mrf.mxu1  ;;  %v1491_v13 = vadd.s32 1, %v10744_v38  ;;  %v1573_v37 = vsel %vm1569_vm15, %v1553_v52, %v10660_v28  ;;  %v1575_v63 = vsel %vm1571_vm0, %v10662_v18, %v1574_v57  ;;  %v1595_v17 = vadd.s32 1, %v10757_v35 }
 0x1c6   :  { %17076 = vst [vmem:[#allocation118_spill] sm:$0xff] %v10795_v61  ;;  %17077 = vst [vmem:[#allocation119_spill] sm:$0xff] %v10797_v41  ;;  %v1755_v61 = vadd.s32 1, %v8791_v15  ;;  %v10811_v29 = vpop.f32.mrf.mxu0  ;;  %vm1594_vm4 = vc.u32 %v10764_v3, %v10756_v53  ;;  %v17081_v4 = vand.u32 2147483647, %v10324_v32  ;;  %v1668_v16 = vshrl.u32 %v17031_v46, %v10793_v5 }
 0x1c7   :  { %17078 = vst [vmem:[#allocation120_spill] sm:$0xff] %v10799_v6  ;;  %17079 = vst [vmem:[#allocation121_spill] sm:$0xff] %v10811_v29  ;;  %v10813_v8 = vpop.f32.mrf.mxu1  ;;  %v1392_v15 = vshll.u32 %v10799_v6, 30  ;;  %v1488_v52 = vmul.u32 %v10724_v55, %v1472_v1  ;;  %v1853_v29 = vshrl.u32 %v1852_v59, 23  ;;  %v1492_v41 = vsel %vm1490_vm3, %v1491_v13, %v10744_v38 }
 0x1c8   :  { %17080 = vst [vmem:[#allocation122_spill] sm:$0xff] %v10813_v8  ;;  %v1648_v28 = vand.u32 8388607, %v17081_v4  ;;  %v10824_v18 = vpop.f32.mrf.mxu0  ;;  %v1576_v8 = vsel %vm1570_vm2, %v1573_v37, %v1575_v63  ;;  %v1659_v4 = vshrl.u32 %v17045_v25, %v10793_v5  ;;  %v1667_v56 = vshll.u32 %v17048_v23, %v10766_v0 }
 0x1c9   :  { %17082 = vst [vmem:[#allocation123_spill] sm:$0xff] %v10824_v18  ;;  %v10826_v57 = vpop.f32.mrf.mxu1  ;;  %vm1756_vm5 = vcmp.gt.s32.totalorder %v1755_v61, 0  ;;  %v1596_v24 = vsel %vm1594_vm4, %v1595_v17, %v10757_v35  ;;  %v10842_v55 = vshrl.u32 %v1653_v48, 5  ;;  %v1662_v14 = vshrl.u32 %v17046_v2, %v10793_v5 }
 0x1ca   :  { %17083 = vst [vmem:[#allocation124_spill] sm:$0xff] %v10826_v57  ;;  %v10837_v18 = vpop.f32.mrf.mxu0  ;;  %v1665_v38 = vshrl.u32 %v17048_v23, %v10793_v5  ;;  %v1592_v63 = vmul.u32 %v10738_v12, %v1576_v8  ;;  %v1658_v1 = vshll.u32 %v17040_v20, %v10766_v0  ;;  %v1661_v59 = vshll.u32 %v17045_v25, %v10766_v0 }
 0x1cb   :  { %17084 = vst [vmem:[#allocation125_spill] sm:$0xff] %v10837_v18  ;;  %v10839_v57 = vpop.f32.mrf.mxu1  ;;  %v1669_v13 = vor.u32 %v1668_v16, %v1667_v56  ;;  %v1664_v48 = vshll.u32 %v17046_v2, %v10766_v0  ;;  %v1671_v17 = vshrl.u32 %v17049_v54, %v10793_v5  ;;  %v8795_v18 = vadd.s32 4294967169, %v1853_v29 }
 0x1cc   :  { %17085 = vst [vmem:[#allocation126_spill] sm:$0xff] %v10839_v57  ;;  %v10853_v37 = vpop.f32.mrf.mxu0  ;;  %v1757_v57 = vsel %vm1756_vm5, %v1755_v61, 0  ;;  %v10861_v12 = vadd.s32 %v1492_v41, %v1488_v52  ;;  %v10863_v8 = vadd.s32 %v1596_v24, %v1592_v63  ;;  %v1660_v21 = vor.u32 %v1659_v4, %v1658_v1 }
 0x1cd   :  { %17086 = vst [vmem:[#allocation127_spill] sm:$0xff] %v10853_v37  ;;  %v10855_v35 = vpop.f32.mrf.mxu1  ;;  %v10872_v37 = vor.u32 %v1665_v38, %v1664_v48  ;;  %v1670_v26 = vshll.u32 %v17031_v46, %v10766_v0  ;;  %vm1676_vm6 = vcmp.lt.s32.totalorder %v10842_v55, 4  ;;  %v1649_v29 = vor.u32 8388608, %v1648_v28 }
 0x1ce   :  { %17087 = vst [vmem:[#allocation128_spill] sm:$0xff] %v10855_v35  ;;  %v10866_v56 = vpop.f32.mrf.mxu0  ;;  %v10870_v35 = vor.u32 %v1662_v14, %v1661_v59  ;;  %v1682_v24 = vsel %vm1676_vm6, %v1669_v13, 920167782  ;;  %v1759_v61 = vand.u32 31, %v1757_v57  ;;  %v10884_v4 = vsub.s32 %v10732_v40, %v1392_v15 }
 0x1cf   :  { %17088 = vst [vmem:[#allocation129_spill] sm:$0xff] %v10866_v56  ;;  %v10868_v16 = vpop.f32.mrf.mxu1  ;;  %v1672_v14 = vor.u32 %v1671_v17, %v1670_v26  ;;  %v1859_v38 = vadd.s32 1, %v8795_v18  ;;  %v1494_v63 = vadd.s32 536870912, %v10861_v12  ;;  %vm1673_vm7 = vcmp.lt.s32.totalorder %v10842_v55, 1 }
 0x1d0   :  { %17089 = vst [vmem:[#allocation130_spill] sm:$0xff] %v10868_v16  ;;  %v10879_v41 = vpop.f32.mrf.mxu0  ;;  %vm1675_vm8 = vcmp.lt.s32.totalorder %v10842_v55, 3  ;;  %v1957_v0 = vshrl.u32 %v1956_v49, 23  ;;  %v1598_v59 = vadd.s32 536870912, %v10863_v8  ;;  %v1681_v40 = vsel %vm1673_vm7, %v1660_v21, %v10870_v35 }
 0x1d1   :  { %17090 = vst [vmem:[#allocation131_spill] sm:$0xff] %v10879_v41  ;;  %v10881_v52 = vpop.f32.mrf.mxu1  ;;  %v1683_v26 = vsel %vm1675_vm8, %v10872_v37, %v1682_v24  ;;  %v10901_v15 = vshll.u32 %v1649_v29, 8  ;;  %v10903_v48 = vsub.s32 32, %v1759_v61  ;;  %vm1674_vm9 = vcmp.lt.s32.totalorder %v10842_v55, 2 }
 0x1d2   :  { %17091 = vst [vmem:[#allocation132_spill] sm:$0xff] %v10881_v52  ;;  %v10889_v28 = vpop.f32.mrf.mxu0  ;;  %v1686_v52 = vsel %vm1676_vm6, %v1672_v14, 1326507024  ;;  %vm1860_vm10 = vcmp.gt.s32.totalorder %v1859_v38, 0  ;;  %v10915_v18 = vshrl.u32 %v1494_v63, 30  ;;  %v10919_v29 = vsel %vm1674_vm9, %v1681_v40, %v1683_v26 }
 0x1d3   :  { %17092 = vst [vmem:[#allocation133_spill] sm:$0xff] %v10889_v28  ;;  %v10891_v1 = vpop.f32.mrf.mxu1  ;;  %v1685_v14 = vsel %vm1673_vm7, %v10870_v35, %v10872_v37  ;;  %v17100_v63 = vand.u32 2147483647, %v10362_v10  ;;  %v1772_v26 = vshrl.u32 %v17031_v46, %v10903_v48  ;;  %v2060_v24 = vand.u32 2139095040, %v10408_v30 }
 0x1d4   :  { %17093 = vst [vmem:[#allocation134_spill] sm:$0xff] %v10891_v1  ;;  %v10905_v49 = vpop.f32.mrf.mxu0  ;;  %v1657_v1 = vshrl.u32 %v17040_v20, %v10793_v5  ;;  %17096 = vst [vmem:[#allocation137_spill] sm:$0xff] %v10915_v18  ;;  %v10925_v5 = vshrl.u32 %v1598_v59, 30  ;;  %v10941_v59 = vsel %vm1860_vm10, %v1859_v38, 0  ;;  %v1763_v38 = vshrl.u32 %v17045_v25, %v10903_v48 }
 0x1d5   :  { %17094 = vst [vmem:[#allocation135_spill] sm:$0xff] %v10905_v49  ;;  %v10907_v17 = vpop.f32.mrf.mxu1  ;;  %v8799_v49 = vadd.s32 4294967169, %v1957_v0  ;;  %v1752_v40 = vand.u32 8388607, %v17100_v63  ;;  %v1687_v0 = vsel %vm1675_vm8, %v1669_v13, %v1686_v52  ;;  %v1775_v13 = vshrl.u32 %v17049_v54, %v10903_v48 }
 0x1d6   :  { %17095 = vst [vmem:[#allocation136_spill] sm:$0xff] %v10907_v17  ;;  %v10921_v41 = vpop.f32.mrf.mxu0  ;;  %17099 = vst [vmem:[#allocation140_spill] sm:$0xff] %v10925_v5  ;;  %v10929_v16 = vsel %vm1673_vm7, %v1657_v1, %v1660_v21  ;;  %v10950_v56 = vmul.u32.u64.low %v10901_v15, %v10919_v29  ;;  %v10951_v39 = vmul.u32.u64.high %v10901_v15, %v10919_v29, %v10950_v56  ;;  %v10957_v63 = vshrl.u32 %v1757_v57, 5 }
 0x1d7   :  { %17097 = vst [vmem:[#allocation138_spill] sm:$0xff] %v10921_v41  ;;  %v10923_v17 = vpop.f32.mrf.mxu1  ;;  %v1771_v33 = vshll.u32 %v17048_v23, %v1759_v61  ;;  %v1766_v29 = vshrl.u32 %v17046_v2, %v10903_v48  ;;  %v1769_v43 = vshrl.u32 %v17048_v23, %v10903_v48  ;;  %v1774_v52 = vshll.u32 %v17031_v46, %v1759_v61 }
 0x1d8   :  { %17098 = vst [vmem:[#allocation139_spill] sm:$0xff] %v10923_v17  ;;  %v10944_v21 = vpop.f32.mrf.mxu0  ;;  %v10972_v57 = vand.u32 31, %v10941_v59  ;;  %v10976_v60 = vsel %vm1674_vm9, %v1685_v14, %v1687_v0  ;;  %v2061_v17 = vshrl.u32 %v2060_v24, 23  ;;  %v1765_v9 = vshll.u32 %v17045_v25, %v1759_v61 }
 0x1d9   :  { %17101 = vst [vmem:[#allocation141_spill] sm:$0xff] %v10944_v21  ;;  %v10946_v1 = vpop.f32.mrf.mxu1  ;;  %v1963_v21 = vadd.s32 1, %v8799_v49  ;;  %v1762_v49 = vshll.u32 %v17040_v20, %v1759_v61  ;;  %v1773_v62 = vor.u32 %v1772_v26, %v1771_v33  ;;  %v1768_v7 = vshll.u32 %v17046_v2, %v1759_v61 }
 0x1da   :  { %17102 = vst [vmem:[#allocation142_spill] sm:$0xff] %v10946_v1  ;;  %v10962_v1 = vpop.f32.mrf.mxu0  ;;  %v1776_v41 = vor.u32 %v1775_v13, %v1774_v52  ;;  %v1678_v28 = vsel %vm1676_vm6, %v10872_v37, 2102212464  ;;  %v17107_v0 = vand.u32 2147483647, %v10775_v34  ;;  %vm1780_vm12 = vcmp.lt.s32.totalorder %v10957_v63, 4 }
 0x1db   :  { %17103 = vst [vmem:[#allocation143_spill] sm:$0xff] %v10962_v1  ;;  %v10964_v6 = vpop.f32.mrf.mxu1  ;;  %v1753_v1 = vor.u32 8388608, %v1752_v40  ;;  %v1764_v14 = vor.u32 %v1763_v38, %v1762_v49  ;;  %vm1964_vm11 = vcmp.gt.s32.totalorder %v1963_v21, 0  ;;  %v1767_v40 = vor.u32 %v1766_v29, %v1765_v9 }
 0x1dc   :  { %17104 = vst [vmem:[#allocation144_spill] sm:$0xff] %v10964_v6  ;;  %v10979_v6 = vpop.f32.mrf.mxu0  ;;  %v10990_v47 = vand.u32 8388607, %v17107_v0  ;;  %v1770_v26 = vor.u32 %v1769_v43, %v1768_v7  ;;  %v10998_v61 = vsub.s32 32, %v10972_v57  ;;  %v1786_v52 = vsel %vm1780_vm12, %v1773_v62, 920167782 }
 0x1dd   :  { %17105 = vst [vmem:[#allocation145_spill] sm:$0xff] %v10979_v6  ;;  %v10981_v36 = vpop.f32.mrf.mxu1  ;;  %v11002_v37 = vmul.u32.u64.low %v10901_v15, %v10976_v60  ;;  %v11003_v13 = vmul.u32.u64.high %v10901_v15, %v10976_v60, %v11002_v37  ;;  %v8803_v38 = vadd.s32 4294967169, %v2061_v17  ;;  %v11015_v7 = vsel %vm1675_vm8, %v10870_v35, %v1678_v28 }
 0x1de   :  { %17106 = vst [vmem:[#allocation146_spill] sm:$0xff] %v10981_v36  ;;  %v10992_v33 = vpop.f32.mrf.mxu0  ;;  %v1790_v9 = vsel %vm1780_vm12, %v1776_v41, 1326507024  ;;  %v11019_v43 = vshll.u32 %v1753_v1, 8  ;;  %v1965_v60 = vsel %vm1964_vm11, %v1963_v21, 0  ;;  %v1761_v29 = vshrl.u32 %v17040_v20, %v10903_v48 }
 0x1df   :  { %17108 = vst [vmem:[#allocation147_spill] sm:$0xff] %v10992_v33  ;;  %v10994_v24 = vpop.f32.mrf.mxu1  ;;  %vm1777_vm13 = vcmp.lt.s32.totalorder %v10957_v63, 1  ;;  %vm1779_vm14 = vcmp.lt.s32.totalorder %v10957_v63, 3  ;;  %vm1778_vm15 = vcmp.lt.s32.totalorder %v10957_v63, 2  ;;  %v1876_v28 = vshrl.u32 %v17031_v46, %v10998_v61 }
 0x1e0   :  { %17109 = vst [vmem:[#allocation148_spill] sm:$0xff] %v10994_v24  ;;  %v11008_v49 = vpop.f32.mrf.mxu0  ;;  %v1785_v35 = vsel %vm1777_vm13, %v1764_v14, %v1767_v40  ;;  %v1787_v41 = vsel %vm1779_vm14, %v1770_v26, %v1786_v52  ;;  %v1789_v48 = vsel %vm1777_vm13, %v1767_v40, %v1770_v26  ;;  %v1791_v21 = vsel %vm1779_vm14, %v1773_v62, %v1790_v9 }
 0x1e1   :  { %17110 = vst [vmem:[#allocation149_spill] sm:$0xff] %v11008_v49  ;;  %v11010_v0 = vpop.f32.mrf.mxu1  ;;  %v11037_v1 = vand.u32 31, %v1965_v60  ;;  %v2067_v17 = vadd.s32 1, %v8803_v38  ;;  %v1870_v52 = vshrl.u32 %v17046_v2, %v10998_v61  ;;  %v1875_v49 = vshll.u32 %v17048_v23, %v10972_v57 }
 0x1e2   :  { %17111 = vst [vmem:[#allocation150_spill] sm:$0xff] %v11010_v0  ;;  %v11028_v0 = vpop.f32.mrf.mxu0  ;;  %v1782_v62 = vsel %vm1780_vm12, %v1770_v26, 2102212464  ;;  %v1788_v38 = vsel %vm1778_vm15, %v1785_v35, %v1787_v41  ;;  %v11054_v9 = vshrl.u32 %v10941_v59, 5  ;;  %v1866_v24 = vshll.u32 %v17040_v20, %v10972_v57 }
 0x1e3   :  { %v11026_v37 = vpop.f32.mrf.mxu1  ;;  %17113 = vst [vmem:[#allocation152_spill] sm:$0xff] %v11028_v0  ;;  %v1781_v0 = vsel %vm1777_vm13, %v1761_v29, %v1764_v14  ;;  %v1873_v14 = vshrl.u32 %v17048_v23, %v10998_v61  ;;  %v1869_v26 = vshll.u32 %v17045_v25, %v10972_v57  ;;  %v11068_v35 = vor.u32 %v1876_v28, %v1875_v49 }
 0x1e4   :  { %17112 = vst [vmem:[#allocation151_spill] sm:$0xff] %v11026_v37  ;;  %v11041_v6 = vpop.f32.mrf.mxu0  ;;  %v1867_v37 = vshrl.u32 %v17045_v25, %v10998_v61  ;;  %v1872_v59 = vshll.u32 %v17046_v2, %v10972_v57  ;;  %v1879_v41 = vshrl.u32 %v17049_v54, %v10998_v61  ;;  %vm2068_vm0 = vcmp.gt.s32.totalorder %v2067_v17, 0 }
 0x1e5   :  { %v11039_v36 = vpop.f32.mrf.mxu1  ;;  %17115 = vst [vmem:[#allocation154_spill] sm:$0xff] %v11041_v6  ;;  %v11088_v28 = vor.u32 %v1870_v52, %v1869_v26  ;;  %v1783_v34 = vsel %vm1779_vm14, %v1767_v40, %v1782_v62  ;;  %v1878_v32 = vshll.u32 %v17031_v46, %v10972_v57  ;;  %vm1884_vm1 = vcmp.lt.s32.totalorder %v11054_v9, 4 }
 0x1e6   :  { %17114 = vst [vmem:[#allocation153_spill] sm:$0xff] %v11039_v36  ;;  %v11058_v29 = vpop.f32.mrf.mxu0  ;;  %v1792_v36 = vsel %vm1778_vm15, %v1789_v48, %v1791_v21  ;;  %v11082_v21 = vmul.u32.u64.low %v11019_v43, %v1788_v38  ;;  %v11083_v33 = vmul.u32.u64.high %v11019_v43, %v1788_v38, %v11082_v21  ;;  %v11086_v49 = vor.u32 %v1867_v37, %v1866_v24 }
 0x1e7   :  { %17116 = vst [vmem:[#allocation155_spill] sm:$0xff] %v11058_v29  ;;  %v11060_v6 = vpop.f32.mrf.mxu1  ;;  %v11075_v29 = vsub.s32 32, %v11037_v1  ;;  %v11092_v31 = vor.u32 %v1873_v14, %v1872_v59  ;;  %v11102_v38 = vmul.u32.u64.low %v11019_v43, %v1792_v36  ;;  %v11103_v24 = vmul.u32.u64.high %v11019_v43, %v1792_v36, %v11102_v38 }
 0x1e8   :  { %17117 = vst [vmem:[#allocation156_spill] sm:$0xff] %v11060_v6  ;;  %v11077_v6 = vpop.f32.mrf.mxu0  ;;  %v1890_v37 = vsel %vm1884_vm1, %v11068_v35, 920167782  ;;  %v11108_v40 = vsel %vm2068_vm0, %v2067_v17, 0  ;;  %v1880_v52 = vor.u32 %v1879_v41, %v1878_v32  ;;  %vm1881_vm2 = vcmp.lt.s32.totalorder %v11054_v9, 1 }
 0x1e9   :  { %17118 = vst [vmem:[#allocation157_spill] sm:$0xff] %v11077_v6  ;;  %v11079_v48 = vpop.f32.mrf.mxu1  ;;  %v1980_v62 = vshrl.u32 %v17031_v46, %v11075_v29  ;;  %v11120_v36 = vsel %vm1778_vm15, %v1781_v0, %v1783_v34  ;;  %vm1883_vm3 = vcmp.lt.s32.totalorder %v11054_v9, 3  ;;  %v1889_v32 = vsel %vm1881_vm2, %v11086_v49, %v11088_v28 }
 0x1ea   :  { %17119 = vst [vmem:[#allocation158_spill] sm:$0xff] %v11079_v48  ;;  %v11097_v48 = vpop.f32.mrf.mxu0  ;;  %v1983_v17 = vshrl.u32 %v17049_v54, %v11075_v29  ;;  %v1891_v59 = vsel %vm1883_vm3, %v11092_v31, %v1890_v37  ;;  %v11132_v41 = vshrl.u32 %v1965_v60, 5  ;;  %v1979_v34 = vshll.u32 %v17048_v23, %v11037_v1 }
 0x1eb   :  { %17120 = vst [vmem:[#allocation159_spill] sm:$0xff] %v11097_v48  ;;  %v11099_v6 = vpop.f32.mrf.mxu1  ;;  %v11137_v63 = vand.u32 31, %v11108_v40  ;;  %v1971_v57 = vshrl.u32 %v17045_v25, %v11075_v29  ;;  %v1977_v60 = vshrl.u32 %v17048_v23, %v11075_v29  ;;  %v1982_v37 = vshll.u32 %v17031_v46, %v11037_v1 }
 0x1ec   :  { %17121 = vst [vmem:[#allocation160_spill] sm:$0xff] %v11099_v6  ;;  %v11114_v14 = vpop.f32.mrf.mxu0  ;;  %vm1882_vm4 = vcmp.lt.s32.totalorder %v11054_v9, 2  ;;  %v1894_v6 = vsel %vm1884_vm1, %v1880_v52, 1326507024  ;;  %v1970_v45 = vshll.u32 %v17040_v20, %v11037_v1  ;;  %v1973_v50 = vshll.u32 %v17045_v25, %v11037_v1 }
 0x1ed   :  { %17122 = vst [vmem:[#allocation161_spill] sm:$0xff] %v11114_v14  ;;  %v11116_v26 = vpop.f32.mrf.mxu1  ;;  %v1981_v14 = vor.u32 %v1980_v62, %v1979_v34  ;;  %v1976_v22 = vshll.u32 %v17046_v2, %v11037_v1  ;;  %v1984_v42 = vor.u32 %v1983_v17, %v1982_v37  ;;  %v11167_v52 = vadd.s32 1, %v11083_v33 }
 0x1ee   :  { %17123 = vst [vmem:[#allocation162_spill] sm:$0xff] %v11116_v26  ;;  %v11139_v0 = vpop.f32.mrf.mxu0  ;;  %v1974_v26 = vshrl.u32 %v17046_v2, %v11075_v29  ;;  %v11171_v62 = vsel %vm1882_vm4, %v1889_v32, %v1891_v59  ;;  %v17129_v34 = vor.u32 8388608, %v10990_v47  ;;  %v11184_v1 = vor.u32 %v1971_v57, %v1970_v45 }
 0x1ef   :  { %17124 = vst [vmem:[#allocation163_spill] sm:$0xff] %v11139_v0  ;;  %v11141_v38 = vpop.f32.mrf.mxu1  ;;  %v17126_v0 = vand.u32 2147483647, %v10403_v44  ;;  %v11188_v37 = vor.u32 %v1977_v60, %v1976_v22  ;;  %vm1988_vm5 = vcmp.lt.s32.totalorder %v11132_v41, 4  ;;  %vm1802_vm6 = vc.u32 %v11103_v24, %v11082_v21 }
 0x1f0   :  { %17125 = vst [vmem:[#allocation164_spill] sm:$0xff] %v11141_v38  ;;  %v11156_v48 = vpop.f32.mrf.mxu0  ;;  %v11186_v17 = vor.u32 %v1974_v26, %v1973_v50  ;;  %v1893_v47 = vsel %vm1881_vm2, %v11088_v28, %v11092_v31  ;;  %v1895_v32 = vsel %vm1883_vm3, %v11068_v35, %v1894_v6  ;;  %v1994_v45 = vsel %vm1988_vm5, %v1981_v14, 920167782 }
 0x1f1   :  { %v1960_v38 = vand.u32 8388607, %v17126_v0  ;;  %17127 = vst [vmem:[#allocation165_spill] sm:$0xff] %v11156_v48  ;;  %v11158_v10 = vpop.f32.mrf.mxu1  ;;  %v11175_v0 = vshll.u32 %v17129_v34, 8  ;;  %v1998_v60 = vsel %vm1988_vm5, %v1984_v42, 1326507024  ;;  %v2074_v19 = vshll.u32 %v17040_v20, %v11137_v63 }
 0x1f2   :  { %17128 = vst [vmem:[#allocation166_spill] sm:$0xff] %v11158_v10  ;;  %v11178_v10 = vsub.s32 32, %v11137_v63  ;;  %v11180_v48 = vpop.f32.mrf.mxu0  ;;  %vm1985_vm7 = vcmp.lt.s32.totalorder %v11132_v41, 1  ;;  %vm1987_vm8 = vcmp.lt.s32.totalorder %v11132_v41, 3  ;;  %vm1986_vm10 = vcmp.lt.s32.totalorder %v11132_v41, 2 }
 0x1f3   :  { %17130 = vst [vmem:[#allocation167_spill] sm:$0xff] %v11180_v48  ;;  %v11182_v44 = vpop.f32.mrf.mxu1  ;;  %v11208_v57 = vmul.u32.u64.low %v11175_v0, %v11171_v62  ;;  %v11209_v26 = vmul.u32.u64.high %v11175_v0, %v11171_v62, %v11208_v57  ;;  %v1961_v59 = vor.u32 8388608, %v1960_v38  ;;  %v1896_v62 = vsel %vm1882_vm4, %v1893_v47, %v1895_v32 }
 0x1f4   :  { %17131 = vst [vmem:[#allocation168_spill] sm:$0xff] %v11182_v44  ;;  %v11202_v50 = vpop.f32.mrf.mxu0  ;;  %v2084_v35 = vshrl.u32 %v17031_v46, %v11178_v10  ;;  %v1993_v42 = vsel %vm1985_vm7, %v11184_v1, %v11186_v17  ;;  %v1995_v38 = vsel %vm1987_vm8, %v11188_v37, %v1994_v45  ;;  %v2087_v6 = vshrl.u32 %v17049_v54, %v11178_v10 }
 0x1f5   :  { %17132 = vst [vmem:[#allocation169_spill] sm:$0xff] %v11202_v50  ;;  %v11204_v22 = vpop.f32.mrf.mxu1  ;;  %v1999_v47 = vsel %vm1987_vm8, %v1981_v14, %v1998_v60  ;;  %v11241_v32 = vshrl.u32 %v11108_v40, 5  ;;  %v2078_v44 = vshrl.u32 %v17046_v2, %v11178_v10  ;;  %v2081_v54 = vshrl.u32 %v17048_v23, %v11178_v10 }
 0x1f6   :  { %17133 = vst [vmem:[#allocation170_spill] sm:$0xff] %v11204_v22  ;;  %v11219_v34 = vpop.f32.mrf.mxu0  ;;  %v2075_v22 = vshrl.u32 %v17045_v25, %v11178_v10  ;;  %v2086_v40 = vshll.u32 %v17031_v46, %v11137_v63  ;;  %v11258_v14 = vmul.u32.u64.low %v11175_v0, %v1896_v62  ;;  %v11259_v60 = vmul.u32.u64.high %v11175_v0, %v1896_v62, %v11258_v14 }
 0x1f7   :  { %17134 = vst [vmem:[#allocation171_spill] sm:$0xff] %v11219_v34  ;;  %v11221_v50 = vpop.f32.mrf.mxu1  ;;  %v2083_v34 = vshll.u32 %v17048_v23, %v11137_v63  ;;  %v2077_v23 = vshll.u32 %v17045_v25, %v11137_v63  ;;  %v2080_v46 = vshll.u32 %v17046_v2, %v11137_v63  ;;  %v1996_v62 = vsel %vm1986_vm10, %v1993_v42, %v1995_v38 }
 0x1f8   :  { %17135 = vst [vmem:[#allocation172_spill] sm:$0xff] %v11221_v50  ;;  %v1997_v50 = vsel %vm1985_vm7, %v11186_v17, %v11188_v37  ;;  %v11245_v48 = vpop.f32.mrf.mxu0  ;;  %v2088_v51 = vor.u32 %v2087_v6, %v2086_v40  ;;  %v17140_v14 = vand.u32 2147483647, %v10408_v30  ;;  %v11284_v25 = vor.u32 %v2075_v22, %v2074_v19 }
 0x1f9   :  { %17136 = vst [vmem:[#allocation173_spill] sm:$0xff] %v11245_v48  ;;  %v11247_v45 = vpop.f32.mrf.mxu1  ;;  %v2085_v48 = vor.u32 %v2084_v35, %v2083_v34  ;;  %v2000_v35 = vsel %vm1986_vm10, %v1997_v50, %v1999_v47  ;;  %v11276_v34 = vshll.u32 %v1961_v59, 8  ;;  %v11286_v3 = vor.u32 %v2078_v44, %v2077_v23 }
 0x1fa   :  { %17137 = vst [vmem:[#allocation174_spill] sm:$0xff] %v11247_v45  ;;  %v11262_v45 = vpop.f32.mrf.mxu0  ;;  %v11288_v63 = vor.u32 %v2081_v54, %v2080_v46  ;;  %vm2092_vm11 = vcmp.lt.s32.totalorder %v11241_v32, 4  ;;  %v1699_v6 = vadd.s32 1, %v10951_v39  ;;  %v1800_v50 = vmul.u32 %v11019_v43, %v11120_v36 }
 0x1fb   :  { %17138 = vst [vmem:[#allocation175_spill] sm:$0xff] %v11262_v45  ;;  %v11264_v58 = vpop.f32.mrf.mxu1  ;;  %v1804_v59 = vsel %vm1802_vm6, %v11167_v52, %v11083_v33  ;;  %v2098_v19 = vsel %vm2092_vm11, %v2085_v48, 920167782  ;;  %v1886_v23 = vsel %vm1884_vm1, %v11092_v31, 2102212464  ;;  %vm2089_vm12 = vcmp.lt.s32.totalorder %v11241_v32, 1 }
 0x1fc   :  { %17139 = vst [vmem:[#allocation176_spill] sm:$0xff] %v11264_v58  ;;  %v2064_v58 = vand.u32 8388607, %v17140_v14  ;;  %v11280_v45 = vpop.f32.mrf.mxu0  ;;  %v11309_v54 = vmul.u32.u64.low %v11276_v34, %v1996_v62  ;;  %v11310_v43 = vmul.u32.u64.high %v11276_v34, %v1996_v62, %v11309_v54  ;;  %v2102_v36 = vsel %vm2092_vm11, %v2088_v51, 1326507024 }
 0x1fd   :  { %17141 = vst [vmem:[#allocation177_spill] sm:$0xff] %v11280_v45  ;;  %v11282_v53 = vpop.f32.mrf.mxu1  ;;  %v11316_v33 = vmul.u32.u64.low %v11276_v34, %v2000_v35  ;;  %v11317_v52 = vmul.u32.u64.high %v11276_v34, %v2000_v35, %v11316_v33  ;;  %vm2091_vm13 = vcmp.lt.s32.totalorder %v11241_v32, 3  ;;  %v1865_v31 = vshrl.u32 %v17040_v20, %v10998_v61 }
 0x1fe   :  { %17142 = vst [vmem:[#allocation178_spill] sm:$0xff] %v11282_v53  ;;  %v11301_v44 = vpop.f32.mrf.mxu0  ;;  %v2065_v38 = vor.u32 8388608, %v2064_v58  ;;  %v2097_v51 = vsel %vm2089_vm12, %v11284_v25, %v11286_v3  ;;  %v2099_v47 = vsel %vm2091_vm13, %v11288_v63, %v2098_v19  ;;  %vm1698_vm14 = vc.u32 %v11003_v13, %v10950_v56  ;;  %v11542_v53 = vpop.permute.xlu1 %4696 }
 0x1ff   :  { %17143 = vst [vmem:[#allocation179_spill] sm:$0xff] %v11301_v44  ;;  %v11303_v46 = vpop.f32.mrf.mxu1  ;;  %v11336_v40 = vadd.s32 %v1804_v59, %v1800_v50  ;;  %v2101_v61 = vsel %vm2089_vm12, %v11286_v3, %v11288_v63  ;;  %v2103_v58 = vsel %vm2091_vm13, %v2085_v48, %v2102_v36  ;;  %v1885_v14 = vsel %vm1881_vm2, %v1865_v31, %v11086_v49 }
 0x200   :  { %17144 = vst [vmem:[#allocation180_spill] sm:$0xff] %v11303_v46  ;;  %v11321_v22 = vpop.f32.mrf.mxu0  ;;  %v1887_v50 = vsel %vm1883_vm3, %v11088_v28, %v1886_v23  ;;  %v1990_v59 = vsel %vm1988_vm5, %v11188_v37, 2102212464  ;;  %vm2090_vm15 = vcmp.lt.s32.totalorder %v11241_v32, 2  ;;  %v1680_v48 = vsel %vm1674_vm9, %v10929_v16, %v11015_v7 }
 0x201   :  { %17145 = vst [vmem:[#allocation181_spill] sm:$0xff] %v11321_v22  ;;  %v11323_v42 = vpop.f32.mrf.mxu1  ;;  %v1907_v19 = vadd.s32 1, %v11209_v26  ;;  %v1969_v49 = vshrl.u32 %v17040_v20, %v11075_v29  ;;  %v2100_v36 = vsel %vm2090_vm15, %v2097_v51, %v2099_v47  ;;  %v1700_v37 = vsel %vm1698_vm14, %v1699_v6, %v10951_v39 }
 0x202   :  { %17146 = vst [vmem:[#allocation182_spill] sm:$0xff] %v11323_v42  ;;  %v11344_v62 = vpop.f32.mrf.mxu0  ;;  %vm1906_vm9 = vc.u32 %v11259_v60, %v11208_v57  ;;  %v2104_v55 = vsel %vm2090_vm15, %v2101_v61, %v2103_v58  ;;  %v11379_v16 = vshll.u32 %v2065_v38, 8  ;;  %v1806_v7 = vadd.s32 536870912, %v11336_v40 }
 0x203   :  { %17147 = vst [vmem:[#allocation183_spill] sm:$0xff] %v11344_v62  ;;  %v11346_v35 = vpop.f32.mrf.mxu1  ;;  %v1888_v29 = vsel %vm1882_vm4, %v1885_v14, %v1887_v50  ;;  %v1989_v33 = vsel %vm1985_vm7, %v1969_v49, %v11184_v1  ;;  %v1991_v39 = vsel %vm1987_vm8, %v11186_v17, %v1990_v59  ;;  %v1696_v38 = vmul.u32 %v10901_v15, %v1680_v48 }
 0x204   :  { %17148 = vst [vmem:[#allocation184_spill] sm:$0xff] %v11346_v35  ;;  %v11367_v28 = vpop.f32.mrf.mxu0  ;;  %v2011_v51 = vadd.s32 1, %v11310_v43  ;;  %v11397_v47 = vmul.u32.u64.low %v11379_v16, %v2100_v36  ;;  %v11398_v9 = vmul.u32.u64.high %v11379_v16, %v2100_v36, %v11397_v47  ;;  %v1908_v61 = vsel %vm1906_vm9, %v1907_v19, %v11209_v26 }
 0x205   :  { %17149 = vst [vmem:[#allocation185_spill] sm:$0xff] %v11367_v28  ;;  %v11369_v23 = vpop.f32.mrf.mxu1  ;;  %vm2010_vm0 = vc.u32 %v11317_v52, %v11309_v54  ;;  %v11405_v1 = vmul.u32.u64.low %v11379_v16, %v2104_v55  ;;  %v11406_v17 = vmul.u32.u64.high %v11379_v16, %v2104_v55, %v11405_v1  ;;  %v1600_v15 = vshll.u32 %v10925_v5, 30 }
 0x206   :  { %17150 = vst [vmem:[#allocation186_spill] sm:$0xff] %v11369_v23  ;;  %v11390_v6 = vpop.f32.mrf.mxu0  ;;  %v1701_v50 = vadd.s32 %v1700_v37, %v1696_v38  ;;  %v1904_v59 = vmul.u32 %v11175_v0, %v1888_v29  ;;  %v1992_v48 = vsel %vm1986_vm10, %v1989_v33, %v1991_v39  ;;  %v11416_v26 = vshrl.u32 %v1806_v7, 30 }
 0x207   :  { %17151 = vst [vmem:[#allocation187_spill] sm:$0xff] %v11390_v6  ;;  %v11392_v31 = vpop.f32.mrf.mxu1  ;;  %v2012_v55 = vsel %vm2010_vm0, %v2011_v51, %v11310_v43  ;;  %v2094_v1 = vsel %vm2092_vm11, %v11288_v63, 2102212464  ;;  %v2008_v37 = vmul.u32 %v11276_v34, %v1992_v48  ;;  %v2073_v0 = vshrl.u32 %v17040_v20, %v11178_v10 }
 0x208   :  { %17152 = vst [vmem:[#allocation188_spill] sm:$0xff] %v11392_v31  ;;  %v11408_v58 = vpop.f32.mrf.mxu0  ;;  %17155 = vst [vmem:[#allocation191_spill] sm:$0xff] %v11416_v26  ;;  %v1909_v36 = vadd.s32 %v1908_v61, %v1904_v59  ;;  %v17160_v29 = vsub.s32 0, %v10884_v4  ;;  %v1496_v39 = vshll.u32 %v10915_v18, 30  ;;  %v11438_v43 = vsub.s32 %v10863_v8, %v1600_v15 }
 0x209   :  { %17153 = vst [vmem:[#allocation189_spill] sm:$0xff] %v11408_v58  ;;  %v11410_v14 = vpop.f32.mrf.mxu1  ;;  %v1702_v38 = vadd.s32 536870912, %v1701_v50  ;;  %v1808_v63 = vshll.u32 %v11416_v26, 30  ;;  %v2013_v34 = vadd.s32 %v2012_v55, %v2008_v37  ;;  %v2093_v10 = vsel %vm2089_vm12, %v2073_v0, %v11284_v25 }
 0x20a   :  { %17154 = vst [vmem:[#allocation190_spill] sm:$0xff] %v11410_v14  ;;  %v11418_v19 = vpop.f32.mrf.mxu0  ;;  %v8776_v33 = vmin.u32 %v17160_v29, %v10884_v4  ;;  %v2095_v51 = vsel %vm2091_vm13, %v11286_v3, %v2094_v1  ;;  %v1910_v48 = vadd.s32 536870912, %v1909_v36  ;;  %v2115_v8 = vadd.s32 1, %v11398_v9 }
 0x20b   :  { %17156 = vst [vmem:[#allocation192_spill] sm:$0xff] %v11418_v19  ;;  %v11420_v49 = vpop.f32.mrf.mxu1  ;;  %vm2114_vm1 = vc.u32 %v11406_v17, %v11397_v47  ;;  %v1603_v25 = vsub.s32 0, %v11438_v43  ;;  %v11459_v0 = vshrl.u32 %v1702_v38, 30  ;;  %v2096_v3 = vsel %vm2090_vm15, %v2093_v10, %v2095_v51 }
 0x20c   :  { %17157 = vst [vmem:[#allocation193_spill] sm:$0xff] %v11420_v49  ;;  %v11429_v41 = vpop.f32.mrf.mxu0  ;;  %v1397_v37 = vclz %v8776_v33  ;;  %v11464_v1 = vsub.s32 %v10861_v12, %v1496_v39  ;;  %v11467_v29 = vsub.s32 %v11336_v40, %v1808_v63  ;;  %v2116_v33 = vsel %vm2114_vm1, %v2115_v8, %v11398_v9 }
 0x20d   :  { %17158 = vst [vmem:[#allocation194_spill] sm:$0xff] %v11429_v41  ;;  %v11431_v7 = vpop.f32.mrf.mxu1  ;;  %17165 = vst [vmem:[#allocation200_spill] sm:$0xff] %v11459_v0  ;;  %v2112_v38 = vmul.u32 %v11379_v16, %v2096_v3  ;;  %v8784_v39 = vmin.u32 %v1603_v25, %v11438_v43  ;;  %v1704_v40 = vshll.u32 %v11459_v0, 30  ;;  %v17189_v0 = vld [vmem:[#allocation17_spill] sm:$0xff] }
 0x20e   :  { %17159 = vst [vmem:[#allocation195_spill] sm:$0xff] %v11431_v7  ;;  %v11447_v61 = vpop.f32.mrf.mxu0  ;;  %v8777_v12 = vadd.s32 4294967294, %v1397_v37  ;;  %v1499_v63 = vsub.s32 0, %v11464_v1  ;;  %v1811_v10 = vsub.s32 0, %v11467_v29 }
 0x20f   :  { %17161 = vst [vmem:[#allocation196_spill] sm:$0xff] %v11447_v61  ;;  %v11449_v59 = vpop.f32.mrf.mxu1  ;;  %v1605_v25 = vclz %v8784_v39  ;;  %v11496_v3 = vsub.s32 %v1701_v50, %v1704_v40 }
 0x210   :  { %17162 = vst [vmem:[#allocation197_spill] sm:$0xff] %v11449_v59  ;;  %v11454_v15 = vpop.f32.mrf.mxu0  ;;  %v2014_v59 = vadd.s32 536870912, %v2013_v34  ;;  %vm8778_vm2 = vcmp.lt.s32.totalorder %v8777_v12, 0 }
 0x211   :  { %17163 = vst [vmem:[#allocation198_spill] sm:$0xff] %v11454_v15  ;;  %v11456_v55 = vpop.f32.mrf.mxu1  ;;  %v1400_v19 = vsel %vm8778_vm2, 0, %v8777_v12  ;;  %v8785_v50 = vadd.s32 4294967294, %v1605_v25  ;;  %v1707_v39 = vsub.s32 0, %v11496_v3 }
 0x212   :  { %17164 = vst [vmem:[#allocation199_spill] sm:$0xff] %v11456_v55  ;;  %v11469_v7 = vpop.f32.mrf.mxu0  ;;  %v11473_v55 = vshrl.u32 %v1910_v48, 30  ;;  %v11485_v51 = vshrl.u32 %v2014_v59, 30  ;;  %v2117_v48 = vadd.s32 %v2116_v33, %v2112_v38  ;;  %v8792_v59 = vmin.u32 %v1811_v10, %v11467_v29 }
 0x213   :  { %v11471_v49 = vpop.f32.mrf.mxu1  ;;  %vm8786_vm3 = vcmp.lt.s32.totalorder %v8785_v50, 0  ;;  %v8788_v25 = vmin.u32 %v1707_v39, %v11496_v3  ;;  %v1401_v39 = vsub.s32 32, %v1400_v19 }
 0x214   :  { %17166 = vst [vmem:[#allocation201_spill] sm:$0xff] %v11471_v49  ;;  %17167 = vst [vmem:[#allocation202_spill] sm:$0xff] %v11473_v55  ;;  %v11477_v15 = vpop.f32.mrf.mxu0  ;;  %v1912_v16 = vshll.u32 %v11473_v55, 30  ;;  %v2016_v33 = vshll.u32 %v11485_v51, 30  ;;  %v2118_v38 = vadd.s32 536870912, %v2117_v48  ;;  %v11533_v42 = vsel %vm8786_vm3, 0, %v8785_v50 }
 0x215   :  { %17168 = vst [vmem:[#allocation203_spill] sm:$0xff] %v11477_v15  ;;  %v11479_v32 = vpop.f32.mrf.mxu1  ;;  %17170 = vst [vmem:[#allocation205_spill] sm:$0xff] %v11485_v51  ;;  %v8780_v15 = vmin.u32 %v1499_v63, %v11464_v1  ;;  %v1813_v63 = vclz %v8792_v59  ;;  %v1385_v50 = vadd.s32 %v10577_v27, %v10606_v11  ;;  %v1402_v11 = vshll.u32 %v10884_v4, %v1400_v19 }
 0x216   :  { %17169 = vst [vmem:[#allocation204_spill] sm:$0xff] %v11479_v32  ;;  %v11487_v49 = vpop.f32.mrf.mxu0  ;;  %v11505_v41 = vsub.s32 %v1909_v36, %v1912_v16  ;;  %v11512_v10 = vsub.s32 %v2013_v34, %v2016_v33  ;;  %v11514_v58 = vshrl.u32 %v2118_v38, 30  ;;  %v1405_v36 = vsub.s32 4294967266, %v1400_v19 }
 0x217   :  { %v11489_v9 = vpop.f32.mrf.mxu1  ;;  %v1501_v40 = vclz %v8780_v15  ;;  %v8793_v59 = vadd.s32 4294967294, %v1813_v63 }
 0x218   :  { %v11492_v8 = vpop.f32.mrf.mxu0  ;;  %17175 = vst [vmem:[#allocation210_spill] sm:$0xff] %v11514_v58  ;;  %v1915_v12 = vsub.s32 0, %v11505_v41  ;;  %v2019_v34 = vsub.s32 0, %v11512_v10  ;;  %v2120_v33 = vshll.u32 %v11514_v58, 30  ;;  %v1406_v23 = vadd.s32 127, %v1405_v36 }
 0x219   :  { %17171 = vst [vmem:[#allocation206_spill] sm:$0xff] %v11492_v8  ;;  %v11494_v37 = vpop.f32.mrf.mxu1  ;;  %v8781_v15 = vadd.s32 4294967294, %v1501_v40  ;;  %v1709_v40 = vclz %v8788_v25  ;;  %vm8794_vm5 = vcmp.lt.s32.totalorder %v8793_v59, 0 }
 0x21a   :  { %17172 = vst [vmem:[#allocation207_spill] sm:$0xff] %v11494_v37  ;;  %v11501_v32 = vpop.f32.mrf.mxu0  ;;  %v8796_v35 = vmin.u32 %v1915_v12, %v11505_v41  ;;  %v8800_v63 = vmin.u32 %v2019_v34, %v11512_v10  ;;  %v11540_v44 = vsub.s32 %v2117_v48, %v2120_v33  ;;  %v1407_v36 = vshll.u32 %v1406_v23, 23 }
 0x21b   :  { %v11503_v61 = vpop.f32.mrf.mxu1  ;;  %vm8782_vm4 = vcmp.lt.s32.totalorder %v8781_v15, 0  ;;  %v1613_v12 = vsub.s32 4294967266, %v11533_v42  ;;  %v1403_v34 = vshrl.u32 %v1385_v50, %v1401_v39  ;;  %v8789_v33 = vadd.s32 4294967294, %v1709_v40  ;;  %v11565_v39 = vpop.permute.xlu1 %4691 }
 0x21c   :  { %v11507_v14 = vpop.f32.mrf.mxu0  ;;  %v11555_v48 = vsel %vm8782_vm4, 0, %v8781_v15  ;;  %v11557_v58 = vsel %vm8794_vm5, 0, %v8793_v59  ;;  %v2021_v51 = vclz %v8800_v63  ;;  %v2123_v55 = vsub.s32 0, %v11540_v44 }
 0x21d   :  { %17173 = vst [vmem:[#allocation208_spill] sm:$0xff] %v11507_v14  ;;  %v11509_v37 = vpop.f32.mrf.mxu1  ;;  %v1614_v23 = vadd.s32 127, %v1613_v12  ;;  %v1404_v59 = vor.u32 %v1403_v34, %v1402_v11  ;;  %v1609_v40 = vsub.s32 32, %v11533_v42  ;;  %vm8790_vm6 = vcmp.lt.s32.totalorder %v8789_v33, 0  ;;  %v17186_v12 = vld [vmem:[#allocation111_spill] sm:$0xff] }
 0x21e   :  { %17174 = vst [vmem:[#allocation209_spill] sm:$0xff] %v11509_v37  ;;  %v11516_v31 = vpop.f32.mrf.mxu0  ;;  %v11549_v37 = vpop.permute.xlu0 %4706  ;;  %v8801_v50 = vadd.s32 4294967294, %v2021_v51  ;;  %v8804_v4 = vmin.u32 %v2123_v55, %v11540_v44  ;;  %v11577_v8 = vsel %vm8790_vm6, 0, %v8789_v33  ;;  %v1505_v51 = vsub.s32 32, %v11555_v48 }
 0x21f   :  { %v11518_v6 = vpop.f32.mrf.mxu1  ;;  %v11579_v11 = vpop.permute.xlu1 %4721  ;;  %v1411_v26 = vcvt.s32.f32 %v1404_v59  ;;  %v1610_v59 = vshll.u32 %v11438_v43, %v11533_v42  ;;  %vm2059_vm6 = vcmp.lt.s32.totalorder %v10408_v30, 0 }
 0x220   :  { %v11521_v16 = vpop.f32.mrf.mxu0  ;;  %vm8802_vm8 = vcmp.lt.s32.totalorder %v8801_v50, 0 }
 0x221   :  { %v11523_v28 = vpop.f32.mrf.mxu1 }
 0x222   :  { %17176 = vst [vmem:[#allocation211_spill] sm:$0xff] %v11523_v28  ;;  %v11530_v62 = vpop.f32.mrf.mxu0  ;;  %v1917_v28 = vclz %v8796_v35  ;;  %v1408_v35 = vor.u32 4788187, %v1407_v36  ;;  %v11570_v63 = vpop.permute.xlu0 %4701  ;;  %v17185_v36 = vld [vmem:[#allocation112_spill] sm:$0xff] }
 0x223   :  { %v11528_v38 = vpop.f32.mrf.mxu1  ;;  %17177 = vst [vmem:[#allocation212_spill] sm:$0xff] %v11530_v62  ;;  %17187 = vst [vmem:[#allocation112_spill] sm:$0xff] %v11579_v11  ;;  %v11608_v5 = vpop.permute.xlu1 %4711 }
 0x224   :  { %v11537_v22 = vpop.f32.mrf.mxu0 }
 0x225   :  { %v11535_v46 = vpop.f32.mrf.mxu1  ;;  %17178 = vst [vmem:[#allocation213_spill] sm:$0xff] %v11537_v22  ;;  %v1615_v22 = vshll.u32 %v1614_v23, 23  ;;  %v1817_v23 = vsub.s32 32, %v11557_v58 }
 0x226   :  { %v11551_v25 = vpop.f32.mrf.mxu0  ;;  %v11588_v18 = vpop.permute.xlu0 %4726 }
 0x227   :  { %v11544_v45 = vpop.f32.mrf.mxu1  ;;  %17180 = vst [vmem:[#allocation215_spill] sm:$0xff] %v11551_v25  ;;  %v1509_v25 = vsub.s32 4294967266, %v11555_v48 }
 0x228   :  { %17179 = vst [vmem:[#allocation214_spill] sm:$0xff] %v11544_v45  ;;  %v8797_v45 = vadd.s32 4294967294, %v1917_v28  ;;  %v11567_v15 = vpop.f32.mrf.mxu0  ;;  %v1409_v28 = vand.u32 2147483647, %v1408_v35 }
 0x229   :  { %v11553_v14 = vpop.f32.mrf.mxu1  ;;  %17183 = vst [vmem:[#allocation218_spill] sm:$0xff] %v11567_v15  ;;  %v1510_v62 = vadd.s32 127, %v1509_v25 }
 0x22a   :  { %17181 = vst [vmem:[#allocation216_spill] sm:$0xff] %v11553_v14  ;;  %v1821_v14 = vsub.s32 4294967266, %v11557_v58  ;;  %vm8798_vm7 = vcmp.lt.s32.totalorder %v8797_v45, 0  ;;  %v11581_v15 = vpop.f32.mrf.mxu0 }
 0x22b   :  { %v11560_v27 = vpop.f32.mrf.mxu1  ;;  %17188 = vst [vmem:[#allocation111_spill] sm:$0xff] %v11581_v15  ;;  %v11591_v25 = vsel %vm8798_vm7, 0, %v8797_v45  ;;  %v1511_v11 = vshll.u32 %v1510_v62, 23 }
 0x22c   :  { %17182 = vst [vmem:[#allocation217_spill] sm:$0xff] %v11560_v27  ;;  %v1593_v27 = vadd.s32 %v17186_v12, %v17185_v36  ;;  %v1822_v34 = vadd.s32 127, %v1821_v14  ;;  %v2125_v14 = vclz %v8804_v4  ;;  %v1412_v36 = vmul.f32 %v1411_v26, %v1409_v28  ;;  %v11602_v15 = vpop.f32.mrf.mxu0 }
 0x22d   :  { %v11573_v19 = vpop.f32.mrf.mxu1  ;;  %v1616_v12 = vor.u32 4788187, %v1615_v22  ;;  %v11605_v26 = vsel %vm8802_vm8, 0, %v8801_v50  ;;  %v1818_v50 = vshll.u32 %v11467_v29, %v11557_v58 }
 0x22e   :  { %17184 = vst [vmem:[#allocation219_spill] sm:$0xff] %v11573_v19  ;;  %v1611_v55 = vshrl.u32 %v1593_v27, %v1609_v40  ;;  %v17190_v19 = vld [vmem:[#allocation9_spill] sm:$0xff]  ;;  %v1717_v27 = vsub.s32 4294967266, %v11577_v8  ;;  %v17194_v40 = vld [vmem:[#allocation110_spill] sm:$0xff]  ;;  %v1823_v45 = vshll.u32 %v1822_v34, 23  ;;  %v8805_v22 = vadd.s32 4294967294, %v2125_v14 }
 0x22f   :  { %v11586_v35 = vadd.f32 %v17190_v19, %v17189_v0  ;;  %17192 = vst [vmem:[#allocation9_spill] sm:$0xff] %v11588_v18  ;;  %v11593_v33 = vpop.f32.mrf.mxu1  ;;  %v17195_v0 = vld [vmem:[#allocation107_spill] sm:$0xff]  ;;  %v1801_v18 = vadd.s32 %v11082_v21, %v11103_v24  ;;  %17196 = vst [vmem:[#allocation110_spill] sm:$0xff] %v11608_v5  ;;  %v1413_v62 = vxor.u32 2147483648, %v1412_v36  ;;  %v1506_v21 = vshll.u32 %v11464_v1, %v11555_v48  ;;  %v17200_v14 = vld [vmem:[#allocation41_spill] sm:$0xff] }
 0x230   :  { %17193 = vst [vmem:[#allocation220_spill] sm:$0xff] %v11593_v33  ;;  %v1489_v19 = vadd.s32 %v17195_v0, %v17194_v40  ;;  %v1612_v4 = vor.u32 %v1611_v55, %v1610_v59  ;;  %v1925_v33 = vsub.s32 4294967266, %v11591_v25  ;;  %v1617_v24 = vand.u32 2147483647, %v1616_v12  ;;  %v11614_v55 = vpop.permute.xlu0 %4716  ;;  %v17204_v12 = vld [vmem:[#allocation42_spill] sm:$0xff] }
 0x231   :  { %17191 = vst [vmem:[#allocation17_spill] sm:$0xff] %v11586_v35  ;;  %v1819_v42 = vshrl.u32 %v1801_v18, %v1817_v23  ;;  %v2164_v43 = vand.u32 2139095040, %v11586_v35  ;;  %v11610_v40 = vpop.f32.mrf.mxu1  ;;  %v1718_v34 = vadd.s32 127, %v1717_v27  ;;  %17198 = vst [vmem:[#allocation221_spill] sm:$0xff] %v11614_v55  ;;  %v1512_v59 = vor.u32 4788187, %v1511_v11  ;;  %v11619_v23 = vpop.f32.mrf.mxu0 }
 0x232   :  { %v1507_v28 = vshrl.u32 %v1489_v19, %v1505_v51  ;;  %17197 = vst [vmem:[#allocation107_spill] sm:$0xff] %v11610_v40  ;;  %v1824_v18 = vor.u32 4788187, %v1823_v45  ;;  %v2029_v51 = vsub.s32 4294967266, %v11605_v26  ;;  %17199 = vst [vmem:[#allocation222_spill] sm:$0xff] %v11619_v23  ;;  %vm1331_vm10 = vcmp.lt.s32.totalorder %v17200_v14, 0  ;;  %v11630_v27 = vpop.permute.xlu1 %4741 }
 0x233   :  { %v1619_v0 = vcvt.s32.f32 %v1612_v4  ;;  %v1713_v19 = vsub.s32 32, %v11577_v8  ;;  %v1926_v5 = vadd.s32 127, %v1925_v33  ;;  %v17201_v1 = vand.u32 2147483647, %v17200_v14  ;;  %17205 = vst [vmem:[#allocation41_spill] sm:$0xff] %v11630_v27  ;;  %v11632_v45 = vpop.f32.mrf.mxu1 }
 0x234   :  { %v1508_v11 = vor.u32 %v1507_v28, %v1506_v21  ;;  %vm1539_vm12 = vcmp.lt.s32.totalorder %v17204_v12, 0  ;;  %v1820_v58 = vor.u32 %v1819_v42, %v1818_v50  ;;  %vm8806_vm13 = vcmp.lt.s32.totalorder %v8805_v22, 0  ;;  %17206 = vst [vmem:[#allocation42_spill] sm:$0xff] %v11632_v45  ;;  %v11637_v40 = vpop.permute.xlu0 %4746 }
 0x235   :  { %vm11625_vm11 = vcmp.le.f32.partialorder %v17201_v1, 0.7853982  ;;  %v2165_v29 = vshrl.u32 %v2164_v43, 23  ;;  %v1620_v4 = vmul.f32 %v1619_v0, %v1617_v24  ;;  %v1697_v33 = vadd.s32 %v10950_v56, %v11003_v13  ;;  %17207 = vst [vmem:[#allocation223_spill] sm:$0xff] %v11637_v40  ;;  %v11641_v43 = vpop.f32.mrf.mxu0  ;;  %v11649_v23 = vpop.f32.mrf.mxu1 }
 0x236   :  { %v1719_v55 = vshll.u32 %v1718_v34, 23  ;;  %v1921_v1 = vsub.s32 32, %v11591_v25  ;;  %v1414_v28 = vsel %vm1331_vm10, %v1413_v62, %v1412_v36  ;;  %v1513_v21 = vand.u32 2147483647, %v1512_v59 }
 0x237   :  { %v1825_v42 = vand.u32 2147483647, %v1824_v18  ;;  %v2030_v50 = vadd.s32 127, %v2029_v51  ;;  %v1715_v27 = vshrl.u32 %v1697_v33, %v1713_v19  ;;  %v1905_v24 = vadd.s32 %v11208_v57, %v11259_v60  ;;  %v17208_v51 = vld [vmem:[#allocation6_spill] sm:$0xff]  ;;  %v11657_v19 = vpop.permute.xlu1 %4731 }
 0x238   :  { %v1927_v0 = vshll.u32 %v1926_v5, 23  ;;  %v11646_v56 = vsel %vm8806_vm13, 0, %v8805_v22  ;;  %v1515_v13 = vcvt.s32.f32 %v1508_v11  ;;  %v1827_v34 = vcvt.s32.f32 %v1820_v58  ;;  %17209 = vst [vmem:[#allocation6_spill] sm:$0xff] %v11657_v19  ;;  %v11659_v11 = vpop.f32.mrf.mxu0 }
 0x239   :  { %v2025_v40 = vsub.s32 32, %v11605_v26  ;;  %v8807_v45 = vadd.s32 4294967169, %v2165_v29  ;;  %v1621_v36 = vxor.u32 2147483648, %v1620_v4  ;;  %v1714_v62 = vshll.u32 %v11496_v3, %v11577_v8  ;;  %17210 = vst [vmem:[#allocation224_spill] sm:$0xff] %v11659_v11 }
 0x23a   :  { %v1720_v59 = vor.u32 4788187, %v1719_v55  ;;  %v1923_v18 = vshrl.u32 %v1905_v24, %v1921_v1  ;;  %vm1435_vm14 = vcmp.lt.s32.totalorder %v17208_v51, 0  ;;  %v1828_v57 = vmul.f32 %v1827_v34, %v1825_v42  ;;  %v11663_v55 = vpop.permute.xlu0 %4736 }
 0x23b   :  { %v2009_v5 = vadd.s32 %v11309_v54, %v11317_v52  ;;  %v2031_v60 = vshll.u32 %v2030_v50, 23  ;;  %v2133_v22 = vsub.s32 4294967266, %v11646_v56  ;;  %v1516_v58 = vmul.f32 %v1515_v13, %v1513_v21  ;;  %17211 = vst [vmem:[#allocation225_spill] sm:$0xff] %v11663_v55  ;;  %v17215_v54 = vld [vmem:[#allocation8_spill] sm:$0xff]  ;;  %v11677_v50 = vpop.f32.mrf.mxu1 }
 0x23c   :  { %v1716_v29 = vor.u32 %v1715_v27, %v1714_v62  ;;  %v1922_v8 = vshll.u32 %v11505_v41, %v11591_v25  ;;  %v1928_v3 = vor.u32 4788187, %v1927_v0  ;;  %v17212_v33 = vand.u32 2147483647, %v17204_v12  ;;  %17219 = vst [vmem:[#allocation8_spill] sm:$0xff] %v11677_v50 }
 0x23d   :  { %v17216_v52 = vand.u32 2147483647, %v17215_v54  ;;  %v2027_v21 = vshrl.u32 %v2009_v5, %v2025_v40  ;;  %v2171_v27 = vadd.s32 1, %v8807_v45  ;;  %v1417_v41 = vsel %vm11625_vm11, %v17200_v14, %v1414_v28  ;;  %v11688_v40 = vpop.f32.mrf.mxu0 }
 0x23e   :  { %vm11667_vm15 = vcmp.le.f32.partialorder %v17212_v33, 0.7853982  ;;  %v1622_v25 = vsel %vm1539_vm12, %v1621_v36, %v1620_v4  ;;  %v1721_v24 = vand.u32 2147483647, %v1720_v59  ;;  %v1924_v0 = vor.u32 %v1923_v18, %v1922_v8  ;;  %17220 = vst [vmem:[#allocation226_spill] sm:$0xff] %v11688_v40  ;;  %v11691_v55 = vpop.permute.xlu0 %4766  ;;  %v17221_v4 = vld [vmem:[#allocation7_spill] sm:$0xff] }
 0x23f   :  { %vm11673_vm9 = vcmp.le.f32.partialorder %v17216_v52, 0.7853982  ;;  %v1829_v13 = vxor.u32 2147483648, %v1828_v57  ;;  %v2026_v34 = vshll.u32 %v11512_v10, %v11605_v26  ;;  %v2032_v62 = vor.u32 4788187, %v2031_v60  ;;  %v11686_v52 = vpop.permute.xlu1 %4761  ;;  %v17222_v10 = vld [vmem:[#allocation43_spill] sm:$0xff]  ;;  %v11699_v60 = vpop.f32.mrf.mxu1 }
 0x240   :  { %v2134_v33 = vadd.s32 127, %v2133_v22  ;;  %v1517_v45 = vxor.u32 2147483648, %v1516_v58  ;;  %v1723_v5 = vcvt.s32.f32 %v1716_v29  ;;  %vm1747_vm0 = vcmp.lt.s32.totalorder %v17215_v54, 0  ;;  %v17223_v26 = vld [vmem:[#allocation11_spill] sm:$0xff]  ;;  %17225 = vst [vmem:[#allocation43_spill] sm:$0xff] %v11699_v60  ;;  %v11708_v50 = vpop.f32.mrf.mxu0 }
 0x241   :  { %v1929_v28 = vand.u32 2147483647, %v1928_v3  ;;  %vm1643_vm1 = vcmp.lt.s32.totalorder %v17221_v4, 0  ;;  %v2028_v36 = vor.u32 %v2027_v21, %v2026_v34  ;;  %v2129_v59 = vsub.s32 32, %v11646_v56  ;;  %17226 = vst [vmem:[#allocation11_spill] sm:$0xff] %v11708_v50 }
 0x242   :  { %vm2172_vm2 = vcmp.gt.s32.totalorder %v2171_v27, 0  ;;  %v11697_v18 = vadd.f32 %v17223_v26, %v17222_v10  ;;  %9051 = vcosq.f32 %v1417_v41  ;;  %v1625_v22 = vsel %vm11667_vm15, %v17204_v12, %v1622_v25  ;;  %v17227_v25 = vld [vmem:[#allocation115_spill] sm:$0xff] }
 0x243   :  { %v1724_v29 = vmul.f32 %v1723_v5, %v1721_v24  ;;  %v1931_v8 = vcvt.s32.f32 %v1924_v0  ;;  %v1830_v3 = vsel %vm1747_vm0, %v1829_v13, %v1828_v57  ;;  %v2033_v21 = vand.u32 2147483647, %v2032_v62  ;;  %v11716_v13 = vpop.permute.xlu1 %4751  ;;  %v11718_v62 = vpop.f32.mrf.mxu1 }
 0x244   :  { %17224 = vst [vmem:[#allocation7_spill] sm:$0xff] %v11697_v18  ;;  %v2113_v34 = vadd.s32 %v11397_v47, %v11406_v17  ;;  %v2135_v19 = vshll.u32 %v2134_v33, 23  ;;  %9053 = vsinq.f32 %v1417_v41  ;;  %v11712_v10 = vsel %vm1435_vm14, %v1517_v45, %v1516_v58  ;;  %17228 = vst [vmem:[#allocation115_spill] sm:$0xff] %v11716_v13  ;;  %v11724_v41 = vpop.permute.xlu0 %4756 }
 0x245   :  { %v1932_v26 = vmul.f32 %v1931_v8, %v1929_v28  ;;  %v2173_v60 = vsel %vm2172_vm2, %v2171_v27, 0  ;;  %vm1851_vm3 = vcmp.lt.s32.totalorder %v17227_v25, 0  ;;  %v2035_v24 = vcvt.s32.f32 %v2028_v36  ;;  %17229 = vst [vmem:[#allocation227_spill] sm:$0xff] %v11718_v62  ;;  %v11728_v28 = vpop.f32.mrf.mxu0  ;;  %v17232_v8 = vld [vmem:[#allocation133_spill] sm:$0xff] }
 0x246   :  { %v2131_v0 = vshrl.u32 %v2113_v34, %v2129_v59  ;;  %v2268_v57 = vand.u32 2139095040, %v11697_v18  ;;  %9055 = vcosq.f32 %v1625_v22  ;;  %v1725_v47 = vxor.u32 2147483648, %v1724_v29  ;;  %17230 = vst [vmem:[#allocation228_spill] sm:$0xff] %v11728_v28  ;;  %v17231_v59 = vld [vmem:[#allocation18_spill] sm:$0xff] }
 0x247   :  { %v1833_v17 = vsel %vm11673_vm9, %v17215_v54, %v1830_v3  ;;  %v2036_v27 = vmul.f32 %v2035_v24, %v2033_v21  ;;  %v2130_v33 = vshll.u32 %v11540_v44, %v11646_v56  ;;  %v2136_v45 = vor.u32 4788187, %v2135_v19  ;;  %v17236_v56 = vld [vmem:[#allocation138_spill] sm:$0xff]  ;;  %v11741_v24 = vpop.f32.mrf.mxu1 }
 0x248   :  { %v2175_v5 = vand.u32 31, %v2173_v60  ;;  %9057 = vsinq.f32 %v1625_v22  ;;  %v1933_v36 = vxor.u32 2147483648, %v1932_v26  ;;  %vm1955_vm4 = vcmp.lt.s32.totalorder %v17231_v59, 0  ;;  %17237 = vst [vmem:[#allocation18_spill] sm:$0xff] %v11741_v24 }
 0x249   :  { %v5025_v34 = vadd.f32 %v17232_v8, %v11716_v13  ;;  %9059 = vcosq.f32 %v1833_v17  ;;  %v17233_v3 = vand.u32 2147483647, %v17231_v59  ;;  %v2132_v21 = vor.u32 %v2131_v0, %v2130_v33  ;;  %v17238_v8 = vld [vmem:[#allocation21_spill] sm:$0xff]  ;;  %v17239_v13 = vld [vmem:[#allocation10_spill] sm:$0xff] }
 0x24a   :  { %v2269_v44 = vshrl.u32 %v2268_v57, 23  ;;  %v5036_v19 = vadd.f32 %v17236_v56, %v11724_v41  ;;  %v11745_v22 = vsel %vm1643_vm1, %v1725_v47, %v1724_v29  ;;  %9061 = vsinq.f32 %v1833_v17  ;;  %v11757_v56 = vpop.f32.mrf.mxu0  ;;  %v17245_v47 = vld [vmem:[#allocation14_spill] sm:$0xff] }
 0x24b   :  { %vm11735_vm5 = vcmp.le.f32.partialorder %v17233_v3, 0.7853982  ;;  %v1074_v62 = vadd.f32 %v17239_v13, %v17238_v8  ;;  %v17240_v3 = vld [vmem:[#allocation143_spill] sm:$0xff]  ;;  %v2037_v50 = vxor.u32 2147483648, %v2036_v27  ;;  %v2137_v40 = vand.u32 2147483647, %v2136_v45 }
 0x24c   :  { %v5047_v28 = vadd.f32 %v17240_v3, %v11686_v52  ;;  %v17241_v0 = vand.u32 2147483647, %v11586_v35  ;;  %v11755_v33 = vsub.s32 32, %v2175_v5  ;;  %17244 = vst [vmem:[#allocation21_spill] sm:$0xff] %v11757_v56  ;;  %v11761_v29 = vsel %vm1851_vm3, %v1933_v36, %v1932_v26  ;;  %v17247_v13 = vld [vmem:[#allocation139_spill] sm:$0xff]  ;;  %v17250_v35 = vld [vmem:[#allocation144_spill] sm:$0xff]  ;;  %v11774_v56 = vpop.f32.mrf.mxu1 }
 0x24d   :  { %v11764_v17 = vadd.f32 %v17245_v47, %v1074_v62  ;;  %v5234_v8 = vadd.f32 %v17247_v13, %v5025_v34  ;;  %v17248_v3 = vld [vmem:[#allocation147_spill] sm:$0xff]  ;;  %v2139_v24 = vcvt.s32.f32 %v2132_v21  ;;  %v11769_v11 = vshrl.u32 %v2173_v60, 5  ;;  %17251 = vst [vmem:[#allocation14_spill] sm:$0xff] %v11774_v56  ;;  %v17252_v36 = vld [vmem:[#allocation148_spill] sm:$0xff]  ;;  %v17253_v62 = vld [vmem:[#allocation149_spill] sm:$0xff] }
 0x24e   :  { %v11753_v57 = vand.u32 8388607, %v17241_v0  ;;  %17243 = vst [vmem:[#allocation138_spill] sm:$0xff] %v11755_v33  ;;  %v5058_v45 = vadd.f32 %v17248_v3, %v11691_v55  ;;  %v11771_v0 = vadd.s32 4294967169, %v2269_v44  ;;  %v5241_v18 = vadd.f32 %v17250_v35, %v5036_v19  ;;  %v11789_v3 = vpop.f32.mrf.mxu0 }
 0x24f   :  { %17246 = vst [vmem:[#allocation10_spill] sm:$0xff] %v11764_v17  ;;  %17249 = vst [vmem:[#allocation143_spill] sm:$0xff] %v11769_v11  ;;  %v2178_v26 = vshll.u32 %v17040_v20, %v2175_v5  ;;  %v5060_v47 = vadd.f32 %v17253_v62, %v11691_v55  ;;  %v5432_v34 = vadd.f32 %v11469_v7, %v5234_v8  ;;  %v11781_v13 = vpop.eup %9051  ;;  %v17254_v35 = vmov 2475754826   ;;  %v17257_v55 = vld [vmem:[#allocation153_spill] sm:$0xff] }
 0x250   :  { %17242 = vst [vmem:[#allocation133_spill] sm:$0xff] %v11753_v57  ;;  %v5248_v57 = vadd.f32 %v17252_v36, %v5047_v28  ;;  %v2038_v60 = vsel %vm1955_vm4, %v2037_v50, %v2036_v27  ;;  %v2140_v21 = vmul.f32 %v2139_v24, %v2137_v40  ;;  %v2179_v44 = vshrl.u32 %v17254_v35, %v11755_v33  ;;  %v17256_v28 = vld [vmem:[#allocation151_spill] sm:$0xff] }
 0x251   :  { %v5440_v19 = vadd.f32 %v11487_v49, %v5241_v18  ;;  %17255 = vst [vmem:[#allocation139_spill] sm:$0xff] %v11789_v3  ;;  %v5255_v36 = vadd.f32 %v17256_v28, %v5058_v45  ;;  %v5257_v62 = vadd.f32 %v17257_v55, %v5060_v47  ;;  %v11794_v7 = vadd.f32 %v11489_v9, %v5432_v34  ;;  %v11797_v50 = vpop.eup %9053  ;;  %v11810_v47 = vpop.f32.mrf.mxu1 }
 0x252   :  { %v5448_v8 = vadd.f32 %v11501_v32, %v5248_v57  ;;  %v2182_v40 = vshrl.u32 %v17046_v2, %v11755_v33  ;;  %v17258_v27 = vmov 920167782   ;;  %v17259_v49 = vmov 1326507024   ;;  %17261 = vst [vmem:[#allocation144_spill] sm:$0xff] %v11810_v47 }
 0x253   :  { %v2188_v24 = vshrl.u32 %v17258_v27, %v11755_v33  ;;  %v11805_v18 = vshrl.u32 %v17259_v49, %v11755_v33  ;;  %v11808_v45 = vadd.f32 %v11503_v61, %v5440_v19  ;;  %v2041_v32 = vsel %vm11735_vm5, %v17231_v59, %v2038_v60  ;;  %v11820_v28 = vpop.eup %9055  ;;  %v11830_v60 = vpop.f32.mrf.mxu0 }
 0x254   :  { %v5456_v9 = vadd.f32 %v11516_v31, %v5255_v36  ;;  %v11817_v57 = vadd.f32 %v11518_v6, %v5448_v8  ;;  %v5458_v34 = vadd.f32 %v11521_v16, %v5257_v62  ;;  %v2181_v55 = vshll.u32 %v17254_v35, %v2175_v5  ;;  %17264 = vst [vmem:[#allocation149_spill] sm:$0xff] %v11830_v60  ;;  %v17265_v6 = vld [vmem:[#allocation80_spill] sm:$0xff]  ;;  %v17268_v60 = vld [vmem:[#allocation83_spill] sm:$0xff]  ;;  %v17279_v35 = vld [vmem:[#allocation86_spill] sm:$0xff] }
 0x255   :  { %17260 = vst [vmem:[#allocation147_spill] sm:$0xff] %v11805_v18  ;;  %v11824_v61 = vshll.u32 %v17046_v2, %v2175_v5  ;;  %v17262_v19 = vmov 2102212464   ;;  %v11828_v56 = vshll.u32 %v17258_v27, %v2175_v5  ;;  %v2141_v31 = vxor.u32 2147483648, %v2140_v21  ;;  %v11840_v8 = vpop.eup %9057  ;;  %v11850_v27 = vpop.f32.mrf.mxu1 }
 0x256   :  { %v2187_v47 = vshll.u32 %v17262_v19, %v2175_v5  ;;  %v4893_v36 = vadd.f32 %v17265_v6, %v11565_v39  ;;  %v11835_v16 = vadd.f32 %v11528_v38, %v5456_v9  ;;  %v11838_v62 = vadd.f32 %v11535_v46, %v5458_v34  ;;  %17269 = vst [vmem:[#allocation80_spill] sm:$0xff] %v11850_v27  ;;  %v11852_v6 = vpop.eup %9059  ;;  %v17272_v9 = vld [vmem:[#allocation82_spill] sm:$0xff]  ;;  %v17274_v27 = vld [vmem:[#allocation87_spill] sm:$0xff] }
 0x257   :  { %17263 = vst [vmem:[#allocation148_spill] sm:$0xff] %v11828_v56  ;;  %9063 = vcosq.f32 %v2041_v32  ;;  %v11842_v3 = vor.u32 %v2179_v44, %v2178_v26  ;;  %v11846_v5 = vshrl.u32 %v17262_v19, %v11755_v33  ;;  %v4904_v49 = vadd.f32 %v17268_v60, %v11542_v53  ;;  %v11860_v44 = vpop.eup %9061  ;;  %v17277_v26 = vld [vmem:[#allocation84_spill] sm:$0xff] }
 0x258   :  { %17266 = vst [vmem:[#allocation151_spill] sm:$0xff] %v11838_v62  ;;  %9065 = vsinq.f32 %v2041_v32  ;;  %v11854_v38 = vor.u32 %v2182_v40, %v2181_v55  ;;  %v11856_v46 = vor.u32 %v2188_v24, %v2187_v47  ;;  %v4895_v34 = vadd.f32 %v17272_v9, %v11565_v39  ;;  %v17273_v62 = vld [vmem:[#allocation85_spill] sm:$0xff]  ;;  %v17275_v32 = vld [vmem:[#allocation91_spill] sm:$0xff]  ;;  %v11870_v55 = vpop.f32.mrf.mxu0  ;;  %v17278_v39 = vld [vmem:[#allocation120_spill] sm:$0xff] }
 0x259   :  { %17267 = vst [vmem:[#allocation153_spill] sm:$0xff] %v11842_v3  ;;  %v4906_v60 = vadd.f32 %v17273_v62, %v11542_v53  ;;  %v4915_v19 = vadd.f32 %v17274_v27, %v11570_v63  ;;  %v4926_v40 = vadd.f32 %v17275_v32, %v11549_v37  ;;  %17276 = vst [vmem:[#allocation82_spill] sm:$0xff] %v11870_v55  ;;  %v1415_v9 = vsub.s32 4, %v17278_v39  ;;  %v17280_v62 = vld [vmem:[#allocation88_spill] sm:$0xff]  ;;  %v17281_v27 = vld [vmem:[#allocation89_spill] sm:$0xff]  ;;  %v11884_v55 = vpop.f32.mrf.mxu1 }
 0x25a   :  { %17270 = vst [vmem:[#allocation83_spill] sm:$0xff] %v11854_v38  ;;  %17271 = vst [vmem:[#allocation229_spill] sm:$0xff] %v11856_v46  ;;  %v11874_v24 = vsel %vm2059_vm6, %v2141_v31, %v2140_v21  ;;  %v5150_v2 = vadd.f32 %v17277_v26, %v4893_v36  ;;  %v5152_v53 = vadd.f32 %v17279_v35, %v4895_v34  ;;  %v17282_v32 = vld [vmem:[#allocation90_spill] sm:$0xff]  ;;  %v17284_v21 = vld [vmem:[#allocation93_spill] sm:$0xff] }
 0x25b   :  { %v5157_v20 = vadd.f32 %v17280_v62, %v4904_v49  ;;  %v4917_v33 = vadd.f32 %v17281_v27, %v11570_v63  ;;  %v5159_v3 = vadd.f32 %v17282_v32, %v4906_v60  ;;  %17283 = vst [vmem:[#allocation85_spill] sm:$0xff] %v11884_v55  ;;  %v4928_v31 = vadd.f32 %v17284_v21, %v11549_v37  ;;  %v17285_v47 = vld [vmem:[#allocation141_spill] sm:$0xff]  ;;  %v17287_v56 = vld [vmem:[#allocation140_spill] sm:$0xff]  ;;  %v17289_v62 = vld [vmem:[#allocation94_spill] sm:$0xff]  ;;  %v11897_v55 = vpop.f32.mrf.mxu0 }
 0x25c   :  { %v5038_v38 = vadd.f32 %v17285_v47, %v11724_v41  ;;  %v17286_v36 = vld [vmem:[#allocation145_spill] sm:$0xff]  ;;  %v1623_v35 = vsub.s32 4, %v17287_v56  ;;  %v17288_v34 = vld [vmem:[#allocation92_spill] sm:$0xff]  ;;  %17292 = vst [vmem:[#allocation87_spill] sm:$0xff] %v11897_v55  ;;  %v17293_v46 = vld [vmem:[#allocation98_spill] sm:$0xff] }
 0x25d   :  { %v5049_v26 = vadd.f32 %v17286_v36, %v11686_v52  ;;  %v5164_v49 = vadd.f32 %v17288_v34, %v4915_v19  ;;  %v5166_v18 = vadd.f32 %v17289_v62, %v4917_v33  ;;  %v17290_v63 = vld [vmem:[#allocation96_spill] sm:$0xff]  ;;  %v5173_v37 = vadd.f32 %v17293_v46, %v4928_v31  ;;  %v17294_v21 = vld [vmem:[#allocation146_spill] sm:$0xff]  ;;  %v17297_v33 = vld [vmem:[#allocation155_spill] sm:$0xff] }
 0x25e   :  { %v5171_v27 = vadd.f32 %v17290_v63, %v4926_v40  ;;  %v17291_v60 = vld [vmem:[#allocation152_spill] sm:$0xff]  ;;  %v5243_v11 = vadd.f32 %v17294_v21, %v5038_v38  ;;  %v17295_v41 = vld [vmem:[#allocation150_spill] sm:$0xff]  ;;  %v1416_v52 = vsel %vm1331_vm10, %v1415_v9, %v17278_v39  ;;  %v5344_v34 = vadd.f32 %v17297_v33, %v5157_v20  ;;  %v17301_v46 = vld [vmem:[#allocation159_spill] sm:$0xff] }
 0x25f   :  { %v5336_v32 = vadd.f32 %v17291_v60, %v5150_v2  ;;  %v11902_v47 = vadd.f32 %v17295_v41, %v5049_v26  ;;  %v17296_v19 = vld [vmem:[#allocation154_spill] sm:$0xff]  ;;  %v17298_v40 = vld [vmem:[#allocation156_spill] sm:$0xff]  ;;  %v17299_v2 = vld [vmem:[#allocation157_spill] sm:$0xff]  ;;  %v11911_v60 = vpop.f32.mrf.mxu1  ;;  %v5352_v31 = vadd.f32 %v17301_v46, %v5164_v49  ;;  %v1624_v39 = vsel %vm1539_vm12, %v1623_v35, %v17287_v56 }
 0x260   :  { %v5338_v36 = vadd.f32 %v17296_v19, %v5152_v53  ;;  %v5346_v63 = vadd.f32 %v17299_v2, %v5159_v3  ;;  %17300 = vst [vmem:[#allocation91_spill] sm:$0xff] %v11911_v60  ;;  %v17302_v38 = vld [vmem:[#allocation161_spill] sm:$0xff]  ;;  %v17304_v9 = vld [vmem:[#allocation158_spill] sm:$0xff]  ;;  %v17305_v19 = vld [vmem:[#allocation160_spill] sm:$0xff]  ;;  %v17306_v3 = vand.u32 2147483647, %v17208_v51  ;;  %vm1421_vm10 = vweird.f32 %v17200_v14 }
 0x261   :  { %v5534_v62 = vadd.f32 %v17298_v40, %v5336_v32  ;;  %v5354_v21 = vadd.f32 %v17302_v38, %v5166_v18  ;;  %v17303_v26 = vld [vmem:[#allocation137_spill] sm:$0xff]  ;;  %v5543_v20 = vadd.f32 %v17305_v19, %v5344_v34  ;;  %v1418_v32 = vsel %vm11625_vm11, 0, %v1416_v52  ;;  %v11929_v18 = vpop.f32.mrf.mxu0  ;;  %v17310_v49 = vld [vmem:[#allocation162_spill] sm:$0xff]  ;;  %v17311_v2 = vld [vmem:[#allocation163_spill] sm:$0xff] }
 0x262   :  { %v1519_v41 = vsub.s32 4, %v17303_v26  ;;  %v5536_v53 = vadd.f32 %v17304_v9, %v5338_v36  ;;  %vm11925_vm7 = vcmp.le.f32.partialorder %v17306_v3, 0.7853982  ;;  %17309 = vst [vmem:[#allocation84_spill] sm:$0xff] %v11929_v18  ;;  %v5545_v40 = vadd.f32 %v17310_v49, %v5346_v63  ;;  %v17312_v56 = vld [vmem:[#allocation164_spill] sm:$0xff]  ;;  %v17313_v52 = vld [vmem:[#allocation165_spill] sm:$0xff]  ;;  %v11945_v63 = vpop.f32.mrf.mxu1 }
 0x263   :  { %v5360_v46 = vadd.f32 %v17311_v2, %v5171_v27  ;;  %v5552_v35 = vadd.f32 %v17312_v56, %v5352_v31  ;;  %v1521_v48 = vsel %vm11925_vm7, %v17208_v51, %v11712_v10  ;;  %v5362_v36 = vadd.f32 %v17313_v52, %v5173_v37  ;;  %v17314_v34 = vld [vmem:[#allocation166_spill] sm:$0xff]  ;;  %v17315_v19 = vld [vmem:[#allocation200_spill] sm:$0xff]  ;;  %17316 = vst [vmem:[#allocation120_spill] sm:$0xff] %v11945_v63 }
 0x264   :  { %v11940_v38 = vadd.f32 %v17314_v34, %v5354_v21  ;;  %v1626_v9 = vsel %vm11667_vm15, 0, %v1624_v39  ;;  %v1727_v3 = vsub.s32 4, %v17315_v19  ;;  %v11947_v27 = vpop.eup %9063  ;;  %v1422_v31 = vadd.s32 3, %v1418_v32  ;;  %v17320_v21 = vld [vmem:[#allocation191_spill] sm:$0xff]  ;;  %v17321_v2 = vld [vmem:[#allocation168_spill] sm:$0xff]  ;;  %v17322_v52 = vld [vmem:[#allocation170_spill] sm:$0xff] }
 0x265   :  { %v1520_v49 = vsel %vm1435_vm14, %v1519_v41, %v17303_v26  ;;  %v17317_v10 = vand.u32 2147483647, %v17221_v4  ;;  %v1831_v1 = vsub.s32 4, %v17320_v21  ;;  %v11959_v39 = vpop.eup %9065  ;;  %v11962_v56 = vadd.f32 %v17321_v2, %v5360_v46  ;;  %v11971_v41 = vpop.f32.mrf.mxu0  ;;  %v17324_v32 = vld [vmem:[#allocation206_spill] sm:$0xff]  ;;  %v17325_v63 = vld [vmem:[#allocation212_spill] sm:$0xff]  ;;  %v17326_v46 = vld [vmem:[#allocation213_spill] sm:$0xff] }
 0x266   :  { %v11965_v34 = vadd.f32 %v17322_v52, %v5362_v36  ;;  %9067 = vcosq.f32 %v1521_v48  ;;  %17323 = vst [vmem:[#allocation86_spill] sm:$0xff] %v11971_v41  ;;  %v5753_v60 = vadd.f32 %v17325_v63, %v5534_v62  ;;  %v1630_v18 = vadd.s32 3, %v1626_v9  ;;  %v11986_v41 = vpop.f32.mrf.mxu1  ;;  %v17329_v33 = vld [vmem:[#allocation214_spill] sm:$0xff] }
 0x267   :  { %vm11954_vm8 = vcmp.le.f32.partialorder %v17317_v10, 0.7853982  ;;  %v11974_v10 = vadd.f32 %v17324_v32, %v5243_v11  ;;  %9069 = vsinq.f32 %v1521_v48  ;;  %v5755_v2 = vadd.f32 %v17326_v46, %v5536_v53  ;;  %17327 = vst [vmem:[#allocation88_spill] sm:$0xff] %v11986_v41  ;;  %v17328_v11 = vld [vmem:[#allocation215_spill] sm:$0xff]  ;;  %v17330_v63 = vld [vmem:[#allocation218_spill] sm:$0xff] }
 0x268   :  { %v1729_v26 = vsel %vm11954_vm8, %v17221_v4, %v11745_v22  ;;  %v1522_v36 = vsel %vm11925_vm7, 0, %v1520_v49  ;;  %v1728_v52 = vsel %vm1643_vm1, %v1727_v3, %v17315_v19  ;;  %v1832_v22 = vsel %vm1747_vm0, %v1831_v1, %v17320_v21  ;;  %v11993_v19 = vpop.f32.mrf.mxu0  ;;  %v17332_v1 = vld [vmem:[#allocation216_spill] sm:$0xff]  ;;  %v17337_v37 = vld [vmem:[#allocation202_spill] sm:$0xff] }
 0x269   :  { %v5760_v32 = vadd.f32 %v17328_v11, %v5543_v20  ;;  %v1423_v62 = vand.u32 3, %v1422_v31  ;;  %v1426_v48 = vxor.u32 2147483648, %v11797_v50  ;;  %9071 = vcosq.f32 %v1729_v26  ;;  %17331 = vst [vmem:[#allocation89_spill] sm:$0xff] %v11993_v19 }
 0x26a   :  { %v1429_v53 = vxor.u32 2147483648, %v11781_v13  ;;  %v5934_v9 = vadd.f32 %v17329_v33, %v5753_v60  ;;  %v5762_v49 = vadd.f32 %v17330_v63, %v5545_v40  ;;  %9073 = vsinq.f32 %v1729_v26  ;;  %v12020_v63 = vpop.f32.mrf.mxu0 }
 0x26b   :  { %v1526_v3 = vadd.s32 3, %v1522_v36  ;;  %v1631_v21 = vand.u32 3, %v1630_v18  ;;  %v1730_v20 = vsel %vm11954_vm8, 0, %v1728_v52  ;;  %v1834_v31 = vsel %vm11673_vm9, 0, %v1832_v22  ;;  %v12011_v18 = vpop.f32.mrf.mxu1  ;;  %17338 = vst [vmem:[#allocation93_spill] sm:$0xff] %v12020_v63 }
 0x26c   :  { %v12001_v46 = vadd.f32 %v17332_v1, %v5755_v2  ;;  %v1634_v60 = vxor.u32 2147483648, %v11840_v8  ;;  %v1637_v40 = vxor.u32 2147483648, %v11820_v28  ;;  %v17333_v26 = vand.u32 2147483647, %v17227_v25  ;;  %17336 = vst [vmem:[#allocation90_spill] sm:$0xff] %v12011_v18 }
 0x26d   :  { %vm1425_vm12 = vcmp.eq.s32.totalorder %v1423_v62, 0  ;;  %vm1428_vm13 = vcmp.eq.s32.totalorder %v1423_v62, 2  ;;  %v1935_v42 = vsub.s32 4, %v17337_v37  ;;  %v1734_v22 = vadd.s32 3, %v1730_v20 }
 0x26e   :  { %vm12007_vm11 = vcmp.le.f32.partialorder %v17333_v26, 0.7853982  ;;  %v1427_v36 = vsel %vm1425_vm12, %v11781_v13, %v1426_v48  ;;  %v1430_v52 = vsel %vm1428_vm13, %v1429_v53, %v11797_v50  ;;  %v1838_v33 = vadd.s32 3, %v1834_v31  ;;  %v17339_v26 = vld [vmem:[#allocation111_spill] sm:$0xff]  ;;  %v12029_v13 = vpop.f32.mrf.mxu1 }
 0x26f   :  { %v1937_v2 = vsel %vm12007_vm11, %v17227_v25, %v11761_v29  ;;  %v12022_v1 = vand.u32 3, %v1526_v3  ;;  %v12025_v18 = vadd.f32 %v17339_v26, %v5552_v35  ;;  %vm1633_vm14 = vcmp.eq.s32.totalorder %v1631_v21, 0  ;;  %17340 = vst [vmem:[#allocation141_spill] sm:$0xff] %v12029_v13  ;;  %v17341_v35 = vld [vmem:[#allocation217_spill] sm:$0xff]  ;;  %v12040_v3 = vpop.f32.mrf.mxu0 }
 0x270   :  { %vm1636_vm15 = vcmp.eq.s32.totalorder %v1631_v21, 2  ;;  %vm1424_vm9 = vcmp.lt.s32.totalorder %v1423_v62, 2  ;;  %v1635_v41 = vsel %vm1633_vm14, %v11820_v28, %v1634_v60  ;;  %9075 = vcosq.f32 %v1937_v2  ;;  %17342 = vst [vmem:[#allocation145_spill] sm:$0xff] %v12040_v3 }
 0x271   :  { %v1638_v29 = vsel %vm1636_vm15, %v1637_v40, %v11840_v8  ;;  %v1431_v50 = vsel %vm1424_vm9, %v1427_v36, %v1430_v52  ;;  %vm1629_vm0 = vweird.f32 %v17204_v12  ;;  %v1936_v48 = vsel %vm1851_vm3, %v1935_v42, %v17337_v37  ;;  %v17343_v37 = vld [vmem:[#allocation205_spill] sm:$0xff] }
 0x272   :  { %9077 = vsinq.f32 %v1937_v2  ;;  %vm1632_vm1 = vcmp.lt.s32.totalorder %v1631_v21, 2  ;;  %v12036_v53 = vadd.f32 %v17341_v35, %v5760_v32  ;;  %v12038_v62 = vand.u32 3, %v1734_v22  ;;  %v12052_v2 = vpop.f32.mrf.mxu1  ;;  %v17357_v35 = vld [vmem:[#allocation42_spill] sm:$0xff] }
 0x273   :  { %v1839_v28 = vand.u32 3, %v1838_v33  ;;  %v9068_v8 = vpop.eup %9067  ;;  %vm1529_vm2 = vcmp.eq.s32.totalorder %v12022_v1, 0  ;;  %v1639_v20 = vsel %vm1632_vm1, %v1635_v41, %v1638_v29  ;;  %v5769_v31 = vadd.f32 %v11602_v15, %v11940_v38  ;;  %17344 = vst [vmem:[#allocation140_spill] sm:$0xff] %v12052_v2  ;;  %v17345_v41 = vld [vmem:[#allocation219_spill] sm:$0xff]  ;;  %v17346_v15 = vld [vmem:[#allocation222_spill] sm:$0xff] }
 0x274   :  { %v1842_v60 = vxor.u32 2147483648, %v11860_v44  ;;  %v9070_v40 = vpop.eup %9069  ;;  %v1432_v21 = vsel %vm1421_vm10, nan, %v1431_v50  ;;  %vm1532_vm3 = vcmp.eq.s32.totalorder %v12022_v1, 2  ;;  %v1938_v32 = vsel %vm12007_vm11, 0, %v1936_v48 }
 0x275   :  { %v2039_v42 = vsub.s32 4, %v17343_v37  ;;  %v12054_v36 = vmul.f32 %v5934_v9, %v1432_v21  ;;  %v12057_v52 = vadd.f32 %v17345_v41, %v5762_v49  ;;  %v12061_v38 = vadd.f32 %v17346_v15, %v11962_v56  ;;  %v12068_v9 = vpop.f32.mrf.mxu0  ;;  %v12083_v41 = vpop.f32.mrf.mxu1 }
 0x276   :  { %v1845_v14 = vxor.u32 2147483648, %v11852_v6  ;;  %v9072_v22 = vpop.eup %9071  ;;  %v1533_v33 = vxor.u32 2147483648, %v9068_v8  ;;  %v1640_v11 = vsel %vm1629_vm0, nan, %v1639_v20  ;;  %vm1737_vm7 = vcmp.eq.s32.totalorder %v12038_v62, 0  ;;  %17347 = vst [vmem:[#allocation92_spill] sm:$0xff] %v12068_v9  ;;  %v17351_v20 = vld [vmem:[#allocation210_spill] sm:$0xff] }
 0x277   :  { %vm1740_vm8 = vcmp.eq.s32.totalorder %v12038_v62, 2  ;;  %vm1841_vm10 = vcmp.eq.s32.totalorder %v1839_v28, 0  ;;  %v9074_v49 = vpop.eup %9073  ;;  %v1530_v26 = vxor.u32 2147483648, %v9070_v40  ;;  %v1942_v56 = vadd.s32 3, %v1938_v32  ;;  %17352 = vst [vmem:[#allocation94_spill] sm:$0xff] %v12083_v41  ;;  %v12105_v13 = vpop.f32.mrf.mxu1 }
 0x278   :  { %v1843_v29 = vsel %vm1841_vm10, %v11852_v6, %v1842_v60  ;;  %v2040_v50 = vsel %vm1955_vm4, %v2039_v42, %v17343_v37  ;;  %vm1844_vm11 = vcmp.eq.s32.totalorder %v1839_v28, 2  ;;  %v17348_v48 = vand.u32 2147483647, %v10408_v30  ;;  %17355 = vst [vmem:[#allocation152_spill] sm:$0xff] %v12105_v13 }
 0x279   :  { %v2042_v12 = vsel %vm11735_vm5, 0, %v2040_v50  ;;  %v2143_v21 = vsub.s32 4, %v17351_v20  ;;  %v1741_v6 = vxor.u32 2147483648, %v9072_v22  ;;  %vm1837_vm13 = vweird.f32 %v17215_v54  ;;  %v12094_v50 = vpop.f32.mrf.mxu0 }
 0x27a   :  { %vm12078_vm12 = vcmp.le.f32.partialorder %v17348_v48, 0.7853982  ;;  %v1846_v60 = vsel %vm1844_vm11, %v1845_v14, %v11860_v44  ;;  %v2046_v32 = vadd.s32 3, %v2042_v12  ;;  %vm1528_vm4 = vcmp.lt.s32.totalorder %v12022_v1, 2  ;;  %17353 = vst [vmem:[#allocation96_spill] sm:$0xff] %v12094_v50  ;;  %v17354_v12 = vld [vmem:[#allocation220_spill] sm:$0xff] }
 0x27b   :  { %v2145_v58 = vsel %vm12078_vm12, %v10408_v30, %v11874_v24  ;;  %v1738_v37 = vxor.u32 2147483648, %v9074_v49  ;;  %v2050_v42 = vxor.u32 2147483648, %v11959_v39  ;;  %v2053_v15 = vxor.u32 2147483648, %v11947_v27  ;;  %v6052_v1 = vld [vmem:[%s16632_s4 + $0x8] sm:$0xff] }
 0x27c   :  { %9079 = vcosq.f32 %v2145_v58  ;;  %v1943_v48 = vand.u32 3, %v1942_v56  ;;  %v2047_v41 = vand.u32 3, %v2046_v32  ;;  %v2144_v44 = vsel %vm2059_vm6, %v2143_v21, %v17351_v20  ;;  %v17356_v32 = vld [vmem:[#allocation107_spill] sm:$0xff] }
 0x27d   :  { %9081 = vsinq.f32 %v2145_v58  ;;  %v1531_v24 = vsel %vm1529_vm2, %v9068_v8, %v1530_v26  ;;  %v1534_v14 = vsel %vm1532_vm3, %v1533_v33, %v9070_v40  ;;  %vm1840_vm5 = vcmp.lt.s32.totalorder %v1839_v28, 2  ;;  %v9076_v50 = vpop.eup %9075 }
 0x27e   :  { %v5948_v2 = vadd.f32 %v17354_v12, %v12025_v18  ;;  %v1847_v56 = vsel %vm1840_vm5, %v1843_v29, %v1846_v60  ;;  %v5950_v9 = vadd.f32 %v17356_v32, %v5769_v31  ;;  %vm2049_vm14 = vcmp.eq.s32.totalorder %v2047_v41, 0  ;;  %v12113_v18 = vpop.f32.mrf.mxu0 }
 0x27f   :  { %vm2052_vm15 = vcmp.eq.s32.totalorder %v2047_v41, 2  ;;  %v9078_v20 = vpop.eup %9077  ;;  %vm1525_vm6 = vweird.f32 %v17208_v51  ;;  %v1949_v21 = vxor.u32 2147483648, %v9076_v50  ;;  %v2051_v8 = vsel %vm2049_vm14, %v11947_v27, %v2050_v42  ;;  %v12119_v27 = vpop.f32.mrf.mxu1 }
 0x280   :  { %v2054_v40 = vsel %vm2052_vm15, %v2053_v15, %v11959_v39  ;;  %v2146_v28 = vsel %vm12078_vm12, 0, %v2144_v44  ;;  %v1739_v33 = vsel %vm1737_vm7, %v9072_v22, %v1738_v37  ;;  %v1742_v31 = vsel %vm1740_vm8, %v1741_v6, %v9074_v49  ;;  %v12130_v6 = vpop.f32.mrf.mxu0 }
 0x281   :  { %v1946_v26 = vxor.u32 2147483648, %v9078_v20  ;;  %vm1948_vm9 = vcmp.eq.s32.totalorder %v1943_v48, 2  ;;  %vm1944_vm0 = vcmp.lt.s32.totalorder %v1943_v48, 2  ;;  %vm1945_vm1 = vcmp.eq.s32.totalorder %v1943_v48, 0  ;;  %17358 = vst [vmem:[#allocation98_spill] sm:$0xff] %v12130_v6  ;;  %v12136_v54 = vpop.f32.mrf.mxu1 }
 0x282   :  { %v1950_v29 = vsel %vm1948_vm9, %v1949_v21, %v9078_v20  ;;  %vm2048_vm2 = vcmp.lt.s32.totalorder %v2047_v41, 2  ;;  %v5955_v58 = vadd.f32 %v17357_v35, %v12061_v38  ;;  %v2150_v42 = vadd.s32 3, %v2146_v28  ;;  %v6051_v41 = vld [vmem:[%s16632_s4] sm:$0xff]  ;;  %17359 = vst [vmem:[#allocation146_spill] sm:$0xff] %v12136_v54 }
 0x283   :  { %v1947_v39 = vsel %vm1945_vm1, %v9076_v50, %v1946_v26  ;;  %v2055_v60 = vsel %vm2048_vm2, %v2051_v8, %v2054_v40  ;;  %v6045_v15 = vmul.f32 %v12036_v53, %v1640_v11  ;;  %vm1736_vm3 = vcmp.lt.s32.totalorder %v12038_v62, 2  ;;  %v17360_v35 = vld [vmem:[#allocation208_spill] sm:$0xff] }
 0x284   :  { %v1848_v22 = vsel %vm1837_vm13, nan, %v1847_v56  ;;  %v1951_v49 = vsel %vm1944_vm0, %v1947_v39, %v1950_v29  ;;  %v1535_v37 = vsel %vm1528_vm4, %v1531_v24, %v1534_v14  ;;  %vm1941_vm7 = vweird.f32 %v17227_v25  ;;  %v12150_v24 = vpop.f32.mrf.mxu0 }
 0x285   :  { %v6047_v50 = vmul.f32 %v5948_v2, %v1848_v22  ;;  %vm2045_vm8 = vweird.f32 %v17231_v59  ;;  %v1743_v53 = vsel %vm1736_vm3, %v1739_v33, %v1742_v31  ;;  %v1952_v62 = vsel %vm1941_vm7, nan, %v1951_v49 }
 0x286   :  { %v2056_v38 = vsel %vm2045_vm8, nan, %v2055_v60  ;;  %vm16850_vm10 = vcmask 261120   ;;  %v6048_v11 = vmul.f32 %v5950_v9, %v1952_v62  ;;  %v2151_v44 = vand.u32 3, %v2150_v42 }
 0x287   :  { %v6049_v48 = vmul.f32 %v5955_v58, %v2056_v38  ;;  %v6057_v12 = vsel %vm16850_vm10, %v6051_v41, 0  ;;  %v12143_v2 = vand.u32 4294901760, %v12054_v36  ;;  %vm1733_vm11 = vweird.f32 %v17221_v4 }
 0x288   :  { %v5776_v25 = vadd.f32 %v11641_v43, %v11965_v34  ;;  %v12148_v59 = vand.u32 4294901760, %v6057_v12  ;;  %v1536_v14 = vsel %vm1525_vm6, nan, %v1535_v37  ;;  %v12154_v56 = vand.u32 4294901760, %v6045_v15  ;;  %v12161_v34 = vpop.f32.mrf.mxu1 }
 0x289   :  { %v9080_v9 = vpop.eup %9079  ;;  %v1744_v32 = vsel %vm1733_vm11, nan, %v1743_v53  ;;  %v12156_v20 = vand.u32 4294901760, %v6047_v50  ;;  %v6044_v8 = vmul.f32 %v12001_v46, %v1536_v14  ;;  %v6060_v43 = vsel %vm16850_vm10, %v6052_v1, 0  ;;  %v5845_v46 = vpop.f32.mrf.mxu0  ;;  %v6053_v53 = vld [vmem:[%s16632_s4 + $0x10] sm:$0xff] }
 0x28a   :  { %v9082_v21 = vpop.eup %9081  ;;  %v6046_v4 = vmul.f32 %v12057_v52, %v1744_v32  ;;  %v2157_v40 = vxor.u32 2147483648, %v9080_v9  ;;  %v12163_v28 = vand.u32 4294901760, %v6048_v11  ;;  %v12165_v33 = vand.u32 4294901760, %v6049_v48 }
 0x28b   :  { %v2154_v51 = vxor.u32 2147483648, %v9082_v21  ;;  %vm2156_vm12 = vcmp.eq.s32.totalorder %v2151_v44, 2  ;;  %vm2153_vm13 = vcmp.eq.s32.totalorder %v2151_v44, 0  ;;  %v5957_v26 = vadd.f32 %v11649_v23, %v5776_v25  ;;  %v6026_v23 = vpop.f32.mrf.mxu1 }
 0x28c   :  { %v2158_v31 = vsel %vm2156_vm12, %v2157_v40, %v9082_v21  ;;  %v12169_v29 = vsub.f32 %v6057_v12, %v12148_v59  ;;  %v12172_v52 = vsub.f32 %v6047_v50, %v12156_v20  ;;  %vm2152_vm4 = vcmp.lt.s32.totalorder %v2151_v44, 2  ;;  %v17362_v12 = vld [vmem:[#allocation209_spill] sm:$0xff]  ;;  %v6054_v40 = vld [vmem:[%s16632_s4 + $0x18] sm:$0xff] }
 0x28d   :  { %v2155_v39 = vsel %vm2153_vm13, %v9080_v9, %v2154_v51  ;;  %v12174_v60 = vand.u32 4294901760, %v6060_v43  ;;  %v5450_v58 = vadd.f32 %v17360_v35, %v11902_v47  ;;  %v12178_v42 = vand.u32 4294901760, %v6046_v4  ;;  %v6031_v51 = vpop.f32.mrf.mxu1 }
 0x28e   :  { %vm2149_vm5 = vweird.f32 %v10408_v30  ;;  %v2159_v22 = vsel %vm2152_vm4, %v2155_v39, %v2158_v31  ;;  %v12181_v49 = vand.u32 4294901760, %v6044_v8  ;;  %v12184_v41 = vsub.f32 %v6048_v11, %v12163_v28  ;;  %v5850_v11 = vpop.f32.mrf.mxu0 }
 0x28f   :  { %v12187_v37 = vsub.f32 %v6049_v48, %v12165_v33  ;;  %v2160_v50 = vsel %vm2149_vm5, nan, %v2159_v22  ;;  %v12194_v47 = vsub.f32 %v12054_v36, %v12143_v2  ;;  %v12197_v30 = vsub.f32 %v6045_v15, %v12154_v56  ;;  %v17363_v36 = vld [vmem:[#allocation211_spill] sm:$0xff] }
 0x290   :  { %v6050_v62 = vmul.f32 %v5957_v26, %v2160_v50  ;;  %v16766_v38 = vand.u32 4294901760, %v12169_v29  ;;  %v17361_v44 = vand.u32 2139095040, %v11764_v17  ;;  %v5653_v1 = vadd.f32 %v17362_v12, %v11974_v10 }
 0x291   :  { %v16767_v25 = vand.u32 4294901760, %v12172_v52  ;;  %v12208_v9 = vsub.f32 %v6060_v43, %v12174_v60  ;;  %v5662_v14 = vadd.f32 %v17363_v36, %v5450_v58  ;;  %v12212_v15 = vsub.f32 %v6046_v4, %v12178_v42  ;;  %v5852_v58 = vpop.f32.mrf.mxu0 }
 0x292   :  { %v12202_v48 = vshrl.u32 %v17361_v44, 23  ;;  %v12214_v32 = vand.u32 4294901760, %v6050_v62  ;;  %v6063_v21 = vsel %vm16850_vm10, %v6053_v53, 0  ;;  %v12221_v10 = vsub.f32 %v6044_v8, %v12181_v49 }
 0x293   :  { %v16768_v43 = vand.u32 4294901760, %v12187_v37  ;;  %v16769_v31 = vand.u32 4294901760, %v12184_v41  ;;  %v12225_v26 = vand.u32 4294901760, %v6063_v21  ;;  %v6144_v8 = vsub.f32 %v12169_v29, %v16766_v38  ;;  %v5857_v50 = vpop.f32.mrf.mxu0 }
 0x294   :  { %v12230_v35 = vsub.f32 %v6050_v62, %v12214_v32  ;;  %6093 = vmatprep.subr.mxu0 %v12214_v32  ;;  %v12240_v22 = vsub.f32 %v12172_v52, %v16767_v25  ;;  %v6066_v62 = vsel %vm16850_vm10, %v6054_v40, 0  ;;  %v5837_v38 = vadd.f32 %v12113_v18, %v11794_v7  ;;  %v6033_v25 = vpop.f32.mrf.mxu1 }
 0x295   :  { %6095 = vmatpush1.msra.mxu0 %v12165_v33  ;;  %v12244_v53 = vsub.f32 %v6063_v21, %v12225_v26  ;;  %v12250_v36 = vand.u32 4294901760, %v6066_v62  ;;  %v6218_v21 = vsub.f32 %v12187_v37, %v16768_v43  ;;  %v6224_v40 = vsub.f32 %v12184_v41, %v16769_v31 }
 0x296   :  { %6097 = vmatprep.subr.mxu0 %v12163_v28  ;;  %v16770_v44 = vand.u32 4294901760, %v12230_v35  ;;  %v5844_v39 = vadd.f32 %v12150_v24, %v11808_v45  ;;  %v6145_v12 = vand.u32 4294901760, %v6144_v8  ;;  %v12269_v18 = vadd.f32 %v12119_v27, %v5837_v38 }
 0x297   :  { %6099 = vmatpush1.msra.mxu0 %v12156_v20  ;;  %v5846_v43 = vadd.f32 %v5845_v46, %v5653_v1  ;;  %v17365_v31 = vand.u32 4294901760, %v12208_v9  ;;  %v5851_v24 = vadd.f32 %v5850_v11, %v11817_v57  ;;  %v12282_v27 = vsub.f32 %v6066_v62, %v12250_v36  ;;  %v6038_v1 = vpop.f32.mrf.mxu1 }
 0x298   :  { %6101 = vmatprep.subr.mxu0 %v12178_v42  ;;  %v6212_v7 = vsub.f32 %v12230_v35, %v16770_v44  ;;  %17364 = vst [vmem:[#allocation150_spill] sm:$0xff] %v12269_v18  ;;  %v12278_v8 = vadd.f32 %v12161_v34, %v5844_v39  ;;  %v5853_v46 = vadd.f32 %v5852_v58, %v5662_v14  ;;  %v17368_v45 = vand.u32 4294901760, %v12212_v15 }
 0x299   :  { %6103 = vmatpush1.msra.mxu0 %v12154_v56  ;;  %v6155_v4 = vsub.f32 %v12208_v9, %v17365_v31  ;;  %v12284_v38 = vadd.f32 %v6026_v23, %v5846_v43  ;;  %v6219_v31 = vand.u32 4294901760, %v6218_v21  ;;  %v5858_v34 = vadd.f32 %v5857_v50, %v11835_v16 }
 0x29a   :  { %17366 = vst [vmem:[#allocation154_spill] sm:$0xff] %v12278_v8  ;;  %6105 = vmatprep.subr.mxu0 %v12181_v49  ;;  %v6213_v44 = vand.u32 4294901760, %v6212_v7  ;;  %v6236_v57 = vsub.f32 %v12212_v15, %v17368_v45  ;;  %v12291_v11 = vadd.f32 %v6031_v51, %v5851_v24  ;;  %v2275_v39 = vadd.s32 1, %v11771_v0 }
 0x29b   :  { %17367 = vst [vmem:[#allocation155_spill] sm:$0xff] %v12284_v38  ;;  %6107 = vmatpush1.msra.mxu0 %v12143_v2  ;;  %v6225_v62 = vand.u32 4294901760, %v6224_v40  ;;  %v17370_v23 = vand.u32 4294901760, %v12197_v30  ;;  %v12297_v43 = vadd.f32 %v6033_v25, %v5853_v46  ;;  %v2186_v58 = vor.u32 %v11846_v5, %v11824_v61  ;;  %v17379_v46 = vld [vmem:[#allocation147_spill] sm:$0xff] }
 0x29c   :  { %17369 = vst [vmem:[#allocation156_spill] sm:$0xff] %v12291_v11  ;;  %6146 = vmatmul.mubr.f32.vlgmr.msra.gmra.mxu0 %v6145_v12  ;;  %6214 = vmatprep.subr.mxu1 %v6213_v44  ;;  %v6156_v16 = vand.u32 4294901760, %v6155_v4  ;;  %v17372_v51 = vand.u32 4294901760, %v12221_v10  ;;  %v12305_v50 = vadd.f32 %v6038_v1, %v5858_v34  ;;  %v17374_v44 = vld [vmem:[#allocation143_spill] sm:$0xff]  ;;  %v6231_v25 = vand.u32 4294901760, %v12240_v22  ;;  %v17376_v4 = vld [vmem:[#allocation229_spill] sm:$0xff] }
 0x29d   :  { %v6242_v14 = vsub.f32 %v12197_v30, %v17370_v23  ;;  %17371 = vst [vmem:[#allocation157_spill] sm:$0xff] %v12297_v43  ;;  %6344 = vmatprep.subr.mxu0 %v12230_v35  ;;  %6220 = vmatpush1.msra.mxu1 %v6219_v31  ;;  %vm2196_vm14 = vcmp.lt.s32.totalorder %v17374_v44, 4  ;;  %v17375_v12 = vand.u32 4294901760, %v12244_v53  ;;  %v16771_v5 = vand.u32 4294901760, %v12282_v27  ;;  %v17380_v1 = vld [vmem:[#allocation148_spill] sm:$0xff] }
 0x29e   :  { %v6248_v0 = vsub.f32 %v12221_v10, %v17372_v51  ;;  %17373 = vst [vmem:[#allocation159_spill] sm:$0xff] %v12305_v50  ;;  %6347 = vmatpush1.msra.mxu0 %v12187_v37  ;;  %6226 = vmatprep.subr.mxu1 %v6225_v62  ;;  %v2202_v21 = vsel %vm2196_vm14, %v17376_v4, 920167782  ;;  %v8815_v40 = vadd.s32 4294967169, %v12202_v48  ;;  %v17377_v7 = vmov 0.0   ;;  %v17382_v62 = vld [vmem:[#allocation133_spill] sm:$0xff] }
 0x29f   :  { %v6166_v61 = vsub.f32 %v12244_v53, %v17375_v12  ;;  %6350 = vmatprep.subr.mxu0 %v12184_v41  ;;  %6151 = vmatprep.mubr.f32.mxu0 %v17377_v7  ;;  %v6237_v45 = vand.u32 4294901760, %v6236_v57  ;;  %v17378_v24 = vand.u32 4294901760, %v12194_v47  ;;  %vm2193_vm15 = vcmp.lt.s32.totalorder %v17374_v44, 1  ;;  %v17383_v57 = vld [vmem:[#allocation83_spill] sm:$0xff]  ;;  %v17384_v51 = vld [vmem:[#allocation153_spill] sm:$0xff] }
 0x2a0   :  { %v17381_v31 = vor.u32 %v17379_v46, %v17380_v1  ;;  %vm2276_vm6 = vcmp.gt.s32.totalorder %v2275_v39, 0  ;;  %6232 = vmatpush1.msra.mxu1 %v6231_v25  ;;  %6353 = vmatpush1.msra.mxu0 %v12172_v52  ;;  %v6243_v48 = vand.u32 4294901760, %v6242_v14  ;;  %v2169_v23 = vor.u32 8388608, %v17382_v62 }
 0x2a1   :  { %v6254_v22 = vsub.f32 %v12194_v47, %v17378_v24  ;;  %vm2195_vm9 = vcmp.lt.s32.totalorder %v17374_v44, 3  ;;  %v2201_v12 = vsel %vm2193_vm15, %v17384_v51, %v17383_v57  ;;  %6157 = vmatmul.mubr.f32.gmra.mxu0 %v6156_v16  ;;  %6238 = vmatprep.subr.mxu1 %v6237_v45  ;;  %v6249_v24 = vand.u32 4294901760, %v6248_v0 }
 0x2a2   :  { %v2206_v34 = vsel %vm2196_vm14, %v17381_v31, 1326507024  ;;  %v2203_v46 = vsel %vm2195_vm9, %v2186_v58, %v2202_v21  ;;  %v2205_v25 = vsel %vm2193_vm15, %v17383_v57, %v2186_v58  ;;  %6356 = vmatprep.subr.mxu0 %v12212_v15  ;;  %6244 = vmatpush1.msra.mxu1 %v6243_v48  ;;  %v6167_v14 = vand.u32 4294901760, %v6166_v61 }
 0x2a3   :  { %v6177_v1 = vsub.f32 %v12282_v27, %v16771_v5  ;;  %v2207_v16 = vsel %vm2195_vm9, %v17376_v4, %v2206_v34  ;;  %v2277_v0 = vsel %vm2276_vm6, %v2275_v39, 0  ;;  %v2379_v45 = vadd.s32 1, %v8815_v40  ;;  %6359 = vmatpush1.msra.mxu0 %v12197_v30  ;;  %6250 = vmatprep.subr.mxu1 %v6249_v24 }
 0x2a4   :  { %v6255_v21 = vand.u32 4294901760, %v6254_v22  ;;  %vm2194_vm0 = vcmp.lt.s32.totalorder %v17374_v44, 2  ;;  %6362 = vmatprep.subr.mxu0 %v12221_v10  ;;  %6162 = vmatprep.mubr.f32.mxu0 %v17377_v7  ;;  %v12358_v4 = vshll.u32 %v2169_v23, 8  ;;  %v12360_v40 = vand.u32 31, %v2277_v0 }
 0x2a5   :  { %v2204_v61 = vsel %vm2194_vm0, %v2201_v12, %v2203_v46  ;;  %6365 = vmatpush1.msra.mxu0 %v12194_v47  ;;  %v2208_v39 = vsel %vm2194_vm0, %v2205_v25, %v2207_v16  ;;  %v6178_v22 = vand.u32 4294901760, %v6177_v1  ;;  %vm2380_vm1 = vcmp.gt.s32.totalorder %v2379_v45, 0  ;;  %v17390_v1 = vld [vmem:[#allocation12_spill] sm:$0xff] }
 0x2a6   :  { %6256 = vmatpush1.msra.mxu1 %v6255_v21  ;;  %6168 = vmatmul.mubr.f32.gmra.mxu0 %v6167_v14  ;;  %v17385_v31 = vand.u32 4294901760, %v12230_v35  ;;  %v12367_v34 = vmul.u32.u64.low %v12358_v4, %v2204_v61  ;;  %v12368_v48 = vmul.u32.u64.high %v12358_v4, %v2204_v61, %v12367_v34  ;;  %v2198_v62 = vsel %vm2196_vm14, %v2186_v58, 2102212464  ;;  %v17387_v35 = vld [vmem:[#allocation138_spill] sm:$0xff] }
 0x2a7   :  { %6291 = vmatmul.mubr.f32.vlgmr.msra.gmra.mxu1 %v12148_v59  ;;  %6456 = vmatprep.subr.mxu1 %v12214_v32  ;;  %v12376_v23 = vmul.u32.u64.low %v12358_v4, %v2208_v39  ;;  %v12377_v12 = vmul.u32.u64.high %v12358_v4, %v2208_v39, %v12376_v23  ;;  %v17388_v24 = vmov 683565275   ;;  %v12384_v25 = vsub.s32 32, %v12360_v40  ;;  %v17389_v58 = vld [vmem:[#allocation22_spill] sm:$0xff]  ;;  %v17392_v39 = vld [vmem:[#allocation13_spill] sm:$0xff] }
 0x2a8   :  { %6567 = vmatprep.subr.mxu0 %v17385_v31  ;;  %17386 = vst [vmem:[#allocation161_spill] sm:$0xff] %v12367_v34  ;;  %6458 = vmatpush1.msra.mxu1 %v12165_v33  ;;  %v2177_v46 = vshrl.u32 %v17388_v24, %v17387_v35  ;;  %v12386_v14 = vsel %vm2380_vm1, %v2379_v45, 0  ;;  %v1076_v16 = vadd.f32 %v17390_v1, %v17389_v58  ;;  %v17391_v45 = vld [vmem:[#allocation23_spill] sm:$0xff]  ;;  %v17393_v23 = vld [vmem:[#allocation16_spill] sm:$0xff]  ;;  %v17397_v58 = vmov 2131351028  }
 0x2a9   :  { %6173 = vmatprep.mubr.f32.mxu0 %v17377_v7  ;;  %6460 = vmatprep.subr.mxu1 %v12163_v28  ;;  %v2199_v61 = vsel %vm2195_vm9, %v17383_v57, %v2198_v62  ;;  %v12404_v31 = vand.u32 31, %v12386_v14  ;;  %v17396_v57 = vmov 2475754826   ;;  %v2286_v1 = vshrl.u32 %v17397_v58, %v12384_v25 }
 0x2aa   :  { %6296 = vmatprep.mubr.f32.mxu1 %v17377_v7  ;;  %6462 = vmatpush1.msra.mxu1 %v12156_v20  ;;  %v2197_v21 = vsel %vm2193_vm15, %v2177_v46, %v17384_v51  ;;  %v12407_v35 = vadd.f32 %v17393_v23, %v1076_v16  ;;  %v17395_v51 = vld [vmem:[#allocation7_spill] sm:$0xff]  ;;  %v2283_v62 = vshrl.u32 %v17396_v57, %v12384_v25  ;;  %v12424_v23 = vshrl.u32 %v2277_v0, 5 }
 0x2ab   :  { %6179 = vmatmul.mubr.f32.gmra.mxu0 %v6178_v22  ;;  %6298 = vmatmul.mubr.f32.gmra.mxu1 %v12174_v60  ;;  %v1081_v22 = vadd.f32 %v17392_v39, %v17391_v45  ;;  %v17398_v45 = vmov 920167782   ;;  %v12422_v16 = vsel %vm2194_vm0, %v2197_v21, %v2199_v61  ;;  %v2282_v5 = vshll.u32 %v17388_v24, %v12360_v40  ;;  %v17402_v61 = vld [vmem:[#allocation45_spill] sm:$0xff] }
 0x2ac   :  { %6464 = vmatprep.subr.mxu1 %v12178_v42  ;;  %6303 = vmatprep.mubr.f32.mxu1 %v17377_v7  ;;  %17394 = vst [vmem:[#allocation137_spill] sm:$0xff] %v12407_v35  ;;  %v2292_v39 = vshrl.u32 %v17398_v45, %v12384_v25  ;;  %v17399_v46 = vmov 1326507024   ;;  %v17400_v43 = vand.u32 4294901760, %v12187_v37  ;;  %v2219_v11 = vadd.s32 1, %v12368_v48 }
 0x2ad   :  { %6466 = vmatpush1.msra.mxu1 %v12154_v56  ;;  %6398 = vmatprep.mubr.f32.mxu0 %v17377_v7  ;;  %v2295_v50 = vshrl.u32 %v17399_v46, %v12384_v25  ;;  %v2285_v44 = vshll.u32 %v17396_v57, %v12360_v40  ;;  %v17401_v21 = vmov 2102212464   ;;  %v12439_v18 = vadd.f32 %v17402_v61, %v1081_v22 }
 0x2ae   :  { %6468 = vmatprep.subr.mxu1 %v12181_v49  ;;  %v2291_v0 = vshll.u32 %v17401_v21, %v12360_v40  ;;  %v17404_v8 = vand.u32 4294901760, %v12184_v41  ;;  %vm2218_vm2 = vc.u32 %v12377_v12, %v12367_v34  ;;  %v2289_v37 = vshrl.u32 %v17401_v21, %v12384_v25 }
 0x2af   :  { %6470 = vmatpush1.msra.mxu1 %v12143_v2  ;;  %6401 = vmatmul.mubr.f32.vlgmr.msra.gmra.mxu0 %v12169_v29  ;;  %17403 = vst [vmem:[#allocation158_spill] sm:$0xff] %v12439_v18  ;;  %v12451_v38 = vsub.s32 32, %v12404_v31  ;;  %v17405_v22 = vand.u32 4294901760, %v12172_v52  ;;  %v12458_v41 = vor.u32 %v2286_v1, %v2285_v44  ;;  %v17406_v61 = vand.u32 4294901760, %v12212_v15 }
 0x2b0   :  { %6305 = vmatmul.mubr.f32.gmra.mxu1 %v12225_v26  ;;  %6571 = vmatpush1.msra.mxu0 %v17400_v43  ;;  %v2294_v43 = vshll.u32 %v17398_v45, %v12360_v40  ;;  %v17407_v54 = vand.u32 2147483647, %v17395_v51  ;;  %v2288_v13 = vshll.u32 %v17397_v58, %v12360_v40  ;;  %v2220_v15 = vsel %vm2218_vm2, %v2219_v11, %v12368_v48 }
 0x2b1   :  { %6682 = vmatprep.subr.mxu1 %v12214_v32  ;;  %6575 = vmatprep.subr.mxu0 %v17404_v8  ;;  %v12456_v32 = vor.u32 %v2283_v62, %v2282_v5  ;;  %v2293_v8 = vor.u32 %v2292_v39, %v2291_v0  ;;  %v2216_v5 = vmul.u32 %v12358_v4, %v12422_v16  ;;  %vm2297_vm3 = vcmp.lt.s32.totalorder %v12424_v23, 1 }
 0x2b2   :  { %6579 = vmatpush1.msra.mxu0 %v17405_v22  ;;  %6310 = vmatprep.mubr.f32.mxu1 %v17377_v7  ;;  %v2272_v6 = vand.u32 8388607, %v17407_v54  ;;  %v2296_v52 = vor.u32 %v2295_v50, %v2294_v43  ;;  %v16774_v22 = vand.u32 2147483647, %v11764_v17  ;;  %v2580_v54 = vand.u32 2139095040, %v12439_v18 }
 0x2b3   :  { %6406 = vmatprep.mubr.f32.mxu0 %v17377_v7  ;;  %6583 = vmatprep.subr.mxu0 %v17406_v61  ;;  %v17408_v50 = vand.u32 4294901760, %v12197_v30  ;;  %v12481_v40 = vor.u32 %v2289_v37, %v2288_v13  ;;  %vm2299_vm7 = vcmp.lt.s32.totalorder %v12424_v23, 3  ;;  %vm2300_vm8 = vcmp.lt.s32.totalorder %v12424_v23, 4 }
 0x2b4   :  { %6312 = vmatmul.mubr.f32.gmra.mxu1 %v12250_v36  ;;  %6409 = vmatmul.mubr.f32.gmra.mxu0 %v12208_v9  ;;  %v2396_v4 = vshrl.u32 %v17398_v45, %v12451_v38  ;;  %v17409_v11 = vand.u32 4294901760, %v12221_v10  ;;  %v2305_v30 = vsel %vm2297_vm3, %v12456_v32, %v12458_v41  ;;  %v2306_v13 = vsel %vm2300_vm8, %v2293_v8, 920167782 }
 0x2b5   :  { %6587 = vmatpush1.msra.mxu0 %v17408_v50  ;;  %6414 = vmatprep.mubr.f32.mxu0 %v17377_v7  ;;  %v2399_v48 = vshrl.u32 %v17399_v46, %v12451_v38  ;;  %v2476_v62 = vand.u32 2139095040, %v12407_v35  ;;  %v17410_v1 = vand.u32 4294901760, %v12194_v47  ;;  %v2310_v10 = vsel %vm2300_vm8, %v2296_v52, 1326507024 }
 0x2b6   :  { %6591 = vmatprep.subr.mxu0 %v17409_v11  ;;  %6503 = vmatprep.mubr.f32.mxu1 %v17377_v7  ;;  %v12504_v39 = vshrl.u32 %v12386_v14, 5  ;;  %v2387_v16 = vshrl.u32 %v17396_v57, %v12451_v38  ;;  %v2395_v44 = vshll.u32 %v17401_v21, %v12404_v31  ;;  %v17411_v0 = vand.u32 4294901760, %v12169_v29 }
 0x2b7   :  { %6595 = vmatpush1.msra.mxu0 %v17410_v1  ;;  %v2390_v47 = vshrl.u32 %v17397_v58, %v12451_v38  ;;  %v2393_v37 = vshrl.u32 %v17401_v21, %v12451_v38  ;;  %v2398_v14 = vshll.u32 %v17398_v45, %v12404_v31  ;;  %v2581_v43 = vshrl.u32 %v2580_v54, 23 }
 0x2b8   :  { %6417 = vmatmul.mubr.f32.gmra.mxu0 %v12244_v53  ;;  %6507 = vmatmul.mubr.f32.vlgmr.msra.gmra.mxu1 %v17411_v0  ;;  %v2273_v61 = vor.u32 8388608, %v2272_v6  ;;  %v2307_v29 = vsel %vm2299_vm7, %v12481_v40, %v2306_v13  ;;  %v2386_v52 = vshll.u32 %v17388_v24, %v12404_v31  ;;  %v2397_v50 = vor.u32 %v2396_v4, %v2395_v44 }
 0x2b9   :  { %6684 = vmatpush1.msra.mxu1 %v12165_v33  ;;  %6422 = vmatprep.mubr.f32.mxu0 %v17377_v7  ;;  %v2389_v54 = vshll.u32 %v17396_v57, %v12404_v31  ;;  %v2392_v33 = vshll.u32 %v17397_v58, %v12404_v31  ;;  %v2400_v11 = vor.u32 %v2399_v48, %v2398_v14  ;;  %v2477_v6 = vshrl.u32 %v2476_v62, 23 }
 0x2ba   :  { %6686 = vmatprep.subr.mxu1 %v12163_v28  ;;  %6512 = vmatprep.mubr.f32.mxu1 %v17377_v7  ;;  %v2309_v13 = vsel %vm2297_vm3, %v12458_v41, %v12481_v40  ;;  %v2311_v28 = vsel %vm2299_vm7, %v2293_v8, %v2310_v10  ;;  %v2376_v4 = vand.u32 8388607, %v16774_v22  ;;  %v12541_v1 = vor.u32 %v2387_v16, %v2386_v52 }
 0x2bb   :  { %6688 = vmatpush1.msra.mxu1 %v12156_v20  ;;  %v12545_v31 = vor.u32 %v2390_v47, %v2389_v54  ;;  %v2394_v20 = vor.u32 %v2393_v37, %v2392_v33  ;;  %vm2404_vm11 = vcmp.lt.s32.totalorder %v12504_v39, 4  ;;  %v8823_v48 = vadd.s32 4294967169, %v2581_v43 }
 0x2bc   :  { %6690 = vmatprep.subr.mxu1 %v12178_v42  ;;  %6425 = vmatmul.mubr.f32.gmra.mxu0 %v12282_v27  ;;  %v17412_v62 = vand.u32 4294901760, %v12208_v9  ;;  %v12551_v8 = vshll.u32 %v2273_v61, 8  ;;  %v2410_v10 = vsel %vm2404_vm11, %v2397_v50, 920167782  ;;  %v12557_v42 = vadd.s32 %v2220_v15, %v2216_v5 }
 0x2bd   :  { %6628 = vmatprep.mubr.f32.mxu0 %v17377_v7  ;;  %6692 = vmatpush1.msra.mxu1 %v12154_v56  ;;  %vm2298_vm12 = vcmp.lt.s32.totalorder %v12424_v23, 2  ;;  %v2414_v16 = vsel %vm2404_vm11, %v2400_v11, 1326507024  ;;  %v8819_v9 = vadd.s32 4294967169, %v2477_v6  ;;  %vm2401_vm13 = vcmp.lt.s32.totalorder %v12504_v39, 1 }
 0x2be   :  { %6516 = vmatmul.mubr.f32.gmra.mxu1 %v17412_v62  ;;  %6694 = vmatprep.subr.mxu1 %v12181_v49  ;;  %v2308_v44 = vsel %vm2298_vm12, %v2305_v30, %v2307_v29  ;;  %v2312_v0 = vsel %vm2298_vm12, %v2309_v13, %v2311_v28  ;;  %vm2403_vm4 = vcmp.lt.s32.totalorder %v12504_v39, 3  ;;  %v2377_v56 = vor.u32 8388608, %v2376_v4  ;;  %v17420_v62 = vld [vmem:[#allocation15_spill] sm:$0xff] }
 0x2bf   :  { %6521 = vmatprep.mubr.f32.mxu1 %v17377_v7  ;;  %6696 = vmatpush1.msra.mxu1 %v12143_v2  ;;  %v2409_v49 = vsel %vm2401_vm13, %v12541_v1, %v12545_v31  ;;  %v2411_v5 = vsel %vm2403_vm4, %v2394_v20, %v2410_v10  ;;  %v2587_v15 = vadd.s32 1, %v8823_v48  ;;  %v17413_v30 = vand.u32 4294901760, %v12244_v53  ;;  %v17419_v48 = vld [vmem:[#allocation24_spill] sm:$0xff] }
 0x2c0   :  { %6630 = vmatmul.mubr.f32.vlgmr.msra.gmra.mxu0 %v12148_v59  ;;  %v2413_v2 = vsel %vm2401_vm13, %v12545_v31, %v2394_v20  ;;  %v2415_v47 = vsel %vm2403_vm4, %v2397_v50, %v2414_v16  ;;  %v12587_v37 = vmul.u32.u64.low %v12551_v8, %v2308_v44  ;;  %v12588_v14 = vmul.u32.u64.high %v12551_v8, %v2308_v44, %v12587_v37 }
 0x2c1   :  { %6635 = vmatprep.mubr.f32.mxu0 %v17377_v7  ;;  %vm2402_vm5 = vcmp.lt.s32.totalorder %v12504_v39, 2  ;;  %v2483_v53 = vadd.s32 1, %v8819_v9  ;;  %v12593_v43 = vmul.u32.u64.low %v12551_v8, %v2312_v0  ;;  %v12594_v61 = vmul.u32.u64.high %v12551_v8, %v2312_v0, %v12593_v43 }
 0x2c2   :  { %6525 = vmatmul.mubr.f32.gmra.mxu1 %v17413_v30  ;;  %17414 = vst [vmem:[#allocation160_spill] sm:$0xff] %v12587_v37  ;;  %v2412_v29 = vsel %vm2402_vm5, %v2409_v49, %v2411_v5  ;;  %v2222_v52 = vadd.s32 536870912, %v12557_v42  ;;  %v2416_v50 = vsel %vm2402_vm5, %v2413_v2, %v2415_v47  ;;  %v12602_v54 = vshll.u32 %v2377_v56, 8  ;;  %v17422_v5 = vld [vmem:[#allocation47_spill] sm:$0xff]  ;;  %v17425_v30 = vld [vmem:[#allocation44_spill] sm:$0xff] }
 0x2c3   :  { %6530 = vmatprep.mubr.f32.mxu1 %v17377_v7  ;;  %17415 = vst [vmem:[#allocation162_spill] sm:$0xff] %v12594_v61  ;;  %vm2588_vm14 = vcmp.gt.s32.totalorder %v2587_v15, 0  ;;  %v17416_v33 = vand.u32 4294901760, %v12282_v27  ;;  %v2302_v11 = vsel %vm2300_vm8, %v12481_v40, 2102212464  ;;  %v2281_v6 = vshrl.u32 %v17388_v24, %v12384_v25 }
 0x2c4   :  { %6637 = vmatmul.mubr.f32.gmra.mxu0 %v12174_v60  ;;  %v12614_v13 = vmul.u32.u64.low %v12602_v54, %v2412_v29  ;;  %v12615_v28 = vmul.u32.u64.high %v12602_v54, %v2412_v29, %v12614_v13  ;;  %vm2484_vm15 = vcmp.gt.s32.totalorder %v2483_v53, 0  ;;  %v1083_v10 = vadd.f32 %v17420_v62, %v17419_v48 }
 0x2c5   :  { %6642 = vmatprep.mubr.f32.mxu0 %v17377_v7  ;;  %v12619_v27 = vmul.u32.u64.low %v12602_v54, %v2416_v50  ;;  %v12620_v4 = vmul.u32.u64.high %v12602_v54, %v2416_v50, %v12619_v27  ;;  %v2589_v16 = vsel %vm2588_vm14, %v2587_v15, 0  ;;  %v12625_v40 = vshrl.u32 %v2222_v52, 30  ;;  %v17426_v52 = vld [vmem:[#allocation20_spill] sm:$0xff] }
 0x2c6   :  { %6534 = vmatmul.mubr.f32.gmra.mxu1 %v17416_v33  ;;  %17417 = vst [vmem:[#allocation163_spill] sm:$0xff] %v12614_v13  ;;  %v2301_v25 = vsel %vm2297_vm3, %v2281_v6, %v12456_v32  ;;  %v2303_v9 = vsel %vm2299_vm7, %v12458_v41, %v2302_v11  ;;  %v2406_v44 = vsel %vm2404_vm11, %v2394_v20, 2102212464  ;;  %v2385_v0 = vshrl.u32 %v17388_v24, %v12451_v38  ;;  %v17424_v41 = vld [vmem:[#allocation25_spill] sm:$0xff] }
 0x2c7   :  { %6729 = vmatprep.mubr.f32.mxu1 %v17377_v7  ;;  %17418 = vst [vmem:[#allocation164_spill] sm:$0xff] %v12620_v4  ;;  %17421 = vst [vmem:[#allocation165_spill] sm:$0xff] %v12625_v40  ;;  %v16772_v56 = vand.u32 2147483647, %v12407_v35  ;;  %v2485_v49 = vsel %vm2484_vm15, %v2483_v53, 0  ;;  %v12641_v15 = vadd.f32 %v17422_v5, %v1083_v10  ;;  %v2323_v32 = vadd.s32 1, %v12588_v14 }
 0x2c8   :  { %6644 = vmatmul.mubr.f32.gmra.mxu0 %v12225_v26  ;;  %v1088_v20 = vadd.f32 %v17425_v30, %v17424_v41  ;;  %v12647_v2 = vand.u32 31, %v2589_v16  ;;  %vm2322_vm6 = vc.u32 %v12594_v61, %v12587_v37  ;;  %v2407_v38 = vsel %vm2403_vm4, %v12545_v31, %v2406_v44  ;;  %v17429_v5 = vld [vmem:[#allocation46_spill] sm:$0xff] }
 0x2c9   :  { %6649 = vmatprep.mubr.f32.mxu0 %v17377_v7  ;;  %17423 = vst [vmem:[#allocation166_spill] sm:$0xff] %v12641_v15  ;;  %v16773_v47 = vand.u32 2147483647, %v12439_v18  ;;  %v2224_v53 = vshll.u32 %v12625_v40, 30  ;;  %v2304_v43 = vsel %vm2298_vm12, %v2301_v25, %v2303_v9  ;;  %v2487_v29 = vand.u32 31, %v2485_v49 }
 0x2ca   :  { %6731 = vmatmul.mubr.f32.vlgmr.msra.gmra.mxu1 %v12148_v59  ;;  %v2405_v59 = vsel %vm2401_vm13, %v2385_v0, %v12541_v1  ;;  %v12663_v50 = vadd.f32 %v17426_v52, %v1088_v20  ;;  %v12669_v1 = vand.u32 8388607, %v16772_v56  ;;  %v2684_v31 = vand.u32 2139095040, %v12641_v15  ;;  %v17428_v0 = vld [vmem:[#allocation26_spill] sm:$0xff] }
 0x2cb   :  { %6736 = vmatprep.mubr.f32.mxu1 %v17377_v7  ;;  %v2324_v33 = vsel %vm2322_vm6, %v2323_v32, %v12588_v14  ;;  %v12676_v23 = vsel %vm2402_vm5, %v2405_v59, %v2407_v38  ;;  %v2427_v11 = vadd.s32 1, %v12615_v28  ;;  %v2320_v6 = vmul.u32 %v12551_v8, %v2304_v43 }
 0x2cc   :  { %6651 = vmatmul.mubr.f32.gmra.mxu0 %v12250_v36  ;;  %17427 = vst [vmem:[#allocation200_spill] sm:$0xff] %v12663_v50  ;;  %vm2426_vm9 = vc.u32 %v12620_v4, %v12614_v13  ;;  %v12687_v27 = vand.u32 8388607, %v16773_v47  ;;  %v12690_v14 = vsub.s32 %v12557_v42, %v2224_v53  ;;  %v12692_v39 = vsub.s32 32, %v2487_v29 }
 0x2cd   :  { %6855 = vmatprep.mubr.f32.mxu0 %v17377_v7  ;;  %v2788_v48 = vand.u32 2139095040, %v12663_v50  ;;  %v12696_v62 = vadd.s32 %v2324_v33, %v2320_v6  ;;  %v2424_v8 = vmul.u32 %v12602_v54, %v12676_v23  ;;  %v2685_v25 = vshrl.u32 %v2684_v31, 23 }
 0x2ce   :  { %6738 = vmatmul.mubr.f32.gmra.mxu1 %v12174_v60  ;;  %v12680_v60 = vsub.s32 32, %v12647_v2  ;;  %v2428_v9 = vsel %vm2426_vm9, %v2427_v11, %v12615_v28  ;;  %v12703_v42 = vshrl.u32 %v2485_v49, 5  ;;  %v2490_v32 = vshll.u32 %v17388_v24, %v2487_v29  ;;  %v17430_v11 = vld [vmem:[#allocation48_spill] sm:$0xff] }
 0x2cf   :  { %6743 = vmatprep.mubr.f32.mxu1 %v17377_v7  ;;  %v2493_v41 = vshll.u32 %v17396_v57, %v2487_v29  ;;  %v2499_v54 = vshll.u32 %v17401_v21, %v2487_v29  ;;  %v2585_v30 = vor.u32 8388608, %v12687_v27  ;;  %v2491_v20 = vshrl.u32 %v17396_v57, %v12692_v39 }
 0x2d0   :  { %v2604_v44 = vshrl.u32 %v17398_v45, %v12680_v60  ;;  %v2595_v28 = vshrl.u32 %v17396_v57, %v12680_v60  ;;  %v2603_v49 = vshll.u32 %v17401_v21, %v12647_v2  ;;  %v2789_v59 = vshrl.u32 %v2788_v48, 23 }
 0x2d1   :  { %v12720_v38 = vshrl.u32 %v2589_v16, 5  ;;  %v2598_v53 = vshrl.u32 %v17397_v58, %v12680_v60  ;;  %v2601_v43 = vshrl.u32 %v17401_v21, %v12680_v60  ;;  %v8827_v52 = vadd.s32 4294967169, %v2685_v25 }
 0x2d2   :  { %6745 = vmatmul.mubr.f32.gmra.mxu1 %v12225_v26  ;;  %v1090_v26 = vadd.f32 %v17429_v5, %v17428_v0  ;;  %v2494_v31 = vshrl.u32 %v17397_v58, %v12692_v39  ;;  %v2594_v33 = vshll.u32 %v17388_v24, %v12647_v2  ;;  %v2605_v23 = vor.u32 %v2604_v44, %v2603_v49 }
 0x2d3   :  { %6750 = vmatprep.mubr.f32.mxu1 %v17377_v7  ;;  %v2500_v16 = vshrl.u32 %v17398_v45, %v12692_v39  ;;  %v2503_v6 = vshrl.u32 %v17399_v46, %v12692_v39  ;;  %v2597_v27 = vshll.u32 %v17396_v57, %v12647_v2  ;;  %v2600_v48 = vshll.u32 %v17397_v58, %v12647_v2 }
 0x2d4   :  { %v2497_v25 = vshrl.u32 %v17401_v21, %v12692_v39  ;;  %v2502_v44 = vshll.u32 %v17398_v45, %v2487_v29  ;;  %v12745_v0 = vor.u32 %v2595_v28, %v2594_v33  ;;  %v8831_v5 = vadd.s32 4294967169, %v2789_v59 }
 0x2d5   :  { %v2602_v49 = vor.u32 %v2601_v43, %v2600_v48  ;;  %vm2612_vm0 = vcmp.lt.s32.totalorder %v12720_v38, 4  ;;  %v2496_v56 = vshll.u32 %v17397_v58, %v2487_v29  ;;  %v2607_v47 = vshrl.u32 %v17399_v46, %v12680_v60 }
 0x2d6   :  { %6752 = vmatmul.mubr.f32.gmra.mxu1 %v12250_v36  ;;  %v12732_v36 = vadd.f32 %v17430_v11, %v1090_v26  ;;  %v12747_v26 = vor.u32 %v2598_v53, %v2597_v27  ;;  %v2691_v11 = vadd.s32 1, %v8827_v52  ;;  %v2618_v22 = vsel %vm2612_vm0, %v2605_v23, 920167782 }
 0x2d7   :  { %7004 = vmatprep.mubr.f32.mxu1 %v17377_v7  ;;  %v2492_v3 = vor.u32 %v2491_v20, %v2490_v32  ;;  %v2495_v28 = vor.u32 %v2494_v31, %v2493_v41  ;;  %v2501_v33 = vor.u32 %v2500_v16, %v2499_v54  ;;  %v2504_v59 = vor.u32 %v2503_v6, %v2502_v44 }
 0x2d8   :  { %17431 = vst [vmem:[#allocation191_spill] sm:$0xff] %v12732_v36  ;;  %v2892_v10 = vand.u32 2139095040, %v12732_v36  ;;  %v2606_v53 = vshll.u32 %v17398_v45, %v12647_v2  ;;  %vm2609_vm1 = vcmp.lt.s32.totalorder %v12720_v38, 1  ;;  %vm2611_vm2 = vcmp.lt.s32.totalorder %v12720_v38, 3 }
 0x2d9   :  { %v2795_v29 = vadd.s32 1, %v8831_v5  ;;  %v2498_v43 = vor.u32 %v2497_v25, %v2496_v56  ;;  %v2617_v52 = vsel %vm2609_vm1, %v12745_v0, %v12747_v26  ;;  %v2619_v32 = vsel %vm2611_vm2, %v2602_v49, %v2618_v22 }
 0x2da   :  { %vm2692_vm3 = vcmp.gt.s32.totalorder %v2691_v11, 0  ;;  %v12766_v41 = vadd.s32 %v2428_v9, %v2424_v8  ;;  %vm2508_vm7 = vcmp.lt.s32.totalorder %v12703_v42, 4  ;;  %v2608_v2 = vor.u32 %v2607_v47, %v2606_v53 }
 0x2db   :  { %v2893_v54 = vshrl.u32 %v2892_v10, 23  ;;  %vm2505_vm8 = vcmp.lt.s32.totalorder %v12703_v42, 1  ;;  %v2514_v56 = vsel %vm2508_vm7, %v2501_v33, 920167782  ;;  %v2518_v20 = vsel %vm2508_vm7, %v2504_v59, 1326507024 }
 0x2dc   :  { %vm2610_vm11 = vcmp.lt.s32.totalorder %v12720_v38, 2  ;;  %v16775_v8 = vand.u32 2147483647, %v12641_v15  ;;  %v2693_v9 = vsel %vm2692_vm3, %v2691_v11, 0  ;;  %vm2796_vm12 = vcmp.gt.s32.totalorder %v2795_v29, 0 }
 0x2dd   :  { %v2620_v22 = vsel %vm2610_vm11, %v2617_v52, %v2619_v32  ;;  %vm2507_vm13 = vcmp.lt.s32.totalorder %v12703_v42, 3  ;;  %v2513_v47 = vsel %vm2505_vm8, %v2492_v3, %v2495_v28  ;;  %v2517_v10 = vsel %vm2505_vm8, %v2495_v28, %v2498_v43 }
 0x2de   :  { %v12783_v31 = vshll.u32 %v2585_v30, 8  ;;  %v2515_v16 = vsel %vm2507_vm13, %v2498_v43, %v2514_v56  ;;  %v2519_v6 = vsel %vm2507_vm13, %v2501_v33, %v2518_v20  ;;  %v2622_v27 = vsel %vm2612_vm0, %v2608_v2, 1326507024 }
 0x2df   :  { %v8835_v48 = vadd.s32 4294967169, %v2893_v54  ;;  %v2695_v5 = vand.u32 31, %v2693_v9  ;;  %v2797_v11 = vsel %vm2796_vm12, %v2795_v29, 0  ;;  %v12797_v30 = vadd.s32 536870912, %v12766_v41 }
 0x2e0   :  { %v12792_v25 = vmul.u32.u64.low %v12783_v31, %v2620_v22  ;;  %v12793_v44 = vmul.u32.u64.high %v12783_v31, %v2620_v22, %v12792_v25  ;;  %v2510_v59 = vsel %vm2508_vm7, %v2498_v43, 2102212464  ;;  %v17432_v53 = vor.u32 8388608, %v12669_v1 }
 0x2e1   :  { %v2688_v52 = vand.u32 8388607, %v16775_v8  ;;  %v2489_v32 = vshrl.u32 %v17388_v24, %v12692_v39  ;;  %vm2506_vm4 = vcmp.lt.s32.totalorder %v12703_v42, 2  ;;  %v2621_v29 = vsel %vm2609_vm1, %v12747_v26, %v2602_v49 }
 0x2e2   :  { %v12803_v33 = vshll.u32 %v17432_v53, 8  ;;  %v2623_v2 = vsel %vm2611_vm2, %v2605_v23, %v2622_v27  ;;  %v12817_v1 = vsel %vm2506_vm4, %v2513_v47, %v2515_v16  ;;  %v12821_v43 = vsel %vm2506_vm4, %v2517_v10, %v2519_v6 }
 0x2e3   :  { %v2799_v54 = vand.u32 31, %v2797_v11  ;;  %v2899_v56 = vadd.s32 1, %v8835_v48  ;;  %v12825_v39 = vsel %vm2505_vm8, %v2489_v32, %v2492_v3  ;;  %v12829_v20 = vsel %vm2507_vm13, %v2495_v28, %v2510_v59 }
 0x2e4   :  { %v2614_v23 = vsel %vm2612_vm0, %v2602_v49, 2102212464  ;;  %v12833_v22 = vsub.s32 32, %v2695_v5  ;;  %v2593_v47 = vshrl.u32 %v17388_v24, %v12680_v60  ;;  %v12839_v10 = vsel %vm2610_vm11, %v2621_v29, %v2623_v2 }
 0x2e5   :  { %v2689_v16 = vor.u32 8388608, %v2688_v52  ;;  %v16776_v3 = vand.u32 2147483647, %v12663_v50  ;;  %v12844_v6 = vmul.u32.u64.low %v12803_v33, %v12821_v43  ;;  %v12845_v28 = vmul.u32.u64.high %v12803_v33, %v12821_v43, %v12844_v6 }
 0x2e6   :  { %v12850_v49 = vmul.u32.u64.low %v12803_v33, %v12817_v1  ;;  %v12851_v27 = vmul.u32.u64.high %v12803_v33, %v12817_v1, %v12850_v49  ;;  %v12857_v60 = vsel %vm2609_vm1, %v2593_v47, %v12745_v0  ;;  %v12862_v48 = vsel %vm2611_vm2, %v12747_v26, %v2614_v23 }
 0x2e7   :  { %v12864_v59 = vsub.s32 32, %v2799_v54  ;;  %vm2900_vm5 = vcmp.gt.s32.totalorder %v2899_v56, 0  ;;  %v12868_v53 = vmul.u32.u64.low %v12783_v31, %v12839_v10  ;;  %v12869_v52 = vmul.u32.u64.high %v12783_v31, %v12839_v10, %v12868_v53 }
 0x2e8   :  { %v12873_v32 = vadd.s32 1, %v12793_v44  ;;  %v2699_v0 = vshrl.u32 %v17396_v57, %v12833_v22  ;;  %v12877_v29 = vshrl.u32 %v2693_v9, 5  ;;  %v12879_v2 = vshll.u32 %v2689_v16, 8 }
 0x2e9   :  { %v12883_v26 = vand.u32 8388607, %v16776_v3  ;;  %v2698_v43 = vshll.u32 %v17388_v24, %v2695_v5  ;;  %v2701_v23 = vshll.u32 %v17396_v57, %v2695_v5  ;;  %v2704_v47 = vshll.u32 %v17397_v58, %v2695_v5 }
 0x2ea   :  { %v2901_v10 = vsel %vm2900_vm5, %v2899_v56, 0  ;;  %v2702_v6 = vshrl.u32 %v17397_v58, %v12833_v22  ;;  %v2705_v9 = vshrl.u32 %v17401_v21, %v12833_v22  ;;  %v2708_v16 = vshrl.u32 %v17398_v45, %v12833_v22 }
 0x2eb   :  { %v2812_v53 = vshrl.u32 %v17398_v45, %v12864_v59  ;;  %v12897_v8 = vor.u32 %v2699_v0, %v2698_v43  ;;  %v2707_v3 = vshll.u32 %v17401_v21, %v2695_v5  ;;  %v2710_v1 = vshll.u32 %v17398_v45, %v2695_v5 }
 0x2ec   :  { %v2815_v56 = vshrl.u32 %v17399_v46, %v12864_v59  ;;  %v2711_v63 = vshrl.u32 %v17399_v46, %v12833_v22  ;;  %v12905_v19 = vshrl.u32 %v2797_v11, 5  ;;  %v2811_v55 = vshll.u32 %v17401_v21, %v2799_v54 }
 0x2ed   :  { %v2903_v7 = vand.u32 31, %v2901_v10  ;;  %v2803_v40 = vshrl.u32 %v17396_v57, %v12864_v59  ;;  %v2806_v0 = vshrl.u32 %v17397_v58, %v12864_v59  ;;  %v2809_v5 = vshrl.u32 %v17401_v21, %v12864_v59 }
 0x2ee   :  { %v2814_v43 = vshll.u32 %v17398_v45, %v2799_v54  ;;  %v12915_v50 = vor.u32 %v2702_v6, %v2701_v23  ;;  %v12917_v15 = vor.u32 %v2705_v9, %v2704_v47  ;;  %v2709_v11 = vor.u32 %v2708_v16, %v2707_v3 }
 0x2ef   :  { %v2813_v18 = vor.u32 %v2812_v53, %v2811_v55  ;;  %v2802_v35 = vshll.u32 %v17388_v24, %v2799_v54  ;;  %v2805_v17 = vshll.u32 %v17396_v57, %v2799_v54  ;;  %v2808_v51 = vshll.u32 %v17397_v58, %v2799_v54 }
 0x2f0   :  { %v2816_v37 = vor.u32 %v2815_v56, %v2814_v43  ;;  %v2712_v61 = vor.u32 %v2711_v63, %v2710_v1  ;;  %vm2716_vm14 = vcmp.lt.s32.totalorder %v12877_v29, 4  ;;  %v2793_v13 = vor.u32 8388608, %v12883_v26 }
 0x2f1   :  { %v12924_v4 = vsub.s32 32, %v2903_v7  ;;  %v12926_v23 = vor.u32 %v2803_v40, %v2802_v35  ;;  %v12928_v47 = vor.u32 %v2806_v0, %v2805_v17  ;;  %v12930_v3 = vor.u32 %v2809_v5, %v2808_v51 }
 0x2f2   :  { %vm2820_vm15 = vcmp.lt.s32.totalorder %v12905_v19, 4  ;;  %vm2713_vm6 = vcmp.lt.s32.totalorder %v12877_v29, 1  ;;  %vm2714_vm9 = vcmp.lt.s32.totalorder %v12877_v29, 2  ;;  %v2722_v55 = vsel %vm2716_vm14, %v2709_v11, 920167782 }
 0x2f3   :  { %v2826_v63 = vsel %vm2820_vm15, %v2813_v18, 920167782  ;;  %vm2715_vm0 = vcmp.lt.s32.totalorder %v12877_v29, 3  ;;  %v2721_v17 = vsel %vm2713_vm6, %v12897_v8, %v12915_v50  ;;  %v2725_v35 = vsel %vm2713_vm6, %v12915_v50, %v12917_v15 }
 0x2f4   :  { %v2830_v51 = vsel %vm2820_vm15, %v2816_v37, 1326507024  ;;  %v2726_v40 = vsel %vm2716_vm14, %v2712_v61, 1326507024  ;;  %vm2817_vm1 = vcmp.lt.s32.totalorder %v12905_v19, 1  ;;  %vm2819_vm2 = vcmp.lt.s32.totalorder %v12905_v19, 3 }
 0x2f5   :  { %v2916_v54 = vshrl.u32 %v17398_v45, %v12924_v4  ;;  %v2723_v26 = vsel %vm2715_vm0, %v12917_v15, %v2722_v55  ;;  %v2825_v1 = vsel %vm2817_vm1, %v12926_v23, %v12928_v47  ;;  %v2827_v37 = vsel %vm2819_vm2, %v12930_v3, %v2826_v63 }
 0x2f6   :  { %v2919_v61 = vshrl.u32 %v17399_v46, %v12924_v4  ;;  %v2829_v6 = vsel %vm2817_vm1, %v12928_v47, %v12930_v3  ;;  %v2831_v9 = vsel %vm2819_vm2, %v2813_v18, %v2830_v51  ;;  %v12974_v16 = vshrl.u32 %v2901_v10, 5 }
 0x2f7   :  { %v2915_v53 = vshll.u32 %v17401_v21, %v2903_v7  ;;  %v2907_v56 = vshrl.u32 %v17396_v57, %v12924_v4  ;;  %v2910_v0 = vshrl.u32 %v17397_v58, %v12924_v4  ;;  %v2913_v5 = vshrl.u32 %v17401_v21, %v12924_v4 }
 0x2f8   :  { %v2918_v43 = vshll.u32 %v17398_v45, %v2903_v7  ;;  %v2724_v55 = vsel %vm2714_vm9, %v2721_v17, %v2723_v26  ;;  %v2727_v18 = vsel %vm2715_vm0, %v2709_v11, %v2726_v40  ;;  %vm2818_vm3 = vcmp.lt.s32.totalorder %v12905_v19, 2 }
 0x2f9   :  { %v2917_v10 = vor.u32 %v2916_v54, %v2915_v53  ;;  %v2906_v63 = vshll.u32 %v17388_v24, %v2903_v7  ;;  %v2909_v51 = vshll.u32 %v17396_v57, %v2903_v7  ;;  %v2912_v46 = vshll.u32 %v17397_v58, %v2903_v7 }
 0x2fa   :  { %v2920_v34 = vor.u32 %v2919_v61, %v2918_v43  ;;  %v2828_v21 = vsel %vm2818_vm3, %v2825_v1, %v2827_v37  ;;  %v2832_v45 = vsel %vm2818_vm3, %v2829_v6, %v2831_v9  ;;  %v12996_v17 = vshll.u32 %v2793_v13, 8 }
 0x2fb   :  { %v17433_v11 = vand.u32 2147483647, %v12732_v36  ;;  %v13000_v26 = vor.u32 %v2907_v56, %v2906_v63  ;;  %v13002_v54 = vor.u32 %v2910_v0, %v2909_v51  ;;  %v2914_v53 = vor.u32 %v2913_v5, %v2912_v46 }
 0x2fc   :  { %vm2924_vm7 = vcmp.lt.s32.totalorder %v12974_v16, 4  ;;  %vm2634_vm8 = vc.u32 %v12869_v52, %v12792_v25  ;;  %v13008_v7 = vmul.u32.u64.low %v12879_v2, %v2724_v55  ;;  %v13009_v1 = vmul.u32.u64.high %v12879_v2, %v2724_v55, %v13008_v7 }
 0x2fd   :  { %v2896_v40 = vand.u32 8388607, %v17433_v11  ;;  %v2930_v13 = vsel %vm2924_vm7, %v2917_v10, 920167782  ;;  %v2728_v37 = vsel %vm2714_vm9, %v2725_v35, %v2727_v18  ;;  %v2934_v46 = vsel %vm2924_vm7, %v2920_v34, 1326507024 }
 0x2fe   :  { %v13017_v61 = vmul.u32.u64.low %v12996_v17, %v2828_v21  ;;  %v13018_v6 = vmul.u32.u64.high %v12996_v17, %v2828_v21, %v13017_v61  ;;  %v13024_v9 = vmul.u32.u64.low %v12996_v17, %v2832_v45  ;;  %v13025_v56 = vmul.u32.u64.high %v12996_v17, %v2832_v45, %v13024_v9 }
 0x2ff   :  { %vm2921_vm12 = vcmp.lt.s32.totalorder %v12974_v16, 1  ;;  %vm2923_vm13 = vcmp.lt.s32.totalorder %v12974_v16, 3  ;;  %v2616_v35 = vsel %vm2610_vm11, %v12857_v60, %v12862_v48  ;;  %v2897_v0 = vor.u32 8388608, %v2896_v40 }
 0x300   :  { %v2929_v21 = vsel %vm2921_vm12, %v13000_v26, %v13002_v54  ;;  %v2931_v34 = vsel %vm2923_vm13, %v2914_v53, %v2930_v13  ;;  %v13040_v45 = vmul.u32.u64.low %v12879_v2, %v2728_v37  ;;  %v13041_v5 = vmul.u32.u64.high %v12879_v2, %v2728_v37, %v13040_v45 }
 0x301   :  { %v2933_v43 = vsel %vm2921_vm12, %v13002_v54, %v2914_v53  ;;  %v2935_v38 = vsel %vm2923_vm13, %v2917_v10, %v2934_v46  ;;  %v2512_v60 = vsel %vm2506_vm4, %v12825_v39, %v12829_v20  ;;  %v2636_v48 = vsel %vm2634_vm8, %v12873_v32, %v12793_v44 }
 0x302   :  { %v2822_v55 = vsel %vm2820_vm15, %v12930_v3, 2102212464  ;;  %vm2922_vm11 = vcmp.lt.s32.totalorder %v12974_v16, 2  ;;  %v2531_v18 = vadd.s32 1, %v12851_v27  ;;  %v2632_v10 = vmul.u32 %v12783_v31, %v2616_v35 }
 0x303   :  { %v2801_v42 = vshrl.u32 %v17388_v24, %v12864_v59  ;;  %v2932_v39 = vsel %vm2922_vm11, %v2929_v21, %v2931_v34  ;;  %v2697_v20 = vshrl.u32 %v17388_v24, %v12833_v22  ;;  %v2718_v44 = vsel %vm2716_vm14, %v12917_v15, 2102212464 }
 0x304   :  { %v2936_v32 = vsel %vm2922_vm11, %v2933_v43, %v2935_v38  ;;  %v2937_v3 = vshll.u32 %v2897_v0, 8  ;;  %vm2530_vm4 = vc.u32 %v12845_v28, %v12850_v49  ;;  %v2637_v31 = vadd.s32 %v2636_v48, %v2632_v10 }
 0x305   :  { %v2821_v59 = vsel %vm2817_vm1, %v2801_v42, %v12926_v23  ;;  %v2823_v22 = vsel %vm2819_vm2, %v12928_v47, %v2822_v55  ;;  %v2717_v15 = vsel %vm2713_vm6, %v2697_v20, %v12897_v8  ;;  %v2843_v63 = vadd.s32 1, %v13018_v6 }
 0x306   :  { %v13086_v51 = vmul.u32.u64.low %v2937_v3, %v2932_v39  ;;  %v13087_v11 = vmul.u32.u64.high %v2937_v3, %v2932_v39, %v13086_v51  ;;  %v2719_v40 = vsel %vm2715_vm0, %v12915_v50, %v2718_v44  ;;  %vm2842_vm5 = vc.u32 %v13025_v56, %v13017_v61 }
 0x307   :  { %v13095_v23 = vmul.u32.u64.low %v2937_v3, %v2936_v32  ;;  %v13096_v13 = vmul.u32.u64.high %v2937_v3, %v2936_v32, %v13095_v23  ;;  %v2326_v47 = vadd.s32 536870912, %v12696_v62  ;;  %v2739_v8 = vadd.s32 1, %v13009_v1 }
 0x308   :  { %v2824_v37 = vsel %vm2818_vm3, %v2821_v59, %v2823_v22  ;;  %v2227_v46 = vsub.s32 0, %v12690_v14  ;;  %v2528_v9 = vmul.u32 %v12803_v33, %v2512_v60  ;;  %v2532_v50 = vsel %vm2530_vm4, %v2531_v18, %v12851_v27 }
 0x309   :  { %vm2738_vm14 = vc.u32 %v13041_v5, %v13008_v7  ;;  %v2638_v35 = vadd.s32 536870912, %v2637_v31  ;;  %v2720_v0 = vsel %vm2714_vm9, %v2717_v15, %v2719_v40  ;;  %v2844_v21 = vsel %vm2842_vm5, %v2843_v63, %v13018_v6 }
 0x30a   :  { %v2926_v19 = vsel %vm2924_vm7, %v2914_v53, 2102212464  ;;  %v13116_v34 = vshrl.u32 %v12797_v30, 30  ;;  %v2840_v33 = vmul.u32 %v12996_v17, %v2824_v37  ;;  %v2905_v27 = vshrl.u32 %v17388_v24, %v12924_v4 }
 0x30b   :  { %v13121_v45 = vshrl.u32 %v2326_v47, 30  ;;  %v2533_v43 = vadd.s32 %v2532_v50, %v2528_v9  ;;  %v2740_v38 = vsel %vm2738_vm14, %v2739_v8, %v13009_v1  ;;  %v2736_v29 = vmul.u32 %v12879_v2, %v2720_v0 }
 0x30c   :  { %v2845_v60 = vadd.s32 %v2844_v21, %v2840_v33  ;;  %v2925_v53 = vsel %vm2921_vm12, %v2905_v27, %v13000_v26  ;;  %v2927_v30 = vsel %vm2923_vm13, %v13002_v54, %v2926_v19  ;;  %v8808_v17 = vmin.u32 %v2227_v46, %v12690_v14 }
 0x30d   :  { %v13132_v6 = vshrl.u32 %v2638_v35, 30  ;;  %v2947_v4 = vadd.s32 1, %v13087_v11  ;;  %v2432_v48 = vshll.u32 %v13116_v34, 30  ;;  %v2741_v1 = vadd.s32 %v2740_v38, %v2736_v29 }
 0x30e   :  { %vm2946_vm15 = vc.u32 %v13096_v13, %v13086_v51  ;;  %v2534_v2 = vadd.s32 536870912, %v2533_v43  ;;  %v2928_v26 = vsel %vm2922_vm11, %v2925_v53, %v2927_v30  ;;  %v2328_v55 = vshll.u32 %v13121_v45, 30 }
 0x30f   :  { %v2846_v18 = vadd.s32 536870912, %v2845_v60  ;;  %v2229_v54 = vclz %v8808_v17  ;;  %v2640_v10 = vshll.u32 %v13132_v6, 30  ;;  %v2948_v42 = vsel %vm2946_vm15, %v2947_v4, %v13087_v11 }
 0x310   :  { %v13144_v39 = vsub.s32 %v12766_v41, %v2432_v48  ;;  %v2742_v20 = vadd.s32 536870912, %v2741_v1  ;;  %v2944_v44 = vmul.u32 %v2937_v3, %v2928_v26  ;;  %v13146_v32 = vshrl.u32 %v2534_v2, 30 }
 0x311   :  { %v13149_v59 = vsub.s32 %v12696_v62, %v2328_v55  ;;  %v13151_v16 = vshrl.u32 %v2846_v18, 30  ;;  %v8809_v15 = vadd.s32 4294967294, %v2229_v54  ;;  %v13153_v63 = vsub.s32 %v2637_v31, %v2640_v10  ;;  %v17434_v54 = vld [vmem:[#allocation161_spill] sm:$0xff] }
 0x312   :  { %v2949_v22 = vadd.s32 %v2948_v42, %v2944_v44  ;;  %v2435_v40 = vsub.s32 0, %v13144_v39  ;;  %v13156_v23 = vshrl.u32 %v2742_v20, 30  ;;  %v2536_v41 = vshll.u32 %v13146_v32, 30 }
 0x313   :  { %v2331_v11 = vsub.s32 0, %v13149_v59  ;;  %v2848_v3 = vshll.u32 %v13151_v16, 30  ;;  %vm8810_vm6 = vcmp.lt.s32.totalorder %v8809_v15, 0  ;;  %v2643_v62 = vsub.s32 0, %v13153_v63 }
 0x314   :  { %v2950_v47 = vadd.s32 536870912, %v2949_v22  ;;  %v8816_v8 = vmin.u32 %v2435_v40, %v13144_v39  ;;  %v2744_v37 = vshll.u32 %v13156_v23, 30  ;;  %v13164_v31 = vsub.s32 %v2533_v43, %v2536_v41 }
 0x315   :  { %v2232_v46 = vsel %vm8810_vm6, 0, %v8809_v15  ;;  %v8812_v9 = vmin.u32 %v2331_v11, %v13149_v59  ;;  %v13167_v50 = vsub.s32 %v2845_v60, %v2848_v3  ;;  %v8824_v0 = vmin.u32 %v2643_v62, %v13153_v63 }
 0x316   :  { %v13169_v35 = vshrl.u32 %v2950_v47, 30  ;;  %v2437_v21 = vclz %v8816_v8  ;;  %v13172_v19 = vsub.s32 %v2741_v1, %v2744_v37  ;;  %v2237_v33 = vsub.s32 4294967266, %v2232_v46 }
 0x317   :  { %v2539_v27 = vsub.s32 0, %v13164_v31  ;;  %v2333_v38 = vclz %v8812_v9  ;;  %v2851_v29 = vsub.s32 0, %v13167_v50  ;;  %v2645_v53 = vclz %v8824_v0 }
 0x318   :  { %v2952_v43 = vshll.u32 %v13169_v35, 30  ;;  %v8817_v30 = vadd.s32 4294967294, %v2437_v21  ;;  %v2747_v60 = vsub.s32 0, %v13172_v19  ;;  %v2238_v17 = vadd.s32 127, %v2237_v33 }
 0x319   :  { %v8820_v4 = vmin.u32 %v2539_v27, %v13164_v31  ;;  %v8813_v48 = vadd.s32 4294967294, %v2333_v38  ;;  %v8832_v2 = vmin.u32 %v2851_v29, %v13167_v50  ;;  %v2233_v26 = vsub.s32 32, %v2232_v46  ;;  %v17435_v29 = vld [vmem:[#allocation27_spill] sm:$0xff] }
 0x31a   :  { %v13180_v1 = vsub.s32 %v2949_v22, %v2952_v43  ;;  %v8825_v55 = vadd.s32 4294967294, %v2645_v53  ;;  %vm8818_vm9 = vcmp.lt.s32.totalorder %v8817_v30, 0  ;;  %v8828_v18 = vmin.u32 %v2747_v60, %v13172_v19  ;;  %v17436_v43 = vld [vmem:[#allocation49_spill] sm:$0xff] }
 0x31b   :  { %v2217_v10 = vadd.s32 %v17434_v54, %v12377_v12  ;;  %v2239_v42 = vshll.u32 %v2238_v17, 23  ;;  %v2541_v20 = vclz %v8820_v4  ;;  %vm8814_vm0 = vcmp.lt.s32.totalorder %v8813_v48, 0  ;;  %v17437_v17 = vld [vmem:[#allocation51_spill] sm:$0xff] }
 0x31c   :  { %v2853_v44 = vclz %v8832_v2  ;;  %v2955_v15 = vsub.s32 0, %v13180_v1  ;;  %v2440_v41 = vsel %vm8818_vm9, 0, %v8817_v30  ;;  %vm8826_vm1 = vcmp.lt.s32.totalorder %v8825_v55, 0  ;;  %v17439_v2 = vld [vmem:[#allocation164_spill] sm:$0xff] }
 0x31d   :  { %v2235_v40 = vshrl.u32 %v2217_v10, %v2233_v26  ;;  %v2749_v11 = vclz %v8828_v18  ;;  %v2234_v22 = vshll.u32 %v12690_v14, %v2232_v46  ;;  %v2240_v3 = vor.u32 4788187, %v2239_v42  ;;  %v17440_v26 = vld [vmem:[#allocation163_spill] sm:$0xff] }
 0x31e   :  { %v13187_v47 = vsel %vm8814_vm0, 0, %v8813_v48  ;;  %v8821_v62 = vadd.s32 4294967294, %v2541_v20  ;;  %v2445_v8 = vsub.s32 4294967266, %v2440_v41  ;;  %v2648_v37 = vsel %vm8826_vm1, 0, %v8825_v55 }
 0x31f   :  { %v8833_v9 = vadd.s32 4294967294, %v2853_v44  ;;  %v8836_v12 = vmin.u32 %v2955_v15, %v13180_v1  ;;  %v2236_v0 = vor.u32 %v2235_v40, %v2234_v22  ;;  %v2341_v21 = vsub.s32 4294967266, %v13187_v47 }
 0x320   :  { %v8829_v33 = vadd.s32 4294967294, %v2749_v11  ;;  %v2241_v27 = vand.u32 2147483647, %v2240_v3  ;;  %vm8822_vm2 = vcmp.lt.s32.totalorder %v8821_v62, 0  ;;  %v2653_v38 = vsub.s32 4294967266, %v2648_v37 }
 0x321   :  { %v1095_v53 = vadd.f32 %v17436_v43, %v17435_v29  ;;  %v2441_v14 = vsub.s32 32, %v2440_v41  ;;  %v2446_v46 = vadd.s32 127, %v2445_v8  ;;  %vm8834_vm3 = vcmp.lt.s32.totalorder %v8833_v9, 0 }
 0x322   :  { %v2957_v30 = vclz %v8836_v12  ;;  %v2243_v60 = vcvt.s32.f32 %v2236_v0  ;;  %v2342_v48 = vadd.s32 127, %v2341_v21  ;;  %v2425_v55 = vadd.s32 %v17440_v26, %v17439_v2  ;;  %v17441_v0 = vld [vmem:[#allocation162_spill] sm:$0xff]  ;;  %v17442_v21 = vld [vmem:[#allocation160_spill] sm:$0xff] }
 0x323   :  { %v13194_v4 = vadd.f32 %v17437_v17, %v1095_v53  ;;  %v13198_v18 = vsel %vm8822_vm2, 0, %v8821_v62  ;;  %vm8830_vm7 = vcmp.lt.s32.totalorder %v8829_v33, 0  ;;  %v2654_v54 = vadd.s32 127, %v2653_v38  ;;  %v17443_v17 = vld [vmem:[#allocation17_spill] sm:$0xff] }
 0x324   :  { %v13200_v10 = vsel %vm8834_vm3, 0, %v8833_v9  ;;  %v2244_v42 = vmul.f32 %v2243_v60, %v2241_v27  ;;  %v2443_v20 = vshrl.u32 %v2425_v55, %v2441_v14  ;;  %v2447_v44 = vshll.u32 %v2446_v46, 23 }
 0x325   :  { %17438 = vst [vmem:[#allocation168_spill] sm:$0xff] %v13194_v4  ;;  %v8837_v15 = vadd.s32 4294967294, %v2957_v30  ;;  %v2549_v40 = vsub.s32 4294967266, %v13198_v18  ;;  %v2649_v11 = vsub.s32 32, %v2648_v37  ;;  %v13203_v22 = vsel %vm8830_vm7, 0, %v8829_v33 }
 0x326   :  { %v2996_v3 = vand.u32 2139095040, %v13194_v4  ;;  %v2337_v8 = vsub.s32 32, %v13187_v47  ;;  %v2343_v12 = vshll.u32 %v2342_v48, 23  ;;  %v2861_v62 = vsub.s32 4294967266, %v13200_v10 }
 0x327   :  { %v2321_v9 = vadd.s32 %v17442_v21, %v17441_v0  ;;  %v2442_v27 = vshll.u32 %v13144_v39, %v2440_v41  ;;  %v2633_v38 = vadd.s32 %v12792_v25, %v12869_v52  ;;  %v2655_v29 = vshll.u32 %v2654_v54, 23 }
 0x328   :  { %v2245_v43 = vxor.u32 2147483648, %v2244_v42  ;;  %v2448_v53 = vor.u32 4788187, %v2447_v44  ;;  %v2757_v33 = vsub.s32 4294967266, %v13203_v22  ;;  %vm8838_vm8 = vcmp.lt.s32.totalorder %v8837_v15, 0 }
 0x329   :  { %v2444_v14 = vor.u32 %v2443_v20, %v2442_v27  ;;  %v2550_v46 = vadd.s32 127, %v2549_v40  ;;  %v2651_v30 = vshrl.u32 %v2633_v38, %v2649_v11  ;;  %v2997_v60 = vshrl.u32 %v2996_v3, 23 }
 0x32a   :  { %vm2163_vm12 = vcmp.lt.s32.totalorder %v17443_v17, 0  ;;  %v2338_v48 = vshll.u32 %v13149_v59, %v13187_v47  ;;  %v2339_v2 = vshrl.u32 %v2321_v9, %v2337_v8  ;;  %v2344_v39 = vor.u32 4788187, %v2343_v12 }
 0x32b   :  { %v2862_v41 = vadd.s32 127, %v2861_v62  ;;  %v2545_v25 = vsub.s32 32, %v13198_v18  ;;  %v2650_v52 = vshll.u32 %v13153_v63, %v2648_v37  ;;  %v2656_v26 = vor.u32 4788187, %v2655_v29 }
 0x32c   :  { %v13219_v55 = vsel %vm8838_vm8, 0, %v8837_v15  ;;  %v2449_v54 = vand.u32 2147483647, %v2448_v53  ;;  %v2529_v20 = vadd.s32 %v12850_v49, %v12845_v28  ;;  %v2758_v44 = vadd.s32 127, %v2757_v33 }
 0x32d   :  { %v2857_v40 = vsub.s32 32, %v13200_v10  ;;  %v2451_v11 = vcvt.s32.f32 %v2444_v14  ;;  %v2551_v3 = vshll.u32 %v2550_v46, 23  ;;  %v2652_v59 = vor.u32 %v2651_v30, %v2650_v52 }
 0x32e   :  { %v8839_v47 = vadd.s32 4294967169, %v2997_v60  ;;  %v2753_v8 = vsub.s32 32, %v13203_v22  ;;  %v2841_v12 = vadd.s32 %v13017_v61, %v13025_v56  ;;  %v2863_v63 = vshll.u32 %v2862_v41, 23 }
 0x32f   :  { %v2965_v37 = vsub.s32 4294967266, %v13219_v55  ;;  %v2340_v15 = vor.u32 %v2339_v2, %v2338_v48  ;;  %v2345_v62 = vand.u32 2147483647, %v2344_v39  ;;  %v2547_v0 = vshrl.u32 %v2529_v20, %v2545_v25  ;;  %v17447_v25 = vld [vmem:[#allocation7_spill] sm:$0xff]  ;;  %v17448_v20 = vld [vmem:[#allocation10_spill] sm:$0xff] }
 0x330   :  { %v2657_v21 = vand.u32 2147483647, %v2656_v26  ;;  %v17444_v28 = vand.u32 2147483647, %v17443_v17  ;;  %v2452_v9 = vmul.f32 %v2451_v11, %v2449_v54  ;;  %v2737_v27 = vadd.s32 %v13008_v7, %v13041_v5 }
 0x331   :  { %v2759_v38 = vshll.u32 %v2758_v44, 23  ;;  %v2859_v29 = vshrl.u32 %v2841_v12, %v2857_v40  ;;  %v2546_v61 = vshll.u32 %v13164_v31, %v13198_v18  ;;  %v2552_v56 = vor.u32 4788187, %v2551_v3 }
 0x332   :  { %vm13230_vm13 = vcmp.le.f32.partialorder %v17444_v28, 0.7853982  ;;  %v2659_v53 = vcvt.s32.f32 %v2652_v59  ;;  %v3003_v33 = vadd.s32 1, %v8839_v47  ;;  %v2755_v14 = vshrl.u32 %v2737_v27, %v2753_v8 }
 0x333   :  { %v2858_v46 = vshll.u32 %v13167_v50, %v13200_v10  ;;  %v2864_v30 = vor.u32 4788187, %v2863_v63  ;;  %v2966_v60 = vadd.s32 127, %v2965_v37  ;;  %v2246_v48 = vsel %vm2163_vm12, %v2245_v43, %v2244_v42 }
 0x334   :  { %v2347_v2 = vcvt.s32.f32 %v2340_v15  ;;  %v2548_v39 = vor.u32 %v2547_v0, %v2546_v61  ;;  %v2660_v7 = vmul.f32 %v2659_v53, %v2657_v21  ;;  %v2754_v5 = vshll.u32 %v13172_v19, %v13203_v22  ;;  %v17452_v0 = vld [vmem:[#allocation137_spill] sm:$0xff]  ;;  %v17453_v21 = vld [vmem:[#allocation158_spill] sm:$0xff] }
 0x335   :  { %v2760_v41 = vor.u32 4788187, %v2759_v38  ;;  %v2860_v31 = vor.u32 %v2859_v29, %v2858_v46  ;;  %v2961_v18 = vsub.s32 32, %v13219_v55  ;;  %vm2267_vm11 = vcmp.lt.s32.totalorder %v17447_v25, 0  ;;  %v17459_v46 = vld [vmem:[#allocation50_spill] sm:$0xff] }
 0x336   :  { %v2348_v52 = vmul.f32 %v2347_v2, %v2345_v62  ;;  %v2453_v26 = vxor.u32 2147483648, %v2452_v9  ;;  %v2553_v50 = vand.u32 2147483647, %v2552_v56  ;;  %vm3004_vm4 = vcmp.gt.s32.totalorder %v3003_v33, 0  ;;  %v17460_v2 = vld [vmem:[#allocation166_spill] sm:$0xff] }
 0x337   :  { %v2756_v10 = vor.u32 %v2755_v14, %v2754_v5  ;;  %v2865_v54 = vand.u32 2147483647, %v2864_v30  ;;  %v2945_v42 = vadd.s32 %v13086_v51, %v13096_v13  ;;  %v2967_v43 = vshll.u32 %v2966_v60, 23  ;;  %v17458_v14 = vld [vmem:[#allocation28_spill] sm:$0xff] }
 0x338   :  { %v17449_v44 = vand.u32 2147483647, %v17448_v20  ;;  %vm2371_vm14 = vcmp.lt.s32.totalorder %v17448_v20, 0  ;;  %v2555_v22 = vcvt.s32.f32 %v2548_v39  ;;  %v2661_v40 = vxor.u32 2147483648, %v2660_v7 }
 0x339   :  { %v2761_v11 = vand.u32 2147483647, %v2760_v41  ;;  %v2867_v3 = vcvt.s32.f32 %v2860_v31  ;;  %v2963_v59 = vshrl.u32 %v2945_v42, %v2961_v18  ;;  %v3005_v47 = vsel %vm3004_vm4, %v3003_v33, 0  ;;  %v17463_v41 = vld [vmem:[#allocation200_spill] sm:$0xff] }
 0x33a   :  { %vm13250_vm5 = vcmp.le.f32.partialorder %v17449_v44, 0.7853982  ;;  %v2249_v8 = vsel %vm13230_vm13, %v17443_v17, %v2246_v48  ;;  %v2349_v51 = vxor.u32 2147483648, %v2348_v52  ;;  %v2454_v13 = vsel %vm2371_vm14, %v2453_v26, %v2452_v9  ;;  %v17468_v42 = vld [vmem:[#allocation52_spill] sm:$0xff]  ;;  %v17494_v44 = vld [vmem:[#allocation102_spill] sm:$0xff] }
 0x33b   :  { %v2556_v12 = vmul.f32 %v2555_v22, %v2553_v50  ;;  %v2763_v63 = vcvt.s32.f32 %v2756_v10  ;;  %v2868_v37 = vmul.f32 %v2867_v3, %v2865_v54  ;;  %v2962_v15 = vshll.u32 %v13180_v1, %v13219_v55  ;;  %v17467_v54 = vld [vmem:[#allocation29_spill] sm:$0xff] }
 0x33c   :  { %v2968_v62 = vor.u32 4788187, %v2967_v43  ;;  %vm2475_vm15 = vcmp.lt.s32.totalorder %v17452_v0, 0  ;;  %vm2579_vm6 = vcmp.lt.s32.totalorder %v17453_v21, 0  ;;  %v16799_v28 = vand.u32 2147483647, %v13194_v4 }
 0x33d   :  { %v13265_v27 = vand.u32 31, %v3005_v47  ;;  %9083 = vcosq.f32 %v2249_v8  ;;  %v2662_v38 = vsel %vm2579_vm6, %v2661_v40, %v2660_v7  ;;  %v2764_v9 = vmul.f32 %v2763_v63, %v2761_v11  ;;  %v17495_v4 = vld [vmem:[#allocation105_spill] sm:$0xff] }
 0x33e   :  { %v2964_v29 = vor.u32 %v2963_v59, %v2962_v15  ;;  %9085 = vsinq.f32 %v2249_v8  ;;  %v2457_v1 = vsel %vm13250_vm5, %v17448_v20, %v2454_v13  ;;  %v2557_v55 = vxor.u32 2147483648, %v2556_v12  ;;  %v17470_v59 = vld [vmem:[#allocation53_spill] sm:$0xff] }
 0x33f   :  { %17454 = vst [vmem:[#allocation170_spill] sm:$0xff] %v13265_v27  ;;  %v17455_v61 = vand.u32 2147483647, %v17453_v21  ;;  %v13280_v53 = vsel %vm2267_vm11, %v2349_v51, %v2348_v52  ;;  %v2869_v33 = vxor.u32 2147483648, %v2868_v37  ;;  %v1097_v30 = vadd.f32 %v17459_v46, %v17458_v14  ;;  %v17472_v51 = vld [vmem:[#allocation55_spill] sm:$0xff]  ;;  %v17481_v46 = vld [vmem:[#allocation221_spill] sm:$0xff] }
 0x340   :  { %v2969_v60 = vand.u32 2147483647, %v2968_v62  ;;  %vm2683_vm0 = vcmp.lt.s32.totalorder %v17460_v2, 0  ;;  %v13290_v39 = vand.u32 8388607, %v16799_v28  ;;  %v13293_v7 = vsub.s32 32, %v13265_v27 }
 0x341   :  { %vm13274_vm9 = vcmp.le.f32.partialorder %v17455_v61, 0.7853982  ;;  %9087 = vcosq.f32 %v2457_v1  ;;  %v2765_v5 = vxor.u32 2147483648, %v2764_v9  ;;  %vm2787_vm1 = vcmp.lt.s32.totalorder %v17463_v41, 0  ;;  %v13345_v61 = vpop.f32.mrf.mxu0 }
 0x342   :  { %v2665_v48 = vsel %vm13274_vm9, %v17453_v21, %v2662_v38  ;;  %17461 = vst [vmem:[#allocation206_spill] sm:$0xff] %v13290_v39  ;;  %17462 = vst [vmem:[#allocation212_spill] sm:$0xff] %v13293_v7  ;;  %v2971_v31 = vcvt.s32.f32 %v2964_v29  ;;  %9089 = vsinq.f32 %v2457_v1  ;;  %v13298_v18 = vsel %vm2475_vm15, %v2557_v55, %v2556_v12  ;;  %v17476_v29 = vld [vmem:[#allocation110_spill] sm:$0xff]  ;;  %v17477_v1 = vld [vmem:[#allocation95_spill] sm:$0xff] }
 0x343   :  { %v17464_v52 = vand.u32 2147483647, %v17463_v41  ;;  %vm2891_vm3 = vcmp.lt.s32.totalorder %v12732_v36, 0  ;;  %9091 = vcosq.f32 %v2665_v48  ;;  %v2870_v50 = vsel %vm2787_vm1, %v2869_v33, %v2868_v37  ;;  %17478 = vst [vmem:[#allocation216_spill] sm:$0xff] %v13345_v61  ;;  %v17501_v39 = vld [vmem:[#allocation117_spill] sm:$0xff] }
 0x344   :  { %v2972_v10 = vmul.f32 %v2971_v31, %v2969_v60  ;;  %v1102_v43 = vadd.f32 %v17468_v42, %v17467_v54  ;;  %9093 = vsinq.f32 %v2665_v48  ;;  %v3011_v22 = vshrl.u32 %v17396_v57, %v13293_v7  ;;  %v17483_v48 = vld [vmem:[#allocation112_spill] sm:$0xff]  ;;  %v17487_v54 = vld [vmem:[#allocation97_spill] sm:$0xff] }
 0x345   :  { %vm13302_vm2 = vcmp.le.f32.partialorder %v17464_v52, 0.7853982  ;;  %v3014_v40 = vshrl.u32 %v17397_v58, %v13293_v7  ;;  %v13318_v11 = vsel %vm2683_vm0, %v2765_v5, %v2764_v9  ;;  %v13320_v3 = vshrl.u32 %v3005_v47, 5  ;;  %v17484_v5 = vld [vmem:[#allocation103_spill] sm:$0xff] }
 0x346   :  { %v13323_v8 = vadd.f32 %v17470_v59, %v1097_v30  ;;  %v13326_v13 = vadd.f32 %v17472_v51, %v1102_v43  ;;  %v2873_v12 = vsel %vm13302_vm2, %v17463_v41, %v2870_v50  ;;  %v3010_v63 = vshll.u32 %v17388_v24, %v13265_v27  ;;  %v17482_v30 = vld [vmem:[#allocation99_spill] sm:$0xff]  ;;  %v17488_v43 = vld [vmem:[#allocation9_spill] sm:$0xff]  ;;  %v17489_v59 = vld [vmem:[#allocation108_spill] sm:$0xff] }
 0x347   :  { %17469 = vst [vmem:[#allocation213_spill] sm:$0xff] %v13320_v3  ;;  %v3013_v37 = vshll.u32 %v17396_v57, %v13265_v27  ;;  %v17474_v15 = vmov 2102212464   ;;  %v2973_v62 = vxor.u32 2147483648, %v2972_v10  ;;  %v3016_v38 = vshll.u32 %v17397_v58, %v13265_v27  ;;  %v17499_v24 = vld [vmem:[#allocation113_spill] sm:$0xff] }
 0x348   :  { %17471 = vst [vmem:[#allocation215_spill] sm:$0xff] %v13323_v8  ;;  %17473 = vst [vmem:[#allocation214_spill] sm:$0xff] %v13326_v13  ;;  %v3017_v47 = vshrl.u32 %v17474_v15, %v13293_v7  ;;  %v13341_v9 = vshll.u32 %v17474_v15, %v13265_v27  ;;  %v4937_v55 = vadd.f32 %v17477_v1, %v17476_v29  ;;  %9095 = vcosq.f32 %v2873_v12  ;;  %v17498_v15 = vld [vmem:[#allocation109_spill] sm:$0xff]  ;;  %v17537_v8 = vld [vmem:[#allocation227_spill] sm:$0xff] }
 0x349   :  { %v13347_v33 = vor.u32 %v3011_v22, %v3010_v63  ;;  %v13349_v14 = vor.u32 %v3014_v40, %v3013_v37  ;;  %v4948_v60 = vadd.f32 %v17482_v30, %v17481_v46  ;;  %v4959_v31 = vadd.f32 %v17484_v5, %v17483_v48  ;;  %v17491_v37 = vld [vmem:[#allocation101_spill] sm:$0xff] }
 0x34a   :  { %17475 = vst [vmem:[#allocation218_spill] sm:$0xff] %v13341_v9  ;;  %v17485_v52 = vmov 920167782   ;;  %v4939_v42 = vadd.f32 %v17487_v54, %v17476_v29  ;;  %v4970_v22 = vadd.f32 %v17489_v59, %v17488_v43  ;;  %v13365_v40 = vpop.eup %9083  ;;  %9097 = vsinq.f32 %v2873_v12  ;;  %v17492_v30 = vld [vmem:[#allocation165_spill] sm:$0xff]  ;;  %v17493_v54 = vld [vmem:[#allocation100_spill] sm:$0xff] }
 0x34b   :  { %17479 = vst [vmem:[#allocation202_spill] sm:$0xff] %v13347_v33  ;;  %17480 = vst [vmem:[#allocation111_spill] sm:$0xff] %v13349_v14  ;;  %v13357_v50 = vshrl.u32 %v17485_v52, %v13293_v7  ;;  %v13367_v63 = vor.u32 %v3017_v47, %v3016_v38  ;;  %v4950_v1 = vadd.f32 %v17491_v37, %v17481_v46  ;;  %v2247_v5 = vsub.s32 4, %v17492_v30  ;;  %v13372_v28 = vpop.eup %9085  ;;  %v17496_v38 = vld [vmem:[#allocation104_spill] sm:$0xff]  ;;  %v17497_v46 = vld [vmem:[#allocation106_spill] sm:$0xff] }
 0x34c   :  { %v13376_v29 = vsel %vm2891_vm3, %v2973_v62, %v2972_v10  ;;  %v5178_v59 = vadd.f32 %v17493_v54, %v4937_v55  ;;  %v5180_v61 = vadd.f32 %v17494_v44, %v4939_v42  ;;  %v4961_v12 = vadd.f32 %v17495_v4, %v17483_v48  ;;  %v17500_v10 = vld [vmem:[#allocation114_spill] sm:$0xff]  ;;  %v17502_v54 = vld [vmem:[#allocation167_spill] sm:$0xff]  ;;  %v17503_v42 = vld [vmem:[#allocation169_spill] sm:$0xff] }
 0x34d   :  { %17486 = vst [vmem:[#allocation217_spill] sm:$0xff] %v13357_v50  ;;  %17490 = vst [vmem:[#allocation205_spill] sm:$0xff] %v13367_v63  ;;  %v5185_v58 = vadd.f32 %v17496_v38, %v4948_v60  ;;  %v5187_v37 = vadd.f32 %v17497_v46, %v4950_v1  ;;  %v5192_v57 = vadd.f32 %v17498_v15, %v4959_v31  ;;  %v17504_v48 = vld [vmem:[#allocation119_spill] sm:$0xff]  ;;  %v17506_v1 = vld [vmem:[#allocation173_spill] sm:$0xff]  ;;  %v2261_v19 = vxor.u32 2147483648, %v13365_v40 }
 0x34e   :  { %v4972_v13 = vadd.f32 %v17499_v24, %v17488_v43  ;;  %v5194_v62 = vadd.f32 %v17500_v10, %v4961_v12  ;;  %v5199_v55 = vadd.f32 %v17501_v39, %v4970_v22  ;;  %v5368_v44 = vadd.f32 %v17502_v54, %v5178_v59  ;;  %v13393_v4 = vpop.eup %9087  ;;  %v17505_v60 = vld [vmem:[#allocation171_spill] sm:$0xff]  ;;  %v17507_v39 = vld [vmem:[#allocation172_spill] sm:$0xff]  ;;  %v17508_v22 = vld [vmem:[#allocation174_spill] sm:$0xff] }
 0x34f   :  { %v5370_v63 = vadd.f32 %v17503_v42, %v5180_v61  ;;  %v5376_v38 = vadd.f32 %v17505_v60, %v5185_v58  ;;  %v5378_v46 = vadd.f32 %v17506_v1, %v5187_v37  ;;  %v2248_v24 = vsel %vm2163_vm12, %v2247_v5, %v17492_v30  ;;  %v13403_v31 = vpop.eup %9089  ;;  %v17509_v59 = vld [vmem:[#allocation175_spill] sm:$0xff]  ;;  %v17510_v10 = vld [vmem:[#allocation177_spill] sm:$0xff]  ;;  %v17511_v58 = vld [vmem:[#allocation176_spill] sm:$0xff] }
 0x350   :  { %v5201_v33 = vadd.f32 %v17504_v48, %v4972_v13  ;;  %v5570_v43 = vadd.f32 %v17507_v39, %v5368_v44  ;;  %v5384_v12 = vadd.f32 %v17509_v59, %v5192_v57  ;;  %v5386_v13 = vadd.f32 %v17510_v10, %v5194_v62  ;;  %v13409_v54 = vpop.eup %9091  ;;  %v17512_v42 = vld [vmem:[#allocation178_spill] sm:$0xff]  ;;  %v17513_v60 = vld [vmem:[#allocation179_spill] sm:$0xff]  ;;  %v17514_v14 = vld [vmem:[#allocation181_spill] sm:$0xff]  ;;  %v13420_v39 = vpop.f32.mrf.mxu1 }
 0x351   :  { %v5572_v61 = vadd.f32 %v17508_v22, %v5370_v63  ;;  %v5579_v37 = vadd.f32 %v17511_v58, %v5376_v38  ;;  %v5581_v48 = vadd.f32 %v17512_v42, %v5378_v46  ;;  %v5392_v1 = vadd.f32 %v17513_v60, %v5199_v55  ;;  %v13417_v3 = vpop.eup %9093  ;;  %v17515_v44 = vld [vmem:[#allocation180_spill] sm:$0xff]  ;;  %17516 = vst [vmem:[#allocation219_spill] sm:$0xff] %v13420_v39  ;;  %v17523_v10 = vld [vmem:[#allocation186_spill] sm:$0xff]  ;;  %v17538_v7 = vld [vmem:[#allocation139_spill] sm:$0xff] }
 0x352   :  { %v5394_v30 = vadd.f32 %v17514_v14, %v5201_v33  ;;  %v5588_v63 = vadd.f32 %v17515_v44, %v5384_v12  ;;  %v2250_v57 = vsel %vm13230_vm13, 0, %v2248_v24  ;;  %v17517_v62 = vand.u32 2147483647, %v17447_v25  ;;  %v17520_v33 = vld [vmem:[#allocation182_spill] sm:$0xff]  ;;  %v17521_v46 = vld [vmem:[#allocation224_spill] sm:$0xff] }
 0x353   :  { %v2455_v55 = vsub.s32 4, %v13116_v34  ;;  %v5590_v14 = vadd.f32 %v17520_v33, %v5386_v13  ;;  %v5781_v22 = vadd.f32 %v17521_v46, %v5570_v43  ;;  %v2351_v59 = vsub.s32 4, %v13121_v45  ;;  %v17522_v24 = vld [vmem:[#allocation184_spill] sm:$0xff]  ;;  %v17524_v42 = vld [vmem:[#allocation226_spill] sm:$0xff]  ;;  %v17529_v33 = vld [vmem:[#allocation11_spill] sm:$0xff] }
 0x354   :  { %vm13426_vm7 = vcmp.le.f32.partialorder %v17517_v62, 0.7853982  ;;  %v5597_v12 = vadd.f32 %v17522_v24, %v5392_v1  ;;  %v5599_v58 = vadd.f32 %v17523_v10, %v5394_v30  ;;  %v5783_v60 = vadd.f32 %v17524_v42, %v5572_v61  ;;  %v17530_v39 = vld [vmem:[#allocation8_spill] sm:$0xff] }
 0x355   :  { %v2353_v49 = vsel %vm13426_vm7, %v17447_v25, %v13280_v53  ;;  %v17526_v13 = vand.u32 2147483647, %v17452_v0  ;;  %v5788_v46 = vadd.f32 %v17529_v33, %v5579_v37  ;;  %v13453_v53 = vadd.f32 %v17530_v39, %v5781_v22  ;;  %v17531_v30 = vld [vmem:[#allocation228_spill] sm:$0xff]  ;;  %v13473_v22 = vpop.eup %9095 }
 0x356   :  { %v2254_v1 = vadd.s32 3, %v2250_v57  ;;  %v5790_v24 = vadd.f32 %v17531_v30, %v5581_v48  ;;  %9099 = vcosq.f32 %v2353_v49  ;;  %v2456_v37 = vsel %vm2371_vm14, %v2455_v55, %v13116_v34  ;;  %v17536_v30 = vld [vmem:[#allocation21_spill] sm:$0xff] }
 0x357   :  { %vm13447_vm8 = vcmp.le.f32.partialorder %v17526_v13, 0.7853982  ;;  %v17532_v39 = vand.u32 2147483647, %v17460_v2  ;;  %9101 = vsinq.f32 %v2353_v49  ;;  %v2559_v48 = vsub.s32 4, %v13146_v32  ;;  %v13483_v55 = vpop.eup %9097  ;;  %v17535_v13 = vld [vmem:[#allocation43_spill] sm:$0xff] }
 0x358   :  { %v2561_v61 = vsel %vm13447_vm8, %v17452_v0, %v13298_v18  ;;  %v2352_v18 = vsel %vm2267_vm11, %v2351_v59, %v13121_v45  ;;  %v13486_v33 = vadd.f32 %v17535_v13, %v5783_v60  ;;  %v13490_v50 = vadd.f32 %v17537_v8, %v5788_v46  ;;  %v17539_v13 = vld [vmem:[#allocation18_spill] sm:$0xff] }
 0x359   :  { %vm13469_vm12 = vcmp.le.f32.partialorder %v17532_v39, 0.7853982  ;;  %v5795_v39 = vadd.f32 %v17536_v30, %v5588_v63  ;;  %9103 = vcosq.f32 %v2561_v61  ;;  %v2255_v59 = vand.u32 3, %v2254_v1 }
 0x35a   :  { %v2769_v34 = vsel %vm13469_vm12, %v17460_v2, %v13318_v11  ;;  %v2458_v49 = vsel %vm13250_vm5, 0, %v2456_v37  ;;  %9105 = vsinq.f32 %v2561_v61  ;;  %v2663_v11 = vsub.s32 4, %v13132_v6 }
 0x35b   :  { %v5797_v60 = vadd.f32 %v17538_v7, %v5590_v14  ;;  %v13501_v52 = vadd.f32 %v17539_v13, %v5790_v24  ;;  %v2354_v8 = vsel %vm13426_vm7, 0, %v2352_v18  ;;  %9107 = vcosq.f32 %v2769_v34  ;;  %v17541_v7 = vld [vmem:[#allocation149_spill] sm:$0xff]  ;;  %v17542_v24 = vld [vmem:[#allocation14_spill] sm:$0xff] }
 0x35c   :  { %v13363_v51 = vpop.f32.mrf.mxu0  ;;  %v2258_v1 = vxor.u32 2147483648, %v13372_v28  ;;  %v2560_v61 = vsel %vm2475_vm15, %v2559_v48, %v13146_v32  ;;  %9109 = vsinq.f32 %v2769_v34  ;;  %v5802_v14 = vadd.f32 %v17541_v7, %v5597_v12  ;;  %v17544_v13 = vld [vmem:[#allocation82_spill] sm:$0xff] }
 0x35d   :  { %v13516_v37 = vadd.f32 %v17542_v24, %v5795_v39  ;;  %v2462_v38 = vadd.s32 3, %v2458_v49  ;;  %v2767_v18 = vsub.s32 4, %v13156_v23  ;;  %v5804_v27 = vadd.f32 %v17544_v13, %v5599_v58  ;;  %v17548_v49 = vld [vmem:[#allocation144_spill] sm:$0xff] }
 0x35e   :  { %v13382_v47 = vpop.f32.mrf.mxu0  ;;  %vm2257_vm13 = vcmp.eq.s32.totalorder %v2255_v59, 0  ;;  %v2664_v32 = vsel %vm2579_vm6, %v2663_v11, %v13132_v6  ;;  %vm2260_vm11 = vcmp.eq.s32.totalorder %v2255_v59, 2  ;;  %v2562_v12 = vsel %vm13447_vm8, 0, %v2560_v61  ;;  %v17549_v61 = vld [vmem:[#allocation80_spill] sm:$0xff] }
 0x35f   :  { %v2871_v34 = vsub.s32 4, %v13151_v16  ;;  %v17545_v39 = vand.u32 2147483647, %v12732_v36  ;;  %v2259_v6 = vsel %vm2257_vm13, %v13365_v40, %v2258_v1  ;;  %v2262_v11 = vsel %vm2260_vm11, %v2261_v19, %v13372_v28 }
 0x360   :  { %v13550_v24 = vadd.f32 %v17549_v61, %v5802_v14  ;;  %v2463_v13 = vand.u32 3, %v2462_v38  ;;  %vm2256_vm5 = vcmp.lt.s32.totalorder %v2255_v59, 2  ;;  %v2466_v28 = vxor.u32 2147483648, %v13403_v31 }
 0x361   :  { %v13398_v15 = vpop.f32.mrf.mxu0  ;;  %vm13534_vm4 = vcmp.le.f32.partialorder %v17545_v39, 0.7853982  ;;  %v2666_v39 = vsel %vm13274_vm9, 0, %v2664_v32  ;;  %v2566_v1 = vadd.s32 3, %v2562_v12  ;;  %v2263_v19 = vsel %vm2256_vm5, %v2259_v6, %v2262_v11 }
 0x362   :  { %v2977_v43 = vsel %vm13534_vm4, %v12732_v36, %v13376_v29  ;;  %v2469_v29 = vxor.u32 2147483648, %v13393_v4  ;;  %v2872_v56 = vsel %vm2787_vm1, %v2871_v34, %v13151_v16  ;;  %v2670_v32 = vadd.s32 3, %v2666_v39 }
 0x363   :  { %v13415_v5 = vpop.f32.mrf.mxu0  ;;  %9111 = vcosq.f32 %v2977_v43  ;;  %v9100_v38 = vpop.eup %9099  ;;  %v2975_v61 = vsub.s32 4, %v13169_v35  ;;  %vm2253_vm14 = vweird.f32 %v17443_v17  ;;  %vm2465_vm15 = vcmp.eq.s32.totalorder %v2463_v13, 0 }
 0x364   :  { %9113 = vsinq.f32 %v2977_v43  ;;  %v9102_v12 = vpop.eup %9101  ;;  %vm2468_vm6 = vcmp.eq.s32.totalorder %v2463_v13, 2  ;;  %v2467_v39 = vsel %vm2465_vm15, %v13393_v4, %v2466_v28  ;;  %v2874_v43 = vsel %vm13302_vm2, 0, %v2872_v56 }
 0x365   :  { %v2470_v57 = vsel %vm2468_vm6, %v2469_v29, %v13403_v31  ;;  %v2365_v31 = vxor.u32 2147483648, %v9100_v38  ;;  %vm2464_vm7 = vcmp.lt.s32.totalorder %v2463_v13, 2  ;;  %v2671_v28 = vand.u32 3, %v2670_v32 }
 0x366   :  { %v13441_v44 = vpop.f32.mrf.mxu0  ;;  %v9104_v16 = vpop.eup %9103  ;;  %v2976_v26 = vsel %vm2891_vm3, %v2975_v61, %v13169_v35  ;;  %v2674_v56 = vxor.u32 2147483648, %v13417_v3  ;;  %vm2461_vm2 = vweird.f32 %v17448_v20  ;;  %v2677_v13 = vxor.u32 2147483648, %v13409_v54 }
 0x367   :  { %v13443_v62 = vpop.f32.mrf.mxu1  ;;  %vm2357_vm3 = vweird.f32 %v17447_v25  ;;  %vm2565_vm11 = vweird.f32 %v17452_v0  ;;  %vm2673_vm5 = vcmp.eq.s32.totalorder %v2671_v28, 0  ;;  %vm2672_vm6 = vcmp.lt.s32.totalorder %v2671_v28, 2 }
 0x368   :  { %17525 = vst [vmem:[#allocation222_spill] sm:$0xff] %v13443_v62  ;;  %v13460_v10 = vpop.f32.mrf.mxu0  ;;  %v2358_v62 = vadd.s32 3, %v2354_v8  ;;  %v13539_v8 = vadd.f32 %v17548_v49, %v5797_v60  ;;  %v2768_v60 = vsel %vm2683_vm0, %v2767_v18, %v13156_v23  ;;  %v6161_v20 = vadd.f32 %v13415_v5, %v13501_v52 }
 0x369   :  { %v13462_v42 = vpop.f32.mrf.mxu1  ;;  %v2770_v59 = vsel %vm13469_vm12, 0, %v2768_v60  ;;  %v13585_v60 = vand.u32 3, %v2566_v1  ;;  %v2362_v1 = vxor.u32 2147483648, %v9102_v12  ;;  %v6150_v52 = vadd.f32 %v13382_v47, %v13486_v33 }
 0x36a   :  { %v13563_v14 = vand.u32 3, %v2358_v62  ;;  %v17552_v62 = vld [vmem:[#allocation85_spill] sm:$0xff]  ;;  %v2774_v17 = vadd.s32 3, %v2770_v59  ;;  %v2573_v59 = vxor.u32 2147483648, %v9104_v16  ;;  %v6170_v0 = vadd.f32 %v13441_v44, %v13516_v37 }
 0x36b   :  { %v13492_v9 = vpop.f32.mrf.mxu0  ;;  %v13494_v45 = vpop.f32.mrf.mxu1  ;;  %v13576_v6 = vadd.f32 %v17552_v62, %v5804_v27  ;;  %v13589_v62 = vsel %vm2253_vm14, nan, %v2263_v19  ;;  %v2471_v19 = vsel %vm2464_vm7, %v2467_v39, %v2470_v57  ;;  %vm2568_vm8 = vcmp.lt.s32.totalorder %v13585_v60, 2 }
 0x36c   :  { %v9106_v27 = vpop.eup %9105  ;;  %17554 = vst [vmem:[#allocation209_spill] sm:$0xff] %v13589_v62  ;;  %vm2360_vm9 = vcmp.lt.s32.totalorder %v13563_v14, 2  ;;  %vm2361_vm0 = vcmp.eq.s32.totalorder %v13563_v14, 0  ;;  %vm2364_vm1 = vcmp.eq.s32.totalorder %v13563_v14, 2  ;;  %v2878_v62 = vadd.s32 3, %v2874_v43 }
 0x36d   :  { %v13503_v63 = vpop.f32.mrf.mxu0  ;;  %v13507_v46 = vpop.f32.mrf.mxu1  ;;  %vm2569_vm12 = vcmp.eq.s32.totalorder %v13585_v60, 0  ;;  %vm2572_vm13 = vcmp.eq.s32.totalorder %v13585_v60, 2  ;;  %v2570_v35 = vxor.u32 2147483648, %v9106_v27  ;;  %v2775_v61 = vand.u32 3, %v2774_v17  ;;  %v8903_v60 = vld [vmem:[%s16632_s4 + $0x20] sm:$0xff] }
 0x36e   :  { %17540 = vst [vmem:[#allocation210_spill] sm:$0xff] %v13503_v63  ;;  %v2978_v39 = vsel %vm13534_vm4, 0, %v2976_v26  ;;  %v2366_v43 = vsel %vm2364_vm1, %v2365_v31, %v9102_v12  ;;  %v2363_v41 = vsel %vm2361_vm0, %v9100_v38, %v2362_v1  ;;  %v2675_v17 = vsel %vm2673_vm5, %v13409_v54, %v2674_v56 }
 0x36f   :  { %v13518_v30 = vpop.f32.mrf.mxu0  ;;  %vm2676_vm14 = vcmp.eq.s32.totalorder %v2671_v28, 2  ;;  %v2879_v58 = vand.u32 3, %v2878_v62  ;;  %v2882_v12 = vxor.u32 2147483648, %v13483_v55  ;;  %v2885_v31 = vxor.u32 2147483648, %v13473_v22 }
 0x370   :  { %17543 = vst [vmem:[#allocation220_spill] sm:$0xff] %v13518_v30  ;;  %v13522_v63 = vpop.f32.mrf.mxu1  ;;  %v2574_v38 = vsel %vm2572_vm13, %v2573_v59, %v9106_v27  ;;  %vm2777_vm4 = vcmp.eq.s32.totalorder %v2775_v61, 0  ;;  %vm2780_vm15 = vcmp.eq.s32.totalorder %v2775_v61, 2  ;;  %vm2776_vm0 = vcmp.lt.s32.totalorder %v2775_v61, 2 }
 0x371   :  { %v13527_v48 = vpop.f32.mrf.mxu0  ;;  %vm2881_vm1 = vcmp.eq.s32.totalorder %v2879_v58, 0  ;;  %vm2884_vm7 = vcmp.eq.s32.totalorder %v2879_v58, 2  ;;  %v6302_v5 = vadd.f32 %v13507_v46, %v6161_v20  ;;  %v6148_v47 = vadd.f32 %v13363_v51, %v13453_v53 }
 0x372   :  { %v13541_v7 = vpop.f32.mrf.mxu1  ;;  %v2886_v14 = vsel %vm2884_vm7, %v2885_v31, %v13483_v55  ;;  %v6295_v33 = vadd.f32 %v13462_v42, %v6150_v52  ;;  %v6307_v44 = vadd.f32 %v13522_v63, %v6170_v0 }
 0x374   :  { %v13557_v49 = vpop.f32.mrf.mxu1  ;;  %v13559_v40 = vpop.f32.mrf.mxu0  ;;  %v6405_v51 = vadd.f32 %v13527_v48, %v6295_v33 }
 0x375   :  { %17550 = vst [vmem:[#allocation107_spill] sm:$0xff] %v13557_v49  ;;  %v2571_v49 = vsel %vm2569_vm12, %v9104_v16, %v2570_v35  ;;  %v2883_v35 = vsel %vm2881_vm1, %v13473_v22, %v2882_v12  ;;  %vm2773_vm12 = vweird.f32 %v17460_v2  ;;  %v17561_v12 = vld [vmem:[#allocation222_spill] sm:$0xff] }
 0x376   :  { %v13568_v23 = vpop.f32.mrf.mxu1  ;;  %v13570_v18 = vpop.f32.mrf.mxu0  ;;  %v2575_v27 = vsel %vm2568_vm8, %v2571_v49, %v2574_v38  ;;  %vm2880_vm8 = vcmp.lt.s32.totalorder %v2879_v58, 2  ;;  %v6293_v31 = vadd.f32 %v17561_v12, %v6148_v47 }
 0x377   :  { %17551 = vst [vmem:[#allocation42_spill] sm:$0xff] %v13568_v23  ;;  %v13674_v25 = vsel %vm2880_vm8, %v2883_v35, %v2886_v14  ;;  %v6413_v46 = vadd.f32 %v13570_v18, %v6302_v5  ;;  %v17562_v18 = vld [vmem:[#allocation210_spill] sm:$0xff] }
 0x378   :  { %v13579_v34 = vpop.f32.mrf.mxu0  ;;  %v13581_v11 = vpop.f32.mrf.mxu1  ;;  %v6183_v38 = vadd.f32 %v17562_v18, %v13576_v6 }
 0x379   :  { %17553 = vst [vmem:[#allocation208_spill] sm:$0xff] %v13581_v11  ;;  %v9108_v11 = vpop.eup %9107  ;;  %v6419_v53 = vadd.f32 %v13579_v34, %v6307_v44 }
 0x37a   :  { %v13594_v23 = vpop.f32.mrf.mxu0  ;;  %v13596_v4 = vpop.f32.mrf.mxu1 }
 0x37b   :  { %17555 = vst [vmem:[#allocation211_spill] sm:$0xff] %v13594_v23  ;;  %17556 = vst [vmem:[#allocation143_spill] sm:$0xff] %v13596_v4  ;;  %v9110_v29 = vpop.eup %9109  ;;  %v2781_v4 = vxor.u32 2147483648, %v9108_v11 }
 0x37c   :  { %v13602_v30 = vpop.f32.mrf.mxu0  ;;  %v9112_v54 = vpop.eup %9111 }
 0x37d   :  { %17557 = vst [vmem:[#allocation229_spill] sm:$0xff] %v13602_v30  ;;  %v2778_v30 = vxor.u32 2147483648, %v9110_v29  ;;  %v2782_v56 = vsel %vm2780_vm15, %v2781_v4, %v9110_v29  ;;  %v2989_v55 = vxor.u32 2147483648, %v9112_v54 }
 0x37e   :  { %v13609_v32 = vpop.f32.mrf.mxu1  ;;  %v13614_v57 = vpop.f32.mrf.mxu0  ;;  %v17570_v6 = vld [vmem:[#allocation42_spill] sm:$0xff] }
 0x37f   :  { %17558 = vst [vmem:[#allocation147_spill] sm:$0xff] %v13609_v32  ;;  %17559 = vst [vmem:[#allocation148_spill] sm:$0xff] %v13614_v57  ;;  %v2678_v57 = vsel %vm2676_vm14, %v2677_v13, %v13417_v3  ;;  %v2982_v32 = vadd.s32 3, %v2978_v39  ;;  %v2367_v3 = vsel %vm2360_vm9, %v2363_v41, %v2366_v43  ;;  %v2779_v1 = vsel %vm2777_vm4, %v9108_v11, %v2778_v30  ;;  %v9114_v13 = vpop.eup %9113 }
 0x380   :  { %v13619_v36 = vpop.f32.mrf.mxu1  ;;  %v13624_v26 = vpop.f32.mrf.mxu0  ;;  %v13653_v11 = vsel %vm2461_vm2, nan, %v2471_v19  ;;  %vm2669_vm9 = vweird.f32 %v17453_v21  ;;  %v2783_v4 = vsel %vm2776_vm0, %v2779_v1, %v2782_v56  ;;  %v13659_v49 = vsel %vm2357_vm3, nan, %v2367_v3  ;;  %v17566_v1 = vld [vmem:[#allocation200_spill] sm:$0xff]  ;;  %v17567_v56 = vld [vmem:[#allocation191_spill] sm:$0xff] }
 0x381   :  { %17560 = vst [vmem:[#allocation133_spill] sm:$0xff] %v13624_v26  ;;  %v2679_v26 = vsel %vm2672_vm6, %v2675_v17, %v2678_v57  ;;  %v13647_v41 = vand.u32 3, %v2982_v32  ;;  %v2986_v22 = vxor.u32 2147483648, %v9114_v13  ;;  %v13670_v21 = vsel %vm2565_vm11, nan, %v2575_v27  ;;  %v17572_v52 = vld [vmem:[#allocation208_spill] sm:$0xff] }
 0x382   :  { %v13629_v23 = vpop.f32.mrf.mxu1  ;;  %v13635_v62 = vpop.f32.mrf.mxu0  ;;  %v13672_v2 = vsel %vm2669_vm9, nan, %v2679_v26  ;;  %v6159_v19 = vadd.f32 %v13398_v15, %v13490_v50  ;;  %v13678_v59 = vsel %vm2773_vm12, nan, %v2783_v4  ;;  %v6772_v57 = vsel %vm16850_vm10, %v8903_v60, 0  ;;  %v17569_v27 = vld [vmem:[#allocation143_spill] sm:$0xff] }
 0x383   :  { %vm2985_vm2 = vcmp.eq.s32.totalorder %v13647_v41, 0  ;;  %vm2988_vm13 = vcmp.eq.s32.totalorder %v13647_v41, 2  ;;  %v6172_v50 = vadd.f32 %v13460_v10, %v13539_v8  ;;  %vm2984_vm3 = vcmp.lt.s32.totalorder %v13647_v41, 2 }
 0x384   :  { %v13639_v39 = vpop.f32.mrf.mxu1  ;;  %v13641_v16 = vpop.f32.mrf.mxu0  ;;  %v6300_v15 = vadd.f32 %v13494_v45, %v6159_v19  ;;  %v2987_v43 = vsel %vm2985_vm2, %v9112_v54, %v2986_v22  ;;  %v2990_v17 = vsel %vm2988_vm13, %v2989_v55, %v9114_v13  ;;  %v6181_v10 = vadd.f32 %v13492_v9, %v13550_v24  ;;  %v17563_v54 = vld [vmem:[#allocation107_spill] sm:$0xff]  ;;  %v17568_v13 = vld [vmem:[#allocation220_spill] sm:$0xff]  ;;  %v17571_v55 = vld [vmem:[#allocation229_spill] sm:$0xff] }
 0x385   :  { %v6309_v45 = vadd.f32 %v13541_v7, %v6172_v50  ;;  %v13701_v26 = vand.u32 4294901760, %v6772_v57  ;;  %v6520_v42 = vadd.f32 %v13619_v36, %v6413_v46  ;;  %v17564_v24 = vld [vmem:[#allocation211_spill] sm:$0xff]  ;;  %vm2877_vm11 = vweird.f32 %v17566_v1 }
 0x386   :  { %v13649_v30 = vpop.f32.mrf.mxu1  ;;  %v6640_v28 = vpop.f32.mrf.mxu0  ;;  %v6411_v8 = vadd.f32 %v13559_v40, %v6300_v15  ;;  %v6314_v9 = vadd.f32 %v17563_v54, %v6181_v10  ;;  %v17565_v3 = vld [vmem:[#allocation147_spill] sm:$0xff]  ;;  %vm2981_vm5 = vweird.f32 %v17567_v56  ;;  %v6403_v48 = vadd.f32 %v17568_v13, %v6293_v31 }
 0x387   :  { %v6421_v7 = vadd.f32 %v17564_v24, %v6309_v45  ;;  %v6511_v34 = vadd.f32 %v17569_v27, %v6405_v51  ;;  %v6527_v36 = vadd.f32 %v13629_v23, %v6419_v53  ;;  %v6641_v35 = vadd.f32 %v6640_v28, %v6520_v42  ;;  %v8904_v23 = vld [vmem:[%s16632_s4 + $0x28] sm:$0xff]  ;;  %v17573_v28 = vld [vmem:[#allocation148_spill] sm:$0xff] }
 0x388   :  { %v13666_v29 = vpop.f32.mrf.mxu1  ;;  %v6645_v32 = vpop.f32.mrf.mxu0  ;;  %v6518_v40 = vadd.f32 %v17565_v3, %v6411_v8  ;;  %v6316_v22 = vadd.f32 %v17570_v6, %v6183_v38  ;;  %v6427_v60 = vadd.f32 %v17571_v55, %v6314_v9  ;;  %v6509_v0 = vadd.f32 %v17572_v52, %v6403_v48  ;;  %v8906_v27 = vld [vmem:[%s16632_s4 + $0x38] sm:$0xff] }
 0x389   :  { %v6529_v20 = vadd.f32 %v13639_v39, %v6421_v7  ;;  %v6634_v5 = vadd.f32 %v13635_v62, %v6511_v34  ;;  %v6646_v50 = vadd.f32 %v6645_v32, %v6527_v36  ;;  %v17574_v39 = vld [vmem:[#allocation133_spill] sm:$0xff]  ;;  %v2991_v62 = vsel %vm2984_vm3, %v2987_v43, %v2990_v17  ;;  %v17576_v34 = vld [vmem:[#allocation170_spill] sm:$0xff] }
 0x38a   :  { %v6732_v61 = vpop.f32.mrf.mxu1  ;;  %v6647_v37 = vpop.f32.mrf.mxu0  ;;  %v6639_v19 = vadd.f32 %v13641_v16, %v6518_v40  ;;  %v6429_v33 = vadd.f32 %v17573_v28, %v6316_v22  ;;  %v6536_v44 = vadd.f32 %v13649_v30, %v6427_v60  ;;  %v6632_v45 = vadd.f32 %v17574_v39, %v6509_v0  ;;  %v17575_v7 = vld [vmem:[#allocation209_spill] sm:$0xff] }
 0x38b   :  { %v6648_v46 = vadd.f32 %v6647_v37, %v6529_v20  ;;  %v6775_v42 = vsel %vm16850_vm10, %v8904_v23, 0  ;;  %v17577_v36 = vmov 920167782  }
 0x38c   :  { %v6734_v58 = vpop.f32.mrf.mxu1  ;;  %v6652_v14 = vpop.f32.mrf.mxu0  ;;  %v6538_v32 = vadd.f32 %v13666_v29, %v6429_v33  ;;  %v6733_v18 = vadd.f32 %v6732_v61, %v6632_v45  ;;  %v8905_v29 = vld [vmem:[%s16632_s4 + $0x30] sm:$0xff]  ;;  %v13749_v17 = vand.u32 4294901760, %v6775_v42 }
 0x38d   :  { %v6735_v16 = vadd.f32 %v6734_v58, %v6634_v5  ;;  %v6653_v51 = vadd.f32 %v6652_v14, %v6536_v44  ;;  %v13736_v58 = vsub.f32 %v6772_v57, %v13701_v26  ;;  %v17578_v14 = vld [vmem:[#allocation212_spill] sm:$0xff]  ;;  %v17580_v44 = vld [vmem:[#allocation218_spill] sm:$0xff] }
 0x38e   :  { %v6739_v63 = vpop.f32.mrf.mxu1  ;;  %v6654_v8 = vpop.f32.mrf.mxu0  ;;  %v6758_v3 = vmul.f32 %v6733_v18, %v17575_v7  ;;  %v13777_v55 = vsub.f32 %v6775_v42, %v13749_v17 }
 0x38f   :  { %v6740_v10 = vadd.f32 %v6739_v63, %v6639_v19  ;;  %v6655_v54 = vadd.f32 %v6654_v8, %v6538_v32  ;;  %v6759_v61 = vmul.f32 %v6735_v16, %v13659_v49  ;;  %v6858_v49 = vand.u32 4294901760, %v13736_v58  ;;  %v17582_v32 = vld [vmem:[#allocation215_spill] sm:$0xff] }
 0x390   :  { %v6741_v4 = vpop.f32.mrf.mxu1  ;;  %v13789_v0 = vand.u32 4294901760, %v6758_v3  ;;  %v6869_v16 = vand.u32 4294901760, %v13777_v55 }
 0x391   :  { %v6742_v15 = vadd.f32 %v6741_v4, %v6641_v35  ;;  %v6760_v38 = vmul.f32 %v6740_v10, %v13653_v11  ;;  %v3022_v35 = vshll.u32 %v17577_v36, %v17576_v34  ;;  %v17579_v4 = vmov 1326507024   ;;  %v17584_v34 = vld [vmem:[#allocation111_spill] sm:$0xff] }
 0x392   :  { %v6746_v47 = vpop.f32.mrf.mxu1  ;;  %v3023_v6 = vshrl.u32 %v17579_v4, %v17578_v14  ;;  %v13774_v22 = vand.u32 4294901760, %v6759_v61 }
 0x393   :  { %v6747_v12 = vadd.f32 %v6746_v47, %v6646_v50  ;;  %v6761_v30 = vmul.f32 %v6742_v15, %v13670_v21  ;;  %v2888_v21 = vsel %vm2877_vm11, nan, %v13674_v25  ;;  %v6778_v25 = vsel %vm16850_vm10, %v8905_v29, 0 }
 0x394   :  { %v6748_v31 = vpop.f32.mrf.mxu1  ;;  %v13760_v1 = vand.u32 4294901760, %v6760_v38  ;;  %v13787_v52 = vand.u32 4294901760, %v6778_v25  ;;  %v6859_v50 = vsub.f32 %v13736_v58, %v6858_v49  ;;  %v6781_v15 = vsel %vm16850_vm10, %v8906_v27, 0 }
 0x395   :  { %v6749_v53 = vadd.f32 %v6748_v31, %v6648_v46  ;;  %v6762_v37 = vmul.f32 %v6747_v12, %v13672_v2  ;;  %v2992_v2 = vsel %vm2981_vm5, nan, %v2991_v62  ;;  %v13756_v40 = vand.u32 4294901760, %v6761_v30  ;;  %v17581_v46 = vld [vmem:[#allocation217_spill] sm:$0xff] }
 0x396   :  { %v6753_v63 = vpop.f32.mrf.mxu1  ;;  %v13799_v47 = vsub.f32 %v6760_v38, %v13760_v1  ;;  %v3021_v10 = vor.u32 %v17581_v46, %v17580_v44  ;;  %v3024_v39 = vor.u32 %v3023_v6, %v3022_v35  ;;  %v13810_v45 = vsub.f32 %v6759_v61, %v13774_v22  ;;  %v17585_v35 = vld [vmem:[#allocation202_spill] sm:$0xff]  ;;  %v17586_v44 = vld [vmem:[#allocation205_spill] sm:$0xff] }
 0x397   :  { %v6763_v41 = vmul.f32 %v6749_v53, %v13678_v59  ;;  %v6754_v43 = vadd.f32 %v6753_v63, %v6653_v51  ;;  %v13751_v11 = vand.u32 4294901760, %v6762_v37  ;;  %v13792_v5 = vsub.f32 %v6761_v30, %v13756_v40 }
 0x398   :  { %v6755_v57 = vpop.f32.mrf.mxu1  ;;  %v13818_v31 = vsub.f32 %v6778_v25, %v13787_v52  ;;  %v13820_v62 = vand.u32 4294901760, %v6781_v15  ;;  %v3100_v51 = vand.u32 2139095040, %v17582_v32  ;;  %v13824_v53 = vsub.f32 %v6758_v3, %v13789_v0 }
 0x399   :  { %v13753_v59 = vand.u32 4294901760, %v6763_v41  ;;  %v6764_v9 = vmul.f32 %v6754_v43, %v2888_v21  ;;  %v6756_v24 = vadd.f32 %v6755_v57, %v6655_v54  ;;  %v13780_v60 = vsub.f32 %v6762_v37, %v13751_v11  ;;  %v17583_v54 = vld [vmem:[#allocation213_spill] sm:$0xff] }
 0x39a   :  { %v6950_v18 = vand.u32 4294901760, %v13792_v5  ;;  %v6956_v30 = vand.u32 4294901760, %v13799_v47  ;;  %v6860_v37 = vand.u32 4294901760, %v6859_v50  ;;  %vm3025_vm14 = vcmp.lt.s32.totalorder %v17583_v54, 1 }
 0x39b   :  { %v13763_v56 = vsub.f32 %v6763_v41, %v13753_v59  ;;  %v13765_v13 = vand.u32 4294901760, %v6764_v9  ;;  %v6765_v48 = vmul.f32 %v6756_v24, %v2992_v2  ;;  %v6944_v8 = vand.u32 4294901760, %v13780_v60 }
 0x39c   :  { %vm3028_vm4 = vcmp.lt.s32.totalorder %v17583_v54, 4  ;;  %v6870_v41 = vsub.f32 %v13777_v55, %v6869_v16  ;;  %v6962_v43 = vand.u32 4294901760, %v13810_v45  ;;  %v16819_v21 = vand.u32 4294901760, %v13818_v31 }
 0x39d   :  { %v13783_v20 = vsub.f32 %v6764_v9, %v13765_v13  ;;  %v13785_v19 = vand.u32 4294901760, %v6765_v48  ;;  %v6938_v33 = vand.u32 4294901760, %v13763_v56  ;;  %v6945_v61 = vsub.f32 %v13780_v60, %v6944_v8 }
 0x39e   :  { %v13852_v2 = vsub.f32 %v6781_v15, %v13820_v62  ;;  %v3034_v57 = vsel %vm3028_vm4, %v3021_v10, 920167782  ;;  %v6968_v9 = vand.u32 4294901760, %v13824_v53  ;;  %v6951_v7 = vsub.f32 %v13792_v5, %v6950_v18 }
 0x39f   :  { %v6932_v23 = vand.u32 4294901760, %v13783_v20  ;;  %v13803_v28 = vsub.f32 %v6765_v48, %v13785_v19  ;;  %6808 = vmatprep.subr.mxu0 %v13785_v19  ;;  %v6939_v38 = vsub.f32 %v13763_v56, %v6938_v33  ;;  %v3038_v3 = vsel %vm3028_vm4, %v3024_v39, 1326507024 }
 0x3a0   :  { %6810 = vmatpush1.msra.mxu0 %v13765_v13  ;;  %v3101_v25 = vshrl.u32 %v3100_v51, 23  ;;  %v6957_v27 = vsub.f32 %v13799_v47, %v6956_v30  ;;  %vm3027_vm15 = vcmp.lt.s32.totalorder %v17583_v54, 3  ;;  %v3033_v6 = vsel %vm3025_vm14, %v17585_v35, %v17584_v34 }
 0x3a1   :  { %6812 = vmatprep.subr.mxu0 %v13753_v59  ;;  %v6926_v12 = vand.u32 4294901760, %v13803_v28  ;;  %v6933_v42 = vsub.f32 %v13783_v20, %v6932_v23  ;;  %v6940_v48 = vand.u32 4294901760, %v6939_v38  ;;  %v6871_v50 = vand.u32 4294901760, %v6870_v41 }
 0x3a2   :  { %6814 = vmatpush1.msra.mxu0 %v13751_v11  ;;  %v6963_v15 = vsub.f32 %v13810_v45, %v6962_v43  ;;  %v3035_v46 = vsel %vm3027_vm15, %v17586_v44, %v3034_v57  ;;  %v6946_v39 = vand.u32 4294901760, %v6945_v61  ;;  %v6881_v51 = vsub.f32 %v13818_v31, %v16819_v21 }
 0x3a3   :  { %6816 = vmatprep.subr.mxu0 %v13756_v40  ;;  %v6927_v63 = vsub.f32 %v13803_v28, %v6926_v12  ;;  %v6934_v24 = vand.u32 4294901760, %v6933_v42  ;;  %v6891_v42 = vand.u32 4294901760, %v13852_v2  ;;  %v17587_v38 = vmov 0.0  }
 0x3a4   :  { %6818 = vmatpush1.msra.mxu0 %v13760_v1  ;;  %v6952_v41 = vand.u32 4294901760, %v6951_v7  ;;  %vm3026_vm6 = vcmp.lt.s32.totalorder %v17583_v54, 2  ;;  %v8843_v61 = vadd.s32 4294967169, %v3101_v25  ;;  %v6958_v57 = vand.u32 4294901760, %v6957_v27 }
 0x3a5   :  { %6820 = vmatprep.subr.mxu0 %v13774_v22  ;;  %v6928_v29 = vand.u32 4294901760, %v6927_v63  ;;  %v3039_v63 = vsel %vm3027_vm15, %v3021_v10, %v3038_v3  ;;  %v6964_v10 = vand.u32 4294901760, %v6963_v15  ;;  %v17588_v3 = vld [vmem:[#allocation206_spill] sm:$0xff]  ;;  %v6882_v25 = vand.u32 4294901760, %v6881_v51 }
 0x3a6   :  { %6822 = vmatpush1.msra.mxu0 %v13789_v0  ;;  %v6892_v27 = vsub.f32 %v13852_v2, %v6891_v42 }
 0x3a7   :  { %6861 = vmatmul.mubr.f32.vlgmr.msra.gmra.mxu0 %v6860_v37  ;;  %6929 = vmatprep.subr.mxu1 %v6928_v29  ;;  %v3037_v37 = vsel %vm3025_vm14, %v17584_v34, %v17586_v44  ;;  %v6969_v29 = vsub.f32 %v13824_v53, %v6968_v9 }
 0x3a8   :  { %7059 = vmatprep.subr.mxu0 %v13803_v28  ;;  %6935 = vmatpush1.msra.mxu1 %v6934_v24  ;;  %v3036_v24 = vsel %vm3026_vm6, %v3033_v6, %v3035_v46  ;;  %v3040_v7 = vsel %vm3026_vm6, %v3037_v37, %v3039_v63  ;;  %v3107_v37 = vadd.s32 1, %v8843_v61  ;;  %v3030_v61 = vsel %vm3028_vm4, %v17586_v44, 2102212464 }
 0x3a9   :  { %7062 = vmatpush1.msra.mxu0 %v13783_v20  ;;  %6941 = vmatprep.subr.mxu1 %v6940_v48  ;;  %v17589_v48 = vor.u32 8388608, %v17588_v3 }
 0x3aa   :  { %7065 = vmatprep.subr.mxu0 %v13763_v56  ;;  %6866 = vmatprep.mubr.f32.mxu0 %v17587_v38  ;;  %vm3108_vm0 = vcmp.gt.s32.totalorder %v3107_v37, 0 }
 0x3ab   :  { %6947 = vmatpush1.msra.mxu1 %v6946_v39  ;;  %7068 = vmatpush1.msra.mxu0 %v13780_v60  ;;  %v13902_v21 = vshll.u32 %v17589_v48, 8  ;;  %v17590_v39 = vld [vmem:[#allocation214_spill] sm:$0xff]  ;;  %v3109_v44 = vsel %vm3108_vm0, %v3107_v37, 0  ;;  %v16822_v48 = vand.u32 2147483647, %v17582_v32  ;;  %v17601_v37 = vld [vmem:[#allocation56_spill] sm:$0xff] }
 0x3ac   :  { %6872 = vmatmul.mubr.f32.gmra.mxu0 %v6871_v50  ;;  %6953 = vmatprep.subr.mxu1 %v6952_v41  ;;  %v3204_v6 = vand.u32 2139095040, %v17590_v39  ;;  %v6970_v50 = vand.u32 4294901760, %v6969_v29  ;;  %v6893_v41 = vand.u32 4294901760, %v6892_v27  ;;  %v17595_v27 = vld [vmem:[#allocation54_spill] sm:$0xff] }
 0x3ad   :  { %7071 = vmatprep.subr.mxu0 %v13792_v5  ;;  %6959 = vmatpush1.msra.mxu1 %v6958_v57  ;;  %v13911_v15 = vmul.u32.u64.low %v13902_v21, %v3036_v24  ;;  %v13912_v46 = vmul.u32.u64.high %v13902_v21, %v3036_v24, %v13911_v15  ;;  %v13918_v51 = vmul.u32.u64.low %v13902_v21, %v3040_v7  ;;  %v13919_v63 = vmul.u32.u64.high %v13902_v21, %v3040_v7, %v13918_v51 }
 0x3ae   :  { %7074 = vmatpush1.msra.mxu0 %v13799_v47  ;;  %6965 = vmatprep.subr.mxu1 %v6964_v10  ;;  %v3205_v29 = vshrl.u32 %v3204_v6, 23  ;;  %v17593_v57 = vmov 683565275   ;;  %v3104_v60 = vand.u32 8388607, %v16822_v48 }
 0x3af   :  { %17591 = vst [vmem:[#allocation83_spill] sm:$0xff] %v13911_v15  ;;  %7077 = vmatprep.subr.mxu0 %v13810_v45  ;;  %6877 = vmatprep.mubr.f32.mxu0 %v17587_v38  ;;  %17592 = vst [vmem:[#allocation153_spill] sm:$0xff] %v13919_v63  ;;  %v3009_v24 = vshrl.u32 %v17593_v57, %v17578_v14  ;;  %v3051_v14 = vadd.s32 1, %v13912_v46  ;;  %vm3050_vm1 = vc.u32 %v13919_v63, %v13911_v15  ;;  %v17602_v51 = vmov 2131351028  }
 0x3b0   :  { %6971 = vmatpush1.msra.mxu1 %v6970_v50  ;;  %7080 = vmatpush1.msra.mxu0 %v13824_v53  ;;  %v8847_v10 = vadd.s32 4294967169, %v3205_v29  ;;  %v3105_v45 = vor.u32 8388608, %v3104_v60 }
 0x3b1   :  { %6883 = vmatmul.mubr.f32.gmra.mxu0 %v6882_v25  ;;  %7006 = vmatmul.mubr.f32.vlgmr.msra.gmra.mxu1 %v13701_v26  ;;  %v3029_v28 = vsel %vm3025_vm14, %v3009_v24, %v17585_v35  ;;  %v13953_v35 = vand.u32 31, %v3109_v44  ;;  %v3052_v3 = vsel %vm3050_vm1, %v3051_v14, %v13912_v46  ;;  %v17594_v25 = vld [vmem:[#allocation30_spill] sm:$0xff]  ;;  %v17600_v46 = vld [vmem:[#allocation31_spill] sm:$0xff] }
 0x3b2   :  { %7171 = vmatprep.subr.mxu1 %v13785_v19  ;;  %7282 = vmatprep.subr.mxu0 %v6926_v12  ;;  %v3031_v12 = vsel %vm3027_vm15, %v17584_v34, %v3030_v61  ;;  %v3211_v7 = vadd.s32 1, %v8847_v10  ;;  %v1104_v6 = vadd.f32 %v17595_v27, %v17594_v25  ;;  %v1109_v53 = vadd.f32 %v17601_v37, %v17600_v46  ;;  %v17603_v24 = vld [vmem:[#allocation59_spill] sm:$0xff] }
 0x3b3   :  { %7173 = vmatpush1.msra.mxu1 %v13765_v13  ;;  %6888 = vmatprep.mubr.f32.mxu0 %v17587_v38  ;;  %v3032_v34 = vsel %vm3026_vm6, %v3029_v28, %v3031_v12  ;;  %v13972_v20 = vsub.s32 32, %v13953_v35 }
 0x3b4   :  { %7175 = vmatprep.subr.mxu1 %v13753_v59  ;;  %7011 = vmatprep.mubr.f32.mxu1 %v17587_v38  ;;  %v3048_v54 = vmul.u32 %v13902_v21, %v3032_v34  ;;  %vm3212_vm7 = vcmp.gt.s32.totalorder %v3211_v7, 0  ;;  %v17599_v21 = vmov 2102212464   ;;  %v14032_v28 = vadd.f32 %v17603_v24, %v1109_v53 }
 0x3b5   :  { %7177 = vmatpush1.msra.mxu1 %v13751_v11  ;;  %6894 = vmatmul.mubr.f32.gmra.mxu0 %v6893_v41  ;;  %v3124_v5 = vshrl.u32 %v17577_v36, %v13972_v20  ;;  %v3123_v50 = vshll.u32 %v17599_v21, %v13953_v35  ;;  %v3127_v34 = vshrl.u32 %v17579_v4, %v13972_v20 }
 0x3b6   :  { %7013 = vmatmul.mubr.f32.gmra.mxu1 %v13749_v17  ;;  %7179 = vmatprep.subr.mxu1 %v13756_v40  ;;  %v13977_v56 = vadd.s32 %v3052_v3, %v3048_v54  ;;  %17604 = vst [vmem:[#allocation22_spill] sm:$0xff] %v14032_v28  ;;  %v17608_v3 = vld [vmem:[#allocation58_spill] sm:$0xff] }
 0x3b7   :  { %7181 = vmatpush1.msra.mxu1 %v13760_v1  ;;  %7018 = vmatprep.mubr.f32.mxu1 %v17587_v38  ;;  %v14025_v29 = vor.u32 %v3124_v5, %v3123_v50 }
 0x3b8   :  { %7183 = vmatprep.subr.mxu1 %v13774_v22  ;;  %7113 = vmatprep.mubr.f32.mxu0 %v17587_v38  ;;  %v3054_v47 = vadd.s32 536870912, %v13977_v56 }
 0x3b9   :  { %7185 = vmatpush1.msra.mxu1 %v13789_v0  ;;  %7116 = vmatmul.mubr.f32.vlgmr.msra.gmra.mxu0 %v13736_v58  ;;  %v3118_v58 = vshrl.u32 %v17602_v51, %v13972_v20 }
 0x3ba   :  { %7020 = vmatmul.mubr.f32.gmra.mxu1 %v13787_v52  ;;  %7286 = vmatpush1.msra.mxu0 %v6932_v23  ;;  %v14035_v12 = vshrl.u32 %v3054_v47, 30  ;;  %v17609_v47 = vld [vmem:[#allocation33_spill] sm:$0xff] }
 0x3bb   :  { %7397 = vmatprep.subr.mxu1 %v13785_v19  ;;  %7290 = vmatprep.subr.mxu0 %v6938_v33  ;;  %v17596_v19 = vld [vmem:[#allocation57_spill] sm:$0xff]  ;;  %v16824_v33 = vand.u32 2147483647, %v17590_v39 }
 0x3bc   :  { %7294 = vmatpush1.msra.mxu0 %v6944_v8  ;;  %7025 = vmatprep.mubr.f32.mxu1 %v17587_v38  ;;  %v13980_v23 = vadd.f32 %v17596_v19, %v1104_v6  ;;  %v13995_v8 = vsel %vm3212_vm7, %v3211_v7, 0  ;;  %17605 = vst [vmem:[#allocation12_spill] sm:$0xff] %v14035_v12  ;;  %v14045_v7 = vshll.u32 %v3105_v45, 8  ;;  %v3126_v6 = vshll.u32 %v17577_v36, %v13953_v35 }
 0x3bd   :  { %7121 = vmatprep.mubr.f32.mxu0 %v17587_v38  ;;  %7298 = vmatprep.subr.mxu0 %v6950_v18  ;;  %v14019_v41 = vand.u32 31, %v13995_v8  ;;  %v14029_v61 = vand.u32 8388607, %v16824_v33  ;;  %v3412_v19 = vand.u32 2139095040, %v14032_v28  ;;  %v3056_v60 = vshll.u32 %v14035_v12, 30 }
 0x3be   :  { %17597 = vst [vmem:[#allocation138_spill] sm:$0xff] %v13980_v23  ;;  %7027 = vmatmul.mubr.f32.gmra.mxu1 %v13820_v62  ;;  %7124 = vmatmul.mubr.f32.gmra.mxu0 %v13777_v55  ;;  %v3308_v18 = vand.u32 2139095040, %v13980_v23  ;;  %17606 = vst [vmem:[#allocation23_spill] sm:$0xff] %v14045_v7  ;;  %v16821_v5 = vand.u32 2147483647, %v13980_v23 }
 0x3bf   :  { %7302 = vmatpush1.msra.mxu0 %v6956_v30  ;;  %7129 = vmatprep.mubr.f32.mxu0 %v17587_v38  ;;  %v17598_v30 = vmov 2475754826   ;;  %v3413_v53 = vshrl.u32 %v3412_v19, 23 }
 0x3c0   :  { %7306 = vmatprep.subr.mxu0 %v6962_v43  ;;  %7218 = vmatprep.mubr.f32.mxu1 %v17587_v38  ;;  %v3115_v43 = vshrl.u32 %v17598_v30, %v13972_v20  ;;  %v3309_v10 = vshrl.u32 %v3308_v18, 23  ;;  %v17610_v18 = vld [vmem:[#allocation60_spill] sm:$0xff] }
 0x3c1   :  { %7310 = vmatpush1.msra.mxu0 %v6968_v9  ;;  %v14012_v9 = vshrl.u32 %v3109_v44, 5  ;;  %v3120_v44 = vshll.u32 %v17602_v51, %v13953_v35  ;;  %v14070_v45 = vadd.f32 %v17610_v18, %v17609_v47 }
 0x3c2   :  { %7132 = vmatmul.mubr.f32.gmra.mxu0 %v13818_v31  ;;  %7222 = vmatmul.mubr.f32.vlgmr.msra.gmra.mxu1 %v6858_v49  ;;  %v3121_v49 = vshrl.u32 %v17599_v21, %v13972_v20 }
 0x3c3   :  { %7399 = vmatpush1.msra.mxu1 %v13765_v13  ;;  %7137 = vmatprep.mubr.f32.mxu0 %v17587_v38  ;;  %v3114_v13 = vshll.u32 %v17593_v57, %v13953_v35  ;;  %vm3132_vm9 = vcmp.lt.s32.totalorder %v14012_v9, 4  ;;  %vm3129_vm12 = vcmp.lt.s32.totalorder %v14012_v9, 1  ;;  %vm3131_vm8 = vcmp.lt.s32.totalorder %v14012_v9, 3 }
 0x3c4   :  { %7401 = vmatprep.subr.mxu1 %v13753_v59  ;;  %7227 = vmatprep.mubr.f32.mxu1 %v17587_v38  ;;  %v3117_v59 = vshll.u32 %v17598_v30, %v13953_v35  ;;  %v3122_v27 = vor.u32 %v3121_v49, %v3120_v44  ;;  %v3138_v55 = vsel %vm3132_vm9, %v14025_v29, 920167782  ;;  %v3113_v35 = vshrl.u32 %v17593_v57, %v13972_v20 }
 0x3c5   :  { %7403 = vmatpush1.msra.mxu1 %v13751_v11  ;;  %v3116_v14 = vor.u32 %v3115_v43, %v3114_v13  ;;  %v17607_v11 = vld [vmem:[#allocation32_spill] sm:$0xff]  ;;  %v3128_v43 = vor.u32 %v3127_v34, %v3126_v6  ;;  %vm3130_vm2 = vcmp.lt.s32.totalorder %v14012_v9, 2  ;;  %v3227_v49 = vshll.u32 %v17599_v21, %v14019_v41 }
 0x3c6   :  { %7405 = vmatprep.subr.mxu1 %v13756_v40  ;;  %7140 = vmatmul.mubr.f32.gmra.mxu0 %v13852_v2  ;;  %v14049_v54 = vadd.f32 %v17608_v3, %v17607_v11  ;;  %v3119_v25 = vor.u32 %v3118_v58, %v3117_v59  ;;  %v3216_v40 = vsub.s32 32, %v14019_v41  ;;  %v3230_v13 = vshll.u32 %v17577_v36, %v14019_v41 }
 0x3c7   :  { %7231 = vmatmul.mubr.f32.gmra.mxu1 %v6869_v16  ;;  %7343 = vmatprep.mubr.f32.mxu0 %v17587_v38  ;;  %v3209_v16 = vor.u32 8388608, %v14029_v61  ;;  %v3134_v59 = vsel %vm3132_vm9, %v3122_v27, 2102212464  ;;  %v3224_v34 = vshll.u32 %v17602_v51, %v14019_v41  ;;  %v3218_v11 = vshll.u32 %v17593_v57, %v14019_v41 }
 0x3c8   :  { %7407 = vmatpush1.msra.mxu1 %v13760_v1  ;;  %7236 = vmatprep.mubr.f32.mxu1 %v17587_v38  ;;  %v8851_v1 = vadd.s32 4294967169, %v3309_v10  ;;  %v3137_v50 = vsel %vm3129_vm12, %v3116_v14, %v3119_v25  ;;  %v3228_v46 = vshrl.u32 %v17577_v36, %v3216_v40  ;;  %v3231_v20 = vshrl.u32 %v17579_v4, %v3216_v40 }
 0x3c9   :  { %7409 = vmatprep.subr.mxu1 %v13774_v22  ;;  %v17611_v22 = vand.u32 4294901760, %v13818_v31  ;;  %v3219_v37 = vshrl.u32 %v17598_v30, %v3216_v40  ;;  %v3225_v31 = vshrl.u32 %v17599_v21, %v3216_v40  ;;  %v3222_v58 = vshrl.u32 %v17602_v51, %v3216_v40 }
 0x3ca   :  { %7411 = vmatpush1.msra.mxu1 %v13789_v0  ;;  %7345 = vmatmul.mubr.f32.vlgmr.msra.gmra.mxu0 %v13701_v26  ;;  %v3139_v0 = vsel %vm3131_vm8, %v3122_v27, %v3138_v55  ;;  %v3315_v24 = vadd.s32 1, %v8851_v1  ;;  %v3214_v10 = vshrl.u32 %v13995_v8, 5  ;;  %v3221_v3 = vshll.u32 %v17598_v30, %v14019_v41 }
 0x3cb   :  { %7240 = vmatmul.mubr.f32.gmra.mxu1 %v17611_v22  ;;  %7350 = vmatprep.mubr.f32.mxu0 %v17587_v38  ;;  %v3140_v44 = vsel %vm3130_vm2, %v3137_v50, %v3139_v0  ;;  %v3229_v6 = vor.u32 %v3228_v46, %v3227_v49  ;;  %v3232_v55 = vor.u32 %v3231_v20, %v3230_v13  ;;  %v3142_v19 = vsel %vm3132_vm9, %v3128_v43, 1326507024 }
 0x3cc   :  { %7245 = vmatprep.mubr.f32.mxu1 %v17587_v38  ;;  %v3133_v8 = vsel %vm3129_vm12, %v3113_v35, %v3116_v14  ;;  %v3226_v2 = vor.u32 %v3225_v31, %v3224_v34  ;;  %v3135_v1 = vsel %vm3131_vm8, %v3119_v25, %v3134_v59  ;;  %v3220_v47 = vor.u32 %v3219_v37, %v3218_v11 }
 0x3cd   :  { %v3223_v18 = vor.u32 %v3222_v58, %v3221_v3  ;;  %vm3316_vm13 = vcmp.gt.s32.totalorder %v3315_v24, 0  ;;  %v3141_v41 = vsel %vm3129_vm12, %v3119_v25, %v3122_v27  ;;  %vm3236_vm3 = vcmp.lt.s32.totalorder %v3214_v10, 4 }
 0x3ce   :  { %7352 = vmatmul.mubr.f32.gmra.mxu0 %v13749_v17  ;;  %v14122_v22 = vmul.u32.u64.low %v14045_v7, %v3140_v44  ;;  %v14123_v50 = vmul.u32.u64.high %v14045_v7, %v3140_v44, %v14122_v22  ;;  %v3143_v14 = vsel %vm3131_vm8, %v14025_v29, %v3142_v19  ;;  %v3217_v35 = vshrl.u32 %v17593_v57, %v3216_v40  ;;  %v17612_v29 = vld [vmem:[#allocation61_spill] sm:$0xff] }
 0x3cf   :  { %7249 = vmatmul.mubr.f32.gmra.mxu1 %v6891_v42  ;;  %7357 = vmatprep.mubr.f32.mxu0 %v17587_v38  ;;  %v8855_v42 = vadd.s32 4294967169, %v3413_v53  ;;  %v3242_v43 = vsel %vm3236_vm3, %v3229_v6, 920167782  ;;  %v3246_v0 = vsel %vm3236_vm3, %v3232_v55, 1326507024  ;;  %vm3233_vm11 = vcmp.lt.s32.totalorder %v3214_v10, 1 }
 0x3d0   :  { %7444 = vmatprep.mubr.f32.mxu1 %v17587_v38  ;;  %v3238_v25 = vsel %vm3236_vm3, %v3226_v2, 2102212464  ;;  %v3317_v27 = vsel %vm3316_vm13, %v3315_v24, 0  ;;  %vm3235_vm5 = vcmp.lt.s32.totalorder %v3214_v10, 3  ;;  %v3237_v20 = vsel %vm3233_vm11, %v3217_v35, %v3220_v47  ;;  %v17614_v24 = vld [vmem:[#allocation63_spill] sm:$0xff] }
 0x3d1   :  { %v3419_v46 = vadd.s32 1, %v8855_v42  ;;  %v3241_v37 = vsel %vm3233_vm11, %v3220_v47, %v3223_v18  ;;  %v3243_v31 = vsel %vm3235_vm5, %v3226_v2, %v3242_v43  ;;  %v3247_v53 = vsel %vm3235_vm5, %v3229_v6, %v3246_v0 }
 0x3d2   :  { %7359 = vmatmul.mubr.f32.gmra.mxu0 %v13787_v52  ;;  %v14136_v58 = vadd.f32 %v17612_v29, %v14049_v54  ;;  %v3239_v40 = vsel %vm3235_vm5, %v3223_v18, %v3238_v25  ;;  %v3312_v49 = vand.u32 8388607, %v16821_v5  ;;  %v3319_v13 = vand.u32 31, %v3317_v27 }
 0x3d3   :  { %7446 = vmatmul.mubr.f32.vlgmr.msra.gmra.mxu1 %v13701_v26  ;;  %7364 = vmatprep.mubr.f32.mxu0 %v17587_v38  ;;  %v3245_v26 = vsel %vm3233_vm11, %v3223_v18, %v3226_v2  ;;  %v14144_v59 = vadd.f32 %v17614_v24, %v14070_v45  ;;  %vm3234_vm14 = vcmp.lt.s32.totalorder %v3214_v10, 2  ;;  %vm3420_vm4 = vcmp.gt.s32.totalorder %v3419_v46, 0  ;;  %v17620_v18 = vld [vmem:[#allocation34_spill] sm:$0xff] }
 0x3d4   :  { %7451 = vmatprep.mubr.f32.mxu1 %v17587_v38  ;;  %17613 = vst [vmem:[#allocation13_spill] sm:$0xff] %v14136_v58  ;;  %v14150_v54 = vsub.s32 %v13977_v56, %v3056_v60  ;;  %v3248_v44 = vsel %vm3234_vm14, %v3245_v26, %v3247_v53  ;;  %v14154_v34 = vshll.u32 %v3209_v16, 8  ;;  %v14158_v11 = vsel %vm3130_vm2, %v3133_v8, %v3135_v1 }
 0x3d5   :  { %17615 = vst [vmem:[#allocation16_spill] sm:$0xff] %v14144_v59  ;;  %17617 = vst [vmem:[#allocation24_spill] sm:$0xff] %v14158_v11  ;;  %v14162_v45 = vsel %vm3130_vm2, %v3141_v41, %v3143_v14  ;;  %v14164_v10 = vsel %vm3234_vm14, %v3237_v20, %v3239_v40  ;;  %v3516_v3 = vand.u32 2139095040, %v14136_v58  ;;  %v3313_v56 = vor.u32 8388608, %v3312_v49  ;;  %v17621_v41 = vld [vmem:[#allocation62_spill] sm:$0xff] }
 0x3d6   :  { %7366 = vmatmul.mubr.f32.gmra.mxu0 %v13820_v62  ;;  %17616 = vst [vmem:[#allocation45_spill] sm:$0xff] %v14150_v54  ;;  %v14168_v60 = vsub.s32 32, %v3319_v13  ;;  %v3421_v61 = vsel %vm3420_vm4, %v3419_v46, 0  ;;  %v3620_v16 = vand.u32 2139095040, %v14144_v59  ;;  %v14190_v42 = vadd.s32 1, %v14123_v50 }
 0x3d7   :  { %7453 = vmatmul.mubr.f32.gmra.mxu1 %v13749_v17  ;;  %7570 = vmatprep.mubr.f32.mxu0 %v17587_v38  ;;  %v3244_v17 = vsel %vm3234_vm14, %v3241_v37, %v3243_v31  ;;  %v14173_v6 = vmul.u32.u64.low %v14154_v34, %v3248_v44  ;;  %v14174_v55 = vmul.u32.u64.high %v14154_v34, %v3248_v44, %v14173_v6  ;;  %v3423_v47 = vand.u32 31, %v3421_v61  ;;  %v17623_v31 = vld [vmem:[#allocation65_spill] sm:$0xff] }
 0x3d8   :  { %7458 = vmatprep.mubr.f32.mxu1 %v17587_v38  ;;  %v14177_v9 = vmul.u32.u64.low %v14154_v34, %v3244_v17  ;;  %v14178_v8 = vmul.u32.u64.high %v14154_v34, %v3244_v17, %v14177_v9  ;;  %v1118_v14 = vadd.f32 %v17621_v41, %v17620_v18  ;;  %v3517_v35 = vshrl.u32 %v3516_v3, 23 }
 0x3d9   :  { %17618 = vst [vmem:[#allocation15_spill] sm:$0xff] %v14174_v55  ;;  %v3332_v43 = vshrl.u32 %v17577_v36, %v14168_v60  ;;  %v14199_v0 = vshll.u32 %v3313_v56, 8  ;;  %v16823_v25 = vand.u32 2147483647, %v14032_v28  ;;  %v3621_v46 = vshrl.u32 %v3620_v16, 23 }
 0x3da   :  { %17619 = vst [vmem:[#allocation47_spill] sm:$0xff] %v14177_v9  ;;  %v14203_v20 = vshrl.u32 %v3317_v27, 5  ;;  %v3335_v37 = vshrl.u32 %v17579_v4, %v14168_v60  ;;  %v16820_v26 = vand.u32 2147483647, %v14136_v58  ;;  %v14209_v53 = vadd.f32 %v17623_v31, %v1118_v14 }
 0x3db   :  { %7460 = vmatmul.mubr.f32.gmra.mxu1 %v13787_v52  ;;  %v14183_v52 = vmul.u32.u64.low %v14045_v7, %v14162_v45  ;;  %v14184_v19 = vmul.u32.u64.high %v14045_v7, %v14162_v45, %v14183_v52  ;;  %17622 = vst [vmem:[#allocation25_spill] sm:$0xff] %v14199_v0  ;;  %v3326_v29 = vshrl.u32 %v17602_v51, %v14168_v60  ;;  %v3329_v40 = vshrl.u32 %v17599_v21, %v14168_v60 }
 0x3dc   :  { %7465 = vmatprep.mubr.f32.mxu1 %v17587_v38  ;;  %17624 = vst [vmem:[#allocation44_spill] sm:$0xff] %v14209_v53  ;;  %v3331_v27 = vshll.u32 %v17599_v21, %v3319_v13  ;;  %v3322_v49 = vshll.u32 %v17593_v57, %v3319_v13  ;;  %v3334_v24 = vshll.u32 %v17577_v36, %v3319_v13  ;;  %v14220_v17 = vsub.s32 32, %v3423_v47 }
 0x3dd   :  { %v8859_v44 = vadd.s32 4294967169, %v3517_v35  ;;  %v3325_v45 = vshll.u32 %v17598_v30, %v3319_v13  ;;  %v3328_v3 = vshll.u32 %v17602_v51, %v3319_v13  ;;  %v8863_v16 = vadd.s32 4294967169, %v3621_v46 }
 0x3de   :  { %v3333_v56 = vor.u32 %v3332_v43, %v3331_v27  ;;  %vm3258_vm15 = vc.u32 %v14174_v55, %v14177_v9  ;;  %v3259_v6 = vadd.s32 1, %v14178_v8  ;;  %v3336_v52 = vor.u32 %v3335_v37, %v3334_v24 }
 0x3df   :  { %7467 = vmatmul.mubr.f32.gmra.mxu1 %v13820_v62  ;;  %v3323_v62 = vshrl.u32 %v17598_v30, %v14168_v60  ;;  %v3416_v18 = vand.u32 8388607, %v16823_v25  ;;  %v3724_v41 = vand.u32 2139095040, %v14209_v53  ;;  %v14232_v35 = vor.u32 %v3326_v29, %v3325_v45 }
 0x3e0   :  { %7719 = vmatprep.mubr.f32.mxu1 %v17587_v38  ;;  %v14234_v31 = vor.u32 %v3329_v40, %v3328_v3  ;;  %v14238_v13 = vand.u32 8388607, %v16820_v26  ;;  %vm3337_vm6 = vcmp.lt.s32.totalorder %v14203_v20, 1  ;;  %vm3340_vm0 = vcmp.lt.s32.totalorder %v14203_v20, 4 }
 0x3e1   :  { %v14230_v14 = vor.u32 %v3323_v62, %v3322_v49  ;;  %v3436_v43 = vshrl.u32 %v17577_v36, %v14220_v17  ;;  %v3523_v46 = vadd.s32 1, %v8859_v44  ;;  %vm3339_vm1 = vcmp.lt.s32.totalorder %v14203_v20, 3 }
 0x3e2   :  { %v3346_v37 = vsel %vm3340_vm0, %v3333_v56, 920167782  ;;  %v3439_v62 = vshrl.u32 %v17579_v4, %v14220_v17  ;;  %v3627_v29 = vadd.s32 1, %v8863_v16  ;;  %v3350_v40 = vsel %vm3340_vm0, %v3336_v52, 1326507024 }
 0x3e3   :  { %v14251_v27 = vshrl.u32 %v3421_v61, 5  ;;  %v3435_v49 = vshll.u32 %v17599_v21, %v3423_v47  ;;  %v3725_v24 = vshrl.u32 %v3724_v41, 23  ;;  %v3427_v44 = vshrl.u32 %v17598_v30, %v14220_v17 }
 0x3e4   :  { %v3430_v45 = vshrl.u32 %v17602_v51, %v14220_v17  ;;  %v3433_v3 = vshrl.u32 %v17599_v21, %v14220_v17  ;;  %v3438_v26 = vshll.u32 %v17577_v36, %v3423_v47  ;;  %v3345_v61 = vsel %vm3337_vm6, %v14230_v14, %v14232_v35 }
 0x3e5   :  { %v3426_v16 = vshll.u32 %v17593_v57, %v3423_v47  ;;  %v3437_v52 = vor.u32 %v3436_v43, %v3435_v49  ;;  %vm3524_vm7 = vcmp.gt.s32.totalorder %v3523_v46, 0  ;;  %v3429_v41 = vshll.u32 %v17598_v30, %v3423_v47 }
 0x3e6   :  { %v3432_v5 = vshll.u32 %v17602_v51, %v3423_v47  ;;  %v3440_v48 = vor.u32 %v3439_v62, %v3438_v26  ;;  %vm3628_vm9 = vcmp.gt.s32.totalorder %v3627_v29, 0  ;;  %v3347_v25 = vsel %vm3339_vm1, %v14234_v31, %v3346_v37 }
 0x3e7   :  { %v3349_v33 = vsel %vm3337_vm6, %v14232_v35, %v14234_v31  ;;  %v3351_v2 = vsel %vm3339_vm1, %v3333_v56, %v3350_v40  ;;  %v8867_v43 = vadd.s32 4294967169, %v3725_v24  ;;  %v14277_v49 = vor.u32 %v3427_v44, %v3426_v16 }
 0x3e8   :  { %v14279_v1 = vor.u32 %v3430_v45, %v3429_v41  ;;  %v3434_v47 = vor.u32 %v3433_v3, %v3432_v5  ;;  %vm3444_vm12 = vcmp.lt.s32.totalorder %v14251_v27, 4  ;;  %vm16852_vm8 = vcmp.lt.s32.totalorder %v14203_v20, 2 }
 0x3e9   :  { %v3450_v26 = vsel %vm3444_vm12, %v3437_v52, 920167782  ;;  %v3525_v37 = vsel %vm3524_vm7, %v3523_v46, 0  ;;  %v3629_v62 = vsel %vm3628_vm9, %v3627_v29, 0  ;;  %v3260_v56 = vsel %vm3258_vm15, %v3259_v6, %v14178_v8 }
 0x3ea   :  { %v14291_v40 = vsel %vm16852_vm8, %v3345_v61, %v3347_v25  ;;  %v3417_v24 = vor.u32 8388608, %v3416_v18  ;;  %v3454_v5 = vsel %vm3444_vm12, %v3440_v48, 1326507024  ;;  %v14297_v44 = vsel %vm16852_vm8, %v3349_v33, %v3351_v2 }
 0x3eb   :  { %vm3441_vm2 = vcmp.lt.s32.totalorder %v14251_v27, 1  ;;  %vm3443_vm13 = vcmp.lt.s32.totalorder %v14251_v27, 3  ;;  %v3731_v46 = vadd.s32 1, %v8867_v43  ;;  %v3527_v6 = vand.u32 31, %v3525_v37 }
 0x3ec   :  { %v3449_v8 = vsel %vm3441_vm2, %v14277_v49, %v14279_v1  ;;  %v3451_v25 = vsel %vm3443_vm13, %v3434_v47, %v3450_v26  ;;  %v3631_v18 = vand.u32 31, %v3629_v62  ;;  %v17625_v48 = vmul.u32 %v14154_v34, %v14164_v10 }
 0x3ed   :  { %v3453_v2 = vsel %vm3441_vm2, %v14279_v1, %v3434_v47  ;;  %v3455_v29 = vsel %vm3443_vm13, %v3437_v52, %v3454_v5  ;;  %v3521_v45 = vor.u32 8388608, %v14238_v13  ;;  %vm3442_vm3 = vcmp.lt.s32.totalorder %v14251_v27, 2 }
 0x3ee   :  { %v14310_v33 = vadd.s32 %v3260_v56, %v17625_v48  ;;  %v14320_v3 = vmul.u32.u64.low %v14199_v0, %v14291_v40  ;;  %v14321_v61 = vmul.u32.u64.high %v14199_v0, %v14291_v40, %v14320_v3  ;;  %v14325_v34 = vshll.u32 %v3417_v24, 8 }
 0x3ef   :  { %v14329_v10 = vmul.u32.u64.low %v14199_v0, %v14297_v44  ;;  %v14330_v16 = vmul.u32.u64.high %v14199_v0, %v14297_v44, %v14329_v10  ;;  %v14335_v52 = vsel %vm3442_vm3, %v3449_v8, %v3451_v25  ;;  %vm3732_vm11 = vcmp.gt.s32.totalorder %v3731_v46, 0 }
 0x3f0   :  { %17626 = vst [vmem:[#allocation20_spill] sm:$0xff] %v14310_v33  ;;  %17627 = vst [vmem:[#allocation26_spill] sm:$0xff] %v14325_v34  ;;  %v14339_v13 = vshrl.u32 %v17593_v57, %v14168_v60  ;;  %v14343_v41 = vsel %vm3442_vm3, %v3453_v2, %v3455_v29  ;;  %v14345_v43 = vsub.s32 32, %v3527_v6  ;;  %v14347_v26 = vsub.s32 32, %v3631_v18 }
 0x3f1   :  { %v14352_v56 = vsel %vm3340_vm0, %v14234_v31, 2102212464  ;;  %v14356_v40 = vshrl.u32 %v17593_v57, %v14220_v17  ;;  %v14360_v60 = vsel %vm3444_vm12, %v3434_v47, 2102212464  ;;  %v14362_v24 = vshll.u32 %v3521_v45, 8 }
 0x3f2   :  { %17628 = vst [vmem:[#allocation46_spill] sm:$0xff] %v14345_v43  ;;  %v14366_v5 = vmul.u32.u64.low %v14325_v34, %v14335_v52  ;;  %v14367_v44 = vmul.u32.u64.high %v14325_v34, %v14335_v52, %v14366_v5  ;;  %v14370_v8 = vshrl.u32 %v3525_v37, 5  ;;  %v3733_v31 = vsel %vm3732_vm11, %v3731_v46, 0 }
 0x3f3   :  { %v14374_v25 = vmul.u32.u64.low %v14325_v34, %v14343_v41  ;;  %v14375_v17 = vmul.u32.u64.high %v14325_v34, %v14343_v41, %v14374_v25  ;;  %v3530_v47 = vshll.u32 %v17593_v57, %v3527_v6  ;;  %v3533_v48 = vshll.u32 %v17598_v30, %v3527_v6 }
 0x3f4   :  { %v3531_v2 = vshrl.u32 %v17598_v30, %v14345_v43  ;;  %v3534_v29 = vshrl.u32 %v17602_v51, %v14345_v43  ;;  %v3644_v37 = vshrl.u32 %v17577_v36, %v14347_v26  ;;  %v3647_v46 = vshrl.u32 %v17579_v4, %v14347_v26 }
 0x3f5   :  { %v3537_v45 = vshrl.u32 %v17599_v21, %v14345_v43  ;;  %v3643_v52 = vshll.u32 %v17599_v21, %v3631_v18  ;;  %v3735_v41 = vand.u32 31, %v3733_v31  ;;  %v3635_v25 = vshrl.u32 %v17598_v30, %v14347_v26 }
 0x3f6   :  { %v3638_v38 = vshrl.u32 %v17602_v51, %v14347_v26  ;;  %v3641_v12 = vshrl.u32 %v17599_v21, %v14347_v26  ;;  %v3646_v58 = vshll.u32 %v17577_v36, %v3631_v18  ;;  %v3540_v23 = vshrl.u32 %v17577_v36, %v14345_v43 }
 0x3f7   :  { %v3543_v10 = vshrl.u32 %v17579_v4, %v14345_v43  ;;  %v14403_v28 = vshrl.u32 %v3629_v62, 5  ;;  %v3634_v32 = vshll.u32 %v17593_v57, %v3631_v18  ;;  %vm3548_vm5 = vcmp.lt.s32.totalorder %v14370_v8, 4 }
 0x3f8   :  { %v3637_v39 = vshll.u32 %v17598_v30, %v3631_v18  ;;  %v3640_v9 = vshll.u32 %v17602_v51, %v3631_v18  ;;  %v3645_v55 = vor.u32 %v3644_v37, %v3643_v52  ;;  %v3648_v15 = vor.u32 %v3647_v46, %v3646_v58 }
 0x3f9   :  { %v3536_v63 = vshll.u32 %v17602_v51, %v3527_v6  ;;  %v3539_v54 = vshll.u32 %v17599_v21, %v3527_v6  ;;  %v17629_v0 = vand.u32 2147483647, %v14144_v59  ;;  %v14413_v7 = vsub.s32 32, %v3735_v41 }
 0x3fa   :  { %v3542_v62 = vshll.u32 %v17577_v36, %v3527_v6  ;;  %v14416_v43 = vor.u32 %v3635_v25, %v3634_v32  ;;  %v14418_v33 = vor.u32 %v3638_v38, %v3637_v39  ;;  %v14420_v34 = vor.u32 %v3641_v12, %v3640_v9 }
 0x3fb   :  { %v3624_v11 = vand.u32 8388607, %v17629_v0  ;;  %v14422_v18 = vor.u32 %v3531_v2, %v3530_v47  ;;  %v14424_v58 = vor.u32 %v3534_v29, %v3533_v48  ;;  %v14426_v37 = vor.u32 %v3537_v45, %v3536_v63 }
 0x3fc   :  { %vm3652_vm14 = vcmp.lt.s32.totalorder %v14403_v28, 4  ;;  %v3541_v46 = vor.u32 %v3540_v23, %v3539_v54  ;;  %v3544_v0 = vor.u32 %v3543_v10, %v3542_v62  ;;  %vm16851_vm4 = vcmp.lt.s32.totalorder %v14370_v8, 1 }
 0x3fd   :  { %vm3547_vm15 = vcmp.lt.s32.totalorder %v14370_v8, 3  ;;  %v3658_v32 = vsel %vm3652_vm14, %v3645_v55, 920167782  ;;  %v3662_v38 = vsel %vm3652_vm14, %v3648_v15, 1326507024  ;;  %v3625_v39 = vor.u32 8388608, %v3624_v11 }
 0x3fe   :  { %vm3649_vm0 = vcmp.lt.s32.totalorder %v14403_v28, 1  ;;  %v3748_v12 = vshrl.u32 %v17577_v36, %v14413_v7  ;;  %vm3651_vm7 = vcmp.lt.s32.totalorder %v14403_v28, 3  ;;  %v3751_v54 = vshrl.u32 %v17579_v4, %v14413_v7 }
 0x3ff   :  { %v3657_v23 = vsel %vm3649_vm0, %v14416_v43, %v14418_v33  ;;  %v3661_v15 = vsel %vm3649_vm0, %v14418_v33, %v14420_v34  ;;  %v3659_v11 = vsel %vm3651_vm7, %v14420_v34, %v3658_v32  ;;  %v3663_v9 = vsel %vm3651_vm7, %v3645_v55, %v3662_v38 }
 0x400   :  { %v14455_v6 = vshrl.u32 %v3733_v31, 5  ;;  %v3747_v47 = vshll.u32 %v17599_v21, %v3735_v41  ;;  %v3739_v48 = vshrl.u32 %v17598_v30, %v14413_v7  ;;  %v3742_v2 = vshrl.u32 %v17602_v51, %v14413_v7 }
 0x401   :  { %v3745_v29 = vshrl.u32 %v17599_v21, %v14413_v7  ;;  %v3750_v45 = vshll.u32 %v17577_v36, %v3735_v41  ;;  %v3554_v10 = vsel %vm3548_vm5, %v3541_v46, 920167782  ;;  %v3558_v55 = vsel %vm3548_vm5, %v3544_v0, 1326507024 }
 0x402   :  { %vm3650_vm9 = vcmp.lt.s32.totalorder %v14403_v28, 2  ;;  %v3749_v31 = vor.u32 %v3748_v12, %v3747_v47  ;;  %v3738_v52 = vshll.u32 %v17593_v57, %v3735_v41  ;;  %v3741_v25 = vshll.u32 %v17598_v30, %v3735_v41 }
 0x403   :  { %v3744_v62 = vshll.u32 %v17602_v51, %v3735_v41  ;;  %v3752_v32 = vor.u32 %v3751_v54, %v3750_v45  ;;  %v3660_v38 = vsel %vm3650_vm9, %v3657_v23, %v3659_v11  ;;  %v3664_v63 = vsel %vm3650_vm9, %v3661_v15, %v3663_v9  ;;  %v17725_v51 = vld [vmem:[#allocation90_spill] sm:$0xff] }
 0x404   :  { %v14477_v21 = vshll.u32 %v3625_v39, 8  ;;  %v17630_v0 = vand.u32 2147483647, %v14209_v53  ;;  %v14481_v36 = vor.u32 %v3739_v48, %v3738_v52  ;;  %v14483_v12 = vor.u32 %v3742_v2, %v3741_v25 }
 0x405   :  { %v3746_v47 = vor.u32 %v3745_v29, %v3744_v62  ;;  %vm3756_vm12 = vcmp.lt.s32.totalorder %v14455_v6, 4  ;;  %v3553_v41 = vsel %vm16851_vm4, %v14422_v18, %v14424_v58  ;;  %v3555_v39 = vsel %vm3547_vm15, %v14426_v37, %v3554_v10 }
 0x406   :  { %v3728_v4 = vand.u32 8388607, %v17630_v0  ;;  %v3557_v23 = vsel %vm16851_vm4, %v14424_v58, %v14426_v37  ;;  %v3762_v15 = vsel %vm3756_vm12, %v3749_v31, 920167782  ;;  %vm3154_vm11 = vc.u32 %v14184_v19, %v14122_v22 }
 0x407   :  { %v3559_v54 = vsel %vm3547_vm15, %v3541_v46, %v3558_v55  ;;  %v14504_v11 = vmul.u32.u64.low %v14477_v21, %v3660_v38  ;;  %v14505_v9 = vmul.u32.u64.high %v14477_v21, %v3660_v38, %v14504_v11  ;;  %v3766_v48 = vsel %vm3756_vm12, %v3752_v32, 1326507024 }
 0x408   :  { %v14511_v2 = vmul.u32.u64.low %v14477_v21, %v3664_v63  ;;  %v14512_v29 = vmul.u32.u64.high %v14477_v21, %v3664_v63, %v14511_v2  ;;  %vm16853_vm10 = vcmp.lt.s32.totalorder %v14455_v6, 1  ;;  %vm3755_vm4 = vcmp.lt.s32.totalorder %v14455_v6, 3 }
 0x409   :  { %vm3546_vm8 = vcmp.lt.s32.totalorder %v14370_v8, 2  ;;  %v3729_v45 = vor.u32 8388608, %v3728_v4  ;;  %v3761_v46 = vsel %vm16853_vm10, %v14481_v36, %v14483_v12  ;;  %v3763_v10 = vsel %vm3755_vm4, %v3746_v47, %v3762_v15 }
 0x40a   :  { %v3445_v63 = vsel %vm3441_vm2, %v14356_v40, %v14277_v49  ;;  %v3556_v55 = vsel %vm3546_vm8, %v3553_v41, %v3555_v39  ;;  %v3765_v4 = vsel %vm16853_vm10, %v14483_v12, %v3746_v47  ;;  %v3767_v52 = vsel %vm3755_vm4, %v3749_v31, %v3766_v48 }
 0x40b   :  { %v3447_v25 = vsel %vm3443_vm13, %v14279_v1, %v14360_v60  ;;  %v3560_v62 = vsel %vm3546_vm8, %v3557_v23, %v3559_v54  ;;  %v3654_v49 = vsel %vm3652_vm14, %v14420_v34, 2102212464  ;;  %vm3754_vm2 = vcmp.lt.s32.totalorder %v14455_v6, 2 }
 0x40c   :  { %vm3466_vm10 = vc.u32 %v14375_v17, %v14366_v5  ;;  %v3467_v40 = vadd.s32 1, %v14367_v44  ;;  %v3633_v31 = vshrl.u32 %v17593_v57, %v14347_v26  ;;  %v3764_v1 = vsel %vm3754_vm2, %v3761_v46, %v3763_v10 }
 0x40d   :  { %v14552_v60 = vmul.u32.u64.low %v14362_v24, %v3556_v55  ;;  %v14553_v32 = vmul.u32.u64.high %v14362_v24, %v3556_v55, %v14552_v60  ;;  %v3768_v34 = vsel %vm3754_vm2, %v3765_v4, %v3767_v52  ;;  %v3769_v38 = vshll.u32 %v3729_v45, 8  ;;  %v17633_v55 = vld [vmem:[#allocation46_spill] sm:$0xff] }
 0x40e   :  { %v14559_v0 = vmul.u32.u64.low %v14362_v24, %v3560_v62  ;;  %v14560_v41 = vmul.u32.u64.high %v14362_v24, %v3560_v62, %v14559_v0  ;;  %v3653_v26 = vsel %vm3649_vm0, %v3633_v31, %v14416_v43  ;;  %v3655_v39 = vsel %vm3651_vm7, %v14418_v33, %v3654_v49  ;;  %v17636_v49 = vld [vmem:[#allocation24_spill] sm:$0xff] }
 0x40f   :  { %v3448_v23 = vsel %vm3442_vm3, %v3445_v63, %v3447_v25  ;;  %v3675_v15 = vadd.s32 1, %v14505_v9  ;;  %v14571_v54 = vmul.u32.u64.low %v3769_v38, %v3764_v1  ;;  %v14572_v48 = vmul.u32.u64.high %v3769_v38, %v3764_v1, %v14571_v54  ;;  %v17632_v63 = vld [vmem:[#allocation20_spill] sm:$0xff]  ;;  %v17640_v0 = vld [vmem:[#allocation25_spill] sm:$0xff] }
 0x410   :  { %v3341_v2 = vsel %vm3337_vm6, %v14339_v13, %v14230_v14  ;;  %vm3674_vm13 = vc.u32 %v14512_v29, %v14504_v11  ;;  %v14581_v43 = vmul.u32.u64.low %v3769_v38, %v3768_v34  ;;  %v14582_v45 = vmul.u32.u64.high %v3769_v38, %v3768_v34, %v14581_v43 }
 0x411   :  { %v3343_v27 = vsel %vm3339_vm1, %v14232_v35, %v14352_v56  ;;  %v3363_v33 = vadd.s32 1, %v14321_v61  ;;  %v3468_v46 = vsel %vm3466_vm10, %v3467_v40, %v14367_v44  ;;  %v3656_v14 = vsel %vm3650_vm9, %v3653_v26, %v3655_v39  ;;  %v17631_v35 = vld [vmem:[#allocation26_spill] sm:$0xff] }
 0x412   :  { %v3156_v13 = vsel %vm3154_vm11, %v14190_v42, %v14123_v50  ;;  %vm3362_vm6 = vc.u32 %v14330_v16, %v14320_v3  ;;  %v3464_v56 = vmul.u32 %v17631_v35, %v3448_v23  ;;  %v3550_v10 = vsel %vm3548_vm5, %v14426_v37, 2102212464  ;;  %v17635_v37 = vld [vmem:[#allocation23_spill] sm:$0xff] }
 0x413   :  { %v3262_v44 = vadd.s32 536870912, %v17632_v63  ;;  %v3529_v28 = vshrl.u32 %v17593_v57, %v17633_v55  ;;  %v3676_v4 = vsel %vm3674_vm13, %v3675_v15, %v14505_v9  ;;  %v3758_v52 = vsel %vm3756_vm12, %v3746_v47, 2102212464 }
 0x414   :  { %vm17634_vm10 = vcmp.lt.s32.totalorder %v14203_v20, 2  ;;  %v3469_v42 = vadd.s32 %v3468_v46, %v3464_v56  ;;  %v3672_v25 = vmul.u32 %v14477_v21, %v3656_v14  ;;  %v3737_v62 = vshrl.u32 %v17593_v57, %v14413_v7  ;;  %v17722_v57 = vld [vmem:[#allocation88_spill] sm:$0xff] }
 0x415   :  { %v3344_v50 = vsel %vm17634_vm10, %v3341_v2, %v3343_v27  ;;  %v17637_v40 = vmul.u32 %v17635_v37, %v17636_v49  ;;  %v3364_v9 = vsel %vm3362_vm6, %v3363_v33, %v14321_v61  ;;  %vm17638_vm1 = vcmp.lt.s32.totalorder %v14370_v8, 1 }
 0x416   :  { %v3549_v20 = vsel %vm17638_vm1, %v3529_v28, %v14422_v18  ;;  %v3551_v21 = vsel %vm3547_vm15, %v14424_v58, %v3550_v10  ;;  %v3571_v47 = vadd.s32 1, %v14553_v32  ;;  %v3677_v7 = vadd.s32 %v3676_v4, %v3672_v25 }
 0x417   :  { %v3157_v31 = vadd.s32 %v3156_v13, %v17637_v40  ;;  %vm17639_vm3 = vcmp.lt.s32.totalorder %v14455_v6, 1  ;;  %v3759_v34 = vsel %vm3755_vm4, %v14483_v12, %v3758_v52  ;;  %v14637_v61 = vshrl.u32 %v3262_v44, 30 }
 0x418   :  { %v3757_v1 = vsel %vm17639_vm3, %v3737_v62, %v14481_v36  ;;  %v3360_v26 = vmul.u32 %v17640_v0, %v3344_v50  ;;  %vm3570_vm5 = vc.u32 %v14560_v41, %v14552_v60  ;;  %v3779_v18 = vadd.s32 1, %v14572_v48  ;;  %v17641_v36 = vld [vmem:[#allocation45_spill] sm:$0xff] }
 0x419   :  { %v3470_v58 = vadd.s32 536870912, %v3469_v42  ;;  %v3552_v39 = vsel %vm3546_vm8, %v3549_v20, %v3551_v21  ;;  %vm3778_vm14 = vc.u32 %v14582_v45, %v14571_v54  ;;  %v3059_v23 = vsub.s32 0, %v17641_v36 }
 0x41a   :  { %v3365_v15 = vadd.s32 %v3364_v9, %v3360_v26  ;;  %v3760_v12 = vsel %vm3754_vm2, %v3757_v1, %v3759_v34  ;;  %v3572_v2 = vsel %vm3570_vm5, %v3571_v47, %v14553_v32  ;;  %v3678_v43 = vadd.s32 536870912, %v3677_v7 }
 0x41b   :  { %v3158_v27 = vadd.s32 536870912, %v3157_v31  ;;  %v3264_v33 = vshll.u32 %v14637_v61, 30  ;;  %v3568_v46 = vmul.u32 %v14362_v24, %v3552_v39  ;;  %v3780_v8 = vsel %vm3778_vm14, %v3779_v18, %v14572_v48 }
 0x41c   :  { %v14654_v14 = vshrl.u32 %v3470_v58, 30  ;;  %v3776_v13 = vmul.u32 %v3769_v38, %v3760_v12  ;;  %v8840_v35 = vmin.u32 %v3059_v23, %v17641_v36  ;;  %v3366_v56 = vadd.s32 536870912, %v3365_v15 }
 0x41d   :  { %v3573_v10 = vadd.s32 %v3572_v2, %v3568_v46  ;;  %v14657_v44 = vshrl.u32 %v3678_v43, 30  ;;  %v14659_v55 = vshrl.u32 %v3158_v27, 30  ;;  %v14662_v32 = vsub.s32 %v17632_v63, %v3264_v33 }
 0x41e   :  { %v3781_v6 = vadd.s32 %v3780_v8, %v3776_v13  ;;  %v3472_v28 = vshll.u32 %v14654_v14, 30  ;;  %v3061_v24 = vclz %v8840_v35  ;;  %v14665_v4 = vshrl.u32 %v3366_v56, 30 }
 0x41f   :  { %v3574_v48 = vadd.s32 536870912, %v3573_v10  ;;  %v3680_v38 = vshll.u32 %v14657_v44, 30  ;;  %v3160_v50 = vshll.u32 %v14659_v55, 30  ;;  %v3267_v25 = vsub.s32 0, %v14662_v32 }
 0x420   :  { %v3782_v52 = vadd.s32 536870912, %v3781_v6  ;;  %v14670_v62 = vsub.s32 %v3469_v42, %v3472_v28  ;;  %v8841_v37 = vadd.s32 4294967294, %v3061_v24  ;;  %v3368_v49 = vshll.u32 %v14665_v4, 30 }
 0x421   :  { %v14673_v63 = vshrl.u32 %v3574_v48, 30  ;;  %v14675_v40 = vsub.s32 %v3677_v7, %v3680_v38  ;;  %v14679_v20 = vsub.s32 %v3157_v31, %v3160_v50  ;;  %v8848_v21 = vmin.u32 %v3267_v25, %v14662_v32  ;;  %v17642_v48 = vld [vmem:[#allocation153_spill] sm:$0xff]  ;;  %v17643_v38 = vld [vmem:[#allocation83_spill] sm:$0xff] }
 0x422   :  { %v14677_v9 = vshrl.u32 %v3782_v52, 30  ;;  %v3475_v47 = vsub.s32 0, %v14670_v62  ;;  %vm8842_vm8 = vcmp.lt.s32.totalorder %v8841_v37, 0  ;;  %v14683_v1 = vsub.s32 %v3365_v15, %v3368_v49 }
 0x423   :  { %v3576_v42 = vshll.u32 %v14673_v63, 30  ;;  %v3683_v34 = vsub.s32 0, %v14675_v40  ;;  %v3163_v7 = vsub.s32 0, %v14679_v20  ;;  %v3269_v26 = vclz %v8848_v21 }
 0x424   :  { %v3784_v0 = vshll.u32 %v14677_v9, 30  ;;  %v3064_v18 = vsel %vm8842_vm8, 0, %v8841_v37  ;;  %v8856_v31 = vmin.u32 %v3475_v47, %v14670_v62  ;;  %v3371_v58 = vsub.s32 0, %v14683_v1 }
 0x425   :  { %v14691_v39 = vsub.s32 %v3573_v10, %v3576_v42  ;;  %v8864_v23 = vmin.u32 %v3683_v34, %v14675_v40  ;;  %v3069_v12 = vsub.s32 4294967266, %v3064_v18  ;;  %v8844_v2 = vmin.u32 %v3163_v7, %v14679_v20 }
 0x426   :  { %v14694_v15 = vsub.s32 %v3781_v6, %v3784_v0  ;;  %v8849_v43 = vadd.s32 4294967294, %v3269_v26  ;;  %v3477_v27 = vclz %v8856_v31  ;;  %v8852_v33 = vmin.u32 %v3371_v58, %v14683_v1 }
 0x427   :  { %v3579_v46 = vsub.s32 0, %v14691_v39  ;;  %v3685_v8 = vclz %v8864_v23  ;;  %v3070_v35 = vadd.s32 127, %v3069_v12  ;;  %v3165_v56 = vclz %v8844_v2 }
 0x428   :  { %v3787_v13 = vsub.s32 0, %v14694_v15  ;;  %vm8850_vm4 = vcmp.lt.s32.totalorder %v8849_v43, 0  ;;  %v3065_v10 = vsub.s32 32, %v3064_v18  ;;  %v8857_v28 = vadd.s32 4294967294, %v3477_v27 }
 0x429   :  { %v3373_v24 = vclz %v8852_v33  ;;  %v8860_v6 = vmin.u32 %v3579_v46, %v14691_v39  ;;  %v3049_v52 = vadd.s32 %v17643_v38, %v17642_v48  ;;  %v3272_v50 = vsel %vm8850_vm4, 0, %v8849_v43 }
 0x42a   :  { %v8865_v25 = vadd.s32 4294967294, %v3685_v8  ;;  %v8868_v37 = vmin.u32 %v3787_v13, %v14694_v15  ;;  %v3071_v49 = vshll.u32 %v3070_v35, 23  ;;  %v8845_v21 = vadd.s32 4294967294, %v3165_v56 }
 0x42b   :  { %v3067_v47 = vshrl.u32 %v3049_v52, %v3065_v10  ;;  %vm8858_vm15 = vcmp.lt.s32.totalorder %v8857_v28, 0  ;;  %v3277_v42 = vsub.s32 4294967266, %v3272_v50  ;;  %v8853_v34 = vadd.s32 4294967294, %v3373_v24  ;;  %v17645_v24 = vld [vmem:[#allocation47_spill] sm:$0xff] }
 0x42c   :  { %v3581_v0 = vclz %v8860_v6  ;;  %v3066_v7 = vshll.u32 %v17641_v36, %v3064_v18  ;;  %vm8866_vm0 = vcmp.lt.s32.totalorder %v8865_v25, 0  ;;  %v3789_v26 = vclz %v8868_v37  ;;  %v17644_v18 = vld [vmem:[#allocation15_spill] sm:$0xff] }
 0x42d   :  { %v3072_v31 = vor.u32 4788187, %v3071_v49  ;;  %vm8846_vm7 = vcmp.lt.s32.totalorder %v8845_v21, 0  ;;  %v3480_v58 = vsel %vm8858_vm15, 0, %v8857_v28  ;;  %v3278_v12 = vadd.s32 127, %v3277_v42 }
 0x42e   :  { %v3068_v23 = vor.u32 %v3067_v47, %v3066_v7  ;;  %vm8854_vm9 = vcmp.lt.s32.totalorder %v8853_v34, 0  ;;  %v8861_v2 = vadd.s32 4294967294, %v3581_v0  ;;  %v3688_v43 = vsel %vm8866_vm0, 0, %v8865_v25 }
 0x42f   :  { %v3168_v27 = vsel %vm8846_vm7, 0, %v8845_v21  ;;  %v3485_v33 = vsub.s32 4294967266, %v3480_v58  ;;  %v8869_v46 = vadd.s32 4294967294, %v3789_v26  ;;  %v3073_v8 = vand.u32 2147483647, %v3072_v31 }
 0x430   :  { %v3273_v13 = vsub.s32 32, %v3272_v50  ;;  %v3075_v35 = vcvt.s32.f32 %v3068_v23  ;;  %v14705_v56 = vsel %vm8854_vm9, 0, %v8853_v34  ;;  %v3693_v10 = vsub.s32 4294967266, %v3688_v43 }
 0x431   :  { %v3173_v36 = vsub.s32 4294967266, %v3168_v27  ;;  %v3257_v6 = vadd.s32 %v17645_v24, %v17644_v18  ;;  %v3279_v48 = vshll.u32 %v3278_v12, 23  ;;  %vm8862_vm12 = vcmp.lt.s32.totalorder %v8861_v2, 0 }
 0x432   :  { %v3486_v28 = vadd.s32 127, %v3485_v33  ;;  %vm8870_vm11 = vcmp.lt.s32.totalorder %v8869_v46, 0  ;;  %v3076_v38 = vmul.f32 %v3075_v35, %v3073_v8  ;;  %v3381_v25 = vsub.s32 4294967266, %v14705_v56  ;;  %v17646_v35 = vld [vmem:[#allocation168_spill] sm:$0xff] }
 0x433   :  { %v3275_v52 = vshrl.u32 %v3257_v6, %v3273_v13  ;;  %v3169_v37 = vsub.s32 32, %v3168_v27  ;;  %v3481_v49 = vsub.s32 32, %v3480_v58  ;;  %v14710_v21 = vsel %vm8862_vm12, 0, %v8861_v2 }
 0x434   :  { %v3694_v47 = vadd.s32 127, %v3693_v10  ;;  %v3174_v42 = vadd.s32 127, %v3173_v36  ;;  %v3274_v34 = vshll.u32 %v14662_v32, %v3272_v50  ;;  %v3280_v0 = vor.u32 4788187, %v3279_v48 }
 0x435   :  { %v14713_v7 = vsel %vm8870_vm11, 0, %v8869_v46  ;;  %v3153_v26 = vadd.s32 %v14122_v22, %v14184_v19  ;;  %v3465_v31 = vadd.s32 %v14366_v5, %v14375_v17  ;;  %v3487_v23 = vshll.u32 %v3486_v28, 23 }
 0x436   :  { %v3689_v12 = vsub.s32 32, %v3688_v43  ;;  %v3077_v33 = vxor.u32 2147483648, %v3076_v38  ;;  %v3276_v8 = vor.u32 %v3275_v52, %v3274_v34  ;;  %v3382_v13 = vadd.s32 127, %v3381_v25 }
 0x437   :  { %v3589_v2 = vsub.s32 4294967266, %v14710_v21  ;;  %vm2995_vm2 = vcmp.lt.s32.totalorder %v17646_v35, 0  ;;  %v3483_v10 = vshrl.u32 %v3465_v31, %v3481_v49  ;;  %v3673_v32 = vadd.s32 %v14504_v11, %v14512_v29 }
 0x438   :  { %v3695_v50 = vshll.u32 %v3694_v47, 23  ;;  %v3797_v46 = vsub.s32 4294967266, %v14713_v7  ;;  %v3170_v22 = vshll.u32 %v14679_v20, %v3168_v27  ;;  %v3171_v19 = vshrl.u32 %v3153_v26, %v3169_v37 }
 0x439   :  { %v3175_v5 = vshll.u32 %v3174_v42, 23  ;;  %v3281_v17 = vand.u32 2147483647, %v3280_v0  ;;  %v3377_v36 = vsub.s32 32, %v14705_v56  ;;  %v3482_v18 = vshll.u32 %v14670_v62, %v3480_v58 }
 0x43a   :  { %v3488_v24 = vor.u32 4788187, %v3487_v23  ;;  %v3691_v6 = vshrl.u32 %v3673_v32, %v3689_v12  ;;  %v3283_v48 = vcvt.s32.f32 %v3276_v8  ;;  %v3361_v28 = vadd.s32 %v14320_v3, %v14330_v16 }
 0x43b   :  { %v3383_v52 = vshll.u32 %v3382_v13, 23  ;;  %v3590_v11 = vadd.s32 127, %v3589_v2  ;;  %v3484_v29 = vor.u32 %v3483_v10, %v3482_v18  ;;  %v3690_v25 = vshll.u32 %v14675_v40, %v3688_v43 }
 0x43c   :  { %v3696_v49 = vor.u32 4788187, %v3695_v50  ;;  %v3798_v20 = vadd.s32 127, %v3797_v46  ;;  %v3172_v27 = vor.u32 %v3171_v19, %v3170_v22  ;;  %v3176_v37 = vor.u32 4788187, %v3175_v5  ;;  %v17647_v22 = vld [vmem:[#allocation35_spill] sm:$0xff] }
 0x43d   :  { %v3284_v47 = vmul.f32 %v3283_v48, %v3281_v17  ;;  %v3585_v42 = vsub.s32 32, %v14710_v21  ;;  %v3379_v34 = vshrl.u32 %v3361_v28, %v3377_v36  ;;  %v3489_v62 = vand.u32 2147483647, %v3488_v24  ;;  %v17648_v19 = vld [vmem:[#allocation64_spill] sm:$0xff]  ;;  %v17652_v24 = vld [vmem:[#allocation67_spill] sm:$0xff] }
 0x43e   :  { %v3692_v58 = vor.u32 %v3691_v6, %v3690_v25  ;;  %v3793_v0 = vsub.s32 32, %v14713_v7  ;;  %v3378_v3 = vshll.u32 %v14683_v1, %v14705_v56  ;;  %v3384_v16 = vor.u32 4788187, %v3383_v52 }
 0x43f   :  { %v3569_v26 = vadd.s32 %v14552_v60, %v14560_v41  ;;  %v3591_v40 = vshll.u32 %v3590_v11, 23  ;;  %v3491_v43 = vcvt.s32.f32 %v3484_v29  ;;  %v3697_v31 = vand.u32 2147483647, %v3696_v49 }
 0x440   :  { %v3777_v23 = vadd.s32 %v14571_v54, %v14582_v45  ;;  %v3799_v12 = vshll.u32 %v3798_v20, 23  ;;  %v3078_v8 = vsel %vm2995_vm2, %v3077_v33, %v3076_v38  ;;  %v3177_v13 = vand.u32 2147483647, %v3176_v37  ;;  %v17655_v20 = vld [vmem:[#allocation215_spill] sm:$0xff] }
 0x441   :  { %v3179_v2 = vcvt.s32.f32 %v3172_v27  ;;  %v3587_v10 = vshrl.u32 %v3569_v26, %v3585_v42  ;;  %v3380_v32 = vor.u32 %v3379_v34, %v3378_v3  ;;  %v3492_v50 = vmul.f32 %v3491_v43, %v3489_v62  ;;  %v17656_v27 = vld [vmem:[#allocation22_spill] sm:$0xff] }
 0x442   :  { %v3699_v1 = vcvt.s32.f32 %v3692_v58  ;;  %v3795_v56 = vshrl.u32 %v3777_v23, %v3793_v0  ;;  %v3285_v46 = vxor.u32 2147483648, %v3284_v47  ;;  %v3586_v60 = vshll.u32 %v14691_v39, %v14710_v21 }
 0x443   :  { %v3592_v41 = vor.u32 4788187, %v3591_v40  ;;  %v1123_v5 = vadd.f32 %v17648_v19, %v17647_v22  ;;  %v3385_v54 = vand.u32 2147483647, %v3384_v16  ;;  %v3794_v38 = vshll.u32 %v14694_v15, %v14713_v7  ;;  %v17654_v15 = vld [vmem:[#allocation214_spill] sm:$0xff] }
 0x444   :  { %v3700_v45 = vmul.f32 %v3699_v1, %v3697_v31  ;;  %v3800_v33 = vor.u32 4788187, %v3799_v12  ;;  %v17649_v17 = vand.u32 2147483647, %v17646_v35  ;;  %v3588_v18 = vor.u32 %v3587_v10, %v3586_v60  ;;  %v17663_v12 = vld [vmem:[#allocation138_spill] sm:$0xff]  ;;  %v17664_v10 = vld [vmem:[#allocation13_spill] sm:$0xff] }
 0x445   :  { %v14753_v6 = vadd.f32 %v17652_v24, %v1123_v5  ;;  %v3180_v39 = vmul.f32 %v3179_v2, %v3177_v13  ;;  %v3387_v21 = vcvt.s32.f32 %v3380_v32  ;;  %v3493_v48 = vxor.u32 2147483648, %v3492_v50  ;;  %v17669_v60 = vld [vmem:[#allocation116_spill] sm:$0xff]  ;;  %v17670_v5 = vld [vmem:[#allocation225_spill] sm:$0xff]  ;;  %v17675_v24 = vld [vmem:[#allocation118_spill] sm:$0xff] }
 0x446   :  { %vm14748_vm13 = vcmp.le.f32.partialorder %v17649_v17, 0.7853982  ;;  %v3796_v28 = vor.u32 %v3795_v56, %v3794_v38  ;;  %vm3203_vm6 = vcmp.lt.s32.totalorder %v17654_v15, 0  ;;  %v3593_v7 = vand.u32 2147483647, %v3592_v41  ;;  %v17674_v17 = vld [vmem:[#allocation125_spill] sm:$0xff] }
 0x447   :  { %17653 = vst [vmem:[#allocation48_spill] sm:$0xff] %v14753_v6  ;;  %v3081_v52 = vsel %vm14748_vm13, %v17646_v35, %v3078_v8  ;;  %v3286_v11 = vsel %vm3203_vm6, %v3285_v46, %v3284_v47  ;;  %v3388_v29 = vmul.f32 %v3387_v21, %v3385_v54  ;;  %v3701_v25 = vxor.u32 2147483648, %v3700_v45  ;;  %v17668_v46 = vld [vmem:[#allocation6_spill] sm:$0xff]  ;;  %v17671_v54 = vld [vmem:[#allocation121_spill] sm:$0xff]  ;;  %v17676_v21 = vld [vmem:[#allocation223_spill] sm:$0xff] }
 0x448   :  { %v3801_v49 = vand.u32 2147483647, %v3800_v33  ;;  %vm3099_vm10 = vcmp.lt.s32.totalorder %v17655_v20, 0  ;;  %vm3411_vm1 = vcmp.lt.s32.totalorder %v17656_v27, 0  ;;  %v3595_v37 = vcvt.s32.f32 %v3588_v18  ;;  %v17673_v33 = vld [vmem:[#allocation41_spill] sm:$0xff] }
 0x449   :  { %v3828_v42 = vand.u32 2139095040, %v14753_v6  ;;  %v3181_v34 = vxor.u32 2147483648, %v3180_v39  ;;  %v17657_v62 = vand.u32 2147483647, %v17654_v15  ;;  %v3494_v47 = vsel %vm3411_vm1, %v3493_v48, %v3492_v50  ;;  %v17677_v48 = vld [vmem:[#allocation129_spill] sm:$0xff] }
 0x44a   :  { %v3803_v0 = vcvt.s32.f32 %v3796_v28  ;;  %9115 = vcosq.f32 %v3081_v52  ;;  %v3596_v16 = vmul.f32 %v3595_v37, %v3593_v7  ;;  %vm3619_vm5 = vcmp.lt.s32.totalorder %v14144_v59, 0  ;;  %v17678_v7 = vld [vmem:[#allocation12_spill] sm:$0xff]  ;;  %v17680_v37 = vld [vmem:[#allocation123_spill] sm:$0xff] }
 0x44b   :  { %vm14766_vm3 = vcmp.le.f32.partialorder %v17657_v62, 0.7853982  ;;  %v3389_v26 = vxor.u32 2147483648, %v3388_v29  ;;  %v17660_v40 = vand.u32 2147483647, %v17656_v27  ;;  %v3702_v31 = vsel %vm3619_vm5, %v3701_v25, %v3700_v45  ;;  %v17679_v25 = vld [vmem:[#allocation122_spill] sm:$0xff] }
 0x44c   :  { %v3289_v3 = vsel %vm14766_vm3, %v17654_v15, %v3286_v11  ;;  %v3804_v23 = vmul.f32 %v3803_v0, %v3801_v49  ;;  %9117 = vsinq.f32 %v3081_v52  ;;  %vm3307_vm8 = vcmp.lt.s32.totalorder %v17663_v12, 0  ;;  %v17681_v62 = vld [vmem:[#allocation124_spill] sm:$0xff]  ;;  %v17682_v0 = vld [vmem:[#allocation126_spill] sm:$0xff] }
 0x44d   :  { %vm14778_vm14 = vcmp.le.f32.partialorder %v17660_v40, 0.7853982  ;;  %v3829_v13 = vshrl.u32 %v3828_v42, 23  ;;  %v3182_v2 = vsel %vm3099_vm10, %v3181_v34, %v3180_v39  ;;  %9119 = vcosq.f32 %v3289_v3 }
 0x44e   :  { %v3497_v8 = vsel %vm14778_vm14, %v17656_v27, %v3494_v47  ;;  %vm3515_vm4 = vcmp.lt.s32.totalorder %v17664_v10, 0  ;;  %v17665_v32 = vand.u32 2147483647, %v14144_v59  ;;  %9121 = vsinq.f32 %v3289_v3 }
 0x44f   :  { %v3597_v1 = vxor.u32 2147483648, %v3596_v16  ;;  %v4981_v41 = vadd.f32 %v17669_v60, %v17668_v46  ;;  %v14804_v22 = vsel %vm3307_vm8, %v3389_v26, %v3388_v29  ;;  %9123 = vcosq.f32 %v3497_v8  ;;  %v17683_v26 = vld [vmem:[#allocation127_spill] sm:$0xff] }
 0x450   :  { %vm14793_vm15 = vcmp.le.f32.partialorder %v17665_v32, 0.7853982  ;;  %v3805_v19 = vxor.u32 2147483648, %v3804_v23  ;;  %v4992_v45 = vadd.f32 %v17671_v54, %v17670_v5  ;;  %9125 = vsinq.f32 %v3497_v8  ;;  %v17690_v54 = vld [vmem:[#allocation185_spill] sm:$0xff] }
 0x451   :  { %v3705_v56 = vsel %vm14793_vm15, %v14144_v59, %v3702_v31  ;;  %vm3723_vm0 = vcmp.lt.s32.totalorder %v14209_v53, 0  ;;  %v14809_v38 = vadd.s32 4294967169, %v3829_v13  ;;  %v5003_v18 = vadd.f32 %v17674_v17, %v17673_v33  ;;  %v17685_v13 = vld [vmem:[#allocation130_spill] sm:$0xff]  ;;  %v17691_v17 = vld [vmem:[#allocation136_spill] sm:$0xff] }
 0x452   :  { %9127 = vcosq.f32 %v3705_v56  ;;  %v4983_v39 = vadd.f32 %v17675_v24, %v17668_v46  ;;  %v5014_v28 = vadd.f32 %v17677_v48, %v17676_v21  ;;  %v3079_v11 = vsub.s32 4, %v17678_v7  ;;  %v17687_v46 = vld [vmem:[#allocation183_spill] sm:$0xff] }
 0x453   :  { %17672 = vst [vmem:[#allocation161_spill] sm:$0xff] %v14809_v38  ;;  %v14822_v29 = vsel %vm3515_vm4, %v3597_v1, %v3596_v16  ;;  %9129 = vsinq.f32 %v3705_v56  ;;  %v5206_v49 = vadd.f32 %v17679_v25, %v4981_v41  ;;  %v4994_v42 = vadd.f32 %v17680_v37, %v17670_v5  ;;  %v17684_v16 = vld [vmem:[#allocation128_spill] sm:$0xff]  ;;  %v17686_v1 = vld [vmem:[#allocation131_spill] sm:$0xff]  ;;  %v17694_v37 = vld [vmem:[#allocation189_spill] sm:$0xff] }
 0x454   :  { %v14829_v34 = vsel %vm3723_vm0, %v3805_v19, %v3804_v23  ;;  %v5208_v47 = vadd.f32 %v17681_v62, %v4983_v39  ;;  %v5213_v3 = vadd.f32 %v17682_v0, %v4992_v45  ;;  %v5005_v40 = vadd.f32 %v17683_v26, %v17673_v33  ;;  %v17688_v23 = vld [vmem:[#allocation132_spill] sm:$0xff]  ;;  %v17689_v19 = vld [vmem:[#allocation134_spill] sm:$0xff]  ;;  %v17692_v39 = vld [vmem:[#allocation187_spill] sm:$0xff] }
 0x455   :  { %v5215_v8 = vadd.f32 %v17684_v16, %v4994_v42  ;;  %v5220_v32 = vadd.f32 %v17685_v13, %v5003_v18  ;;  %v5016_v56 = vadd.f32 %v17686_v1, %v17676_v21  ;;  %v5400_v60 = vadd.f32 %v17687_v46, %v5206_v49  ;;  %v17693_v18 = vld [vmem:[#allocation188_spill] sm:$0xff]  ;;  %v17695_v62 = vld [vmem:[#allocation190_spill] sm:$0xff] }
 0x456   :  { %v5222_v41 = vadd.f32 %v17688_v23, %v5005_v40  ;;  %v5227_v5 = vadd.f32 %v17689_v19, %v5014_v28  ;;  %v5402_v45 = vadd.f32 %v17690_v54, %v5208_v47  ;;  %v3080_v33 = vsel %vm2995_vm2, %v3079_v11, %v17678_v7  ;;  %v17696_v0 = vld [vmem:[#allocation192_spill] sm:$0xff]  ;;  %v17697_v26 = vld [vmem:[#allocation194_spill] sm:$0xff] }
 0x457   :  { %v5229_v24 = vadd.f32 %v17691_v17, %v5016_v56  ;;  %v5408_v48 = vadd.f32 %v17692_v39, %v5213_v3  ;;  %v5606_v25 = vadd.f32 %v17693_v18, %v5400_v60  ;;  %v5410_v21 = vadd.f32 %v17694_v37, %v5215_v8  ;;  %v14854_v49 = vpop.eup %9115  ;;  %v17698_v11 = vld [vmem:[#allocation196_spill] sm:$0xff]  ;;  %v17699_v13 = vld [vmem:[#allocation198_spill] sm:$0xff]  ;;  %v17703_v60 = vld [vmem:[#allocation193_spill] sm:$0xff] }
 0x458   :  { %v5608_v28 = vadd.f32 %v17695_v62, %v5402_v45  ;;  %v5416_v47 = vadd.f32 %v17696_v0, %v5220_v32  ;;  %v5418_v40 = vadd.f32 %v17697_v26, %v5222_v41  ;;  %v3287_v7 = vsub.s32 4, %v14637_v61  ;;  %v17704_v41 = vld [vmem:[#allocation195_spill] sm:$0xff]  ;;  %v17705_v45 = vld [vmem:[#allocation197_spill] sm:$0xff]  ;;  %v17708_v37 = vld [vmem:[#allocation204_spill] sm:$0xff] }
 0x459   :  { %v5424_v16 = vadd.f32 %v17698_v11, %v5227_v5  ;;  %v5426_v3 = vadd.f32 %v17699_v13, %v5229_v24  ;;  %v3082_v8 = vsel %vm14748_vm13, 0, %v3080_v33  ;;  %v17700_v56 = vand.u32 2147483647, %v17655_v20  ;;  %v14872_v32 = vpop.eup %9117  ;;  %v17706_v17 = vld [vmem:[#allocation199_spill] sm:$0xff]  ;;  %v17707_v39 = vld [vmem:[#allocation201_spill] sm:$0xff] }
 0x45a   :  { %v5615_v23 = vadd.f32 %v17703_v60, %v5408_v48  ;;  %v5617_v19 = vadd.f32 %v17704_v41, %v5410_v21  ;;  %v3183_v5 = vsub.s32 4, %v14659_v55  ;;  %v14880_v36 = vpop.eup %9119  ;;  %v5624_v33 = vadd.f32 %v17705_v45, %v5416_v47  ;;  %v17709_v48 = vld [vmem:[#allocation87_spill] sm:$0xff]  ;;  %v17716_v45 = vld [vmem:[#allocation89_spill] sm:$0xff] }
 0x45b   :  { %vm14868_vm7 = vcmp.le.f32.partialorder %v17700_v56, 0.7853982  ;;  %v5626_v24 = vadd.f32 %v17706_v17, %v5418_v40  ;;  %v5633_v18 = vadd.f32 %v17707_v39, %v5424_v16  ;;  %v5635_v62 = vadd.f32 %v17708_v37, %v5426_v3  ;;  %v14886_v0 = vpop.eup %9121  ;;  %v17713_v3 = vld [vmem:[#allocation84_spill] sm:$0xff] }
 0x45c   :  { %v3185_v54 = vsel %vm14868_vm7, %v17655_v20, %v3182_v2  ;;  %v5809_v21 = vadd.f32 %v17709_v48, %v5606_v25  ;;  %v3086_v13 = vadd.s32 3, %v3082_v8  ;;  %v3288_v2 = vsel %vm3203_vm6, %v3287_v7, %v14637_v61  ;;  %v14902_v16 = vpop.eup %9123  ;;  %v17714_v25 = vld [vmem:[#allocation86_spill] sm:$0xff]  ;;  %v17715_v61 = vld [vmem:[#allocation91_spill] sm:$0xff] }
 0x45d   :  { %v17710_v47 = vand.u32 2147483647, %v17663_v12  ;;  %v5811_v56 = vadd.f32 %v17713_v3, %v5608_v28  ;;  %v5816_v60 = vadd.f32 %v17714_v25, %v5615_v23  ;;  %9131 = vcosq.f32 %v3185_v54  ;;  %v14910_v41 = vpop.eup %9125  ;;  %v17721_v25 = vld [vmem:[#allocation93_spill] sm:$0xff] }
 0x45e   :  { %v14913_v7 = vadd.f32 %v17715_v61, %v5809_v21  ;;  %v5818_v17 = vadd.f32 %v17716_v45, %v5617_v19  ;;  %v3184_v28 = vsel %vm3099_vm10, %v3183_v5, %v14659_v55  ;;  %v17717_v23 = vand.u32 2147483647, %v17664_v10  ;;  %v17720_v5 = vld [vmem:[#allocation120_spill] sm:$0xff] }
 0x45f   :  { %vm14898_vm9 = vcmp.le.f32.partialorder %v17710_v47, 0.7853982  ;;  %9133 = vsinq.f32 %v3185_v54  ;;  %v3290_v19 = vsel %vm14766_vm3, 0, %v3288_v2  ;;  %v3391_v21 = vsub.s32 4, %v14665_v4 }
 0x460   :  { %v3393_v8 = vsel %vm14898_vm9, %v17663_v12, %v14804_v22  ;;  %vm14925_vm12 = vcmp.le.f32.partialorder %v17717_v23, 0.7853982  ;;  %v14929_v22 = vpop.eup %9127  ;;  %v14941_v3 = vadd.f32 %v17720_v5, %v5811_v56  ;;  %v5823_v61 = vadd.f32 %v17721_v25, %v5624_v33 }
 0x461   :  { %v3601_v47 = vsel %vm14925_vm12, %v17664_v10, %v14822_v29  ;;  %v14938_v55 = vpop.eup %9129  ;;  %v3087_v54 = vand.u32 3, %v3086_v13  ;;  %9135 = vcosq.f32 %v3393_v8  ;;  %v3090_v2 = vxor.u32 2147483648, %v14872_v32  ;;  %v17724_v13 = vld [vmem:[#allocation145_spill] sm:$0xff] }
 0x462   :  { %v3093_v23 = vxor.u32 2147483648, %v14854_v49  ;;  %9137 = vsinq.f32 %v3393_v8  ;;  %v3495_v29 = vsub.s32 4, %v14654_v14  ;;  %v14952_v6 = vadd.f32 %v17722_v57, %v5816_v60  ;;  %v17726_v57 = vld [vmem:[#allocation92_spill] sm:$0xff] }
 0x463   :  { %v3186_v33 = vsel %vm14868_vm7, 0, %v3184_v28  ;;  %v3294_v5 = vadd.s32 3, %v3290_v19  ;;  %9139 = vcosq.f32 %v3601_v47  ;;  %v5825_v25 = vadd.f32 %v17724_v13, %v5626_v24 }
 0x464   :  { %v14960_v30 = vadd.f32 %v17725_v51, %v5818_v17  ;;  %v3392_v8 = vsel %vm3307_vm8, %v3391_v21, %v14665_v4  ;;  %9141 = vsinq.f32 %v3601_v47  ;;  %v5830_v60 = vadd.f32 %v17726_v57, %v5633_v18 }
 0x465   :  { %vm3089_vm11 = vcmp.eq.s32.totalorder %v3087_v54, 0  ;;  %vm3092_vm2 = vcmp.eq.s32.totalorder %v3087_v54, 2  ;;  %v3599_v46 = vsub.s32 4, %v14673_v63  ;;  %v3190_v17 = vadd.s32 3, %v3186_v33 }
 0x466   :  { %v3091_v51 = vsel %vm3089_vm11, %v14854_v49, %v3090_v2  ;;  %v3094_v24 = vsel %vm3092_vm2, %v3093_v23, %v14872_v32  ;;  %v3496_v4 = vsel %vm3411_vm1, %v3495_v29, %v14654_v14  ;;  %v3295_v18 = vand.u32 3, %v3294_v5  ;;  %v17731_v49 = vld [vmem:[#allocation141_spill] sm:$0xff]  ;;  %v17732_v2 = vld [vmem:[#allocation96_spill] sm:$0xff] }
 0x467   :  { %v14817_v52 = vpop.f32.mrf.mxu0  ;;  %v3394_v21 = vsel %vm14898_vm9, 0, %v3392_v8  ;;  %v3703_v47 = vsub.s32 4, %v14657_v44  ;;  %v17728_v13 = vand.u32 2147483647, %v14209_v53  ;;  %v14990_v32 = vadd.f32 %v17731_v49, %v5823_v61  ;;  %v17733_v14 = vld [vmem:[#allocation140_spill] sm:$0xff]  ;;  %v17734_v61 = vld [vmem:[#allocation94_spill] sm:$0xff] }
 0x468   :  { %v5832_v23 = vadd.f32 %v17732_v2, %v5635_v62  ;;  %v14994_v29 = vadd.f32 %v17733_v14, %v5825_v25  ;;  %vm3088_vm6 = vcmp.lt.s32.totalorder %v3087_v54, 2  ;;  %v3298_v5 = vxor.u32 2147483648, %v14886_v0 }
 0x469   :  { %v14835_v31 = vpop.f32.mrf.mxu0  ;;  %vm14985_vm13 = vcmp.le.f32.partialorder %v17728_v13, 0.7853982  ;;  %v3498_v8 = vsel %vm14778_vm14, 0, %v3496_v4  ;;  %v3600_v62 = vsel %vm3515_vm4, %v3599_v46, %v14673_v63  ;;  %v15009_v25 = vadd.f32 %v17734_v61, %v5830_v60 }
 0x46a   :  { %v3809_v40 = vsel %vm14985_vm13, %v14209_v53, %v14829_v34  ;;  %v3095_v2 = vsel %vm3088_vm6, %v3091_v51, %v3094_v24  ;;  %v3301_v34 = vxor.u32 2147483648, %v14880_v36  ;;  %v3398_v54 = vadd.s32 3, %v3394_v21  ;;  %v9132_v14 = vpop.eup %9131 }
 0x46b   :  { %vm3297_vm10 = vcmp.eq.s32.totalorder %v3295_v18, 0  ;;  %v3704_v43 = vsel %vm3619_vm5, %v3703_v47, %v14657_v44  ;;  %9143 = vcosq.f32 %v3809_v40  ;;  %v3502_v46 = vadd.s32 3, %v3498_v8 }
 0x46c   :  { %v14852_v42 = vpop.f32.mrf.mxu0  ;;  %v3602_v51 = vsel %vm14925_vm12, 0, %v3600_v62  ;;  %v3807_v24 = vsub.s32 4, %v14677_v9  ;;  %9145 = vsinq.f32 %v3809_v40  ;;  %v9134_v4 = vpop.eup %9133  ;;  %vm3085_vm1 = vweird.f32 %v17646_v35 }
 0x46d   :  { %v3299_v44 = vsel %vm3297_vm10, %v14880_v36, %v3298_v5  ;;  %vm3300_vm3 = vcmp.eq.s32.totalorder %v3295_v18, 2  ;;  %v3197_v8 = vxor.u32 2147483648, %v9132_v14  ;;  %v15038_v62 = vand.u32 3, %v3398_v54 }
 0x46e   :  { %v14862_v1 = vpop.f32.mrf.mxu0  ;;  %v9136_v47 = vpop.eup %9135  ;;  %v3302_v48 = vsel %vm3300_vm3, %v3301_v34, %v14886_v0  ;;  %v3706_v40 = vsel %vm14793_vm15, 0, %v3704_v43  ;;  %v3606_v35 = vadd.s32 3, %v3602_v51  ;;  %vm3296_vm4 = vcmp.lt.s32.totalorder %v3295_v18, 2 }
 0x46f   :  { %v3503_v0 = vand.u32 3, %v3502_v46  ;;  %v3808_v50 = vsel %vm3723_vm0, %v3807_v24, %v14677_v9  ;;  %v3194_v34 = vxor.u32 2147483648, %v9134_v4  ;;  %v3303_v54 = vsel %vm3296_vm4, %v3299_v44, %v3302_v48 }
 0x470   :  { %v3506_v43 = vxor.u32 2147483648, %v14910_v41  ;;  %vm3293_vm15 = vweird.f32 %v17654_v15  ;;  %vm3400_vm7 = vcmp.lt.s32.totalorder %v15038_v62, 2  ;;  %vm3401_vm9 = vcmp.eq.s32.totalorder %v15038_v62, 0 }
 0x471   :  { %v14889_v26 = vpop.f32.mrf.mxu0  ;;  %v14891_v11 = vpop.f32.mrf.mxu1  ;;  %v3509_v18 = vxor.u32 2147483648, %v14902_v16  ;;  %vm3189_vm0 = vweird.f32 %v17655_v20  ;;  %v3405_v24 = vxor.u32 2147483648, %v9136_v47  ;;  %v3607_v44 = vand.u32 3, %v3606_v35 }
 0x472   :  { %v3810_v48 = vsel %vm14985_vm13, 0, %v3808_v50  ;;  %vm3397_vm12 = vweird.f32 %v17663_v12  ;;  %vm3404_vm11 = vcmp.eq.s32.totalorder %v15038_v62, 2  ;;  %vm3505_vm2 = vcmp.eq.s32.totalorder %v3503_v0, 0  ;;  %v8907_v62 = vld [vmem:[%s16632_s4 + $0x40] sm:$0xff] }
 0x473   :  { %v14916_v39 = vpop.f32.mrf.mxu0  ;;  %v14918_v37 = vpop.f32.mrf.mxu1  ;;  %v3507_v53 = vsel %vm3505_vm2, %v14902_v16, %v3506_v43  ;;  %vm3508_vm6 = vcmp.eq.s32.totalorder %v3503_v0, 2  ;;  %vm3609_vm13 = vcmp.eq.s32.totalorder %v3607_v44, 0  ;;  %vm3612_vm10 = vcmp.eq.s32.totalorder %v3607_v44, 2 }
 0x474   :  { %v3510_v50 = vsel %vm3508_vm6, %v3509_v18, %v14910_v41  ;;  %vm3608_vm3 = vcmp.lt.s32.totalorder %v3607_v44, 2  ;;  %vm3605_vm4 = vweird.f32 %v17664_v10  ;;  %v6876_v15 = vadd.f32 %v14862_v1, %v14960_v30 }
 0x475   :  { %v14944_v45 = vpop.f32.mrf.mxu0  ;;  %v6865_v30 = vadd.f32 %v14835_v31, %v14941_v3  ;;  %v6885_v12 = vadd.f32 %v14889_v26, %v14990_v32  ;;  %v6863_v31 = vadd.f32 %v14817_v52, %v14913_v7 }
 0x476   :  { %v14946_v58 = vpop.f32.mrf.mxu1 }
 0x477   :  { %v14954_v56 = vpop.f32.mrf.mxu0  ;;  %v7010_v3 = vadd.f32 %v14918_v37, %v6865_v30 }
 0x478   :  { %17723 = vst [vmem:[#allocation27_spill] sm:$0xff] %v14954_v56  ;;  %v14962_v38 = vpop.f32.mrf.mxu1 }
 0x479   :  { %v14968_v56 = vpop.f32.mrf.mxu0  ;;  %v7017_v1 = vadd.f32 %v14962_v38, %v6876_v15 }
 0x47a   :  { %17727 = vst [vmem:[#allocation49_spill] sm:$0xff] %v14968_v56  ;;  %v14971_v28 = vpop.f32.mrf.mxu1  ;;  %v15016_v56 = vand.u32 3, %v3190_v17  ;;  %v17737_v17 = vld [vmem:[#allocation152_spill] sm:$0xff] }
 0x47b   :  { %v14978_v19 = vpop.f32.mrf.mxu0  ;;  %v15029_v21 = vadd.f32 %v17737_v17, %v5832_v23  ;;  %v9138_v23 = vpop.eup %9137  ;;  %v15042_v17 = vsel %vm3085_vm1, nan, %v3095_v2  ;;  %vm3504_vm1 = vcmp.lt.s32.totalorder %v3503_v0, 2  ;;  %v7022_v26 = vadd.f32 %v14971_v28, %v6885_v12 }
 0x47c   :  { %v14996_v33 = vpop.f32.mrf.mxu1  ;;  %17740 = vst [vmem:[#allocation160_spill] sm:$0xff] %v15042_v17  ;;  %vm3192_vm5 = vcmp.lt.s32.totalorder %v15016_v56, 2  ;;  %vm3193_vm14 = vcmp.eq.s32.totalorder %v15016_v56, 0  ;;  %v9140_v36 = vpop.eup %9139  ;;  %vm3196_vm8 = vcmp.eq.s32.totalorder %v15016_v56, 2  ;;  %v3710_v17 = vadd.s32 3, %v3706_v40 }
 0x47d   :  { %17738 = vst [vmem:[#allocation163_spill] sm:$0xff] %v15029_v21  ;;  %v9142_v2 = vpop.eup %9141  ;;  %v3198_v59 = vsel %vm3196_vm8, %v3197_v8, %v9134_v4  ;;  %v3402_v9 = vxor.u32 2147483648, %v9138_v23  ;;  %v3613_v8 = vxor.u32 2147483648, %v9140_v36  ;;  %v7120_v52 = vadd.f32 %v14978_v19, %v7010_v3 }
 0x47e   :  { %v15011_v13 = vpop.f32.mrf.mxu1  ;;  %v15013_v49 = vpop.f32.mrf.mxu0  ;;  %v3610_v4 = vxor.u32 2147483648, %v9142_v2  ;;  %v3711_v35 = vand.u32 3, %v3710_v17 }
 0x47f   :  { %17735 = vst [vmem:[#allocation51_spill] sm:$0xff] %v15011_v13  ;;  %v3403_v21 = vsel %vm3401_vm9, %v9136_v47, %v3402_v9  ;;  %v9144_v16 = vpop.eup %9143  ;;  %v3614_v43 = vsel %vm3612_vm10, %v3613_v8, %v9142_v2  ;;  %v6874_v2 = vadd.f32 %v14852_v42, %v14952_v6  ;;  %v6887_v6 = vadd.f32 %v14916_v39, %v14994_v29 }
 0x480   :  { %v15021_v63 = vpop.f32.mrf.mxu1  ;;  %v15023_v60 = vpop.f32.mrf.mxu0  ;;  %vm3716_vm8 = vcmp.eq.s32.totalorder %v3711_v35, 2  ;;  %v6896_v39 = vadd.f32 %v14944_v45, %v15009_v25 }
 0x481   :  { %17736 = vst [vmem:[#allocation164_spill] sm:$0xff] %v15021_v63  ;;  %v9146_v18 = vpop.eup %9145  ;;  %v7015_v42 = vadd.f32 %v14946_v58, %v6874_v2  ;;  %v7128_v38 = vadd.f32 %v15023_v60, %v7017_v1  ;;  %v7024_v58 = vadd.f32 %v14996_v33, %v6887_v6 }
 0x482   :  { %v15033_v61 = vpop.f32.mrf.mxu0  ;;  %v15035_v63 = vpop.f32.mrf.mxu1 }
 0x483   :  { %17739 = vst [vmem:[#allocation162_spill] sm:$0xff] %v15035_v63  ;;  %v7126_v29 = vadd.f32 %v15013_v49, %v7015_v42  ;;  %v7134_v7 = vadd.f32 %v15033_v61, %v7022_v26 }
 0x484   :  { %v15046_v5 = vpop.f32.mrf.mxu0  ;;  %v15048_v63 = vpop.f32.mrf.mxu1  ;;  %v17748_v60 = vld [vmem:[#allocation163_spill] sm:$0xff] }
 0x485   :  { %17741 = vst [vmem:[#allocation17_spill] sm:$0xff] %v15046_v5  ;;  %17742 = vst [vmem:[#allocation7_spill] sm:$0xff] %v15048_v63  ;;  %v3195_v63 = vsel %vm3193_vm14, %v9132_v14, %v3194_v34  ;;  %v3814_v5 = vadd.s32 3, %v3810_v48  ;;  %v3406_v14 = vsel %vm3404_vm11, %v3405_v24, %v9138_v23  ;;  %v3611_v34 = vsel %vm3609_vm13, %v9140_v36, %v3610_v4 }
 0x486   :  { %v15055_v51 = vpop.f32.mrf.mxu0  ;;  %v3199_v41 = vsel %vm3192_vm5, %v3195_v63, %v3198_v59  ;;  %vm3713_vm14 = vcmp.eq.s32.totalorder %v3711_v35, 0  ;;  %v3407_v23 = vsel %vm3400_vm7, %v3403_v21, %v3406_v14  ;;  %v15104_v36 = vsel %vm3293_vm15, nan, %v3303_v54 }
 0x487   :  { %17743 = vst [vmem:[#allocation10_spill] sm:$0xff] %v15055_v51  ;;  %v15061_v46 = vpop.f32.mrf.mxu1  ;;  %v15098_v59 = vand.u32 3, %v3814_v5  ;;  %vm3501_vm5 = vweird.f32 %v17656_v27  ;;  %v15110_v21 = vsel %vm3189_vm0, nan, %v3199_v41  ;;  %vm3712_vm7 = vcmp.lt.s32.totalorder %v3711_v35, 2 }
 0x488   :  { %17744 = vst [vmem:[#allocation137_spill] sm:$0xff] %v15061_v46  ;;  %v15066_v40 = vpop.f32.mrf.mxu0  ;;  %v3717_v46 = vxor.u32 2147483648, %v14929_v22  ;;  %v15121_v27 = vsel %vm3397_vm12, nan, %v3407_v23  ;;  %vm17747_vm0 = vcmask 261120  }
 0x489   :  { %17745 = vst [vmem:[#allocation158_spill] sm:$0xff] %v15066_v40  ;;  %v15070_v51 = vpop.f32.mrf.mxu1  ;;  %v3714_v40 = vxor.u32 2147483648, %v14938_v55  ;;  %vm3817_vm15 = vcmp.eq.s32.totalorder %v15098_v59, 0  ;;  %vm3820_vm9 = vcmp.eq.s32.totalorder %v15098_v59, 2  ;;  %v7487_v44 = vsel %vm17747_vm0, %v8907_v62, 0  ;;  %vm17762_vm6 = vmmov %vm17747_vm0 }
 0x48a   :  { %v15075_v57 = vpop.f32.mrf.mxu0  ;;  %v3718_v56 = vsel %vm3716_vm8, %v3717_v46, %v14938_v55  ;;  %v3821_v55 = vxor.u32 2147483648, %v9144_v16  ;;  %vm3816_vm12 = vcmp.lt.s32.totalorder %v15098_v59, 2  ;;  %v15152_v35 = vand.u32 4294901760, %v7487_v44  ;;  %v17759_v30 = vld [vmem:[#allocation162_spill] sm:$0xff]  ;;  %vm17764_vm13 = vmmov %vm17747_vm0 }
 0x48b   :  { %17746 = vst [vmem:[#allocation28_spill] sm:$0xff] %v15075_v57  ;;  %v15080_v13 = vpop.f32.mrf.mxu1  ;;  %v3511_v57 = vsel %vm3504_vm1, %v3507_v53, %v3510_v50  ;;  %v3715_v9 = vsel %vm3713_vm14, %v14929_v22, %v3714_v40  ;;  %v3615_v53 = vsel %vm3608_vm3, %v3611_v34, %v3614_v43  ;;  %v3818_v22 = vxor.u32 2147483648, %v9146_v18  ;;  %v17749_v50 = vld [vmem:[#allocation27_spill] sm:$0xff]  ;;  %v17753_v34 = vld [vmem:[#allocation16_spill] sm:$0xff]  ;;  %vm17766_vm10 = vmmov %vm17747_vm0 }
 0x48c   :  { %v15086_v17 = vpop.f32.mrf.mxu0  ;;  %v15123_v10 = vsel %vm3501_vm5, nan, %v3511_v57  ;;  %v15125_v20 = vsel %vm3712_vm7, %v3715_v9, %v3718_v56  ;;  %v15129_v46 = vsel %vm3605_vm4, nan, %v3615_v53  ;;  %v3822_v4 = vsel %vm3820_vm9, %v3821_v55, %v9146_v18  ;;  %v17751_v25 = vld [vmem:[#allocation17_spill] sm:$0xff]  ;;  %v17754_v43 = vld [vmem:[#allocation44_spill] sm:$0xff]  ;;  %v17756_v18 = vld [vmem:[#allocation7_spill] sm:$0xff] }
 0x48d   :  { %v15090_v48 = vpop.f32.mrf.mxu1  ;;  %v3819_v40 = vsel %vm3817_vm15, %v9144_v16, %v3818_v22  ;;  %v7008_v57 = vadd.f32 %v14891_v11, %v6863_v31  ;;  %v7235_v37 = vadd.f32 %v15070_v51, %v7128_v38  ;;  %v6898_v14 = vadd.f32 %v17749_v50, %v17748_v60  ;;  %v17750_v16 = vld [vmem:[#allocation51_spill] sm:$0xff]  ;;  %v17755_v11 = vld [vmem:[#allocation49_spill] sm:$0xff]  ;;  %v17757_v53 = vld [vmem:[#allocation164_spill] sm:$0xff] }
 0x48e   :  { %v15092_v47 = vpop.f32.mrf.mxu0  ;;  %v7029_v45 = vadd.f32 %v17750_v16, %v6896_v39  ;;  %v7136_v33 = vadd.f32 %v17751_v25, %v7024_v58  ;;  %vm3709_vm11 = vweird.f32 %v17753_v34  ;;  %vm3813_vm2 = vweird.f32 %v17754_v43  ;;  %v17758_v55 = vld [vmem:[#allocation10_spill] sm:$0xff] }
 0x48f   :  { %v15100_v63 = vpop.f32.mrf.mxu1  ;;  %v17752_v41 = vld [vmem:[#allocation137_spill] sm:$0xff]  ;;  %v7118_v19 = vadd.f32 %v17755_v11, %v7008_v57  ;;  %v7226_v61 = vadd.f32 %v17756_v18, %v7120_v52  ;;  %v7242_v51 = vadd.f32 %v15080_v13, %v7134_v7  ;;  %v7031_v22 = vadd.f32 %v17757_v53, %v6898_v14  ;;  %v8910_v18 = vld [vmem:[%s16632_s4 + $0x58] sm:$0xff] }
 0x490   :  { %v7355_v0 = vpop.f32.mrf.mxu0  ;;  %v7233_v49 = vadd.f32 %v17752_v41, %v7126_v29  ;;  %v7142_v62 = vadd.f32 %v17758_v55, %v7029_v45  ;;  %v7244_v15 = vadd.f32 %v15090_v48, %v7136_v33  ;;  %v8908_v13 = vld [vmem:[%s16632_s4 + $0x48] sm:$0xff]  ;;  %v17763_v33 = vld [vmem:[#allocation160_spill] sm:$0xff] }
 0x491   :  { %v15117_v5 = vpop.f32.mrf.mxu1  ;;  %v7356_v23 = vadd.f32 %v7355_v0, %v7235_v37  ;;  %v7224_v12 = vadd.f32 %v17759_v30, %v7118_v19  ;;  %v7349_v1 = vadd.f32 %v15086_v17, %v7226_v61  ;;  %v17760_v0 = vld [vmem:[#allocation158_spill] sm:$0xff]  ;;  %v3823_v17 = vsel %vm3816_vm12, %v3819_v40, %v3822_v4  ;;  %v17765_v61 = vld [vmem:[#allocation161_spill] sm:$0xff] }
 0x492   :  { %v7360_v54 = vpop.f32.mrf.mxu0  ;;  %v7354_v2 = vadd.f32 %v15092_v47, %v7233_v49  ;;  %v7144_v3 = vadd.f32 %v17760_v0, %v7031_v22  ;;  %v7251_v26 = vadd.f32 %v15100_v63, %v7142_v62  ;;  %v17761_v48 = vld [vmem:[#allocation28_spill] sm:$0xff]  ;;  %v7490_v60 = vsel %vm17762_vm6, %v8908_v13, 0 }
 0x493   :  { %v7447_v24 = vpop.f32.mrf.mxu1  ;;  %v7361_v6 = vadd.f32 %v7360_v54, %v7242_v51  ;;  %v7347_v58 = vadd.f32 %v17761_v48, %v7224_v12  ;;  %v15200_v4 = vand.u32 4294901760, %v7490_v60  ;;  %v3835_v51 = vadd.s32 1, %v17765_v61  ;;  %v17768_v48 = vld [vmem:[#allocation66_spill] sm:$0xff] }
 0x494   :  { %v7362_v32 = vpop.f32.mrf.mxu0  ;;  %v7253_v54 = vadd.f32 %v15117_v5, %v7144_v3  ;;  %v8909_v5 = vld [vmem:[%s16632_s4 + $0x50] sm:$0xff]  ;;  %v7496_v30 = vsel %vm17766_vm10, %v8910_v18, 0 }
 0x495   :  { %v7449_v8 = vpop.f32.mrf.mxu1  ;;  %v7363_v38 = vadd.f32 %v7362_v32, %v7244_v15  ;;  %v7448_v50 = vadd.f32 %v7447_v24, %v7347_v58  ;;  %vm3836_vm1 = vcmp.gt.s32.totalorder %v3835_v51, 0 }
 0x496   :  { %v7367_v9 = vpop.f32.mrf.mxu0  ;;  %v7450_v47 = vadd.f32 %v7449_v8, %v7349_v1  ;;  %v15187_v8 = vsub.f32 %v7487_v44, %v15152_v35 }
 0x497   :  { %v7454_v28 = vpop.f32.mrf.mxu1  ;;  %v7368_v7 = vadd.f32 %v7367_v9, %v7251_v26  ;;  %v7473_v41 = vmul.f32 %v7448_v50, %v17763_v33  ;;  %v15225_v9 = vsub.f32 %v7490_v60, %v15200_v4  ;;  %v17769_v60 = vld [vmem:[#allocation69_spill] sm:$0xff] }
 0x498   :  { %v7455_v39 = vadd.f32 %v7454_v28, %v7354_v2  ;;  %v7369_v29 = vpop.f32.mrf.mxu0  ;;  %v7474_v24 = vmul.f32 %v7450_v47, %v15110_v21  ;;  %v7573_v21 = vand.u32 4294901760, %v15187_v8 }
 0x499   :  { %v7456_v56 = vpop.f32.mrf.mxu1  ;;  %v7370_v16 = vadd.f32 %v7369_v29, %v7253_v54  ;;  %v15237_v62 = vand.u32 4294901760, %v7473_v41  ;;  %v16865_v13 = vand.u32 4294901760, %v15225_v9 }
 0x49a   :  { %v7457_v42 = vadd.f32 %v7456_v56, %v7356_v23  ;;  %v7475_v14 = vmul.f32 %v7455_v39, %v15104_v36  ;;  %v15222_v23 = vand.u32 4294901760, %v7474_v24  ;;  %v7574_v2 = vsub.f32 %v15187_v8, %v7573_v21  ;;  %v17767_v39 = vld [vmem:[#allocation36_spill] sm:$0xff] }
 0x49b   :  { %v7461_v31 = vpop.f32.mrf.mxu1  ;;  %v1125_v58 = vadd.f32 %v17768_v48, %v17767_v39  ;;  %v15271_v47 = vsub.f32 %v7473_v41, %v15237_v62  ;;  %v17771_v41 = vld [vmem:[#allocation37_spill] sm:$0xff] }
 0x49c   :  { %v7462_v57 = vadd.f32 %v7461_v31, %v7361_v6  ;;  %v7476_v63 = vmul.f32 %v7457_v42, %v15121_v27  ;;  %v3720_v27 = vsel %vm3709_vm11, nan, %v15125_v20  ;;  %v7493_v20 = vsel %vm17764_vm13, %v8909_v5, 0 }
 0x49d   :  { %v7463_v52 = vpop.f32.mrf.mxu1  ;;  %v15211_v34 = vand.u32 4294901760, %v7475_v14  ;;  %v15235_v55 = vand.u32 4294901760, %v7493_v20  ;;  %v15256_v31 = vsub.f32 %v7474_v24, %v15222_v23  ;;  %v15290_v50 = vadd.f32 %v17769_v60, %v1125_v58  ;;  %v17774_v58 = vld [vmem:[#allocation71_spill] sm:$0xff] }
 0x49e   :  { %v7464_v37 = vadd.f32 %v7463_v52, %v7363_v38  ;;  %v7477_v32 = vmul.f32 %v7462_v57, %v15123_v10  ;;  %v3824_v10 = vsel %vm3813_vm2, nan, %v3823_v17  ;;  %v15207_v49 = vand.u32 4294901760, %v7476_v63 }
 0x49f   :  { %v7468_v28 = vpop.f32.mrf.mxu1  ;;  %v15247_v12 = vsub.f32 %v7475_v14, %v15211_v34  ;;  %v15264_v26 = vsub.f32 %v7493_v20, %v15235_v55  ;;  %v15266_v38 = vand.u32 4294901760, %v7496_v30  ;;  %v7575_v17 = vand.u32 4294901760, %v7574_v2  ;;  %17770 = vst [vmem:[#allocation50_spill] sm:$0xff] %v15290_v50  ;;  %v17772_v20 = vld [vmem:[#allocation68_spill] sm:$0xff] }
 0x4a0   :  { %v7478_v59 = vmul.f32 %v7464_v37, %v15129_v46  ;;  %v7469_v40 = vadd.f32 %v7468_v28, %v7368_v7  ;;  %v15202_v36 = vand.u32 4294901760, %v7477_v32  ;;  %v15240_v15 = vsub.f32 %v7476_v63, %v15207_v49 }
 0x4a1   :  { %v7470_v44 = vpop.f32.mrf.mxu1  ;;  %v7671_v52 = vand.u32 4294901760, %v15247_v12  ;;  %v15287_v37 = vsel %vm3836_vm1, %v3835_v51, 0  ;;  %v7585_v63 = vsub.f32 %v15225_v9, %v16865_v13  ;;  %v17773_v2 = vmov 0.0  }
 0x4a2   :  { %v15204_v46 = vand.u32 4294901760, %v7478_v59  ;;  %v7479_v45 = vmul.f32 %v7469_v40, %v3720_v27  ;;  %v7471_v25 = vadd.f32 %v7470_v44, %v7370_v16  ;;  %v15228_v56 = vsub.f32 %v7477_v32, %v15202_v36 }
 0x4a3   :  { %v7665_v57 = vand.u32 4294901760, %v15240_v15  ;;  %v7677_v32 = vand.u32 4294901760, %v15256_v31  ;;  %v16864_v16 = vand.u32 4294901760, %v15264_v26  ;;  %v7683_v40 = vand.u32 4294901760, %v15271_v47 }
 0x4a4   :  { %v15214_v43 = vsub.f32 %v7478_v59, %v15204_v46  ;;  %v15216_v11 = vand.u32 4294901760, %v7479_v45  ;;  %v7480_v19 = vmul.f32 %v7471_v25, %v3824_v10  ;;  %v7659_v0 = vand.u32 4294901760, %v15228_v56 }
 0x4a5   :  { %v15303_v59 = vsub.f32 %v7496_v30, %v15266_v38  ;;  %v7666_v24 = vsub.f32 %v15240_v15, %v7665_v57  ;;  %v15311_v27 = vand.u32 31, %v15287_v37  ;;  %v7672_v44 = vsub.f32 %v15247_v12, %v7671_v52 }
 0x4a6   :  { %v15231_v53 = vsub.f32 %v7479_v45, %v15216_v11  ;;  %v15233_v22 = vand.u32 4294901760, %v7480_v19  ;;  %v7653_v42 = vand.u32 4294901760, %v15214_v43  ;;  %v7660_v14 = vsub.f32 %v15228_v56, %v7659_v0 }
 0x4a7   :  { %v3932_v45 = vand.u32 2139095040, %v15290_v50  ;;  %v7586_v25 = vand.u32 4294901760, %v7585_v63  ;;  %v7678_v33 = vsub.f32 %v15256_v31, %v7677_v32  ;;  %v7596_v61 = vsub.f32 %v15264_v26, %v16864_v16 }
 0x4a8   :  { %v7647_v1 = vand.u32 4294901760, %v15231_v53  ;;  %v15251_v6 = vsub.f32 %v7480_v19, %v15233_v22  ;;  %7523 = vmatprep.subr.mxu0 %v15233_v22  ;;  %v7654_v7 = vsub.f32 %v15214_v43, %v7653_v42  ;;  %v1130_v19 = vadd.f32 %v17772_v20, %v17771_v41 }
 0x4a9   :  { %7525 = vmatpush1.msra.mxu0 %v15216_v11  ;;  %v7661_v18 = vand.u32 4294901760, %v7660_v14  ;;  %v16863_v51 = vand.u32 4294901760, %v15303_v59  ;;  %v7667_v30 = vand.u32 4294901760, %v7666_v24  ;;  %v7684_v39 = vsub.f32 %v15271_v47, %v7683_v40 }
 0x4aa   :  { %7527 = vmatprep.subr.mxu0 %v15204_v46  ;;  %v7641_v3 = vand.u32 4294901760, %v15251_v6  ;;  %v7648_v29 = vsub.f32 %v15231_v53, %v7647_v1  ;;  %v7655_v10 = vand.u32 4294901760, %v7654_v7  ;;  %v15334_v48 = vsub.s32 32, %v15311_v27 }
 0x4ab   :  { %7529 = vmatpush1.msra.mxu0 %v15202_v36  ;;  %v7679_v7 = vand.u32 4294901760, %v7678_v33  ;;  %v7597_v60 = vand.u32 4294901760, %v7596_v61  ;;  %v7607_v63 = vsub.f32 %v15303_v59, %v16863_v51  ;;  %v17776_v14 = vmov 920167782  }
 0x4ac   :  { %7531 = vmatprep.subr.mxu0 %v15207_v49  ;;  %v7642_v54 = vsub.f32 %v15251_v6, %v7641_v3  ;;  %v7649_v5 = vand.u32 4294901760, %v7648_v29  ;;  %v15337_v29 = vadd.f32 %v17774_v58, %v1130_v19  ;;  %v17777_v24 = vmov 1326507024  }
 0x4ad   :  { %7533 = vmatpush1.msra.mxu0 %v15211_v34  ;;  %v17779_v41 = vmov 2475754826   ;;  %v17780_v19 = vmov 2131351028   ;;  %v3854_v61 = vshll.u32 %v17776_v14, %v15311_v27 }
 0x4ae   :  { %7535 = vmatprep.subr.mxu0 %v15222_v23  ;;  %v7643_v28 = vand.u32 4294901760, %v7642_v54  ;;  %17775 = vst [vmem:[#allocation166_spill] sm:$0xff] %v15337_v29  ;;  %v3933_v54 = vshrl.u32 %v3932_v45, 23  ;;  %v17778_v45 = vmov 2102212464   ;;  %v3843_v20 = vshrl.u32 %v17779_v41, %v15334_v48 }
 0x4af   :  { %7537 = vmatpush1.msra.mxu0 %v15237_v62 }
 0x4b0   :  { %7576 = vmatmul.mubr.f32.vlgmr.msra.gmra.mxu0 %v7575_v17  ;;  %7644 = vmatprep.subr.mxu1 %v7643_v28  ;;  %v7673_v17 = vand.u32 4294901760, %v7672_v44  ;;  %v7685_v28 = vand.u32 4294901760, %v7684_v39  ;;  %v4036_v44 = vand.u32 2139095040, %v15337_v29  ;;  %v8875_v33 = vadd.s32 4294967169, %v3933_v54  ;;  %v17781_v39 = vld [vmem:[#allocation48_spill] sm:$0xff] }
 0x4b1   :  { %7774 = vmatprep.subr.mxu0 %v15251_v6  ;;  %7650 = vmatpush1.msra.mxu1 %v7649_v5  ;;  %v3852_v5 = vshrl.u32 %v17776_v14, %v15334_v48  ;;  %v16872_v58 = vand.u32 2147483647, %v17781_v39  ;;  %v17782_v54 = vmov 683565275  }
 0x4b2   :  { %7777 = vmatpush1.msra.mxu0 %v15231_v53  ;;  %7656 = vmatprep.subr.mxu1 %v7655_v10  ;;  %v3855_v10 = vshrl.u32 %v17777_v24, %v15334_v48  ;;  %v4037_v16 = vshrl.u32 %v4036_v44, 23 }
 0x4b3   :  { %7780 = vmatprep.subr.mxu0 %v15214_v43  ;;  %7581 = vmatprep.mubr.f32.mxu0 %v17773_v2 }
 0x4b4   :  { %7662 = vmatpush1.msra.mxu1 %v7661_v18  ;;  %7783 = vmatpush1.msra.mxu0 %v15228_v56  ;;  %v3846_v18 = vshrl.u32 %v17780_v19, %v15334_v48  ;;  %v3856_v51 = vor.u32 %v3855_v10, %v3854_v61  ;;  %v3841_v56 = vshrl.u32 %v17782_v54, %v15334_v48 }
 0x4b5   :  { %7587 = vmatmul.mubr.f32.gmra.mxu0 %v7586_v25  ;;  %7668 = vmatprep.subr.mxu1 %v7667_v30  ;;  %v3851_v25 = vshll.u32 %v17778_v45, %v15311_v27  ;;  %v7608_v30 = vand.u32 4294901760, %v7607_v63 }
 0x4b6   :  { %7786 = vmatprep.subr.mxu0 %v15240_v15  ;;  %7674 = vmatpush1.msra.mxu1 %v7673_v17  ;;  %v15364_v17 = vshrl.u32 %v15287_v37, 5  ;;  %v3848_v37 = vshll.u32 %v17780_v19, %v15311_v27 }
 0x4b7   :  { %7789 = vmatpush1.msra.mxu0 %v15247_v12  ;;  %7680 = vmatprep.subr.mxu1 %v7679_v7  ;;  %v3842_v7 = vshll.u32 %v17782_v54, %v15311_v27  ;;  %v3853_v63 = vor.u32 %v3852_v5, %v3851_v25  ;;  %v3832_v5 = vand.u32 8388607, %v16872_v58  ;;  %v8879_v25 = vadd.s32 4294967169, %v4037_v16 }
 0x4b8   :  { %7792 = vmatprep.subr.mxu0 %v15256_v31  ;;  %7592 = vmatprep.mubr.f32.mxu0 %v17773_v2  ;;  %vm3860_vm3 = vcmp.lt.s32.totalorder %v15364_v17, 4  ;;  %vm3857_vm14 = vcmp.lt.s32.totalorder %v15364_v17, 1  ;;  %vm3859_vm8 = vcmp.lt.s32.totalorder %v15364_v17, 3  ;;  %vm3858_vm4 = vcmp.lt.s32.totalorder %v15364_v17, 2 }
 0x4b9   :  { %7686 = vmatpush1.msra.mxu1 %v7685_v28  ;;  %7795 = vmatpush1.msra.mxu0 %v15271_v47  ;;  %v3849_v28 = vshrl.u32 %v17778_v45, %v15334_v48  ;;  %v3844_v13 = vor.u32 %v3843_v20, %v3842_v7  ;;  %v3870_v44 = vsel %vm3860_vm3, %v3856_v51, 1326507024  ;;  %v3833_v16 = vor.u32 8388608, %v3832_v5  ;;  %v17783_v47 = vld [vmem:[#allocation19_spill] sm:$0xff] }
 0x4ba   :  { %7598 = vmatmul.mubr.f32.gmra.mxu0 %v7597_v60  ;;  %7721 = vmatmul.mubr.f32.vlgmr.msra.gmra.mxu1 %v15152_v35  ;;  %v3845_v60 = vshll.u32 %v17779_v41, %v15311_v27  ;;  %v3866_v27 = vsel %vm3860_vm3, %v3853_v63, 920167782  ;;  %v4043_v61 = vadd.s32 1, %v8879_v25 }
 0x4bb   :  { %7886 = vmatprep.subr.mxu1 %v15233_v22  ;;  %7997 = vmatprep.subr.mxu0 %v7641_v3  ;;  %v3939_v3 = vadd.s32 1, %v8875_v33  ;;  %v3850_v10 = vor.u32 %v3849_v28, %v3848_v37  ;;  %v15424_v43 = vshll.u32 %v3833_v16, 8  ;;  %v3861_v12 = vsel %vm3857_vm14, %v3841_v56, %v3844_v13 }
 0x4bc   :  { %7888 = vmatpush1.msra.mxu1 %v15216_v11  ;;  %7603 = vmatprep.mubr.f32.mxu0 %v17773_v2  ;;  %v3847_v6 = vor.u32 %v3846_v18, %v3845_v60  ;;  %v3871_v18 = vsel %vm3859_vm8, %v3853_v63, %v3870_v44  ;;  %vm4044_vm7 = vcmp.gt.s32.totalorder %v4043_v61, 0  ;;  %v17787_v28 = vand.u32 4294901760, %v15225_v9  ;;  %v17788_v60 = vld [vmem:[#allocation38_spill] sm:$0xff]  ;;  %v17789_v63 = vld [vmem:[#allocation72_spill] sm:$0xff] }
 0x4bd   :  { %7890 = vmatprep.subr.mxu1 %v15204_v46  ;;  %7726 = vmatprep.mubr.f32.mxu1 %v17773_v2  ;;  %vm3940_vm5 = vcmp.gt.s32.totalorder %v3939_v3, 0  ;;  %v3867_v51 = vsel %vm3859_vm8, %v3850_v10, %v3866_v27  ;;  %v15453_v48 = vsel %vm4044_vm7, %v4043_v61, 0  ;;  %v1137_v37 = vadd.f32 %v17789_v63, %v17788_v60 }
 0x4be   :  { %7892 = vmatpush1.msra.mxu1 %v15202_v36  ;;  %7609 = vmatmul.mubr.f32.gmra.mxu0 %v7608_v30  ;;  %v3865_v33 = vsel %vm3857_vm14, %v3844_v13, %v3847_v6  ;;  %v3869_v20 = vsel %vm3857_vm14, %v3847_v6, %v3850_v10  ;;  %v3941_v30 = vsel %vm3940_vm5, %v3939_v3, 0 }
 0x4bf   :  { %7728 = vmatmul.mubr.f32.gmra.mxu1 %v15200_v4  ;;  %7894 = vmatprep.subr.mxu1 %v15207_v49  ;;  %v3868_v7 = vsel %vm3858_vm4, %v3865_v33, %v3867_v51  ;;  %v3872_v53 = vsel %vm3858_vm4, %v3869_v20, %v3871_v18  ;;  %v16871_v33 = vand.u32 2147483647, %v15337_v29  ;;  %v17790_v51 = vand.u32 4294901760, %v15264_v26 }
 0x4c0   :  { %7896 = vmatpush1.msra.mxu1 %v15211_v34  ;;  %7733 = vmatprep.mubr.f32.mxu1 %v17773_v2 }
 0x4c1   :  { %7898 = vmatprep.subr.mxu1 %v15222_v23  ;;  %7828 = vmatprep.mubr.f32.mxu0 %v17773_v2 }
 0x4c2   :  { %7900 = vmatpush1.msra.mxu1 %v15237_v62  ;;  %7831 = vmatmul.mubr.f32.vlgmr.msra.gmra.mxu0 %v15187_v8  ;;  %v15471_v8 = vand.u32 31, %v15453_v48 }
 0x4c3   :  { %7735 = vmatmul.mubr.f32.gmra.mxu1 %v15235_v55  ;;  %8001 = vmatpush1.msra.mxu0 %v7647_v1  ;;  %v3943_v1 = vand.u32 31, %v3941_v30 }
 0x4c4   :  { %8112 = vmatprep.subr.mxu1 %v15233_v22  ;;  %8005 = vmatprep.subr.mxu0 %v7653_v42  ;;  %v3862_v22 = vsel %vm3860_vm3, %v3850_v10, 2102212464  ;;  %v15436_v15 = vmul.u32.u64.low %v15424_v43, %v3872_v53  ;;  %v15437_v42 = vmul.u32.u64.high %v15424_v43, %v3872_v53, %v15436_v15  ;;  %v15500_v5 = vsub.s32 32, %v15471_v8 }
 0x4c5   :  { %8009 = vmatpush1.msra.mxu0 %v7659_v0  ;;  %7740 = vmatprep.mubr.f32.mxu1 %v17773_v2  ;;  %v15458_v31 = vsub.s32 32, %v3943_v1  ;;  %v3955_v3 = vshll.u32 %v17778_v45, %v3943_v1  ;;  %v3946_v25 = vshll.u32 %v17782_v54, %v3943_v1  ;;  %v3952_v18 = vshll.u32 %v17780_v19, %v3943_v1 }
 0x4c6   :  { %7836 = vmatprep.mubr.f32.mxu0 %v17773_v2  ;;  %8013 = vmatprep.subr.mxu0 %v7665_v57  ;;  %v15440_v0 = vmul.u32.u64.low %v15424_v43, %v3868_v7  ;;  %v15441_v57 = vmul.u32.u64.high %v15424_v43, %v3868_v7, %v15440_v0  ;;  %v3958_v61 = vshll.u32 %v17776_v14, %v3943_v1  ;;  %v4051_v15 = vshrl.u32 %v17779_v41, %v15500_v5 }
 0x4c7   :  { %7742 = vmatmul.mubr.f32.gmra.mxu1 %v15266_v38  ;;  %7839 = vmatmul.mubr.f32.gmra.mxu0 %v15225_v9  ;;  %v3947_v9 = vshrl.u32 %v17779_v41, %v15458_v31  ;;  %v3953_v27 = vshrl.u32 %v17778_v45, %v15458_v31  ;;  %v3959_v44 = vshrl.u32 %v17777_v24, %v15458_v31 }
 0x4c8   :  { %8017 = vmatpush1.msra.mxu0 %v7671_v52  ;;  %7844 = vmatprep.mubr.f32.mxu0 %v17773_v2  ;;  %v3863_v52 = vsel %vm3859_vm8, %v3847_v6, %v3862_v22  ;;  %vm3882_vm15 = vc.u32 %v15437_v42, %v15440_v0  ;;  %v15494_v6 = vshrl.u32 %v3941_v30, 5  ;;  %v4063_v22 = vshrl.u32 %v17777_v24, %v15500_v5 }
 0x4c9   :  { %8021 = vmatprep.subr.mxu0 %v7677_v32  ;;  %7933 = vmatprep.mubr.f32.mxu1 %v17773_v2  ;;  %v15466_v13 = vsel %vm3858_vm4, %v3861_v12, %v3863_v52  ;;  %v17784_v32 = vld [vmem:[#allocation70_spill] sm:$0xff]  ;;  %v15529_v30 = vor.u32 %v3947_v9, %v3946_v25  ;;  %v15537_v53 = vor.u32 %v3953_v27, %v3952_v18  ;;  %v17791_v52 = vand.u32 4294901760, %v15303_v59 }
 0x4ca   :  { %8025 = vmatpush1.msra.mxu0 %v7683_v40  ;;  %v1132_v40 = vadd.f32 %v17784_v32, %v17783_v47  ;;  %vm3961_vm9 = vcmp.lt.s32.totalorder %v15494_v6, 1  ;;  %vm3964_vm0 = vcmp.lt.s32.totalorder %v15494_v6, 4  ;;  %v3960_v56 = vor.u32 %v3959_v44, %v3958_v61 }
 0x4cb   :  { %7847 = vmatmul.mubr.f32.gmra.mxu0 %v15264_v26  ;;  %7937 = vmatmul.mubr.f32.vlgmr.msra.gmra.mxu1 %v7573_v21  ;;  %v16867_v21 = vand.u32 2147483647, %v15290_v50  ;;  %v4060_v26 = vshrl.u32 %v17776_v14, %v15500_v5  ;;  %v15552_v47 = vshrl.u32 %v15453_v48, 5  ;;  %v4054_v32 = vshrl.u32 %v17780_v19, %v15500_v5 }
 0x4cc   :  { %8114 = vmatpush1.msra.mxu1 %v15216_v11  ;;  %7852 = vmatprep.mubr.f32.mxu0 %v17773_v2  ;;  %v17785_v11 = vld [vmem:[#allocation73_spill] sm:$0xff]  ;;  %vm3963_vm12 = vcmp.lt.s32.totalorder %v15494_v6, 3  ;;  %v4053_v60 = vshll.u32 %v17779_v41, %v15471_v8  ;;  %v4056_v63 = vshll.u32 %v17780_v19, %v15471_v8  ;;  %vm3962_vm2 = vcmp.lt.s32.totalorder %v15494_v6, 2 }
 0x4cd   :  { %8116 = vmatprep.subr.mxu1 %v15204_v46  ;;  %7942 = vmatprep.mubr.f32.mxu1 %v17773_v2  ;;  %v3956_v46 = vshrl.u32 %v17776_v14, %v15458_v31  ;;  %v15480_v17 = vadd.f32 %v17785_v11, %v1132_v40  ;;  %v15505_v10 = vand.u32 8388607, %v16867_v21  ;;  %v4057_v40 = vshrl.u32 %v17778_v45, %v15500_v5 }
 0x4ce   :  { %8118 = vmatpush1.msra.mxu1 %v15202_v36  ;;  %v3880_v36 = vmul.u32 %v15424_v43, %v15466_v13  ;;  %vm4068_vm11 = vcmp.lt.s32.totalorder %v15552_v47, 4  ;;  %vm4065_vm6 = vcmp.lt.s32.totalorder %v15552_v47, 1  ;;  %vm4067_vm13 = vcmp.lt.s32.totalorder %v15552_v47, 3 }
 0x4cf   :  { %8120 = vmatprep.subr.mxu1 %v15207_v49  ;;  %7855 = vmatmul.mubr.f32.gmra.mxu0 %v15303_v59  ;;  %17786 = vst [vmem:[#allocation29_spill] sm:$0xff] %v15480_v17  ;;  %v3883_v49 = vadd.s32 1, %v15441_v57  ;;  %v4140_v16 = vand.u32 2139095040, %v15480_v17  ;;  %v4050_v59 = vshll.u32 %v17782_v54, %v15471_v8  ;;  %v4058_v44 = vor.u32 %v4057_v40, %v4056_v63 }
 0x4d0   :  { %7946 = vmatmul.mubr.f32.gmra.mxu1 %v17787_v28  ;;  %8058 = vmatprep.mubr.f32.mxu0 %v17773_v2  ;;  %v17792_v28 = vld [vmem:[#allocation75_spill] sm:$0xff]  ;;  %vm4066_vm10 = vcmp.lt.s32.totalorder %v15552_v47, 2 }
 0x4d1   :  { %8122 = vmatpush1.msra.mxu1 %v15211_v34  ;;  %7951 = vmatprep.mubr.f32.mxu1 %v17773_v2  ;;  %v3950_v34 = vshrl.u32 %v17780_v19, %v15458_v31  ;;  %v3884_v20 = vsel %vm3882_vm15, %v3883_v49, %v15441_v57  ;;  %v4059_v57 = vshll.u32 %v17778_v45, %v15471_v8  ;;  %v4141_v12 = vshrl.u32 %v4140_v16, 23 }
 0x4d2   :  { %8124 = vmatprep.subr.mxu1 %v15222_v23  ;;  %v3957_v23 = vor.u32 %v3956_v46, %v3955_v3  ;;  %v4062_v46 = vshll.u32 %v17776_v14, %v15471_v8  ;;  %v15565_v48 = vadd.f32 %v17792_v28, %v1137_v37  ;;  %v3974_v37 = vsel %vm3964_vm0, %v3960_v56, 1326507024 }
 0x4d3   :  { %8126 = vmatpush1.msra.mxu1 %v15237_v62  ;;  %8060 = vmatmul.mubr.f32.vlgmr.msra.gmra.mxu0 %v15152_v35  ;;  %v3949_v62 = vshll.u32 %v17779_v41, %v3943_v1  ;;  %v4061_v11 = vor.u32 %v4060_v26, %v4059_v57  ;;  %v15583_v27 = vor.u32 %v4051_v15, %v4050_v59  ;;  %v8883_v25 = vadd.s32 4294967169, %v4141_v12 }
 0x4d4   :  { %7955 = vmatmul.mubr.f32.gmra.mxu1 %v17790_v51  ;;  %8065 = vmatprep.mubr.f32.mxu0 %v17773_v2  ;;  %v3970_v1 = vsel %vm3964_vm0, %v3957_v23, 920167782  ;;  %17793 = vst [vmem:[#allocation52_spill] sm:$0xff] %v15565_v48  ;;  %v4064_v9 = vor.u32 %v4063_v22, %v4062_v46  ;;  %v15587_v8 = vor.u32 %v4054_v32, %v4053_v60  ;;  %v3937_v16 = vor.u32 8388608, %v15505_v10 }
 0x4d5   :  { %7960 = vmatprep.mubr.f32.mxu1 %v17773_v2  ;;  %v15535_v7 = vor.u32 %v3950_v34, %v3949_v62  ;;  %v3971_v3 = vsel %vm3963_vm12, %v15537_v53, %v3970_v1  ;;  %v4040_v34 = vand.u32 8388607, %v16871_v33  ;;  %v4074_v51 = vsel %vm4068_vm11, %v4061_v11, 920167782 }
 0x4d6   :  { %v4244_v62 = vand.u32 2139095040, %v15565_v48  ;;  %v4078_v10 = vsel %vm4068_vm11, %v4064_v9, 1326507024  ;;  %v3975_v43 = vsel %vm3963_vm12, %v3957_v23, %v3974_v37  ;;  %v4147_v26 = vadd.s32 1, %v8883_v25  ;;  %v17799_v37 = vld [vmem:[#allocation39_spill] sm:$0xff] }
 0x4d7   :  { %8067 = vmatmul.mubr.f32.gmra.mxu0 %v15200_v4  ;;  %v3969_v49 = vsel %vm3961_vm9, %v15529_v30, %v15535_v7  ;;  %v3973_v18 = vsel %vm3961_vm9, %v15535_v7, %v15537_v53  ;;  %v4041_v13 = vor.u32 8388608, %v4040_v34  ;;  %v3977_v23 = vshll.u32 %v3937_v16, 8  ;;  %v17800_v34 = vld [vmem:[#allocation74_spill] sm:$0xff] }
 0x4d8   :  { %7964 = vmatmul.mubr.f32.gmra.mxu1 %v17791_v52  ;;  %8072 = vmatprep.mubr.f32.mxu0 %v17773_v2  ;;  %v3972_v61 = vsel %vm3962_vm2, %v3969_v49, %v3971_v3  ;;  %v4077_v56 = vsel %vm4065_vm6, %v15587_v8, %v4058_v44  ;;  %v4245_v22 = vshrl.u32 %v4244_v62, 23  ;;  %v3976_v1 = vsel %vm3962_vm2, %v3973_v18, %v3975_v43  ;;  %v17803_v43 = vld [vmem:[#allocation77_spill] sm:$0xff] }
 0x4d9   :  { %8159 = vmatprep.mubr.f32.mxu1 %v17773_v2  ;;  %v15631_v15 = vmul.u32.u64.low %v3977_v23, %v3972_v61  ;;  %v15632_v57 = vmul.u32.u64.high %v3977_v23, %v3972_v61, %v15631_v15  ;;  %v4081_v40 = vshll.u32 %v4041_v13, 8  ;;  %vm4148_vm1 = vcmp.gt.s32.totalorder %v4147_v26, 0 }
 0x4da   :  { %v15642_v46 = vmul.u32.u64.low %v3977_v23, %v3976_v1  ;;  %v15643_v59 = vmul.u32.u64.high %v3977_v23, %v3976_v1, %v15642_v46  ;;  %v3966_v3 = vsel %vm3964_vm0, %v15537_v53, 2102212464  ;;  %v1139_v25 = vadd.f32 %v17800_v34, %v17799_v37 }
 0x4db   :  { %8074 = vmatmul.mubr.f32.gmra.mxu0 %v15235_v55  ;;  %17794 = vst [vmem:[#allocation53_spill] sm:$0xff] %v15631_v15  ;;  %v3945_v16 = vshrl.u32 %v17782_v54, %v15458_v31  ;;  %v4070_v62 = vsel %vm4068_vm11, %v4058_v44, 2102212464  ;;  %v4049_v31 = vshrl.u32 %v17782_v54, %v15500_v5 }
 0x4dc   :  { %8161 = vmatmul.mubr.f32.vlgmr.msra.gmra.mxu1 %v15152_v35  ;;  %8079 = vmatprep.mubr.f32.mxu0 %v17773_v2  ;;  %v15598_v35 = vadd.s32 %v3884_v20, %v3880_v36  ;;  %v4073_v36 = vsel %vm4065_vm6, %v15583_v27, %v15587_v8  ;;  %v4075_v20 = vsel %vm4067_vm13, %v4058_v44, %v4074_v51  ;;  %v16866_v44 = vand.u32 2147483647, %v15480_v17 }
 0x4dd   :  { %8166 = vmatprep.mubr.f32.mxu1 %v17773_v2  ;;  %v4076_v12 = vsel %vm4066_vm10, %v4073_v36, %v4075_v20  ;;  %17795 = vst [vmem:[#allocation55_spill] sm:$0xff] %v15643_v59  ;;  %v15668_v13 = vadd.f32 %v17803_v43, %v1139_v25  ;;  %v3965_v53 = vsel %vm3961_vm9, %v3945_v16, %v15529_v30  ;;  %v17807_v43 = vld [vmem:[#allocation5_spill] sm:$0xff] }
 0x4de   :  { %v3886_v52 = vadd.s32 536870912, %v15598_v35  ;;  %v15645_v28 = vmul.u32.u64.low %v4081_v40, %v4076_v12  ;;  %v15646_v49 = vmul.u32.u64.high %v4081_v40, %v4076_v12, %v15645_v28  ;;  %v3967_v36 = vsel %vm3963_vm12, %v15535_v7, %v3966_v3 }
 0x4df   :  { %8081 = vmatmul.mubr.f32.gmra.mxu0 %v15266_v38  ;;  %17804 = vst [vmem:[#allocation99_spill] sm:$0xff] %v15668_v13  ;;  %vm3986_vm3 = vc.u32 %v15643_v59, %v15631_v15  ;;  %v4069_v30 = vsel %vm4065_vm6, %v4049_v31, %v15583_v27  ;;  %v4071_v5 = vsel %vm4067_vm13, %v15587_v8, %v4070_v62  ;;  %v4348_v12 = vand.u32 2139095040, %v15668_v13 }
 0x4e0   :  { %8168 = vmatmul.mubr.f32.gmra.mxu1 %v15200_v4  ;;  %8278 = vmatprep.mubr.f32.mxu0 %v17773_v2  ;;  %v4079_v4 = vsel %vm4067_vm13, %v4061_v11, %v4078_v10  ;;  %v8887_v11 = vadd.s32 4294967169, %v4245_v22  ;;  %17796 = vst [vmem:[#allocation110_spill] sm:$0xff] %v15645_v28  ;;  %v15653_v9 = vshrl.u32 %v3886_v52, 30  ;;  %v17802_v10 = vld [vmem:[#allocation76_spill] sm:$0xff]  ;;  %v3968_v7 = vsel %vm3962_vm2, %v3965_v53, %v3967_v36  ;;  %v17808_v53 = vld [vmem:[#allocation78_spill] sm:$0xff] }
 0x4e1   :  { %8173 = vmatprep.mubr.f32.mxu1 %v17773_v2  ;;  %v4080_v32 = vsel %vm4066_vm10, %v4077_v56, %v4079_v4  ;;  %v17805_v56 = vld [vmem:[#allocation79_spill] sm:$0xff]  ;;  %v4091_v22 = vadd.s32 1, %v15646_v49  ;;  %v4144_v52 = vand.u32 8388607, %v16866_v44  ;;  %v4072_v8 = vsel %vm4066_vm10, %v4069_v30, %v4071_v5 }
 0x4e2   :  { %v15649_v60 = vmul.u32.u64.low %v4081_v40, %v4080_v32  ;;  %v15650_v63 = vmul.u32.u64.high %v4081_v40, %v4080_v32, %v15649_v60  ;;  %17798 = vst [vmem:[#allocation221_spill] sm:$0xff] %v15653_v9  ;;  %v4251_v51 = vadd.s32 1, %v8887_v11  ;;  %v3888_v20 = vshll.u32 %v15653_v9, 30 }
 0x4e3   :  { %v3984_v46 = vmul.u32 %v3977_v23, %v3968_v7  ;;  %v4349_v37 = vshrl.u32 %v4348_v12, 23  ;;  %v4088_v25 = vmul.u32 %v4081_v40, %v4072_v8  ;;  %v4145_v16 = vor.u32 8388608, %v4144_v52 }
 0x4e4   :  { %8175 = vmatmul.mubr.f32.gmra.mxu1 %v15235_v55  ;;  %17797 = vst [vmem:[#allocation95_spill] sm:$0xff] %v15650_v63  ;;  %v4149_v55 = vsel %vm4148_vm1, %v4147_v26, 0  ;;  %v3987_v26 = vadd.s32 1, %v15632_v57  ;;  %vm4252_vm14 = vcmp.gt.s32.totalorder %v4251_v51, 0  ;;  %vm4090_vm8 = vc.u32 %v15650_v63, %v15645_v28 }
 0x4e5   :  { %8180 = vmatprep.mubr.f32.mxu1 %v17773_v2  ;;  %v4151_v18 = vand.u32 31, %v4149_v55  ;;  %v4253_v32 = vsel %vm4252_vm14, %v4251_v51, 0  ;;  %v15705_v11 = vsub.s32 %v15598_v35, %v3888_v20  ;;  %v4092_v60 = vsel %vm4090_vm8, %v4091_v22, %v15646_v49  ;;  %v17809_v22 = vld [vmem:[#allocation81_spill] sm:$0xff] }
 0x4e6   :  { %v3988_v27 = vsel %vm3986_vm3, %v3987_v26, %v15632_v57  ;;  %v4255_v57 = vand.u32 31, %v4253_v32  ;;  %v16870_v62 = vand.u32 2147483647, %v15565_v48  ;;  %v15716_v35 = vshrl.u32 %v4149_v55, 5 }
 0x4e7   :  { %v4152_v1 = vsub.s32 32, %v4151_v18  ;;  %v15709_v34 = vadd.s32 %v3988_v27, %v3984_v46  ;;  %v4163_v51 = vshll.u32 %v17778_v45, %v4151_v18  ;;  %v1146_v36 = vadd.f32 %v17808_v53, %v17807_v43 }
 0x4e8   :  { %8182 = vmatmul.mubr.f32.gmra.mxu1 %v15266_v38  ;;  %v17801_v38 = vld [vmem:[#allocation40_spill] sm:$0xff]  ;;  %v8891_v31 = vadd.s32 4294967169, %v4349_v37  ;;  %v4157_v20 = vshll.u32 %v17779_v41, %v4151_v18  ;;  %v4160_v26 = vshll.u32 %v17780_v19, %v4151_v18  ;;  %v4256_v30 = vsub.s32 32, %v4255_v57 }
 0x4e9   :  { %8394 = vmatprep.mubr.f32.mxu1 %v17773_v2  ;;  %v1144_v61 = vadd.f32 %v17802_v10, %v17801_v38  ;;  %v4164_v3 = vshrl.u32 %v17776_v14, %v4152_v1  ;;  %v4155_v47 = vshrl.u32 %v17779_v41, %v4152_v1  ;;  %v15714_v38 = vadd.s32 %v4092_v60, %v4088_v25 }
 0x4ea   :  { %v4158_v49 = vshrl.u32 %v17780_v19, %v4152_v1  ;;  %v4161_v10 = vshrl.u32 %v17778_v45, %v4152_v1  ;;  %v15728_v5 = vshll.u32 %v4145_v16, 8  ;;  %v15731_v12 = vadd.f32 %v17809_v22, %v1146_v36 }
 0x4eb   :  { %v15682_v4 = vadd.f32 %v17805_v56, %v1144_v61  ;;  %v4154_v61 = vshll.u32 %v17782_v54, %v4151_v18  ;;  %v4165_v40 = vor.u32 %v4164_v3, %v4163_v51  ;;  %v4167_v56 = vshrl.u32 %v17777_v24, %v4152_v1 }
 0x4ec   :  { %17810 = vst [vmem:[#allocation103_spill] sm:$0xff] %v15731_v12  ;;  %v15733_v52 = vor.u32 %v4158_v49, %v4157_v20  ;;  %v15735_v27 = vor.u32 %v4161_v10, %v4160_v26  ;;  %v4166_v8 = vshll.u32 %v17776_v14, %v4151_v18  ;;  %vm4172_vm5 = vcmp.lt.s32.totalorder %v15716_v35, 4 }
 0x4ed   :  { %17806 = vst [vmem:[#allocation112_spill] sm:$0xff] %v15682_v4  ;;  %v4452_v6 = vand.u32 2139095040, %v15682_v4  ;;  %v15726_v55 = vor.u32 %v4155_v47, %v4154_v61  ;;  %vm4169_vm4 = vcmp.lt.s32.totalorder %v15716_v35, 1  ;;  %v15744_v46 = vand.u32 8388607, %v16870_v62 }
 0x4ee   :  { %v4355_v60 = vadd.s32 1, %v8891_v31  ;;  %v15747_v3 = vadd.s32 536870912, %v15714_v38  ;;  %v4153_v37 = vshrl.u32 %v17782_v54, %v4152_v1  ;;  %v4168_v25 = vor.u32 %v4167_v56, %v4166_v8 }
 0x4ef   :  { %v4453_v23 = vshrl.u32 %v4452_v6, 23  ;;  %v4178_v6 = vsel %vm4172_vm5, %v4165_v40, 920167782  ;;  %v4271_v18 = vshrl.u32 %v17777_v24, %v4256_v30  ;;  %vm4171_vm7 = vcmp.lt.s32.totalorder %v15716_v35, 3 }
 0x4f0   :  { %v4268_v16 = vshrl.u32 %v17776_v14, %v4256_v30  ;;  %v4556_v51 = vand.u32 2139095040, %v15731_v12  ;;  %v4179_v49 = vsel %vm4171_vm7, %v15735_v27, %v4178_v6  ;;  %v4265_v1 = vshrl.u32 %v17778_v45, %v4256_v30 }
 0x4f1   :  { %v8895_v7 = vadd.s32 4294967169, %v4453_v23  ;;  %v4177_v23 = vsel %vm4169_vm4, %v15726_v55, %v15733_v52  ;;  %v4270_v10 = vshll.u32 %v17776_v14, %v4255_v57  ;;  %v4254_v61 = vshrl.u32 %v4253_v32, 5 }
 0x4f2   :  { %v4262_v43 = vshrl.u32 %v17780_v19, %v4256_v30  ;;  %v4267_v53 = vshll.u32 %v17778_v45, %v4255_v57  ;;  %vm4356_vm15 = vcmp.gt.s32.totalorder %v4355_v60, 0  ;;  %v4182_v36 = vsel %vm4172_vm5, %v4168_v25, 1326507024 }
 0x4f3   :  { %v4459_v47 = vadd.s32 1, %v8895_v7  ;;  %v4259_v31 = vshrl.u32 %v17779_v41, %v4256_v30  ;;  %v4264_v20 = vshll.u32 %v17780_v19, %v4255_v57  ;;  %v4272_v26 = vor.u32 %v4271_v18, %v4270_v10 }
 0x4f4   :  { %v4261_v56 = vshll.u32 %v17779_v41, %v4255_v57  ;;  %v4269_v7 = vor.u32 %v4268_v16, %v4267_v53  ;;  %v4557_v22 = vshrl.u32 %v4556_v51, 23  ;;  %vm4170_vm0 = vcmp.lt.s32.totalorder %v15716_v35, 2 }
 0x4f5   :  { %vm4460_vm9 = vcmp.gt.s32.totalorder %v4459_v47, 0  ;;  %v4258_v32 = vshll.u32 %v17782_v54, %v4255_v57  ;;  %v4266_v8 = vor.u32 %v4265_v1, %v4264_v20  ;;  %v4357_v6 = vsel %vm4356_vm15, %v4355_v60, 0 }
 0x4f6   :  { %v4181_v25 = vsel %vm4169_vm4, %v15733_v52, %v15735_v27  ;;  %v4183_v44 = vsel %vm4171_vm7, %v4165_v40, %v4182_v36  ;;  %v4263_v18 = vor.u32 %v4262_v43, %v4261_v56  ;;  %vm4276_vm12 = vcmp.lt.s32.totalorder %v4254_v61, 4 }
 0x4f7   :  { %v15780_v16 = vsel %vm4170_vm0, %v4177_v23, %v4179_v49  ;;  %v4260_v51 = vor.u32 %v4259_v31, %v4258_v32  ;;  %v4286_v10 = vsel %vm4276_vm12, %v4272_v26, 1326507024  ;;  %v4461_v53 = vsel %vm4460_vm9, %v4459_v47, 0 }
 0x4f8   :  { %v4249_v57 = vor.u32 8388608, %v15744_v46  ;;  %v4282_v60 = vsel %vm4276_vm12, %v4269_v7, 920167782  ;;  %v4359_v1 = vand.u32 31, %v4357_v6  ;;  %v8899_v20 = vadd.s32 4294967169, %v4557_v22 }
 0x4f9   :  { %v15785_v21 = vsel %vm4170_vm0, %v4181_v25, %v4183_v44  ;;  %vm4273_vm11 = vcmp.lt.s32.totalorder %v4254_v61, 1  ;;  %vm4275_vm2 = vcmp.lt.s32.totalorder %v4254_v61, 3  ;;  %v4278_v40 = vsel %vm4276_vm12, %v4266_v8, 2102212464 }
 0x4fa   :  { %v4257_v43 = vshrl.u32 %v17782_v54, %v4256_v30  ;;  %v4285_v36 = vsel %vm4273_vm11, %v4263_v18, %v4266_v8  ;;  %v4287_v23 = vsel %vm4275_vm2, %v4269_v7, %v4286_v10  ;;  %v4463_v49 = vand.u32 31, %v4461_v53 }
 0x4fb   :  { %vm4274_vm6 = vcmp.lt.s32.totalorder %v4254_v61, 2  ;;  %v4281_v31 = vsel %vm4273_vm11, %v4260_v51, %v4263_v18  ;;  %v4283_v47 = vsel %vm4275_vm2, %v4266_v8, %v4282_v60  ;;  %v16868_v46 = vand.u32 2147483647, %v15668_v13 }
 0x4fc   :  { %v4277_v26 = vsel %vm4273_vm11, %v4257_v43, %v4260_v51  ;;  %v4279_v56 = vsel %vm4275_vm2, %v4263_v18, %v4278_v40  ;;  %v15789_v22 = vsub.s32 32, %v4359_v1  ;;  %v4563_v32 = vadd.s32 1, %v8899_v20 }
 0x4fd   :  { %v15793_v44 = vmul.u32.u64.low %v15728_v5, %v15780_v16  ;;  %v15794_v25 = vmul.u32.u64.high %v15728_v5, %v15780_v16, %v15793_v44  ;;  %v15798_v30 = vsel %vm4274_vm6, %v4285_v36, %v4287_v23  ;;  %v16869_v7 = vand.u32 2147483647, %v15682_v4 }
 0x4fe   :  { %v15804_v8 = vsel %vm4169_vm4, %v4153_v37, %v15726_v55  ;;  %v15807_v18 = vsel %vm4274_vm6, %v4281_v31, %v4283_v47  ;;  %v15809_v51 = vshll.u32 %v4249_v57, 8  ;;  %v15811_v10 = vsub.s32 32, %v4463_v49 }
 0x4ff   :  { %v15815_v16 = vmul.u32.u64.low %v15728_v5, %v15785_v21  ;;  %v15816_v60 = vmul.u32.u64.high %v15728_v5, %v15785_v21, %v15815_v16  ;;  %v15820_v20 = vsel %vm4274_vm6, %v4277_v26, %v4279_v56  ;;  %v15824_v55 = vand.u32 8388607, %v16868_v46 }
 0x500   :  { %v15828_v37 = vmul.u32.u64.low %v15809_v51, %v15798_v30  ;;  %v15829_v57 = vmul.u32.u64.high %v15809_v51, %v15798_v30, %v15828_v37  ;;  %v4363_v40 = vshrl.u32 %v17779_v41, %v15789_v22  ;;  %vm4564_vm13 = vcmp.gt.s32.totalorder %v4563_v32, 0 }
 0x501   :  { %v15836_v21 = vmul.u32.u64.low %v15809_v51, %v15807_v18  ;;  %v15837_v61 = vmul.u32.u64.high %v15809_v51, %v15807_v18, %v15836_v21  ;;  %v15840_v43 = vshrl.u32 %v4357_v6, 5  ;;  %v15844_v36 = vand.u32 8388607, %v16869_v7 }
 0x502   :  { %v4362_v23 = vshll.u32 %v17782_v54, %v4359_v1  ;;  %v4365_v31 = vshll.u32 %v17779_v41, %v4359_v1  ;;  %v4368_v47 = vshll.u32 %v17780_v19, %v4359_v1  ;;  %v4476_v26 = vshrl.u32 %v17776_v14, %v15811_v10 }
 0x503   :  { %v4366_v56 = vshrl.u32 %v17780_v19, %v15789_v22  ;;  %v4371_v30 = vshll.u32 %v17778_v45, %v4359_v1  ;;  %v4372_v6 = vshrl.u32 %v17776_v14, %v15789_v22  ;;  %v4565_v18 = vsel %vm4564_vm13, %v4563_v32, 0 }
 0x504   :  { %v15856_v16 = vor.u32 %v4363_v40, %v4362_v23  ;;  %v4369_v37 = vshrl.u32 %v17778_v45, %v15789_v22  ;;  %v4475_v46 = vshll.u32 %v17778_v45, %v4463_v49  ;;  %v4479_v7 = vshrl.u32 %v17777_v24, %v15811_v10 }
 0x505   :  { %v15863_v62 = vshrl.u32 %v4461_v53, 5  ;;  %v4467_v33 = vshrl.u32 %v17779_v41, %v15811_v10  ;;  %v4470_v58 = vshrl.u32 %v17780_v19, %v15811_v10  ;;  %v4473_v32 = vshrl.u32 %v17778_v45, %v15811_v10 }
 0x506   :  { %v4375_v40 = vshrl.u32 %v17777_v24, %v15789_v22  ;;  %v4477_v23 = vor.u32 %v4476_v26, %v4475_v46  ;;  %v4478_v2 = vshll.u32 %v17776_v14, %v4463_v49  ;;  %v4567_v13 = vand.u32 31, %v4565_v18 }
 0x507   :  { %v4373_v4 = vor.u32 %v4372_v6, %v4371_v30  ;;  %v4466_v53 = vshll.u32 %v17782_v54, %v4463_v49  ;;  %v4469_v17 = vshll.u32 %v17779_v41, %v4463_v49  ;;  %v4472_v50 = vshll.u32 %v17780_v19, %v4463_v49 }
 0x508   :  { %v15877_v48 = vor.u32 %v4366_v56, %v4365_v31  ;;  %v15879_v9 = vor.u32 %v4369_v37, %v4368_v47  ;;  %v4374_v29 = vshll.u32 %v17776_v14, %v4359_v1  ;;  %v4480_v15 = vor.u32 %v4479_v7, %v4478_v2 }
 0x509   :  { %v15882_v59 = vor.u32 %v4467_v33, %v4466_v53  ;;  %v15884_v46 = vor.u32 %v4470_v58, %v4469_v17  ;;  %v4474_v26 = vor.u32 %v4473_v32, %v4472_v50  ;;  %vm4484_vm10 = vcmp.lt.s32.totalorder %v15863_v62, 4 }
 0x50a   :  { %v4376_v30 = vor.u32 %v4375_v40, %v4374_v29  ;;  %vm4380_vm1 = vcmp.lt.s32.totalorder %v15840_v43, 4  ;;  %v4490_v49 = vsel %vm4484_vm10, %v4477_v23, 920167782  ;;  %v15890_v31 = vsub.s32 32, %v4567_v13 }
 0x50b   :  { %v4353_v47 = vor.u32 8388608, %v15824_v55  ;;  %vm4377_vm3 = vcmp.lt.s32.totalorder %v15840_v43, 1  ;;  %v4386_v2 = vsel %vm4380_vm1, %v4373_v4, 920167782  ;;  %v4457_v58 = vor.u32 8388608, %v15844_v36 }
 0x50c   :  { %vm4378_vm14 = vcmp.lt.s32.totalorder %v15840_v43, 2  ;;  %vm4481_vm8 = vcmp.lt.s32.totalorder %v15863_v62, 1  ;;  %vm4483_vm4 = vcmp.lt.s32.totalorder %v15863_v62, 3  ;;  %v4494_v50 = vsel %vm4484_vm10, %v4480_v15, 1326507024 }
 0x50d   :  { %vm4379_vm15 = vcmp.lt.s32.totalorder %v15840_v43, 3  ;;  %v4385_v29 = vsel %vm4377_vm3, %v15856_v16, %v15877_v48  ;;  %v4489_v17 = vsel %vm4481_vm8, %v15882_v59, %v15884_v46  ;;  %v4491_v33 = vsel %vm4483_vm4, %v4474_v26, %v4490_v49 }
 0x50e   :  { %v4387_v1 = vsel %vm4379_vm15, %v15879_v9, %v4386_v2  ;;  %v4389_v15 = vsel %vm4377_vm3, %v15877_v48, %v15879_v9  ;;  %v4390_v7 = vsel %vm4380_vm1, %v4376_v30, 1326507024  ;;  %v4580_v55 = vshrl.u32 %v17776_v14, %v15890_v31 }
 0x50f   :  { %vm4482_vm9 = vcmp.lt.s32.totalorder %v15863_v62, 2  ;;  %v4493_v36 = vsel %vm4481_vm8, %v15884_v46, %v4474_v26  ;;  %v4495_v56 = vsel %vm4483_vm4, %v4477_v23, %v4494_v50  ;;  %v4583_v6 = vshrl.u32 %v17777_v24, %v15890_v31 }
 0x510   :  { %v4492_v37 = vsel %vm4482_vm9, %v4489_v17, %v4491_v33  ;;  %v15935_v40 = vshrl.u32 %v4565_v18, 5  ;;  %v4579_v53 = vshll.u32 %v17778_v45, %v4567_v13  ;;  %v4571_v30 = vshrl.u32 %v17779_v41, %v15890_v31 }
 0x511   :  { %v4574_v49 = vshrl.u32 %v17780_v19, %v15890_v31  ;;  %v4577_v23 = vshrl.u32 %v17778_v45, %v15890_v31  ;;  %v4582_v24 = vshll.u32 %v17776_v14, %v4567_v13  ;;  %v4388_v2 = vsel %vm4378_vm14, %v4385_v29, %v4387_v1 }
 0x512   :  { %v4496_v18 = vsel %vm4482_vm9, %v4493_v36, %v4495_v56  ;;  %v15949_v50 = vshll.u32 %v4457_v58, 8  ;;  %v4581_v17 = vor.u32 %v4580_v55, %v4579_v53  ;;  %v4570_v33 = vshll.u32 %v17782_v54, %v4567_v13 }
 0x513   :  { %v4573_v32 = vshll.u32 %v17779_v41, %v4567_v13  ;;  %v4576_v39 = vshll.u32 %v17780_v19, %v4567_v13  ;;  %v4584_v28 = vor.u32 %v4583_v6, %v4582_v24  ;;  %v4391_v45 = vsel %vm4379_vm15, %v4373_v4, %v4390_v7 }
 0x514   :  { %v15957_v14 = vmul.u32.u64.low %v15949_v50, %v4492_v37  ;;  %v15958_v63 = vmul.u32.u64.high %v15949_v50, %v4492_v37, %v15957_v14  ;;  %v17811_v29 = vand.u32 2147483647, %v15731_v12  ;;  %v15963_v1 = vor.u32 %v4571_v30, %v4570_v33 }
 0x515   :  { %v15965_v55 = vor.u32 %v4574_v49, %v4573_v32  ;;  %v4578_v36 = vor.u32 %v4577_v23, %v4576_v39  ;;  %vm4588_vm12 = vcmp.lt.s32.totalorder %v15935_v40, 4  ;;  %v15968_v41 = vshll.u32 %v4353_v47, 8 }
 0x516   :  { %v4560_v58 = vand.u32 8388607, %v17811_v29  ;;  %v15971_v19 = vmul.u32.u64.low %v15949_v50, %v4496_v18  ;;  %v15972_v13 = vmul.u32.u64.high %v15949_v50, %v4496_v18, %v15971_v19  ;;  %v4594_v4 = vsel %vm4588_vm12, %v4581_v17, 920167782 }
 0x517   :  { %vm4298_vm11 = vc.u32 %v15829_v57, %v15836_v21  ;;  %v4299_v7 = vadd.s32 1, %v15837_v61  ;;  %v4392_v56 = vsel %vm4378_vm14, %v4389_v15, %v4391_v45  ;;  %v4598_v39 = vsel %vm4588_vm12, %v4584_v28, 1326507024 }
 0x518   :  { %v15984_v47 = vmul.u32.u64.low %v15968_v41, %v4388_v2  ;;  %v15985_v6 = vmul.u32.u64.high %v15968_v41, %v4388_v2, %v15984_v47  ;;  %vm4585_vm2 = vcmp.lt.s32.totalorder %v15935_v40, 1  ;;  %vm4587_vm6 = vcmp.lt.s32.totalorder %v15935_v40, 3 }
 0x519   :  { %v4486_v37 = vsel %vm4484_vm10, %v4474_v26, 2102212464  ;;  %v4561_v32 = vor.u32 8388608, %v4560_v58  ;;  %v4593_v15 = vsel %vm4585_vm2, %v15963_v1, %v15965_v55  ;;  %v4595_v28 = vsel %vm4587_vm6, %v4578_v36, %v4594_v4 }
 0x51a   :  { %v4174_v53 = vsel %vm4172_vm5, %v15735_v27, 2102212464  ;;  %v4465_v30 = vshrl.u32 %v17782_v54, %v15811_v10  ;;  %v4597_v26 = vsel %vm4585_vm2, %v15965_v55, %v4578_v36  ;;  %v4599_v49 = vsel %vm4587_vm6, %v4581_v17, %v4598_v39 }
 0x51b   :  { %v4300_v23 = vsel %vm4298_vm11, %v4299_v7, %v15837_v61  ;;  %v16013_v24 = vmul.u32.u64.low %v15968_v41, %v4392_v56  ;;  %v16014_v2 = vmul.u32.u64.high %v15968_v41, %v4392_v56, %v16013_v24  ;;  %vm4586_vm5 = vcmp.lt.s32.totalorder %v15935_v40, 2 }
 0x51c   :  { %v4296_v27 = vmul.u32 %v15809_v51, %v15820_v20  ;;  %v4485_v10 = vsel %vm4481_vm8, %v4465_v30, %v15882_v59  ;;  %v4487_v18 = vsel %vm4483_vm4, %v15884_v46, %v4486_v37  ;;  %v4596_v61 = vsel %vm4586_vm5, %v4593_v15, %v4595_v28 }
 0x51d   :  { %v4175_v17 = vsel %vm4171_vm7, %v15733_v52, %v4174_v53  ;;  %v4507_v33 = vadd.s32 1, %v15958_v63  ;;  %v4600_v51 = vsel %vm4586_vm5, %v4597_v26, %v4599_v49  ;;  %v4601_v20 = vshll.u32 %v4561_v32, 8 }
 0x51e   :  { %vm4194_vm13 = vc.u32 %v15816_v60, %v15793_v44  ;;  %v4195_v59 = vadd.s32 1, %v15794_v25  ;;  %v4301_v45 = vadd.s32 %v4300_v23, %v4296_v27  ;;  %vm4506_vm10 = vc.u32 %v15972_v13, %v15957_v14 }
 0x51f   :  { %v4382_v46 = vsel %vm4380_vm1, %v15879_v9, 2102212464  ;;  %v4488_v52 = vsel %vm4482_vm9, %v4485_v10, %v4487_v18  ;;  %v16043_v29 = vmul.u32.u64.low %v4601_v20, %v4596_v61  ;;  %v16044_v58 = vmul.u32.u64.high %v4601_v20, %v4596_v61, %v16043_v29 }
 0x520   :  { %v4176_v19 = vsel %vm4170_vm0, %v15804_v8, %v4175_v17  ;;  %v4361_v4 = vshrl.u32 %v17782_v54, %v15789_v22  ;;  %v16052_v7 = vmul.u32.u64.low %v4601_v20, %v4600_v51  ;;  %v16053_v56 = vmul.u32.u64.high %v4601_v20, %v4600_v51, %v16052_v7 }
 0x521   :  { %v3891_v39 = vsub.s32 0, %v15705_v11  ;;  %v16057_v9 = vshrl.u32 %v15747_v3, 30  ;;  %v4508_v62 = vsel %vm4506_vm10, %v4507_v33, %v15958_v63  ;;  %v4196_v37 = vsel %vm4194_vm13, %v4195_v59, %v15794_v25 }
 0x522   :  { %v4381_v35 = vsel %vm4377_vm3, %v4361_v4, %v15856_v16  ;;  %v4383_v22 = vsel %vm4379_vm15, %v15877_v48, %v4382_v46  ;;  %v4504_v8 = vmul.u32 %v15949_v50, %v4488_v52  ;;  %v4192_v32 = vmul.u32 %v15728_v5, %v4176_v19 }
 0x523   :  { %v4302_v15 = vadd.s32 536870912, %v4301_v45  ;;  %v4403_v3 = vadd.s32 1, %v15985_v6  ;;  %v4590_v63 = vsel %vm4588_vm12, %v4578_v36, 2102212464  ;;  %v3990_v25 = vadd.s32 536870912, %v15709_v34 }
 0x524   :  { %vm4402_vm7 = vc.u32 %v16014_v2, %v15984_v47  ;;  %v4509_v16 = vadd.s32 %v4508_v62, %v4504_v8  ;;  %v4569_v28 = vshrl.u32 %v17782_v54, %v15890_v31  ;;  %v8872_v48 = vmin.u32 %v3891_v39, %v15705_v11 }
 0x525   :  { %v4197_v50 = vadd.s32 %v4196_v37, %v4192_v32  ;;  %v4384_v5 = vsel %vm4378_vm14, %v4381_v35, %v4383_v22  ;;  %v4096_v53 = vshll.u32 %v16057_v9, 30  ;;  %v4591_v30 = vsel %vm4587_vm6, %v15965_v55, %v4590_v63 }
 0x526   :  { %v4589_v36 = vsel %vm4585_vm2, %v4569_v28, %v15963_v1  ;;  %v16087_v26 = vshrl.u32 %v4302_v15, 30  ;;  %v4404_v54 = vsel %vm4402_vm7, %v4403_v3, %v15985_v6  ;;  %v4611_v31 = vadd.s32 1, %v16044_v58 }
 0x527   :  { %v16091_v49 = vshrl.u32 %v3990_v25, 30  ;;  %v4400_v43 = vmul.u32 %v15968_v41, %v4384_v5  ;;  %v4510_v23 = vadd.s32 536870912, %v4509_v16  ;;  %vm4610_vm0 = vc.u32 %v16053_v56, %v16043_v29 }
 0x528   :  { %v3893_v24 = vclz %v8872_v48  ;;  %v4198_v1 = vadd.s32 536870912, %v4197_v50  ;;  %v4592_v27 = vsel %vm4586_vm5, %v4589_v36, %v4591_v30  ;;  %v16099_v55 = vsub.s32 %v15714_v38, %v4096_v53 }
 0x529   :  { %v4405_v10 = vadd.s32 %v4404_v54, %v4400_v43  ;;  %v4304_v6 = vshll.u32 %v16087_v26, 30  ;;  %v4612_v18 = vsel %vm4610_vm0, %v4611_v31, %v16044_v58  ;;  %v3992_v61 = vshll.u32 %v16091_v49, 30 }
 0x52a   :  { %v16104_v41 = vshrl.u32 %v4510_v23, 30  ;;  %v4608_v17 = vmul.u32 %v4601_v20, %v4592_v27  ;;  %v8873_v33 = vadd.s32 4294967294, %v3893_v24  ;;  %v16106_v51 = vshrl.u32 %v4198_v1, 30 }
 0x52b   :  { %v4099_v59 = vsub.s32 0, %v16099_v55  ;;  %v4406_v40 = vadd.s32 536870912, %v4405_v10  ;;  %v16109_v52 = vsub.s32 %v4301_v45, %v4304_v6  ;;  %v16112_v38 = vsub.s32 %v15709_v34, %v3992_v61 }
 0x52c   :  { %v4613_v46 = vadd.s32 %v4612_v18, %v4608_v17  ;;  %v4512_v19 = vshll.u32 %v16104_v41, 30  ;;  %vm8874_vm1 = vcmp.lt.s32.totalorder %v8873_v33, 0  ;;  %v4200_v58 = vshll.u32 %v16106_v51, 30 }
 0x52d   :  { %v8880_v4 = vmin.u32 %v4099_v59, %v16099_v55  ;;  %v16117_v20 = vshrl.u32 %v4406_v40, 30  ;;  %v4307_v39 = vsub.s32 0, %v16109_v52  ;;  %v3896_v62 = vsel %vm8874_vm1, 0, %v8873_v33 }
 0x52e   :  { %v4614_v7 = vadd.s32 536870912, %v4613_v46  ;;  %v3995_v37 = vsub.s32 0, %v16112_v38  ;;  %v16121_v45 = vsub.s32 %v4509_v16, %v4512_v19  ;;  %v16123_v35 = vsub.s32 %v4197_v50, %v4200_v58 }
 0x52f   :  { %v4101_v34 = vclz %v8880_v4  ;;  %v4408_v22 = vshll.u32 %v16117_v20, 30  ;;  %v3901_v32 = vsub.s32 4294967266, %v3896_v62  ;;  %v8888_v15 = vmin.u32 %v4307_v39, %v16109_v52 }
 0x530   :  { %v16126_v8 = vshrl.u32 %v4614_v7, 30  ;;  %v8876_v3 = vmin.u32 %v3995_v37, %v16112_v38  ;;  %v4515_v63 = vsub.s32 0, %v16121_v45  ;;  %v4203_v25 = vsub.s32 0, %v16123_v35 }
 0x531   :  { %v8881_v28 = vadd.s32 4294967294, %v4101_v34  ;;  %v16132_v48 = vsub.s32 %v4405_v10, %v4408_v22  ;;  %v3902_v50 = vadd.s32 127, %v3901_v32  ;;  %v4309_v5 = vclz %v8888_v15 }
 0x532   :  { %v4616_v16 = vshll.u32 %v16126_v8, 30  ;;  %v3997_v53 = vclz %v8876_v3  ;;  %v8896_v36 = vmin.u32 %v4515_v63, %v16121_v45  ;;  %v3897_v30 = vsub.s32 32, %v3896_v62 }
 0x533   :  { %v8884_v54 = vmin.u32 %v4203_v25, %v16123_v35  ;;  %vm8882_vm3 = vcmp.lt.s32.totalorder %v8881_v28, 0  ;;  %v4411_v31 = vsub.s32 0, %v16132_v48  ;;  %v3881_v23 = vadd.s32 %v15440_v0, %v15437_v42 }
 0x534   :  { %v16138_v43 = vsub.s32 %v4613_v46, %v4616_v16  ;;  %v3903_v24 = vshll.u32 %v3902_v50, 23  ;;  %v8889_v1 = vadd.s32 4294967294, %v4309_v5  ;;  %v8877_v27 = vadd.s32 4294967294, %v3997_v53  ;;  %v17812_v50 = vld [vmem:[#allocation95_spill] sm:$0xff]  ;;  %v17813_v5 = vld [vmem:[#allocation110_spill] sm:$0xff] }
 0x535   :  { %v4517_v10 = vclz %v8896_v36  ;;  %v3899_v6 = vshrl.u32 %v3881_v23, %v3897_v30  ;;  %v4104_v18 = vsel %vm8882_vm3, 0, %v8881_v28  ;;  %v4205_v61 = vclz %v8884_v54 }
 0x536   :  { %v8892_v17 = vmin.u32 %v4411_v31, %v16132_v48  ;;  %v4619_v33 = vsub.s32 0, %v16138_v43  ;;  %v3898_v59 = vshll.u32 %v15705_v11, %v3896_v62  ;;  %v3904_v40 = vor.u32 4788187, %v3903_v24 }
 0x537   :  { %vm8890_vm14 = vcmp.lt.s32.totalorder %v8889_v1, 0  ;;  %vm8878_vm8 = vcmp.lt.s32.totalorder %v8877_v27, 0  ;;  %v4109_v46 = vsub.s32 4294967266, %v4104_v18  ;;  %v8897_v19 = vadd.s32 4294967294, %v4517_v10  ;;  %v17814_v10 = vld [vmem:[#allocation48_spill] sm:$0xff] }
 0x538   :  { %v3900_v58 = vor.u32 %v3899_v6, %v3898_v59  ;;  %v8885_v42 = vadd.s32 4294967294, %v4205_v61  ;;  %v4312_v0 = vsel %vm8890_vm14, 0, %v8889_v1  ;;  %v4413_v4 = vclz %v8892_v17 }
 0x539   :  { %v8900_v7 = vmin.u32 %v4619_v33, %v16138_v43  ;;  %v3905_v39 = vand.u32 2147483647, %v3904_v40  ;;  %v4000_v37 = vsel %vm8878_vm8, 0, %v8877_v27  ;;  %v4110_v34 = vadd.s32 127, %v4109_v46  ;;  %v17815_v46 = vld [vmem:[#allocation55_spill] sm:$0xff] }
 0x53a   :  { %vm8898_vm4 = vcmp.lt.s32.totalorder %v8897_v19, 0  ;;  %v3907_v22 = vcvt.s32.f32 %v3900_v58  ;;  %vm8886_vm15 = vcmp.lt.s32.totalorder %v8885_v42, 0  ;;  %v4317_v32 = vsub.s32 4294967266, %v4312_v0 }
 0x53b   :  { %v4005_v15 = vsub.s32 4294967266, %v4000_v37  ;;  %v8893_v11 = vadd.s32 4294967294, %v4413_v4  ;;  %v4621_v62 = vclz %v8900_v7  ;;  %v4105_v63 = vsub.s32 32, %v4104_v18 }
 0x53c   :  { %v3908_v3 = vmul.f32 %v3907_v22, %v3905_v39  ;;  %v16146_v25 = vsel %vm8898_vm4, 0, %v8897_v19  ;;  %v4111_v28 = vshll.u32 %v4110_v34, 23  ;;  %v16148_v16 = vsel %vm8886_vm15, 0, %v8885_v42  ;;  %v17816_v19 = vld [vmem:[#allocation53_spill] sm:$0xff] }
 0x53d   :  { %v4089_v53 = vadd.s32 %v17813_v5, %v17812_v50  ;;  %v4318_v36 = vadd.s32 127, %v4317_v32  ;;  %v4006_v30 = vadd.s32 127, %v4005_v15  ;;  %vm8894_vm9 = vcmp.lt.s32.totalorder %v8893_v11, 0 }
 0x53e   :  { %v4525_v54 = vsub.s32 4294967266, %v16146_v25  ;;  %v8901_v31 = vadd.s32 4294967294, %v4621_v62  ;;  %v3909_v23 = vxor.u32 2147483648, %v3908_v3  ;;  %v4213_v1 = vsub.s32 4294967266, %v16148_v16 }
 0x53f   :  { %v4107_v24 = vshrl.u32 %v4089_v53, %v4105_v63  ;;  %v4313_v27 = vsub.s32 32, %v4312_v0  ;;  %vm3827_vm12 = vcmp.lt.s32.totalorder %v17814_v10, 0  ;;  %v4001_v6 = vsub.s32 32, %v4000_v37 }
 0x540   :  { %v4112_v61 = vor.u32 4788187, %v4111_v28  ;;  %v4106_v17 = vshll.u32 %v16099_v55, %v4104_v18  ;;  %v4297_v33 = vadd.s32 %v15836_v21, %v15829_v57  ;;  %v4319_v59 = vshll.u32 %v4318_v36, 23 }
 0x541   :  { %v16158_v40 = vsel %vm8894_vm9, 0, %v8893_v11  ;;  %v3985_v58 = vadd.s32 %v17816_v19, %v17815_v46  ;;  %v4007_v42 = vshll.u32 %v4006_v30, 23  ;;  %v4526_v4 = vadd.s32 127, %v4525_v54 }
 0x542   :  { %vm8902_vm11 = vcmp.lt.s32.totalorder %v8901_v31, 0  ;;  %v3910_v7 = vsel %vm3827_vm12, %v3909_v23, %v3908_v3  ;;  %v4108_v39 = vor.u32 %v4107_v24, %v4106_v17  ;;  %v4214_v34 = vadd.s32 127, %v4213_v1 }
 0x543   :  { %v4315_v22 = vshrl.u32 %v4297_v33, %v4313_v27  ;;  %v4003_v32 = vshrl.u32 %v3985_v58, %v4001_v6  ;;  %v4113_v55 = vand.u32 2147483647, %v4112_v61  ;;  %v4421_v18 = vsub.s32 4294967266, %v16158_v40 }
 0x544   :  { %v4521_v57 = vsub.s32 32, %v16146_v25  ;;  %v4209_v21 = vsub.s32 32, %v16148_v16  ;;  %v4314_v15 = vshll.u32 %v16109_v52, %v4312_v0  ;;  %v4320_v11 = vor.u32 4788187, %v4319_v59 }
 0x545   :  { %v16168_v62 = vsel %vm8902_vm11, 0, %v8901_v31  ;;  %v4002_v63 = vshll.u32 %v16112_v38, %v4000_v37  ;;  %v4008_v28 = vor.u32 4788187, %v4007_v42  ;;  %v4505_v3 = vadd.s32 %v15957_v14, %v15972_v13 }
 0x546   :  { %v4527_v50 = vshll.u32 %v4526_v4, 23  ;;  %v4115_v5 = vcvt.s32.f32 %v4108_v39  ;;  %v4193_v53 = vadd.s32 %v15793_v44, %v15816_v60  ;;  %v4215_v36 = vshll.u32 %v4214_v34, 23  ;;  %v17820_v39 = vld [vmem:[#allocation166_spill] sm:$0xff] }
 0x547   :  { %v4316_v30 = vor.u32 %v4315_v22, %v4314_v15  ;;  %v17817_v54 = vand.u32 2147483647, %v17814_v10  ;;  %v4422_v0 = vadd.s32 127, %v4421_v18  ;;  %v4523_v31 = vshrl.u32 %v4505_v3, %v4521_v57 }
 0x548   :  { %v4629_v38 = vsub.s32 4294967266, %v16168_v62  ;;  %v4004_v37 = vor.u32 %v4003_v32, %v4002_v63  ;;  %v4116_v23 = vmul.f32 %v4115_v5, %v4113_v55  ;;  %v4211_v14 = vshrl.u32 %v4193_v53, %v4209_v21  ;;  %v17825_v5 = vld [vmem:[#allocation52_spill] sm:$0xff] }
 0x549   :  { %vm16177_vm2 = vcmp.le.f32.partialorder %v17817_v54, 0.7853982  ;;  %v4321_v13 = vand.u32 2147483647, %v4320_v11  ;;  %v4417_v60 = vsub.s32 32, %v16158_v40  ;;  %v4522_v24 = vshll.u32 %v16121_v45, %v16146_v25  ;;  %v17826_v54 = vld [vmem:[#allocation50_spill] sm:$0xff] }
 0x54a   :  { %v3913_v44 = vsel %vm16177_vm2, %v17814_v10, %v3910_v7  ;;  %v4528_v1 = vor.u32 4788187, %v4527_v50  ;;  %v4009_v27 = vand.u32 2147483647, %v4008_v28  ;;  %v4210_v6 = vshll.u32 %v16123_v35, %v16148_v16  ;;  %v17821_v28 = vld [vmem:[#allocation221_spill] sm:$0xff] }
 0x54b   :  { %v4216_v61 = vor.u32 4788187, %v4215_v36  ;;  %v4323_v17 = vcvt.s32.f32 %v4316_v30  ;;  %v4401_v33 = vadd.s32 %v15984_v47, %v16014_v2  ;;  %v4423_v59 = vshll.u32 %v4422_v0, 23 }
 0x54c   :  { %v4524_v46 = vor.u32 %v4523_v31, %v4522_v24  ;;  %v4630_v19 = vadd.s32 127, %v4629_v38  ;;  %v4011_v58 = vcvt.s32.f32 %v4004_v37  ;;  %v4117_v42 = vxor.u32 2147483648, %v4116_v23  ;;  %v17827_v31 = vld [vmem:[#allocation29_spill] sm:$0xff]  ;;  %v17855_v24 = vld [vmem:[#allocation151_spill] sm:$0xff] }
 0x54d   :  { %v4212_v4 = vor.u32 %v4211_v14, %v4210_v6  ;;  %v4324_v7 = vmul.f32 %v4323_v17, %v4321_v13  ;;  %vm4035_vm6 = vcmp.lt.s32.totalorder %v17820_v39, 0  ;;  %v4419_v45 = vshrl.u32 %v4401_v33, %v4417_v60 }
 0x54e   :  { %v4529_v25 = vand.u32 2147483647, %v4528_v1  ;;  %v4625_v34 = vsub.s32 32, %v16168_v62  ;;  %9147 = vcosq.f32 %v3913_v44  ;;  %v4012_v35 = vmul.f32 %v4011_v58, %v4009_v27  ;;  %v17831_v1 = vld [vmem:[#allocation112_spill] sm:$0xff] }
 0x54f   :  { %v4217_v16 = vand.u32 2147483647, %v4216_v61  ;;  %v4418_v22 = vshll.u32 %v16132_v48, %v16158_v40  ;;  %v4424_v47 = vor.u32 4788187, %v4423_v59  ;;  %v4531_v2 = vcvt.s32.f32 %v4524_v46 }
 0x550   :  { %v4609_v32 = vadd.s32 %v16043_v29, %v16053_v56  ;;  %v4631_v55 = vshll.u32 %v4630_v19, 23  ;;  %9149 = vsinq.f32 %v3913_v44  ;;  %v4118_v18 = vsel %vm4035_vm6, %v4117_v42, %v4116_v23 }
 0x551   :  { %v4219_v57 = vcvt.s32.f32 %v4212_v4  ;;  %v4325_v21 = vxor.u32 2147483648, %v4324_v7  ;;  %v4420_v15 = vor.u32 %v4419_v45, %v4418_v22  ;;  %v4532_v11 = vmul.f32 %v4531_v2, %v4529_v25 }
 0x552   :  { %v4627_v63 = vshrl.u32 %v4609_v32, %v4625_v34  ;;  %v3911_v3 = vsub.s32 4, %v17821_v28  ;;  %v4013_v50 = vxor.u32 2147483648, %v4012_v35  ;;  %v17822_v48 = vand.u32 2147483647, %v17820_v39  ;;  %v17838_v34 = vld [vmem:[#allocation115_spill] sm:$0xff] }
 0x553   :  { %v4220_v29 = vmul.f32 %v4219_v57, %v4217_v16  ;;  %vm4243_vm13 = vcmp.lt.s32.totalorder %v17825_v5, 0  ;;  %v4425_v53 = vand.u32 2147483647, %v4424_v47  ;;  %v4626_v36 = vshll.u32 %v16138_v43, %v16168_v62  ;;  %v17840_v57 = vld [vmem:[#allocation142_spill] sm:$0xff] }
 0x554   :  { %vm16203_vm5 = vcmp.le.f32.partialorder %v17822_v48, 0.7853982  ;;  %v4632_v30 = vor.u32 4788187, %v4631_v55  ;;  %vm3931_vm10 = vcmp.lt.s32.totalorder %v17826_v54, 0  ;;  %vm4139_vm7 = vcmp.lt.s32.totalorder %v17827_v31, 0 }
 0x555   :  { %v4121_v0 = vsel %vm16203_vm5, %v17820_v39, %v4118_v18  ;;  %v4326_v38 = vsel %vm4243_vm13, %v4325_v21, %v4324_v7  ;;  %v4427_v23 = vcvt.s32.f32 %v4420_v15  ;;  %v4533_v14 = vxor.u32 2147483648, %v4532_v11 }
 0x556   :  { %v4628_v13 = vor.u32 %v4627_v63, %v4626_v36  ;;  %v3912_v43 = vsel %vm3827_vm12, %v3911_v3, %v17821_v28  ;;  %v4014_v62 = vsel %vm3931_vm10, %v4013_v50, %v4012_v35  ;;  %v4221_v44 = vxor.u32 2147483648, %v4220_v29  ;;  %v17839_v35 = vld [vmem:[#allocation135_spill] sm:$0xff] }
 0x557   :  { %v17828_v60 = vand.u32 2147483647, %v17825_v5  ;;  %vm4451_vm1 = vcmp.lt.s32.totalorder %v17831_v1, 0  ;;  %9151 = vcosq.f32 %v4121_v0  ;;  %v4428_v6 = vmul.f32 %v4427_v23, %v4425_v53  ;;  %v17841_v28 = vld [vmem:[#allocation99_spill] sm:$0xff] }
 0x558   :  { %v4633_v61 = vand.u32 2147483647, %v4632_v30  ;;  %9153 = vsinq.f32 %v4121_v0  ;;  %v17832_v33 = vand.u32 2147483647, %v17831_v1  ;;  %v3914_v46 = vsel %vm16177_vm2, 0, %v3912_v43  ;;  %v17846_v43 = vld [vmem:[#allocation207_spill] sm:$0xff] }
 0x559   :  { %vm16228_vm0 = vcmp.le.f32.partialorder %v17828_v60, 0.7853982  ;;  %v17835_v19 = vand.u32 2147483647, %v17826_v54  ;;  %v4534_v42 = vsel %vm4451_vm1, %v4533_v14, %v4532_v11  ;;  %v4635_v4 = vcvt.s32.f32 %v4628_v13 }
 0x55a   :  { %v4329_v27 = vsel %vm16228_vm0, %v17825_v5, %v4326_v38  ;;  %vm16240_vm3 = vcmp.le.f32.partialorder %v17832_v33, 0.7853982  ;;  %v4015_v45 = vsub.s32 4, %v16091_v49  ;;  %v4222_v52 = vsel %vm4139_vm7, %v4221_v44, %v4220_v29  ;;  %v17845_v29 = vld [vmem:[#allocation203_spill] sm:$0xff] }
 0x55b   :  { %vm16248_vm14 = vcmp.le.f32.partialorder %v17835_v19, 0.7853982  ;;  %9155 = vcosq.f32 %v4329_v27  ;;  %v5027_v16 = vadd.f32 %v17839_v35, %v17838_v34  ;;  %v4119_v22 = vsub.s32 4, %v16057_v9  ;;  %v9148_v47 = vpop.eup %9147 }
 0x55c   :  { %v4017_v25 = vsel %vm16248_vm14, %v17826_v54, %v4014_v62  ;;  %9157 = vsinq.f32 %v4329_v27  ;;  %v4429_v2 = vxor.u32 2147483648, %v4428_v6  ;;  %v4636_v32 = vmul.f32 %v4635_v4, %v4633_v61 }
 0x55d   :  { %v3918_v55 = vadd.s32 3, %v3914_v46  ;;  %v4537_v18 = vsel %vm16240_vm3, %v17831_v1, %v4534_v42  ;;  %v5236_v21 = vadd.f32 %v17840_v57, %v5027_v16  ;;  %9159 = vcosq.f32 %v4017_v25  ;;  %v9150_v63 = vpop.eup %9149 }
 0x55e   :  { %vm4347_vm8 = vcmp.lt.s32.totalorder %v17841_v28, 0  ;;  %v4016_v3 = vsel %vm3931_vm10, %v4015_v45, %v16091_v49  ;;  %9161 = vsinq.f32 %v4017_v25  ;;  %v17842_v50 = vand.u32 2147483647, %v17827_v31  ;;  %v17850_v45 = vld [vmem:[#allocation98_spill] sm:$0xff] }
 0x55f   :  { %v5434_v53 = vadd.f32 %v17845_v29, %v5236_v21  ;;  %v4120_v0 = vsel %vm4035_vm6, %v4119_v22, %v16057_v9  ;;  %v4327_v38 = vsub.s32 4, %v16087_v26  ;;  %v4430_v23 = vsel %vm4347_vm8, %v4429_v2, %v4428_v6 }
 0x560   :  { %vm16279_vm4 = vcmp.le.f32.partialorder %v17842_v50, 0.7853982  ;;  %9163 = vcosq.f32 %v4537_v18  ;;  %v4637_v14 = vxor.u32 2147483648, %v4636_v32  ;;  %v3919_v13 = vand.u32 3, %v3918_v55 }
 0x561   :  { %v4225_v49 = vsel %vm16279_vm4, %v17827_v31, %v4222_v52  ;;  %v5644_v62 = vadd.f32 %v17846_v43, %v5434_v53  ;;  %v3922_v60 = vxor.u32 2147483648, %v9150_v63  ;;  %v3925_v27 = vxor.u32 2147483648, %v9148_v47 }
 0x562   :  { %v4018_v9 = vsel %vm16248_vm14, 0, %v4016_v3  ;;  %v4122_v33 = vsel %vm16203_vm5, 0, %v4120_v0  ;;  %v4223_v46 = vsub.s32 4, %v16106_v51  ;;  %9165 = vcosq.f32 %v4225_v49  ;;  %v17856_v0 = vld [vmem:[#allocation216_spill] sm:$0xff] }
 0x563   :  { %v17847_v6 = vand.u32 2147483647, %v17841_v28  ;;  %vm4555_vm9 = vcmp.lt.s32.totalorder %v15731_v12, 0  ;;  %9167 = vsinq.f32 %v4225_v49  ;;  %v4328_v58 = vsel %vm4243_vm13, %v4327_v38, %v16087_v26 }
 0x564   :  { %9169 = vsinq.f32 %v4537_v18  ;;  %v4638_v4 = vsel %vm4555_vm9, %v4637_v14, %v4636_v32  ;;  %v5839_v25 = vadd.f32 %v17850_v45, %v5644_v62  ;;  %vm3921_vm12 = vcmp.eq.s32.totalorder %v3919_v13, 0  ;;  %v9152_v34 = vpop.eup %9151 }
 0x565   :  { %vm16309_vm15 = vcmp.le.f32.partialorder %v17847_v6, 0.7853982  ;;  %v3923_v16 = vsel %vm3921_vm12, %v9148_v47, %v3922_v60  ;;  %vm3924_vm11 = vcmp.eq.s32.totalorder %v3919_v13, 2  ;;  %v4022_v22 = vadd.s32 3, %v4018_v9  ;;  %v9154_v2 = vpop.eup %9153 }
 0x566   :  { %v4433_v40 = vsel %vm16309_vm15, %v17841_v28, %v4430_v23  ;;  %v4126_v26 = vadd.s32 3, %v4122_v33  ;;  %v3926_v57 = vsel %vm3924_vm11, %v3925_v27, %v9150_v63  ;;  %v4224_v32 = vsel %vm4139_vm7, %v4223_v46, %v16106_v51  ;;  %v17854_v51 = vld [vmem:[#allocation146_spill] sm:$0xff] }
 0x567   :  { %v4330_v18 = vsel %vm16228_vm0, 0, %v4328_v58  ;;  %9171 = vcosq.f32 %v4433_v40  ;;  %v4431_v3 = vsub.s32 4, %v16117_v20  ;;  %v4535_v47 = vsub.s32 4, %v16104_v41 }
 0x568   :  { %9173 = vsinq.f32 %v4433_v40  ;;  %v17851_v50 = vand.u32 2147483647, %v15731_v12  ;;  %v16346_v63 = vpop.eup %9155  ;;  %v16349_v53 = vadd.f32 %v17854_v51, %v5839_v25  ;;  %v5860_v49 = vadd.f32 %v17856_v0, %v17855_v24  ;;  %v17857_v25 = vld [vmem:[#allocation219_spill] sm:$0xff] }
 0x569   :  { %v16358_v14 = vpop.eup %9157  ;;  %vm3920_vm6 = vcmp.lt.s32.totalorder %v3919_v13, 2  ;;  %v16360_v43 = vand.u32 3, %v4022_v22  ;;  %v4127_v62 = vand.u32 3, %v4126_v26  ;;  %v4226_v60 = vsel %vm16279_vm4, 0, %v4224_v32 }
 0x56a   :  { %vm16342_vm2 = vcmp.le.f32.partialorder %v17851_v50, 0.7853982  ;;  %v9160_v27 = vpop.eup %9159  ;;  %v3927_v46 = vsel %vm3920_vm6, %v3923_v16, %v3926_v57  ;;  %v4130_v6 = vxor.u32 2147483648, %v9154_v2  ;;  %v4133_v58 = vxor.u32 2147483648, %v9152_v34 }
 0x56b   :  { %v4641_v23 = vsel %vm16342_vm2, %v15731_v12, %v4638_v4  ;;  %v4334_v40 = vadd.s32 3, %v4330_v18  ;;  %v9162_v45 = vpop.eup %9161  ;;  %v4432_v13 = vsel %vm4347_vm8, %v4431_v3, %v16117_v20  ;;  %v4536_v4 = vsel %vm4451_vm1, %v4535_v47, %v16104_v41 }
 0x56c   :  { %v4639_v48 = vsub.s32 4, %v16126_v8  ;;  %9175 = vcosq.f32 %v4641_v23  ;;  %v16376_v22 = vadd.f32 %v17857_v25, %v5860_v49  ;;  %vm3917_vm5 = vweird.f32 %v17814_v10 }
 0x56d   :  { %v4230_v57 = vadd.s32 3, %v4226_v60  ;;  %9177 = vsinq.f32 %v4641_v23  ;;  %v16383_v32 = vpop.eup %9163  ;;  %v16385_v20 = vsel %vm3917_vm5, nan, %v3927_v46  ;;  %vm4024_vm13 = vcmp.lt.s32.totalorder %v16360_v43, 2 }
 0x56e   :  { %17859 = vst [vmem:[#allocation9_spill] sm:$0xff] %v16385_v20  ;;  %vm4129_vm10 = vcmp.eq.s32.totalorder %v4127_v62, 0  ;;  %vm4132_vm7 = vcmp.eq.s32.totalorder %v4127_v62, 2  ;;  %v4026_v3 = vxor.u32 2147483648, %v9162_v45  ;;  %v4029_v47 = vxor.u32 2147483648, %v9160_v27 }
 0x56f   :  { %v4434_v50 = vsel %vm16309_vm15, 0, %v4432_v13  ;;  %v4538_v10 = vsel %vm16240_vm3, 0, %v4536_v4  ;;  %v9166_v51 = vpop.eup %9165  ;;  %vm4021_vm0 = vweird.f32 %v17826_v54  ;;  %vm4125_vm1 = vweird.f32 %v17820_v39 }
 0x570   :  { %v16207_v56 = vpop.f32.mrf.mxu0  ;;  %v4131_v24 = vsel %vm4129_vm10, %v9152_v34, %v4130_v6  ;;  %v4134_v0 = vsel %vm4132_vm7, %v4133_v58, %v9154_v2  ;;  %v4335_v49 = vand.u32 3, %v4334_v40  ;;  %v4640_v23 = vsel %vm4555_vm9, %v4639_v48, %v16126_v8  ;;  %v9168_v60 = vpop.eup %9167 }
 0x571   :  { %vm4025_vm14 = vcmp.eq.s32.totalorder %v16360_v43, 0  ;;  %v4231_v59 = vand.u32 3, %v4230_v57  ;;  %v4338_v13 = vxor.u32 2147483648, %v16358_v14  ;;  %v4341_v4 = vxor.u32 2147483648, %v16346_v63  ;;  %v9170_v25 = vpop.eup %9169 }
 0x572   :  { %v16219_v37 = vpop.f32.mrf.mxu0  ;;  %vm4028_vm3 = vcmp.eq.s32.totalorder %v16360_v43, 2  ;;  %vm4128_vm8 = vcmp.lt.s32.totalorder %v4127_v62, 2  ;;  %v4438_v34 = vadd.s32 3, %v4434_v50  ;;  %v4542_v2 = vadd.s32 3, %v4538_v10 }
 0x573   :  { %v4027_v8 = vsel %vm4025_vm14, %v9160_v27, %v4026_v3  ;;  %v4030_v58 = vsel %vm4028_vm3, %v4029_v47, %v9162_v45  ;;  %v4135_v40 = vsel %vm4128_vm8, %v4131_v24, %v4134_v0  ;;  %v4642_v48 = vsel %vm16342_vm2, 0, %v4640_v23 }
 0x574   :  { %v9172_v12 = vpop.eup %9171  ;;  %v4234_v20 = vxor.u32 2147483648, %v9168_v60  ;;  %vm4337_vm4 = vcmp.eq.s32.totalorder %v4335_v49, 0  ;;  %vm4340_vm15 = vcmp.eq.s32.totalorder %v4335_v49, 2  ;;  %vm4229_vm9 = vweird.f32 %v17827_v31  ;;  %v17865_v31 = vld [vmem:[#allocation150_spill] sm:$0xff] }
 0x575   :  { %v16236_v17 = vpop.f32.mrf.mxu0  ;;  %vm4233_vm12 = vcmp.eq.s32.totalorder %v4231_v59, 0  ;;  %vm4333_vm11 = vweird.f32 %v17825_v5  ;;  %v4339_v62 = vsel %vm4337_vm4, %v16346_v63, %v4338_v13  ;;  %v4342_v29 = vsel %vm4340_vm15, %v4341_v4, %v16358_v14 }
 0x576   :  { %v4031_v45 = vsel %vm4024_vm13, %v4027_v8, %v4030_v58  ;;  %v4439_v3 = vand.u32 3, %v4438_v34  ;;  %v4543_v47 = vand.u32 3, %v4542_v2  ;;  %v4646_v50 = vadd.s32 3, %v4642_v48 }
 0x577   :  { %v16254_v7 = vpop.f32.mrf.mxu0  ;;  %vm4236_vm2 = vcmp.eq.s32.totalorder %v4231_v59, 2  ;;  %vm4336_vm6 = vcmp.lt.s32.totalorder %v4335_v49, 2  ;;  %v4546_v24 = vxor.u32 2147483648, %v9170_v25  ;;  %v4549_v0 = vxor.u32 2147483648, %v16383_v32 }
 0x578   :  { %v4235_v63 = vsel %vm4233_vm12, %v9166_v51, %v4234_v20  ;;  %v4445_v4 = vxor.u32 2147483648, %v9172_v12  ;;  %v16434_v43 = vsel %vm4021_vm0, nan, %v4031_v45  ;;  %v16438_v34 = vsel %vm4125_vm1, nan, %v4135_v40 }
 0x579   :  { %vm4232_vm5 = vcmp.lt.s32.totalorder %v4231_v59, 2  ;;  %v4343_v49 = vsel %vm4336_vm6, %v4339_v62, %v4342_v29  ;;  %vm4441_vm13 = vcmp.eq.s32.totalorder %v4439_v3, 0  ;;  %vm4545_vm10 = vcmp.eq.s32.totalorder %v4543_v47, 0  ;;  %v17863_v62 = vld [vmem:[#allocation155_spill] sm:$0xff] }
 0x57a   :  { %v16269_v15 = vpop.f32.mrf.mxu0  ;;  %v16271_v11 = vpop.f32.mrf.mxu1  ;;  %vm4548_vm7 = vcmp.eq.s32.totalorder %v4543_v47, 2  ;;  %v16442_v20 = vand.u32 3, %v4646_v50  ;;  %vm4444_vm14 = vcmp.eq.s32.totalorder %v4439_v3, 2  ;;  %v4547_v54 = vsel %vm4545_vm10, %v16383_v32, %v4546_v24 }
 0x57b   :  { %v16449_v39 = vsel %vm4333_vm11, nan, %v4343_v49  ;;  %v7591_v29 = vadd.f32 %v16254_v7, %v17863_v62  ;;  %vm4440_vm0 = vcmp.lt.s32.totalorder %v4439_v3, 2  ;;  %vm4544_vm1 = vcmp.lt.s32.totalorder %v4543_v47, 2 }
 0x57c   :  { %v16284_v36 = vpop.f32.mrf.mxu0  ;;  %v16286_v30 = vpop.f32.mrf.mxu1  ;;  %vm4649_vm3 = vcmp.eq.s32.totalorder %v16442_v20, 0  ;;  %vm4652_vm8 = vcmp.eq.s32.totalorder %v16442_v20, 2  ;;  %v7578_v47 = vadd.f32 %v16207_v56, %v17865_v31  ;;  %vm4437_vm4 = vweird.f32 %v17841_v28 }
 0x57d   :  { %vm17868_vm15 = vcmask 261120   ;;  %vm4648_vm12 = vcmp.lt.s32.totalorder %v16442_v20, 2 }
 0x57e   :  { %v16298_v44 = vpop.f32.mrf.mxu0  ;;  %v7723_v56 = vadd.f32 %v16271_v11, %v7578_v47 }
 0x57f   :  { %v16302_v61 = vpop.f32.mrf.mxu1 }
 0x580   :  { %v16314_v42 = vpop.f32.mrf.mxu0 }
 0x581   :  { %v16325_v52 = vpop.f32.mrf.mxu1 }
 0x582   :  { %v16327_v35 = vpop.f32.mrf.mxu0  ;;  %v7732_v7 = vadd.f32 %v16325_v52, %v7591_v29 }
 0x583   :  { %v16329_v55 = vpop.f32.mrf.mxu1  ;;  %v7833_v11 = vadd.f32 %v16327_v35, %v7723_v56 }
 0x584   :  { %v16336_v21 = vpop.f32.mrf.mxu0 }
 0x585   :  { %v16353_v38 = vpop.f32.mrf.mxu1 }
 0x587   :  { %v16364_v9 = vpop.f32.mrf.mxu1  ;;  %v16366_v33 = vpop.f32.mrf.mxu0 }
 0x589   :  { %v16378_v26 = vpop.f32.mrf.mxu1  ;;  %v16380_v16 = vpop.f32.mrf.mxu0 }
 0x58a   :  { %17858 = vst [vmem:[#allocation97_spill] sm:$0xff] %v16378_v26  ;;  %v9174_v26 = vpop.eup %9173 }
 0x58b   :  { %v16388_v41 = vpop.f32.mrf.mxu0  ;;  %v16390_v18 = vpop.f32.mrf.mxu1  ;;  %v4442_v14 = vxor.u32 2147483648, %v9174_v26  ;;  %v4446_v40 = vsel %vm4444_vm14, %v4445_v4, %v9174_v26 }
 0x58c   :  { %17860 = vst [vmem:[#allocation108_spill] sm:$0xff] %v16390_v18  ;;  %v4237_v18 = vxor.u32 2147483648, %v9166_v51 }
 0x58d   :  { %v16401_v46 = vpop.f32.mrf.mxu0  ;;  %v16403_v19 = vpop.f32.mrf.mxu1  ;;  %v4443_v59 = vsel %vm4441_vm13, %v9172_v12, %v4442_v14  ;;  %v7580_v12 = vadd.f32 %v16219_v37, %v16349_v53  ;;  %v17867_v53 = vld [vmem:[#allocation157_spill] sm:$0xff] }
 0x58e   :  { %v4238_v13 = vsel %vm4236_vm2, %v4237_v18, %v9168_v60  ;;  %v4550_v60 = vsel %vm4548_vm7, %v4549_v0, %v9170_v25  ;;  %v4447_v3 = vsel %vm4440_vm0, %v4443_v59, %v4446_v40  ;;  %v17866_v0 = vld [vmem:[#allocation156_spill] sm:$0xff]  ;;  %v7602_v52 = vadd.f32 %v16284_v36, %v17867_v53  ;;  %v17869_v36 = vld [vmem:[#allocation159_spill] sm:$0xff] }
 0x58f   :  { %v16409_v6 = vpop.f32.mrf.mxu0  ;;  %v4239_v51 = vsel %vm4232_vm5, %v4235_v63, %v4238_v13  ;;  %v17864_v63 = vld [vmem:[#allocation154_spill] sm:$0xff]  ;;  %v16461_v24 = vsel %vm4544_vm1, %v4547_v54, %v4550_v60  ;;  %v7600_v13 = vadd.f32 %v16269_v15, %v17866_v0  ;;  %v7725_v49 = vadd.f32 %v16286_v30, %v7580_v12 }
 0x590   :  { %17861 = vst [vmem:[#allocation101_spill] sm:$0xff] %v16409_v6  ;;  %v16413_v57 = vpop.f32.mrf.mxu1  ;;  %v7589_v32 = vadd.f32 %v16236_v17, %v17864_v63  ;;  %v16459_v5 = vsel %vm4229_vm9, nan, %v4239_v51  ;;  %v8196_v17 = vld [vmem:[%s16633_s5] sm:$0x3]  ;;  %v7843_v51 = vadd.f32 %v16380_v16, %v7732_v7  ;;  %v7611_v30 = vadd.f32 %v16298_v44, %v17869_v36  ;;  %s9209_s5 = smov [#allocation2]  }
 0x591   :  { %v16415_v1 = vpop.f32.mrf.mxu0  ;;  %v7737_v15 = vadd.f32 %v16329_v55, %v7600_v13  ;;  %v8204_v59 = vsel %vm17868_vm15, %v8196_v17, 0  ;;  %v7739_v16 = vadd.f32 %v16353_v38, %v7602_v52  ;;  %v7835_v40 = vadd.f32 %v16336_v21, %v7725_v49  ;;  %v17870_v21 = vld [vmem:[#allocation112_spill] sm:$0xff]  ;;  %s8767_s27 = sshll.u32 %s9209_s5, 4  ;;  %s8768_s27 = int_to_ptr.vmem [resolvable:$true] %s8767_s27 }
 0x592   :  { %17862 = vst [vmem:[#allocation165_spill] sm:$0xff] %v16415_v1  ;;  %v16421_v27 = vpop.f32.mrf.mxu1  ;;  %v9176_v1 = vpop.eup %9175  ;;  %v7730_v14 = vadd.f32 %v16302_v61, %v7589_v32  ;;  %v7744_v29 = vadd.f32 %v16364_v9, %v7611_v30  ;;  %vm4541_vm9 = vweird.f32 %v17870_v21  ;;  %v16508_v0 = vand.u32 4294901760, %v8204_v59  ;;  %v17875_v30 = vld [vmem:[#allocation9_spill] sm:$0xff]  ;;  %s9179_s2 = scalar_lea.vmem %s8768_s27, 64  ;;  %p9184_p1 = scmp.lt.s32.totalorder %s8768_s27, %s8768_s27 }
 0x593   :  { %v16425_v10 = vpop.f32.mrf.mxu0  ;;  %v9178_v2 = vpop.eup %9177  ;;  %v4653_v48 = vxor.u32 2147483648, %v9176_v1  ;;  %v7849_v55 = vadd.f32 %v16388_v41, %v7737_v15  ;;  %v7851_v44 = vadd.f32 %v16401_v46, %v7739_v16  ;;  %v7941_v38 = vadd.f32 %v16403_v19, %v7835_v40  ;;  %v17872_v32 = vld [vmem:[#allocation108_spill] sm:$0xff]  ;;  %p9180_p0 = scmp.ne.s32.totalorder %s8768_s27, %s9179_s2  ;;  %p9185_p2 = scmp.lt.s32.totalorder %s9179_s2, %s9179_s2 }
 0x594   :  { %v16428_v23 = vpop.f32.mrf.mxu1  ;;  %v4650_v50 = vxor.u32 2147483648, %v9178_v2  ;;  %v7841_v61 = vadd.f32 %v16366_v33, %v7730_v14 }
 0x595   :  { %v16430_v6 = vpop.f32.mrf.mxu0  ;;  %v4654_v37 = vsel %vm4652_vm8, %v4653_v48, %v9178_v2  ;;  %v7950_v48 = vadd.f32 %v16421_v27, %v7843_v51  ;;  %v17871_v27 = vld [vmem:[#allocation97_spill] sm:$0xff]  ;;  %v7957_v35 = vadd.f32 %v16428_v23, %v7849_v55  ;;  %p9186_p3 = por %p9185_p2, %p9184_p1 }
 0x596   :  { %v16440_v8 = vpop.f32.mrf.mxu1  ;;  %v4651_v54 = vsel %vm4649_vm3, %v9176_v1, %v4650_v50  ;;  %v7613_v1 = vadd.f32 %v16314_v42, %v16376_v22  ;;  %v7948_v33 = vadd.f32 %v16413_v57, %v7841_v61  ;;  %v7939_v42 = vadd.f32 %v17872_v32, %v7833_v11 }
 0x597   :  { %v8068_v18 = vpop.f32.mrf.mxu0  ;;  %v17873_v57 = vld [vmem:[#allocation101_spill] sm:$0xff]  ;;  %v7959_v9 = vadd.f32 %v16440_v8, %v7851_v44  ;;  %v8064_v46 = vadd.f32 %v16430_v6, %v7941_v38  ;;  %v4448_v6 = vsel %vm4437_vm4, nan, %v4447_v3  ;;  %p9187_p4 = pnand %p9186_p3, %p9180_p0 }
 0x598   :  { %v16445_v58 = vpop.f32.mrf.mxu1  ;;  %v7746_v63 = vadd.f32 %v17871_v27, %v7613_v1  ;;  %v8069_v22 = vadd.f32 %v8068_v18, %v7948_v33  ;;  %v7857_v7 = vadd.f32 %v17873_v57, %v7744_v29  ;;  %v8062_v19 = vadd.f32 %v16425_v10, %v7939_v42 }
 0x599   :  { %v8070_v45 = vpop.f32.mrf.mxu0  ;;  %v17874_v13 = vld [vmem:[#allocation165_spill] sm:$0xff] }
 0x59a   :  { %v16455_v25 = vpop.f32.mrf.mxu1  ;;  %v8071_v50 = vadd.f32 %v8070_v45, %v7950_v48  ;;  %v7859_v14 = vadd.f32 %v17874_v13, %v7746_v63  ;;  %v7966_v23 = vadd.f32 %v16445_v58, %v7857_v7 }
 0x59b   :  { %v8075_v26 = vpop.f32.mrf.mxu0 }
 0x59c   :  { %v8162_v4 = vpop.f32.mrf.mxu1  ;;  %v8076_v45 = vadd.f32 %v8075_v26, %v7957_v35  ;;  %v7968_v10 = vadd.f32 %v16455_v25, %v7859_v14 }
 0x59d   :  { %v8077_v60 = vpop.f32.mrf.mxu0  ;;  %v8163_v52 = vadd.f32 %v8162_v4, %v8062_v19  ;;  %v4655_v4 = vsel %vm4648_vm12, %v4651_v54, %v4654_v37 }
 0x59e   :  { %v8164_v2 = vpop.f32.mrf.mxu1  ;;  %v8078_v18 = vadd.f32 %v8077_v60, %v7959_v9 }
 0x59f   :  { %v8082_v41 = vpop.f32.mrf.mxu0  ;;  %v8165_v53 = vadd.f32 %v8164_v2, %v8064_v46  ;;  %v16520_v2 = vsub.f32 %v8204_v59, %v16508_v0  ;;  %v8188_v25 = vmul.f32 %v8163_v52, %v17875_v30 }
 0x5a0   :  { %v8169_v62 = vpop.f32.mrf.mxu1  ;;  %v8083_v26 = vadd.f32 %v8082_v41, %v7966_v23 }
 0x5a1   :  { %v8170_v31 = vadd.f32 %v8169_v62, %v8069_v22  ;;  %v8084_v49 = vpop.f32.mrf.mxu0  ;;  %v8189_v28 = vmul.f32 %v8165_v53, %v16434_v43  ;;  %v8281_v1 = vand.u32 4294901760, %v16520_v2  ;;  %v16544_v62 = vand.u32 4294901760, %v8188_v25 }
 0x5a2   :  { %v8171_v12 = vpop.f32.mrf.mxu1  ;;  %v8085_v3 = vadd.f32 %v8084_v49, %v7968_v10 }
 0x5a3   :  { %v8172_v17 = vadd.f32 %v8171_v12, %v8071_v50  ;;  %v8190_v61 = vmul.f32 %v8170_v31, %v16438_v34  ;;  %v4552_v34 = vsel %vm4541_vm9, nan, %v16461_v24  ;;  %v16537_v11 = vand.u32 4294901760, %v8189_v28 }
 0x5a4   :  { %v8176_v47 = vpop.f32.mrf.mxu1  ;;  %v8282_v27 = vsub.f32 %v16520_v2, %v8281_v1  ;;  %v16571_v22 = vsub.f32 %v8188_v25, %v16544_v62 }
 0x5a5   :  { %v8177_v51 = vadd.f32 %v8176_v47, %v8076_v45  ;;  %v8191_v56 = vmul.f32 %v8172_v17, %v16459_v5  ;;  %v17876_v5 = vld [vmem:[#allocation103_spill] sm:$0xff]  ;;  %v16534_v40 = vand.u32 4294901760, %v8190_v61  ;;  %v16564_v63 = vsub.f32 %v8189_v28, %v16537_v11 }
 0x5a6   :  { %v8178_v8 = vpop.f32.mrf.mxu1  ;;  %vm4645_vm11 = vweird.f32 %v17876_v5  ;;  %v8283_v46 = vand.u32 4294901760, %v8282_v27  ;;  %v8358_v31 = vand.u32 4294901760, %v16571_v22 }
 0x5a7   :  { %v8179_v15 = vadd.f32 %v8178_v8, %v8078_v18  ;;  %v8192_v58 = vmul.f32 %v8177_v51, %v16449_v39  ;;  %v16530_v37 = vand.u32 4294901760, %v8191_v56  ;;  %v4656_v48 = vsel %vm4645_vm11, nan, %v4655_v4 }
 0x5a8   :  { %v8183_v60 = vpop.f32.mrf.mxu1  ;;  %v16558_v21 = vsub.f32 %v8190_v61, %v16534_v40  ;;  %v8352_v45 = vand.u32 4294901760, %v16564_v63  ;;  %v8359_v51 = vsub.f32 %v16571_v22, %v8358_v31 }
 0x5a9   :  { %v8193_v36 = vmul.f32 %v8179_v15, %v4448_v6  ;;  %v8184_v20 = vadd.f32 %v8183_v60, %v8083_v26  ;;  %v16524_v16 = vand.u32 4294901760, %v8192_v58  ;;  %v16550_v44 = vsub.f32 %v8191_v56, %v16530_v37  ;;  %v8201_v60 = vpop.permute.xlu0 %8200 }
 0x5aa   :  { %v8185_v39 = vpop.f32.mrf.mxu1  ;;  %v8346_v7 = vand.u32 4294901760, %v16558_v21  ;;  %v8353_v52 = vsub.f32 %v16564_v63, %v8352_v45  ;;  %v8360_v26 = vand.u32 4294901760, %v8359_v51  ;;  %v17877_v56 = vmov 0.0  }
 0x5ab   :  { %v16532_v54 = vand.u32 4294901760, %v8193_v36  ;;  %v8194_v59 = vmul.f32 %v8184_v20, %v4552_v34  ;;  %v8186_v43 = vadd.f32 %v8185_v39, %v8085_v3  ;;  %v16547_v29 = vsub.f32 %v8192_v58, %v16524_v16 }
 0x5ac   :  { %v8340_v57 = vand.u32 4294901760, %v16550_v44  ;;  %v8347_v18 = vsub.f32 %v16558_v21, %v8346_v7  ;;  %v8354_v10 = vand.u32 4294901760, %v8353_v52 }
 0x5ad   :  { %v16540_v55 = vsub.f32 %v8193_v36, %v16532_v54  ;;  %v16542_v24 = vand.u32 4294901760, %v8194_v59  ;;  %v8195_v33 = vmul.f32 %v8186_v43, %v4656_v48  ;;  %v8334_v41 = vand.u32 4294901760, %v16547_v29 }
 0x5ae   :  { %v8341_v14 = vsub.f32 %v16550_v44, %v8340_v57  ;;  %v8348_v8 = vand.u32 4294901760, %v8347_v18 }
 0x5af   :  { %v16553_v38 = vsub.f32 %v8194_v59, %v16542_v24  ;;  %v16555_v50 = vand.u32 4294901760, %v8195_v33  ;;  %v8328_v35 = vand.u32 4294901760, %v16540_v55  ;;  %v8335_v47 = vsub.f32 %v16547_v29, %v8334_v41 }
 0x5b0   :  { %v8342_v6 = vand.u32 4294901760, %v8341_v14 }
 0x5b1   :  { %v8322_v32 = vand.u32 4294901760, %v16553_v38  ;;  %v8315_v42 = vsub.f32 %v8195_v33, %v16555_v50  ;;  %8231 = vmatprep.subr.mxu0 %v16555_v50  ;;  %v8329_v19 = vsub.f32 %v16540_v55, %v8328_v35  ;;  %v8336_v49 = vand.u32 4294901760, %v8335_v47 }
 0x5b2   :  { %8233 = vmatpush1.msra.mxu0 %v16542_v24 }
 0x5b3   :  { %8235 = vmatprep.subr.mxu0 %v16532_v54  ;;  %v8316_v12 = vand.u32 4294901760, %v8315_v42  ;;  %v8323_v9 = vsub.f32 %v16553_v38, %v8322_v32  ;;  %v8330_v53 = vand.u32 4294901760, %v8329_v19 }
 0x5b4   :  { %8237 = vmatpush1.msra.mxu0 %v16524_v16 }
 0x5b5   :  { %8239 = vmatprep.subr.mxu0 %v16530_v37  ;;  %v8317_v17 = vsub.f32 %v8315_v42, %v8316_v12  ;;  %v8324_v23 = vand.u32 4294901760, %v8323_v9 }
 0x5b6   :  { %8241 = vmatpush1.msra.mxu0 %v16534_v40 }
 0x5b7   :  { %8243 = vmatprep.subr.mxu0 %v16537_v11  ;;  %v8318_v13 = vand.u32 4294901760, %v8317_v17 }
 0x5b8   :  { %8245 = vmatpush1.msra.mxu0 %v16544_v62 }
 0x5b9   :  { %8284 = vmatmul.mubr.f32.vlgmr.msra.gmra.mxu0 %v8283_v46  ;;  %8319 = vmatprep.subr.mxu1 %v8318_v13 }
 0x5ba   :  { %8428 = vmatprep.subr.mxu0 %v8315_v42  ;;  %8325 = vmatpush1.msra.mxu1 %v8324_v23 }
 0x5bb   :  { %8431 = vmatpush1.msra.mxu0 %v16553_v38  ;;  %8331 = vmatprep.subr.mxu1 %v8330_v53 }
 0x5bc   :  { %8434 = vmatprep.subr.mxu0 %v16540_v55  ;;  %8337 = vmatpush1.msra.mxu1 %v8336_v49 }
 0x5bd   :  { %8437 = vmatpush1.msra.mxu0 %v16547_v29  ;;  %8343 = vmatprep.subr.mxu1 %v8342_v6 }
 0x5be   :  { %8440 = vmatprep.subr.mxu0 %v16550_v44  ;;  %8349 = vmatpush1.msra.mxu1 %v8348_v8 }
 0x5bf   :  { %8443 = vmatpush1.msra.mxu0 %v16558_v21  ;;  %8355 = vmatprep.subr.mxu1 %v8354_v10 }
 0x5c0   :  { %8446 = vmatprep.subr.mxu0 %v16564_v63  ;;  %8361 = vmatpush1.msra.mxu1 %v8360_v26 }
 0x5c1   :  { %8449 = vmatpush1.msra.mxu0 %v16571_v22  ;;  %8396 = vmatmul.mubr.f32.vlgmr.msra.gmra.mxu1 %v16508_v0 }
 0x5c2   :  { %8482 = vmatprep.mubr.f32.mxu0 %v17877_v56  ;;  %8516 = vmatprep.subr.mxu1 %v16555_v50 }
 0x5c3   :  { %8600 = vmatprep.subr.mxu0 %v8316_v12  ;;  %8485 = vmatmul.mubr.f32.vlgmr.msra.gmra.mxu0 %v16520_v2 }
 0x5c4   :  { %8518 = vmatpush1.msra.mxu1 %v16542_v24  ;;  %8604 = vmatpush1.msra.mxu0 %v8322_v32 }
 0x5c5   :  { %8520 = vmatprep.subr.mxu1 %v16532_v54  ;;  %8608 = vmatprep.subr.mxu0 %v8328_v35 }
 0x5c6   :  { %8522 = vmatpush1.msra.mxu1 %v16524_v16  ;;  %8612 = vmatpush1.msra.mxu0 %v8334_v41 }
 0x5c7   :  { %8524 = vmatprep.subr.mxu1 %v16530_v37  ;;  %8616 = vmatprep.subr.mxu0 %v8340_v57 }
 0x5c8   :  { %8526 = vmatpush1.msra.mxu1 %v16534_v40  ;;  %8620 = vmatpush1.msra.mxu0 %v8346_v7 }
 0x5c9   :  { %8528 = vmatprep.subr.mxu1 %v16537_v11  ;;  %8624 = vmatprep.subr.mxu0 %v8352_v45 }
 0x5ca   :  { %8530 = vmatpush1.msra.mxu1 %v16544_v62  ;;  %8563 = vmatprep.mubr.f32.mxu1 %v17877_v56 }
 0x5cb   :  { %8628 = vmatpush1.msra.mxu0 %v8358_v31  ;;  %8567 = vmatmul.mubr.f32.vlgmr.msra.gmra.mxu1 %v8281_v1 }
 0x5cc   :  { %8694 = vmatprep.subr.mxu1 %v16555_v50  ;;  %8661 = vmatprep.mubr.f32.mxu0 %v17877_v56 }
 0x5cd   :  { %8696 = vmatpush1.msra.mxu1 %v16542_v24  ;;  %8663 = vmatmul.mubr.f32.vlgmr.msra.gmra.mxu0 %v16508_v0 }
 0x5ce   :  { %8698 = vmatprep.subr.mxu1 %v16532_v54  ;;  %8741 = vmatprep.mubr.f32.mxu1 %v17877_v56 }
 0x5cf   :  { %8700 = vmatpush1.msra.mxu1 %v16524_v16 }
 0x5d0   :  { %8702 = vmatprep.subr.mxu1 %v16530_v37 }
 0x5d1   :  { %8704 = vmatpush1.msra.mxu1 %v16534_v40 }
 0x5d2   :  { %8706 = vmatprep.subr.mxu1 %v16537_v11 }
 0x5d3   :  { %8708 = vmatpush1.msra.mxu1 %v16544_v62 }
 0x5d4   :  { %8743 = vmatmul.mubr.f32.vlgmr.msra.gmra.mxu1 %v16508_v0 }
 0x679   :  { %v8285_v15 = vpop.f32.mrf.mxu0 }
 0x67a   :  { %v8286_v28 = vadd.f32 %v8285_v15, %v8201_v60 }
 0x67b   :  { %v8287_v58 = vpop.f32.mrf.mxu0 }
 0x67c   :  { %v8288_v3 = vadd.f32 %v8287_v58, %v8201_v60 }
 0x681   :  { %v8397_v61 = vpop.f32.mrf.mxu1 }
 0x682   :  { %v8398_v36 = vadd.f32 %v8397_v61, %v8286_v28 }
 0x683   :  { %v8399_v4 = vpop.f32.mrf.mxu1  ;;  %v8486_v2 = vpop.f32.mrf.mxu0 }
 0x684   :  { %v8400_v20 = vadd.f32 %v8399_v4, %v8288_v3  ;;  %v8487_v5 = vadd.f32 %v8486_v2, %v8398_v36 }
 0x685   :  { %v8488_v25 = vpop.f32.mrf.mxu0 }
 0x686   :  { %v8489_v39 = vadd.f32 %v8488_v25, %v8400_v20 }
 0x68b   :  { %v8568_v30 = vpop.f32.mrf.mxu1 }
 0x68c   :  { %v8569_v37 = vadd.f32 %v8568_v30, %v8487_v5 }
 0x68d   :  { %v8570_v16 = vpop.f32.mrf.mxu1  ;;  %v8664_v34 = vpop.f32.mrf.mxu0 }
 0x68e   :  { %v8571_v54 = vadd.f32 %v8570_v16, %v8489_v39  ;;  %v8665_v43 = vadd.f32 %v8664_v34, %v8569_v37 }
 0x68f   :  { %v8666_v59 = vpop.f32.mrf.mxu0 }
 0x690   :  { %v8667_v40 = vadd.f32 %v8666_v59, %v8571_v54 }
 0x694   :  { %v8744_v0 = vpop.f32.mrf.mxu1 }
 0x695   :  { %v8745_v1 = vadd.f32 %v8744_v0, %v8665_v43 }
 0x696   :  { %v8746_v48 = vpop.f32.mrf.mxu1 }
 0x697   :  { %v8747_v11 = vadd.f32 %v8746_v48, %v8667_v40 }
 0x699   :  { %v8751_v55 = vcombine.low %v8745_v1, %v8747_v11 }
 0x69b   :  { %8911 = vst.sshfl [vmem:[#allocation2] sm:$0x33 pattern:$0x76325410] %v8751_v55 }
 0x69c   :  { %9190 = shalt.err (!%p9187_p4)
}
 0x69d   :  { %8770 = dma.vmem_to_hbm [thread:$0]  %s8768_s27, 64, %s16635_s7, [#allocation3]  }
 0x69e   :  { %9199 = dma.done.wait [#allocation3], 64  }
 0x69f   :  { %9200 = vsyncadd [#allocation3], 4294967232 }
 0x6a0   :  { %8774 = vsyncpa [#allocation3], 1 }

</bundles_post_ra>
